<compile_context>
chip_gen: v7x
topology: tpu7x:2x2x1
jax: 0.10.0
libtpu: 0.0.40
codegen_flags: <defaults>
</compile_context>

<pallas_src>
import functools
import math
import numpy as np
import jax
import jax.numpy as jnp
from jax.experimental import pallas as pl
from jax.experimental.pallas import tpu as pltpu

LANE = 128      # TPU lane width  -> per-gate / per-direction padded feature width
SUBLANE = 8     # TPU sublane tile -> padded batch size

# Reference-only matmul (ground-truth f32); the kernel itself uses bf16 MXU operands.
_DOT_REF = functools.partial(jnp.dot, preferred_element_type=jnp.float32,
                             precision=jax.lax.Precision.HIGHEST)


def _round_up(n, m):
    return ((n + m - 1) // m) * m


# ----------------------- parameter packing (runs ONCE, plain JAX) -------------------

# PyTorch LSTM gate order is [i, f, g, o]; we pack as [i, f, o, g] so the three sigmoid
# gates are lane-contiguous (one wide EUP call in the kernel).
_GATE_SLOT = (0, 1, 3, 2)   # pytorch gate k -> packed slot


def _pad_gate_cols(w, H, Hp):
    """(rows, 4H) -> (rows, 4Hp): pytorch gate k's H columns land in its packed slot."""
    rows = w.shape[0]
    out = jnp.zeros((rows, 4 * Hp), jnp.float32)
    for k in range(4):
        s = _GATE_SLOT[k]
        out = out.at[:, s * Hp:s * Hp + H].set(w[:, k * H:(k + 1) * H])
    return out


def _pad_dir_rows(w, H, Hp):
    """(2H, C) -> (2Hp, C): forward-feature rows at [0,H), backward rows at [Hp,Hp+H)."""
    out = jnp.zeros((2 * Hp, w.shape[1]), jnp.float32)
    out = out.at[0:H].set(w[0:H])
    out = out.at[Hp:Hp + H].set(w[H:2 * H])
    return out


def _prep_dir(p, H, Hp, first_layer, Dp):
    """Pack one (layer, direction): padded W_ih, W_hh (transposed), bias."""
    w_ih_t = jnp.transpose(p["w_ih"]).astype(jnp.float32)           # (d_in, 4H)
    w_ih_p = _pad_gate_cols(w_ih_t, H, Hp)                           # (d_in, 4Hp)
    if first_layer:
        w_ih_p = jnp.zeros((Dp, 4 * Hp), jnp.float32).at[:w_ih_t.shape[0]].set(w_ih_p)
    else:                                                            # d_in == 2H
        w_ih_p = _pad_dir_rows(w_ih_p, H, Hp)                        # (2Hp, 4Hp)
    u_t = jnp.transpose(p["w_hh"]).astype(jnp.float32)               # (H, 4H)
    u_p = jnp.zeros((Hp, 4 * Hp), jnp.float32).at[:H].set(_pad_gate_cols(u_t, H, Hp))
    b_p = _pad_gate_cols(p["b"].reshape(1, 4 * H).astype(jnp.float32), H, Hp)  # (1,4Hp)
    return w_ih_p, u_p, b_p


def pack_params(params, input_dim, output_dim):
    """One-time packing into MXU-friendly, (8,128)-aligned layouts.
    Matmul operands -> bf16, biases -> f32.  Reused for every forward call."""
    assert len(params["lstm"]) == 2, "kernel is specialized for num_layers=2"
    H = params["lstm"][0]["fwd"]["w_hh"].shape[1]      # w_hh is (4H, H)
    O = output_dim
    Hp = _round_up(H, LANE)
    Dp = _round_up(input_dim, LANE)
    Op = _round_up(O, LANE)
    bf16 = jnp.bfloat16

    w1f, u1f, b1f = _prep_dir(params["lstm"][0]["fwd"], H, Hp, True, Dp)
    w1b, u1b, b1b = _prep_dir(params["lstm"][0]["bwd"], H, Hp, True, Dp)
    w2f, u2f, b2f = _prep_dir(params["lstm"][1]["fwd"], H, Hp, False, Dp)
    w2b, u2b, b2b = _prep_dir(params["lstm"][1]["bwd"], H, Hp, False, Dp)

    wfc_t = jnp.transpose(params["fc"]["w"]).astype(jnp.float32)     # (2H, O)
    wfc = jnp.zeros((2 * Hp, Op), jnp.float32).at[:, :O].set(_pad_dir_rows(wfc_t, H, Hp))
    bfc = jnp.zeros((1, Op), jnp.float32).at[0, :O].set(params["fc"]["b"].astype(jnp.float32))

    return {
        "w1": jnp.concatenate([w1f, w1b], axis=1).astype(bf16),   # (Dp,  8Hp)
        "b1": jnp.concatenate([b1f, b1b], axis=1),                 # (1,   8Hp) f32
        "u1f": u1f.astype(bf16), "u1b": u1b.astype(bf16),          # (Hp,  4Hp)
        "w2": jnp.concatenate([w2f, w2b], axis=1).astype(bf16),   # (2Hp, 8Hp)
        "b2": jnp.concatenate([b2f, b2b], axis=1),                 # (1,   8Hp) f32
        "u2f": u2f.astype(bf16), "u2b": u2b.astype(bf16),          # (Hp,  4Hp)
        "wfc": wfc.astype(bf16),                                   # (2Hp, Op)
        "bfc": bfc,                                                # (1,   Op) f32
    }


# --------------------------------- Pallas kernel -----------------------------------

def _make_kernel(L, Bp, Hp, O):
    G = 4 * Hp          # padded gate width of one direction
    ds = O // 2         # direction split of the FC output (last_timestep semantics)
    bf16 = jnp.bfloat16

    def cell(gx_row, h, c, u_ref):
        # gx_row: (Bp, 4Hp) pre-projected inputs; add recurrent term, apply LSTM cell.
        gates = gx_row + jnp.dot(h.astype(bf16), u_ref[...],
                                 preferred_element_type=jnp.float32)
        sig = jax.nn.sigmoid(gates[:, 0:3 * Hp])      # [i | f | o] in one EUP stream
        i = sig[:, 0:Hp]
        f = sig[:, Hp:2 * Hp]
        o = sig[:, 2 * Hp:3 * Hp]
        g = jnp.tanh(gates[:, 3 * Hp:4 * Hp])
        c = f * c + i * g
        h = o * jnp.tanh(c)
        return h, c

    def kernel(len_ref, x_ref, w1_ref, b1_ref, u1f_ref, u1b_ref,
               w2_ref, b2_ref, u2f_ref, u2b_ref, wfc_ref, bfc_ref,
               out_ref, gx_ref, h1_ref, h2_ref, fcin_ref):

        def run_layer(u_f_ref, u_b_ref, store):
            zero = jnp.zeros((Bp, Hp), jnp.float32)
            hf, cf, hb, cb = zero, zero, zero, zero
            # L is a small static constant -> fully unrolled; every slice is static and
            # (8,128)-tile aligned.  Backward direction reads time L-1-t (no reversed
            # copies in HBM).
            for t in range(L):
                tb = L - 1 - t
                rf, rb = t * Bp, tb * Bp
                hf, cf = cell(gx_ref[rf:rf + Bp, 0:G], hf, cf, u_f_ref)
                hb, cb = cell(gx_ref[rb:rb + Bp, G:2 * G], hb, cb, u_b_ref)
                store(t, tb, hf, hb)

        # ---- Layer 1: one bf16 matmul pre-projects every timestep, both directions ----
        gx_ref[...] = jnp.dot(x_ref[...], w1_ref[...],
                              preferred_element_type=jnp.float32) + b1_ref[...]

        def store1(t, tb, hf, hb):
            h1_ref[t * Bp:(t + 1) * Bp, 0:Hp] = hf
            h1_ref[tb * Bp:(tb + 1) * Bp, Hp:2 * Hp] = hb
        run_layer(u1f_ref, u1b_ref, store1)

        # ---- Layer 2: input is the layer-1 bidirectional output slab (VMEM resident) ----
        gx_ref[...] = jnp.dot(h1_ref[...].astype(bf16), w2_ref[...],
                              preferred_element_type=jnp.float32) + b2_ref[...]

        def store2(t, tb, hf, hb):
            h2_ref[t, :, 0:Hp] = hf
            h2_ref[tb, :, Hp:2 * Hp] = hb
        run_layer(u2f_ref, u2b_ref, store2)

        # ---- FC epilogue only on the rows last_timestep() actually consumes ----
        # forward half of the result = fc(h2[lengths[b]-1])[:ds]
        # backward half            = fc(h2[0])[ds:]
        for b in range(Bp):                              # tiny static loop (Bp = 8)
            t_idx = len_ref[b] - 1                       # scalar from SMEM
            fcin_ref[b:b + 1, :] = h2_ref[t_idx][b:b + 1, :]
        out_a = jnp.dot(fcin_ref[...].astype(bf16), wfc_ref[...],
                        preferred_element_type=jnp.float32) + bfc_ref[...]
        out_b = jnp.dot(h2_ref[0].astype(bf16), wfc_ref[...],
                        preferred_element_type=jnp.float32) + bfc_ref[...]
        lane = jax.lax.broadcasted_iota(jnp.int32, out_a.shape, 1)
        out_ref[...] = jnp.where(lane < ds, out_a, out_b)

    return kernel


# ----------------------------------- forward ---------------------------------------

def basic_lstm_forward(packed, x, lengths, *, output_dim):
    """packed: output of pack_params (precomputed once).
    x: (B, L, D) any numeric dtype (cast to float), lengths: (B,) int32."""
    B, L, D = x.shape
    O = output_dim
    Dp = packed["w1"].shape[0]
    Hp = packed["u1f"].shape[0]
    Op = packed["wfc"].shape[1]
    Bp = _round_up(B, SUBLANE)

    # Per-call input prep: time-major, batch padded to a sublane tile, row = t*Bp + b.
    # (Values are small integers -> exact in bf16.)
    xt = jnp.transpose(x.astype(jnp.float32), (1, 0, 2))                       # (L,B,D)
    x2 = (jnp.zeros((L, Bp, Dp), jnp.float32).at[:, :B, :D].set(xt)
          .reshape(L * Bp, Dp).astype(jnp.bfloat16))
    # lengths padded with 1 so padded batch rows still index a valid timestep.
    len_p = jnp.ones((Bp,), jnp.int32).at[:B].set(
        jnp.clip(lengths.astype(jnp.int32), 1, L))

    smem = pl.BlockSpec(memory_space=pltpu.MemorySpace.SMEM)
    vmem = pl.BlockSpec(memory_space=pltpu.MemorySpace.VMEM)
    out = pl.pallas_call(
        _make_kernel(L, Bp, Hp, O),
        out_shape=jax.ShapeDtypeStruct((Bp, Op), jnp.float32),
        in_specs=[smem] + [vmem] * 11,
        out_specs=vmem,
        scratch_shapes=[
            pltpu.VMEM((L * Bp, 8 * Hp), jnp.float32),   # gx: pre-projected gates (reused per layer)
            pltpu.VMEM((L * Bp, 2 * Hp), jnp.float32),   # layer-1 outputs [fwd | bwd]
            pltpu.VMEM((L, Bp, 2 * Hp), jnp.float32),    # layer-2 outputs (3-D for dyn-time gather)
            pltpu.VMEM((Bp, 2 * Hp), jnp.float32),       # gathered h2[lengths-1] rows
        ],
    )(len_p, x2, packed["w1"], packed["b1"], packed["u1f"], packed["u1b"],
      packed["w2"], packed["b2"], packed["u2f"], packed["u2b"],
      packed["wfc"], packed["bfc"])

    return out[:B, :O]


# ----------------------------------- params ----------------------------------------

def init_params(key, input_dim, rnn_size, output_dim, num_layers):
    H = rnn_size
    k_lstm = 1.0 / math.sqrt(H)
    params = {"lstm": [], "fc": {}}
    for layer in range(num_layers):
        d_in = input_dim if layer == 0 else 2 * H     # bidirectional stacking
        layer_p = {}
        for dname in ("fwd", "bwd"):
            key, k1, k2, k3, k4 = jax.random.split(key, 5)
            w_ih = jax.random.uniform(k1, (4 * H, d_in), jnp.float32, -k_lstm, k_lstm)
            w_hh = jax.random.uniform(k2, (4 * H, H), jnp.float32, -k_lstm, k_lstm)
            b_ih = jax.random.uniform(k3, (4 * H,), jnp.float32, -k_lstm, k_lstm)
            b_hh = jax.random.uniform(k4, (4 * H,), jnp.float32, -k_lstm, k_lstm)
            layer_p[dname] = {"w_ih": w_ih, "w_hh": w_hh, "b": b_ih + b_hh}
        params["lstm"].append(layer_p)
    feature_size = 2 * H
    k_fc = 1.0 / math.sqrt(feature_size)
    key, k1, k2 = jax.random.split(key, 3)
    params["fc"]["w"] = jax.random.uniform(k1, (output_dim, feature_size),
                                           jnp.float32, -k_fc, k_fc)
    params["fc"]["b"] = jax.random.uniform(k2, (output_dim,), jnp.float32, -k_fc, k_fc)
    return params


# ---------------------------------- reference ---------------------------------------

def _lstm_layer_ref(x, w_ih, w_hh, b, reverse=False):
    if reverse:
        x = x[:, ::-1, :]
    B, L, _ = x.shape
    H = w_hh.shape[1]

    def step(carry, x_t):
        h, c = carry
        gates = _DOT_REF(x_t, w_ih.T) + _DOT_REF(h, w_hh.T) + b
        i = jax.nn.sigmoid(gates[:, :H])
        f = jax.nn.sigmoid(gates[:, H:2 * H])
        g = jnp.tanh(gates[:, 2 * H:3 * H])
        o = jax.nn.sigmoid(gates[:, 3 * H:4 * H])
        c = f * c + i * g
        h = o * jnp.tanh(c)
        return (h, c), h

    init = (jnp.zeros((B, H), jnp.float32), jnp.zeros((B, H), jnp.float32))
    _, hs = jax.lax.scan(step, init, jnp.transpose(x, (1, 0, 2)))
    hs = jnp.transpose(hs, (1, 0, 2))
    if reverse:
        hs = hs[:, ::-1, :]
    return hs


def basic_lstm_ref(params, x, lengths):
    h = x.astype(jnp.float32)
    for layer_p in params["lstm"]:
        out_f = _lstm_layer_ref(h, layer_p["fwd"]["w_ih"], layer_p["fwd"]["w_hh"],
                                layer_p["fwd"]["b"], reverse=False)
        out_b = _lstm_layer_ref(h, layer_p["bwd"]["w_ih"], layer_p["bwd"]["w_hh"],
                                layer_p["bwd"]["b"], reverse=True)
        h = jnp.concatenate([out_f, out_b], axis=-1)
    out = jnp.einsum("blf,of->blo", h, params["fc"]["w"],
                     precision=jax.lax.Precision.HIGHEST) + params["fc"]["b"]
    B = out.shape[0]
    ds = out.shape[-1] // 2
    last_forward = out[:, :, :ds][jnp.arange(B), lengths - 1, :]
    last_backward = out[:, :, ds:][:, 0, :]
    return jnp.concatenate([last_forward, last_backward], axis=-1)


# ------------------------------------- main ------------------------------------------

if __name__ == "__main__":
    B, L, INPUT_DIM = 2, 8, 16
    RNN_SIZE, OUTPUT_DIM, NUM_LAYERS = 32, 10, 2

    key = jax.random.PRNGKey(0)
    key, kp, kx, kl = jax.random.split(key, 4)
    params = init_params(kp, INPUT_DIM, RNN_SIZE, OUTPUT_DIM, NUM_LAYERS)

    # int32 input features, cast to float inside forward (mirrors x.float()).
    x = jax.random.randint(kx, (B, L, INPUT_DIM), -3, 4, dtype=jnp.int32)
    lengths = jax.random.randint(kl, (B,), 1, L + 1, dtype=jnp.int32)

    # One-time parameter packing (kept off the per-call path).
    packed = jax.tree_util.tree_map(jax.block_until_ready,
                                    pack_params(params, INPUT_DIM, OUTPUT_DIM))

    fwd = jax.jit(basic_lstm_forward, static_argnames=("output_dim",))
    out = jax.block_until_ready(fwd(packed, x, lengths, output_dim=OUTPUT_DIM))

    ref = jax.block_until_ready(basic_lstm_ref(params, x, lengths))
    assert out.shape == (B, OUTPUT_DIM), out.shape
    # Tolerance reflects single-pass bf16 MXU operands in the kernel vs the f32
    # (Precision.HIGHEST) pure-JAX reference.
    assert np.allclose(np.asarray(out), np.asarray(ref), atol=2e-2, rtol=2e-2), \
        "Pallas output does not match pure-JAX reference"

    print("KERNEL_OK")
</pallas_src>

<mosaic_0001>
module attributes {stable_mosaic.version = 11 : i64} {
  func.func @kernel(%arg0: memref<8xi32, #tpu.memory_space<smem>>, %arg1: memref<64x128xbf16, #tpu.memory_space<vmem>>, %arg2: memref<128x1024xbf16, #tpu.memory_space<vmem>>, %arg3: memref<1x1024xf32, #tpu.memory_space<vmem>>, %arg4: memref<128x512xbf16, #tpu.memory_space<vmem>>, %arg5: memref<128x512xbf16, #tpu.memory_space<vmem>>, %arg6: memref<256x1024xbf16, #tpu.memory_space<vmem>>, %arg7: memref<1x1024xf32, #tpu.memory_space<vmem>>, %arg8: memref<128x512xbf16, #tpu.memory_space<vmem>>, %arg9: memref<128x512xbf16, #tpu.memory_space<vmem>>, %arg10: memref<256x128xbf16, #tpu.memory_space<vmem>>, %arg11: memref<1x128xf32, #tpu.memory_space<vmem>>, %arg12: memref<8x128xf32, #tpu.memory_space<vmem>>, %arg13: memref<64x1024xf32, #tpu.memory_space<vmem>>, %arg14: memref<64x256xf32, #tpu.memory_space<vmem>>, %arg15: memref<8x8x256xf32, #tpu.memory_space<vmem>>, %arg16: memref<8x256xf32, #tpu.memory_space<vmem>>) attributes {dimension_semantics = [], scalar_prefetch = 0 : i64, scratch_operands = 4 : i64, tpu.core_type = #tpu.core_type<tc>} {
    %c0 = arith.constant 0 : index
    %c0_0 = arith.constant 0 : index
    %0 = vector.load %arg1[%c0, %c0_0] : memref<64x128xbf16, #tpu.memory_space<vmem>>, vector<64x128xbf16>
    %c0_1 = arith.constant 0 : index
    %c0_2 = arith.constant 0 : index
    %1 = vector.load %arg2[%c0_1, %c0_2] : memref<128x1024xbf16, #tpu.memory_space<vmem>>, vector<128x1024xbf16>
    %cst = arith.constant dense<0.000000e+00> : vector<64x1024xf32>
    %2 = tpu.matmul %0, %1, %cst {dimension_numbers = #tpu.dot_dimension_numbers<[1], [0], [0], [1], [0, 0, 1, 1], [], []>} : vector<64x128xbf16>, vector<128x1024xbf16>, vector<64x1024xf32> -> vector<64x1024xf32>
    %c0_3 = arith.constant 0 : index
    %c0_4 = arith.constant 0 : index
    %3 = vector.load %arg3[%c0_3, %c0_4] : memref<1x1024xf32, #tpu.memory_space<vmem>>, vector<1x1024xf32>
    %4 = vector.broadcast %3 : vector<1x1024xf32> to vector<64x1024xf32>
    %5 = arith.addf %2, %4 : vector<64x1024xf32>
    %c0_5 = arith.constant 0 : index
    %c0_6 = arith.constant 0 : index
    %6 = vector.load %arg13[%c0_5, %c0_6] : memref<64x1024xf32, #tpu.memory_space<vmem>>, vector<64x1024xf32>
    tpu.vector_store %arg13[%c0_5, %c0_6], %5 {strides = array<i32>} : memref<64x1024xf32, #tpu.memory_space<vmem>>, vector<64x1024xf32>,
    %cst_7 = arith.constant 0.000000e+00 : f32
    %7 = vector.broadcast %cst_7 : f32 to vector<8x128xf32>
    %c0_8 = arith.constant 0 : index
    %c0_9 = arith.constant 0 : index
    %8 = vector.load %arg13[%c0_8, %c0_9] : memref<64x1024xf32, #tpu.memory_space<vmem>>, vector<8x512xf32>
    %9 = arith.truncf %7 : vector<8x128xf32> to vector<8x128xbf16>
    %c0_10 = arith.constant 0 : index
    %c0_11 = arith.constant 0 : index
    %10 = vector.load %arg4[%c0_10, %c0_11] : memref<128x512xbf16, #tpu.memory_space<vmem>>, vector<128x512xbf16>
    %cst_12 = arith.constant dense<0.000000e+00> : vector<8x512xf32>
    %11 = tpu.matmul %9, %10, %cst_12 {dimension_numbers = #tpu.dot_dimension_numbers<[1], [0], [0], [1], [0, 0, 1, 1], [], []>} : vector<8x128xbf16>, vector<128x512xbf16>, vector<8x512xf32> -> vector<8x512xf32>
    %12 = arith.addf %8, %11 : vector<8x512xf32>
    %13 = vector.extract_strided_slice %12 {offsets = [0, 0], sizes = [8, 384], strides = [1, 1]} : vector<8x512xf32> to vector<8x384xf32>
    %14 = arith.negf %13 : vector<8x384xf32>
    %15 = math.exp %14 : vector<8x384xf32>
    %cst_13 = arith.constant 1.000000e+00 : f32
    %16 = vector.broadcast %cst_13 : f32 to vector<8x384xf32>
    %17 = arith.addf %16, %15 : vector<8x384xf32>
    %18 = arith.divf %16, %17 : vector<8x384xf32>
    %19 = vector.extract_strided_slice %18 {offsets = [0, 0], sizes = [8, 128], strides = [1, 1]} : vector<8x384xf32> to vector<8x128xf32>
    %20 = vector.extract_strided_slice %18 {offsets = [0, 128], sizes = [8, 128], strides = [1, 1]} : vector<8x384xf32> to vector<8x128xf32>
    %21 = vector.extract_strided_slice %18 {offsets = [0, 256], sizes = [8, 128], strides = [1, 1]} : vector<8x384xf32> to vector<8x128xf32>
    %22 = vector.extract_strided_slice %12 {offsets = [0, 384], sizes = [8, 128], strides = [1, 1]} : vector<8x512xf32> to vector<8x128xf32>
    %23 = math.tanh %22 : vector<8x128xf32>
    %24 = arith.mulf %20, %7 : vector<8x128xf32>
    %25 = arith.mulf %19, %23 : vector<8x128xf32>
    %26 = arith.addf %24, %25 : vector<8x128xf32>
    %27 = math.tanh %26 : vector<8x128xf32>
    %28 = arith.mulf %21, %27 : vector<8x128xf32>
    %c56 = arith.constant 56 : index
    %c512 = arith.constant 512 : index
    %29 = vector.load %arg13[%c56, %c512] : memref<64x1024xf32, #tpu.memory_space<vmem>>, vector<8x512xf32>
    %30 = arith.truncf %7 : vector<8x128xf32> to vector<8x128xbf16>
    %c0_14 = arith.constant 0 : index
    %c0_15 = arith.constant 0 : index
    %31 = vector.load %arg5[%c0_14, %c0_15] : memref<128x512xbf16, #tpu.memory_space<vmem>>, vector<128x512xbf16>
    %cst_16 = arith.constant dense<0.000000e+00> : vector<8x512xf32>
    %32 = tpu.matmul %30, %31, %cst_16 {dimension_numbers = #tpu.dot_dimension_numbers<[1], [0], [0], [1], [0, 0, 1, 1], [], []>} : vector<8x128xbf16>, vector<128x512xbf16>, vector<8x512xf32> -> vector<8x512xf32>
    %33 = arith.addf %29, %32 : vector<8x512xf32>
    %34 = vector.extract_strided_slice %33 {offsets = [0, 0], sizes = [8, 384], strides = [1, 1]} : vector<8x512xf32> to vector<8x384xf32>
    %35 = arith.negf %34 : vector<8x384xf32>
    %36 = math.exp %35 : vector<8x384xf32>
    %cst_17 = arith.constant 1.000000e+00 : f32
    %37 = vector.broadcast %cst_17 : f32 to vector<8x384xf32>
    %38 = arith.addf %37, %36 : vector<8x384xf32>
    %39 = arith.divf %37, %38 : vector<8x384xf32>
    %40 = vector.extract_strided_slice %39 {offsets = [0, 0], sizes = [8, 128], strides = [1, 1]} : vector<8x384xf32> to vector<8x128xf32>
    %41 = vector.extract_strided_slice %39 {offsets = [0, 128], sizes = [8, 128], strides = [1, 1]} : vector<8x384xf32> to vector<8x128xf32>
    %42 = vector.extract_strided_slice %39 {offsets = [0, 256], sizes = [8, 128], strides = [1, 1]} : vector<8x384xf32> to vector<8x128xf32>
    %43 = vector.extract_strided_slice %33 {offsets = [0, 384], sizes = [8, 128], strides = [1, 1]} : vector<8x512xf32> to vector<8x128xf32>
    %44 = math.tanh %43 : vector<8x128xf32>
    %45 = arith.mulf %41, %7 : vector<8x128xf32>
    %46 = arith.mulf %40, %44 : vector<8x128xf32>
    %47 = arith.addf %45, %46 : vector<8x128xf32>
    %48 = math.tanh %47 : vector<8x128xf32>
    %49 = arith.mulf %42, %48 : vector<8x128xf32>
    %c0_18 = arith.constant 0 : index
    %c0_19 = arith.constant 0 : index
    %50 = vector.load %arg14[%c0_18, %c0_19] : memref<64x256xf32, #tpu.memory_space<vmem>>, vector<8x128xf32>
    tpu.vector_store %arg14[%c0_18, %c0_19], %28 {strides = array<i32>} : memref<64x256xf32, #tpu.memory_space<vmem>>, vector<8x128xf32>,
    %c56_20 = arith.constant 56 : index
    %c128 = arith.constant 128 : index
    %51 = vector.load %arg14[%c56_20, %c128] : memref<64x256xf32, #tpu.memory_space<vmem>>, vector<8x128xf32>
    tpu.vector_store %arg14[%c56_20, %c128], %49 {strides = array<i32>} : memref<64x256xf32, #tpu.memory_space<vmem>>, vector<8x128xf32>,
    %c8 = arith.constant 8 : index
    %c0_21 = arith.constant 0 : index
    %52 = vector.load %arg13[%c8, %c0_21] : memref<64x1024xf32, #tpu.memory_space<vmem>>, vector<8x512xf32>
    %53 = arith.truncf %28 : vector<8x128xf32> to vector<8x128xbf16>
    %c0_22 = arith.constant 0 : index
    %c0_23 = arith.constant 0 : index
    %54 = vector.load %arg4[%c0_22, %c0_23] : memref<128x512xbf16, #tpu.memory_space<vmem>>, vector<128x512xbf16>
    %cst_24 = arith.constant dense<0.000000e+00> : vector<8x512xf32>
    %55 = tpu.matmul %53, %54, %cst_24 {dimension_numbers = #tpu.dot_dimension_numbers<[1], [0], [0], [1], [0, 0, 1, 1], [], []>} : vector<8x128xbf16>, vector<128x512xbf16>, vector<8x512xf32> -> vector<8x512xf32>
    %56 = arith.addf %52, %55 : vector<8x512xf32>
    %57 = vector.extract_strided_slice %56 {offsets = [0, 0], sizes = [8, 384], strides = [1, 1]} : vector<8x512xf32> to vector<8x384xf32>
    %58 = arith.negf %57 : vector<8x384xf32>
    %59 = math.exp %58 : vector<8x384xf32>
    %cst_25 = arith.constant 1.000000e+00 : f32
    %60 = vector.broadcast %cst_25 : f32 to vector<8x384xf32>
    %61 = arith.addf %60, %59 : vector<8x384xf32>
    %62 = arith.divf %60, %61 : vector<8x384xf32>
    %63 = vector.extract_strided_slice %62 {offsets = [0, 0], sizes = [8, 128], strides = [1, 1]} : vector<8x384xf32> to vector<8x128xf32>
    %64 = vector.extract_strided_slice %62 {offsets = [0, 128], sizes = [8, 128], strides = [1, 1]} : vector<8x384xf32> to vector<8x128xf32>
    %65 = vector.extract_strided_slice %62 {offsets = [0, 256], sizes = [8, 128], strides = [1, 1]} : vector<8x384xf32> to vector<8x128xf32>
    %66 = vector.extract_strided_slice %56 {offsets = [0, 384], sizes = [8, 128], strides = [1, 1]} : vector<8x512xf32> to vector<8x128xf32>
    %67 = math.tanh %66 : vector<8x128xf32>
    %68 = arith.mulf %64, %26 : vector<8x128xf32>
    %69 = arith.mulf %63, %67 : vector<8x128xf32>
    %70 = arith.addf %68, %69 : vector<8x128xf32>
    %71 = math.tanh %70 : vector<8x128xf32>
    %72 = arith.mulf %65, %71 : vector<8x128xf32>
    %c48 = arith.constant 48 : index
    %c512_26 = arith.constant 512 : index
    %73 = vector.load %arg13[%c48, %c512_26] : memref<64x1024xf32, #tpu.memory_space<vmem>>, vector<8x512xf32>
    %74 = arith.truncf %49 : vector<8x128xf32> to vector<8x128xbf16>
    %c0_27 = arith.constant 0 : index
    %c0_28 = arith.constant 0 : index
    %75 = vector.load %arg5[%c0_27, %c0_28] : memref<128x512xbf16, #tpu.memory_space<vmem>>, vector<128x512xbf16>
    %cst_29 = arith.constant dense<0.000000e+00> : vector<8x512xf32>
    %76 = tpu.matmul %74, %75, %cst_29 {dimension_numbers = #tpu.dot_dimension_numbers<[1], [0], [0], [1], [0, 0, 1, 1], [], []>} : vector<8x128xbf16>, vector<128x512xbf16>, vector<8x512xf32> -> vector<8x512xf32>
    %77 = arith.addf %73, %76 : vector<8x512xf32>
    %78 = vector.extract_strided_slice %77 {offsets = [0, 0], sizes = [8, 384], strides = [1, 1]} : vector<8x512xf32> to vector<8x384xf32>
    %79 = arith.negf %78 : vector<8x384xf32>
    %80 = math.exp %79 : vector<8x384xf32>
    %cst_30 = arith.constant 1.000000e+00 : f32
    %81 = vector.broadcast %cst_30 : f32 to vector<8x384xf32>
    %82 = arith.addf %81, %80 : vector<8x384xf32>
    %83 = arith.divf %81, %82 : vector<8x384xf32>
    %84 = vector.extract_strided_slice %83 {offsets = [0, 0], sizes = [8, 128], strides = [1, 1]} : vector<8x384xf32> to vector<8x128xf32>
    %85 = vector.extract_strided_slice %83 {offsets = [0, 128], sizes = [8, 128], strides = [1, 1]} : vector<8x384xf32> to vector<8x128xf32>
    %86 = vector.extract_strided_slice %83 {offsets = [0, 256], sizes = [8, 128], strides = [1, 1]} : vector<8x384xf32> to vector<8x128xf32>
    %87 = vector.extract_strided_slice %77 {offsets = [0, 384], sizes = [8, 128], strides = [1, 1]} : vector<8x512xf32> to vector<8x128xf32>
    %88 = math.tanh %87 : vector<8x128xf32>
    %89 = arith.mulf %85, %47 : vector<8x128xf32>
    %90 = arith.mulf %84, %88 : vector<8x128xf32>
    %91 = arith.addf %89, %90 : vector<8x128xf32>
    %92 = math.tanh %91 : vector<8x128xf32>
    %93 = arith.mulf %86, %92 : vector<8x128xf32>
    %c8_31 = arith.constant 8 : index
    %c0_32 = arith.constant 0 : index
    %94 = vector.load %arg14[%c8_31, %c0_32] : memref<64x256xf32, #tpu.memory_space<vmem>>, vector<8x128xf32>
    tpu.vector_store %arg14[%c8_31, %c0_32], %72 {strides = array<i32>} : memref<64x256xf32, #tpu.memory_space<vmem>>, vector<8x128xf32>,
    %c48_33 = arith.constant 48 : index
    %c128_34 = arith.constant 128 : index
    %95 = vector.load %arg14[%c48_33, %c128_34] : memref<64x256xf32, #tpu.memory_space<vmem>>, vector<8x128xf32>
    tpu.vector_store %arg14[%c48_33, %c128_34], %93 {strides = array<i32>} : memref<64x256xf32, #tpu.memory_space<vmem>>, vector<8x128xf32>,
    %c16 = arith.constant 16 : index
    %c0_35 = arith.constant 0 : index
    %96 = vector.load %arg13[%c16, %c0_35] : memref<64x1024xf32, #tpu.memory_space<vmem>>, vector<8x512xf32>
    %97 = arith.truncf %72 : vector<8x128xf32> to vector<8x128xbf16>
    %c0_36 = arith.constant 0 : index
    %c0_37 = arith.constant 0 : index
    %98 = vector.load %arg4[%c0_36, %c0_37] : memref<128x512xbf16, #tpu.memory_space<vmem>>, vector<128x512xbf16>
    %cst_38 = arith.constant dense<0.000000e+00> : vector<8x512xf32>
    %99 = tpu.matmul %97, %98, %cst_38 {dimension_numbers = #tpu.dot_dimension_numbers<[1], [0], [0], [1], [0, 0, 1, 1], [], []>} : vector<8x128xbf16>, vector<128x512xbf16>, vector<8x512xf32> -> vector<8x512xf32>
    %100 = arith.addf %96, %99 : vector<8x512xf32>
    %101 = vector.extract_strided_slice %100 {offsets = [0, 0], sizes = [8, 384], strides = [1, 1]} : vector<8x512xf32> to vector<8x384xf32>
    %102 = arith.negf %101 : vector<8x384xf32>
    %103 = math.exp %102 : vector<8x384xf32>
    %cst_39 = arith.constant 1.000000e+00 : f32
    %104 = vector.broadcast %cst_39 : f32 to vector<8x384xf32>
    %105 = arith.addf %104, %103 : vector<8x384xf32>
    %106 = arith.divf %104, %105 : vector<8x384xf32>
    %107 = vector.extract_strided_slice %106 {offsets = [0, 0], sizes = [8, 128], strides = [1, 1]} : vector<8x384xf32> to vector<8x128xf32>
    %108 = vector.extract_strided_slice %106 {offsets = [0, 128], sizes = [8, 128], strides = [1, 1]} : vector<8x384xf32> to vector<8x128xf32>
    %109 = vector.extract_strided_slice %106 {offsets = [0, 256], sizes = [8, 128], strides = [1, 1]} : vector<8x384xf32> to vector<8x128xf32>
    %110 = vector.extract_strided_slice %100 {offsets = [0, 384], sizes = [8, 128], strides = [1, 1]} : vector<8x512xf32> to vector<8x128xf32>
    %111 = math.tanh %110 : vector<8x128xf32>
    %112 = arith.mulf %108, %70 : vector<8x128xf32>
    %113 = arith.mulf %107, %111 : vector<8x128xf32>
    %114 = arith.addf %112, %113 : vector<8x128xf32>
    %115 = math.tanh %114 : vector<8x128xf32>
    %116 = arith.mulf %109, %115 : vector<8x128xf32>
    %c40 = arith.constant 40 : index
    %c512_40 = arith.constant 512 : index
    %117 = vector.load %arg13[%c40, %c512_40] : memref<64x1024xf32, #tpu.memory_space<vmem>>, vector<8x512xf32>
    %118 = arith.truncf %93 : vector<8x128xf32> to vector<8x128xbf16>
    %c0_41 = arith.constant 0 : index
    %c0_42 = arith.constant 0 : index
    %119 = vector.load %arg5[%c0_41, %c0_42] : memref<128x512xbf16, #tpu.memory_space<vmem>>, vector<128x512xbf16>
    %cst_43 = arith.constant dense<0.000000e+00> : vector<8x512xf32>
    %120 = tpu.matmul %118, %119, %cst_43 {dimension_numbers = #tpu.dot_dimension_numbers<[1], [0], [0], [1], [0, 0, 1, 1], [], []>} : vector<8x128xbf16>, vector<128x512xbf16>, vector<8x512xf32> -> vector<8x512xf32>
    %121 = arith.addf %117, %120 : vector<8x512xf32>
    %122 = vector.extract_strided_slice %121 {offsets = [0, 0], sizes = [8, 384], strides = [1, 1]} : vector<8x512xf32> to vector<8x384xf32>
    %123 = arith.negf %122 : vector<8x384xf32>
    %124 = math.exp %123 : vector<8x384xf32>
    %cst_44 = arith.constant 1.000000e+00 : f32
    %125 = vector.broadcast %cst_44 : f32 to vector<8x384xf32>
    %126 = arith.addf %125, %124 : vector<8x384xf32>
    %127 = arith.divf %125, %126 : vector<8x384xf32>
    %128 = vector.extract_strided_slice %127 {offsets = [0, 0], sizes = [8, 128], strides = [1, 1]} : vector<8x384xf32> to vector<8x128xf32>
    %129 = vector.extract_strided_slice %127 {offsets = [0, 128], sizes = [8, 128], strides = [1, 1]} : vector<8x384xf32> to vector<8x128xf32>
    %130 = vector.extract_strided_slice %127 {offsets = [0, 256], sizes = [8, 128], strides = [1, 1]} : vector<8x384xf32> to vector<8x128xf32>
    %131 = vector.extract_strided_slice %121 {offsets = [0, 384], sizes = [8, 128], strides = [1, 1]} : vector<8x512xf32> to vector<8x128xf32>
    %132 = math.tanh %131 : vector<8x128xf32>
    %133 = arith.mulf %129, %91 : vector<8x128xf32>
    %134 = arith.mulf %128, %132 : vector<8x128xf32>
    %135 = arith.addf %133, %134 : vector<8x128xf32>
    %136 = math.tanh %135 : vector<8x128xf32>
    %137 = arith.mulf %130, %136 : vector<8x128xf32>
    %c16_45 = arith.constant 16 : index
    %c0_46 = arith.constant 0 : index
    %138 = vector.load %arg14[%c16_45, %c0_46] : memref<64x256xf32, #tpu.memory_space<vmem>>, vector<8x128xf32>
    tpu.vector_store %arg14[%c16_45, %c0_46], %116 {strides = array<i32>} : memref<64x256xf32, #tpu.memory_space<vmem>>, vector<8x128xf32>,
    %c40_47 = arith.constant 40 : index
    %c128_48 = arith.constant 128 : index
    %139 = vector.load %arg14[%c40_47, %c128_48] : memref<64x256xf32, #tpu.memory_space<vmem>>, vector<8x128xf32>
    tpu.vector_store %arg14[%c40_47, %c128_48], %137 {strides = array<i32>} : memref<64x256xf32, #tpu.memory_space<vmem>>, vector<8x128xf32>,
    %c24 = arith.constant 24 : index
    %c0_49 = arith.constant 0 : index
    %140 = vector.load %arg13[%c24, %c0_49] : memref<64x1024xf32, #tpu.memory_space<vmem>>, vector<8x512xf32>
    %141 = arith.truncf %116 : vector<8x128xf32> to vector<8x128xbf16>
    %c0_50 = arith.constant 0 : index
    %c0_51 = arith.constant 0 : index
    %142 = vector.load %arg4[%c0_50, %c0_51] : memref<128x512xbf16, #tpu.memory_space<vmem>>, vector<128x512xbf16>
    %cst_52 = arith.constant dense<0.000000e+00> : vector<8x512xf32>
    %143 = tpu.matmul %141, %142, %cst_52 {dimension_numbers = #tpu.dot_dimension_numbers<[1], [0], [0], [1], [0, 0, 1, 1], [], []>} : vector<8x128xbf16>, vector<128x512xbf16>, vector<8x512xf32> -> vector<8x512xf32>
    %144 = arith.addf %140, %143 : vector<8x512xf32>
    %145 = vector.extract_strided_slice %144 {offsets = [0, 0], sizes = [8, 384], strides = [1, 1]} : vector<8x512xf32> to vector<8x384xf32>
    %146 = arith.negf %145 : vector<8x384xf32>
    %147 = math.exp %146 : vector<8x384xf32>
    %cst_53 = arith.constant 1.000000e+00 : f32
    %148 = vector.broadcast %cst_53 : f32 to vector<8x384xf32>
    %149 = arith.addf %148, %147 : vector<8x384xf32>
    %150 = arith.divf %148, %149 : vector<8x384xf32>
    %151 = vector.extract_strided_slice %150 {offsets = [0, 0], sizes = [8, 128], strides = [1, 1]} : vector<8x384xf32> to vector<8x128xf32>
    %152 = vector.extract_strided_slice %150 {offsets = [0, 128], sizes = [8, 128], strides = [1, 1]} : vector<8x384xf32> to vector<8x128xf32>
    %153 = vector.extract_strided_slice %150 {offsets = [0, 256], sizes = [8, 128], strides = [1, 1]} : vector<8x384xf32> to vector<8x128xf32>
    %154 = vector.extract_strided_slice %144 {offsets = [0, 384], sizes = [8, 128], strides = [1, 1]} : vector<8x512xf32> to vector<8x128xf32>
    %155 = math.tanh %154 : vector<8x128xf32>
    %156 = arith.mulf %152, %114 : vector<8x128xf32>
    %157 = arith.mulf %151, %155 : vector<8x128xf32>
    %158 = arith.addf %156, %157 : vector<8x128xf32>
    %159 = math.tanh %158 : vector<8x128xf32>
    %160 = arith.mulf %153, %159 : vector<8x128xf32>
    %c32 = arith.constant 32 : index
    %c512_54 = arith.constant 512 : index
    %161 = vector.load %arg13[%c32, %c512_54] : memref<64x1024xf32, #tpu.memory_space<vmem>>, vector<8x512xf32>
    %162 = arith.truncf %137 : vector<8x128xf32> to vector<8x128xbf16>
    %c0_55 = arith.constant 0 : index
    %c0_56 = arith.constant 0 : index
    %163 = vector.load %arg5[%c0_55, %c0_56] : memref<128x512xbf16, #tpu.memory_space<vmem>>, vector<128x512xbf16>
    %cst_57 = arith.constant dense<0.000000e+00> : vector<8x512xf32>
    %164 = tpu.matmul %162, %163, %cst_57 {dimension_numbers = #tpu.dot_dimension_numbers<[1], [0], [0], [1], [0, 0, 1, 1], [], []>} : vector<8x128xbf16>, vector<128x512xbf16>, vector<8x512xf32> -> vector<8x512xf32>
    %165 = arith.addf %161, %164 : vector<8x512xf32>
    %166 = vector.extract_strided_slice %165 {offsets = [0, 0], sizes = [8, 384], strides = [1, 1]} : vector<8x512xf32> to vector<8x384xf32>
    %167 = arith.negf %166 : vector<8x384xf32>
    %168 = math.exp %167 : vector<8x384xf32>
    %cst_58 = arith.constant 1.000000e+00 : f32
    %169 = vector.broadcast %cst_58 : f32 to vector<8x384xf32>
    %170 = arith.addf %169, %168 : vector<8x384xf32>
    %171 = arith.divf %169, %170 : vector<8x384xf32>
    %172 = vector.extract_strided_slice %171 {offsets = [0, 0], sizes = [8, 128], strides = [1, 1]} : vector<8x384xf32> to vector<8x128xf32>
    %173 = vector.extract_strided_slice %171 {offsets = [0, 128], sizes = [8, 128], strides = [1, 1]} : vector<8x384xf32> to vector<8x128xf32>
    %174 = vector.extract_strided_slice %171 {offsets = [0, 256], sizes = [8, 128], strides = [1, 1]} : vector<8x384xf32> to vector<8x128xf32>
    %175 = vector.extract_strided_slice %165 {offsets = [0, 384], sizes = [8, 128], strides = [1, 1]} : vector<8x512xf32> to vector<8x128xf32>
    %176 = math.tanh %175 : vector<8x128xf32>
    %177 = arith.mulf %173, %135 : vector<8x128xf32>
    %178 = arith.mulf %172, %176 : vector<8x128xf32>
    %179 = arith.addf %177, %178 : vector<8x128xf32>
    %180 = math.tanh %179 : vector<8x128xf32>
    %181 = arith.mulf %174, %180 : vector<8x128xf32>
    %c24_59 = arith.constant 24 : index
    %c0_60 = arith.constant 0 : index
    %182 = vector.load %arg14[%c24_59, %c0_60] : memref<64x256xf32, #tpu.memory_space<vmem>>, vector<8x128xf32>
    tpu.vector_store %arg14[%c24_59, %c0_60], %160 {strides = array<i32>} : memref<64x256xf32, #tpu.memory_space<vmem>>, vector<8x128xf32>,
    %c32_61 = arith.constant 32 : index
    %c128_62 = arith.constant 128 : index
    %183 = vector.load %arg14[%c32_61, %c128_62] : memref<64x256xf32, #tpu.memory_space<vmem>>, vector<8x128xf32>
    tpu.vector_store %arg14[%c32_61, %c128_62], %181 {strides = array<i32>} : memref<64x256xf32, #tpu.memory_space<vmem>>, vector<8x128xf32>,
    %c32_63 = arith.constant 32 : index
    %c0_64 = arith.constant 0 : index
    %184 = vector.load %arg13[%c32_63, %c0_64] : memref<64x1024xf32, #tpu.memory_space<vmem>>, vector<8x512xf32>
    %185 = arith.truncf %160 : vector<8x128xf32> to vector<8x128xbf16>
    %c0_65 = arith.constant 0 : index
    %c0_66 = arith.constant 0 : index
    %186 = vector.load %arg4[%c0_65, %c0_66] : memref<128x512xbf16, #tpu.memory_space<vmem>>, vector<128x512xbf16>
    %cst_67 = arith.constant dense<0.000000e+00> : vector<8x512xf32>
    %187 = tpu.matmul %185, %186, %cst_67 {dimension_numbers = #tpu.dot_dimension_numbers<[1], [0], [0], [1], [0, 0, 1, 1], [], []>} : vector<8x128xbf16>, vector<128x512xbf16>, vector<8x512xf32> -> vector<8x512xf32>
    %188 = arith.addf %184, %187 : vector<8x512xf32>
    %189 = vector.extract_strided_slice %188 {offsets = [0, 0], sizes = [8, 384], strides = [1, 1]} : vector<8x512xf32> to vector<8x384xf32>
    %190 = arith.negf %189 : vector<8x384xf32>
    %191 = math.exp %190 : vector<8x384xf32>
    %cst_68 = arith.constant 1.000000e+00 : f32
    %192 = vector.broadcast %cst_68 : f32 to vector<8x384xf32>
    %193 = arith.addf %192, %191 : vector<8x384xf32>
    %194 = arith.divf %192, %193 : vector<8x384xf32>
    %195 = vector.extract_strided_slice %194 {offsets = [0, 0], sizes = [8, 128], strides = [1, 1]} : vector<8x384xf32> to vector<8x128xf32>
    %196 = vector.extract_strided_slice %194 {offsets = [0, 128], sizes = [8, 128], strides = [1, 1]} : vector<8x384xf32> to vector<8x128xf32>
    %197 = vector.extract_strided_slice %194 {offsets = [0, 256], sizes = [8, 128], strides = [1, 1]} : vector<8x384xf32> to vector<8x128xf32>
    %198 = vector.extract_strided_slice %188 {offsets = [0, 384], sizes = [8, 128], strides = [1, 1]} : vector<8x512xf32> to vector<8x128xf32>
    %199 = math.tanh %198 : vector<8x128xf32>
    %200 = arith.mulf %196, %158 : vector<8x128xf32>
    %201 = arith.mulf %195, %199 : vector<8x128xf32>
    %202 = arith.addf %200, %201 : vector<8x128xf32>
    %203 = math.tanh %202 : vector<8x128xf32>
    %204 = arith.mulf %197, %203 : vector<8x128xf32>
    %c24_69 = arith.constant 24 : index
    %c512_70 = arith.constant 512 : index
    %205 = vector.load %arg13[%c24_69, %c512_70] : memref<64x1024xf32, #tpu.memory_space<vmem>>, vector<8x512xf32>
    %206 = arith.truncf %181 : vector<8x128xf32> to vector<8x128xbf16>
    %c0_71 = arith.constant 0 : index
    %c0_72 = arith.constant 0 : index
    %207 = vector.load %arg5[%c0_71, %c0_72] : memref<128x512xbf16, #tpu.memory_space<vmem>>, vector<128x512xbf16>
    %cst_73 = arith.constant dense<0.000000e+00> : vector<8x512xf32>
    %208 = tpu.matmul %206, %207, %cst_73 {dimension_numbers = #tpu.dot_dimension_numbers<[1], [0], [0], [1], [0, 0, 1, 1], [], []>} : vector<8x128xbf16>, vector<128x512xbf16>, vector<8x512xf32> -> vector<8x512xf32>
    %209 = arith.addf %205, %208 : vector<8x512xf32>
    %210 = vector.extract_strided_slice %209 {offsets = [0, 0], sizes = [8, 384], strides = [1, 1]} : vector<8x512xf32> to vector<8x384xf32>
    %211 = arith.negf %210 : vector<8x384xf32>
    %212 = math.exp %211 : vector<8x384xf32>
    %cst_74 = arith.constant 1.000000e+00 : f32
    %213 = vector.broadcast %cst_74 : f32 to vector<8x384xf32>
    %214 = arith.addf %213, %212 : vector<8x384xf32>
    %215 = arith.divf %213, %214 : vector<8x384xf32>
    %216 = vector.extract_strided_slice %215 {offsets = [0, 0], sizes = [8, 128], strides = [1, 1]} : vector<8x384xf32> to vector<8x128xf32>
    %217 = vector.extract_strided_slice %215 {offsets = [0, 128], sizes = [8, 128], strides = [1, 1]} : vector<8x384xf32> to vector<8x128xf32>
    %218 = vector.extract_strided_slice %215 {offsets = [0, 256], sizes = [8, 128], strides = [1, 1]} : vector<8x384xf32> to vector<8x128xf32>
    %219 = vector.extract_strided_slice %209 {offsets = [0, 384], sizes = [8, 128], strides = [1, 1]} : vector<8x512xf32> to vector<8x128xf32>
    %220 = math.tanh %219 : vector<8x128xf32>
    %221 = arith.mulf %217, %179 : vector<8x128xf32>
    %222 = arith.mulf %216, %220 : vector<8x128xf32>
    %223 = arith.addf %221, %222 : vector<8x128xf32>
    %224 = math.tanh %223 : vector<8x128xf32>
    %225 = arith.mulf %218, %224 : vector<8x128xf32>
    %c32_75 = arith.constant 32 : index
    %c0_76 = arith.constant 0 : index
    %226 = vector.load %arg14[%c32_75, %c0_76] : memref<64x256xf32, #tpu.memory_space<vmem>>, vector<8x128xf32>
    tpu.vector_store %arg14[%c32_75, %c0_76], %204 {strides = array<i32>} : memref<64x256xf32, #tpu.memory_space<vmem>>, vector<8x128xf32>,
    %c24_77 = arith.constant 24 : index
    %c128_78 = arith.constant 128 : index
    %227 = vector.load %arg14[%c24_77, %c128_78] : memref<64x256xf32, #tpu.memory_space<vmem>>, vector<8x128xf32>
    tpu.vector_store %arg14[%c24_77, %c128_78], %225 {strides = array<i32>} : memref<64x256xf32, #tpu.memory_space<vmem>>, vector<8x128xf32>,
    %c40_79 = arith.constant 40 : index
    %c0_80 = arith.constant 0 : index
    %228 = vector.load %arg13[%c40_79, %c0_80] : memref<64x1024xf32, #tpu.memory_space<vmem>>, vector<8x512xf32>
    %229 = arith.truncf %204 : vector<8x128xf32> to vector<8x128xbf16>
    %c0_81 = arith.constant 0 : index
    %c0_82 = arith.constant 0 : index
    %230 = vector.load %arg4[%c0_81, %c0_82] : memref<128x512xbf16, #tpu.memory_space<vmem>>, vector<128x512xbf16>
    %cst_83 = arith.constant dense<0.000000e+00> : vector<8x512xf32>
    %231 = tpu.matmul %229, %230, %cst_83 {dimension_numbers = #tpu.dot_dimension_numbers<[1], [0], [0], [1], [0, 0, 1, 1], [], []>} : vector<8x128xbf16>, vector<128x512xbf16>, vector<8x512xf32> -> vector<8x512xf32>
    %232 = arith.addf %228, %231 : vector<8x512xf32>
    %233 = vector.extract_strided_slice %232 {offsets = [0, 0], sizes = [8, 384], strides = [1, 1]} : vector<8x512xf32> to vector<8x384xf32>
    %234 = arith.negf %233 : vector<8x384xf32>
    %235 = math.exp %234 : vector<8x384xf32>
    %cst_84 = arith.constant 1.000000e+00 : f32
    %236 = vector.broadcast %cst_84 : f32 to vector<8x384xf32>
    %237 = arith.addf %236, %235 : vector<8x384xf32>
    %238 = arith.divf %236, %237 : vector<8x384xf32>
    %239 = vector.extract_strided_slice %238 {offsets = [0, 0], sizes = [8, 128], strides = [1, 1]} : vector<8x384xf32> to vector<8x128xf32>
    %240 = vector.extract_strided_slice %238 {offsets = [0, 128], sizes = [8, 128], strides = [1, 1]} : vector<8x384xf32> to vector<8x128xf32>
    %241 = vector.extract_strided_slice %238 {offsets = [0, 256], sizes = [8, 128], strides = [1, 1]} : vector<8x384xf32> to vector<8x128xf32>
    %242 = vector.extract_strided_slice %232 {offsets = [0, 384], sizes = [8, 128], strides = [1, 1]} : vector<8x512xf32> to vector<8x128xf32>
    %243 = math.tanh %242 : vector<8x128xf32>
    %244 = arith.mulf %240, %202 : vector<8x128xf32>
    %245 = arith.mulf %239, %243 : vector<8x128xf32>
    %246 = arith.addf %244, %245 : vector<8x128xf32>
    %247 = math.tanh %246 : vector<8x128xf32>
    %248 = arith.mulf %241, %247 : vector<8x128xf32>
    %c16_85 = arith.constant 16 : index
    %c512_86 = arith.constant 512 : index
    %249 = vector.load %arg13[%c16_85, %c512_86] : memref<64x1024xf32, #tpu.memory_space<vmem>>, vector<8x512xf32>
    %250 = arith.truncf %225 : vector<8x128xf32> to vector<8x128xbf16>
    %c0_87 = arith.constant 0 : index
    %c0_88 = arith.constant 0 : index
    %251 = vector.load %arg5[%c0_87, %c0_88] : memref<128x512xbf16, #tpu.memory_space<vmem>>, vector<128x512xbf16>
    %cst_89 = arith.constant dense<0.000000e+00> : vector<8x512xf32>
    %252 = tpu.matmul %250, %251, %cst_89 {dimension_numbers = #tpu.dot_dimension_numbers<[1], [0], [0], [1], [0, 0, 1, 1], [], []>} : vector<8x128xbf16>, vector<128x512xbf16>, vector<8x512xf32> -> vector<8x512xf32>
    %253 = arith.addf %249, %252 : vector<8x512xf32>
    %254 = vector.extract_strided_slice %253 {offsets = [0, 0], sizes = [8, 384], strides = [1, 1]} : vector<8x512xf32> to vector<8x384xf32>
    %255 = arith.negf %254 : vector<8x384xf32>
    %256 = math.exp %255 : vector<8x384xf32>
    %cst_90 = arith.constant 1.000000e+00 : f32
    %257 = vector.broadcast %cst_90 : f32 to vector<8x384xf32>
    %258 = arith.addf %257, %256 : vector<8x384xf32>
    %259 = arith.divf %257, %258 : vector<8x384xf32>
    %260 = vector.extract_strided_slice %259 {offsets = [0, 0], sizes = [8, 128], strides = [1, 1]} : vector<8x384xf32> to vector<8x128xf32>
    %261 = vector.extract_strided_slice %259 {offsets = [0, 128], sizes = [8, 128], strides = [1, 1]} : vector<8x384xf32> to vector<8x128xf32>
    %262 = vector.extract_strided_slice %259 {offsets = [0, 256], sizes = [8, 128], strides = [1, 1]} : vector<8x384xf32> to vector<8x128xf32>
    %263 = vector.extract_strided_slice %253 {offsets = [0, 384], sizes = [8, 128], strides = [1, 1]} : vector<8x512xf32> to vector<8x128xf32>
    %264 = math.tanh %263 : vector<8x128xf32>
    %265 = arith.mulf %261, %223 : vector<8x128xf32>
    %266 = arith.mulf %260, %264 : vector<8x128xf32>
    %267 = arith.addf %265, %266 : vector<8x128xf32>
    %268 = math.tanh %267 : vector<8x128xf32>
    %269 = arith.mulf %262, %268 : vector<8x128xf32>
    %c40_91 = arith.constant 40 : index
    %c0_92 = arith.constant 0 : index
    %270 = vector.load %arg14[%c40_91, %c0_92] : memref<64x256xf32, #tpu.memory_space<vmem>>, vector<8x128xf32>
    tpu.vector_store %arg14[%c40_91, %c0_92], %248 {strides = array<i32>} : memref<64x256xf32, #tpu.memory_space<vmem>>, vector<8x128xf32>,
    %c16_93 = arith.constant 16 : index
    %c128_94 = arith.constant 128 : index
    %271 = vector.load %arg14[%c16_93, %c128_94] : memref<64x256xf32, #tpu.memory_space<vmem>>, vector<8x128xf32>
    tpu.vector_store %arg14[%c16_93, %c128_94], %269 {strides = array<i32>} : memref<64x256xf32, #tpu.memory_space<vmem>>, vector<8x128xf32>,
    %c48_95 = arith.constant 48 : index
    %c0_96 = arith.constant 0 : index
    %272 = vector.load %arg13[%c48_95, %c0_96] : memref<64x1024xf32, #tpu.memory_space<vmem>>, vector<8x512xf32>
    %273 = arith.truncf %248 : vector<8x128xf32> to vector<8x128xbf16>
    %c0_97 = arith.constant 0 : index
    %c0_98 = arith.constant 0 : index
    %274 = vector.load %arg4[%c0_97, %c0_98] : memref<128x512xbf16, #tpu.memory_space<vmem>>, vector<128x512xbf16>
    %cst_99 = arith.constant dense<0.000000e+00> : vector<8x512xf32>
    %275 = tpu.matmul %273, %274, %cst_99 {dimension_numbers = #tpu.dot_dimension_numbers<[1], [0], [0], [1], [0, 0, 1, 1], [], []>} : vector<8x128xbf16>, vector<128x512xbf16>, vector<8x512xf32> -> vector<8x512xf32>
    %276 = arith.addf %272, %275 : vector<8x512xf32>
    %277 = vector.extract_strided_slice %276 {offsets = [0, 0], sizes = [8, 384], strides = [1, 1]} : vector<8x512xf32> to vector<8x384xf32>
    %278 = arith.negf %277 : vector<8x384xf32>
    %279 = math.exp %278 : vector<8x384xf32>
    %cst_100 = arith.constant 1.000000e+00 : f32
    %280 = vector.broadcast %cst_100 : f32 to vector<8x384xf32>
    %281 = arith.addf %280, %279 : vector<8x384xf32>
    %282 = arith.divf %280, %281 : vector<8x384xf32>
    %283 = vector.extract_strided_slice %282 {offsets = [0, 0], sizes = [8, 128], strides = [1, 1]} : vector<8x384xf32> to vector<8x128xf32>
    %284 = vector.extract_strided_slice %282 {offsets = [0, 128], sizes = [8, 128], strides = [1, 1]} : vector<8x384xf32> to vector<8x128xf32>
    %285 = vector.extract_strided_slice %282 {offsets = [0, 256], sizes = [8, 128], strides = [1, 1]} : vector<8x384xf32> to vector<8x128xf32>
    %286 = vector.extract_strided_slice %276 {offsets = [0, 384], sizes = [8, 128], strides = [1, 1]} : vector<8x512xf32> to vector<8x128xf32>
    %287 = math.tanh %286 : vector<8x128xf32>
    %288 = arith.mulf %284, %246 : vector<8x128xf32>
    %289 = arith.mulf %283, %287 : vector<8x128xf32>
    %290 = arith.addf %288, %289 : vector<8x128xf32>
    %291 = math.tanh %290 : vector<8x128xf32>
    %292 = arith.mulf %285, %291 : vector<8x128xf32>
    %c8_101 = arith.constant 8 : index
    %c512_102 = arith.constant 512 : index
    %293 = vector.load %arg13[%c8_101, %c512_102] : memref<64x1024xf32, #tpu.memory_space<vmem>>, vector<8x512xf32>
    %294 = arith.truncf %269 : vector<8x128xf32> to vector<8x128xbf16>
    %c0_103 = arith.constant 0 : index
    %c0_104 = arith.constant 0 : index
    %295 = vector.load %arg5[%c0_103, %c0_104] : memref<128x512xbf16, #tpu.memory_space<vmem>>, vector<128x512xbf16>
    %cst_105 = arith.constant dense<0.000000e+00> : vector<8x512xf32>
    %296 = tpu.matmul %294, %295, %cst_105 {dimension_numbers = #tpu.dot_dimension_numbers<[1], [0], [0], [1], [0, 0, 1, 1], [], []>} : vector<8x128xbf16>, vector<128x512xbf16>, vector<8x512xf32> -> vector<8x512xf32>
    %297 = arith.addf %293, %296 : vector<8x512xf32>
    %298 = vector.extract_strided_slice %297 {offsets = [0, 0], sizes = [8, 384], strides = [1, 1]} : vector<8x512xf32> to vector<8x384xf32>
    %299 = arith.negf %298 : vector<8x384xf32>
    %300 = math.exp %299 : vector<8x384xf32>
    %cst_106 = arith.constant 1.000000e+00 : f32
    %301 = vector.broadcast %cst_106 : f32 to vector<8x384xf32>
    %302 = arith.addf %301, %300 : vector<8x384xf32>
    %303 = arith.divf %301, %302 : vector<8x384xf32>
    %304 = vector.extract_strided_slice %303 {offsets = [0, 0], sizes = [8, 128], strides = [1, 1]} : vector<8x384xf32> to vector<8x128xf32>
    %305 = vector.extract_strided_slice %303 {offsets = [0, 128], sizes = [8, 128], strides = [1, 1]} : vector<8x384xf32> to vector<8x128xf32>
    %306 = vector.extract_strided_slice %303 {offsets = [0, 256], sizes = [8, 128], strides = [1, 1]} : vector<8x384xf32> to vector<8x128xf32>
    %307 = vector.extract_strided_slice %297 {offsets = [0, 384], sizes = [8, 128], strides = [1, 1]} : vector<8x512xf32> to vector<8x128xf32>
    %308 = math.tanh %307 : vector<8x128xf32>
    %309 = arith.mulf %305, %267 : vector<8x128xf32>
    %310 = arith.mulf %304, %308 : vector<8x128xf32>
    %311 = arith.addf %309, %310 : vector<8x128xf32>
    %312 = math.tanh %311 : vector<8x128xf32>
    %313 = arith.mulf %306, %312 : vector<8x128xf32>
    %c48_107 = arith.constant 48 : index
    %c0_108 = arith.constant 0 : index
    %314 = vector.load %arg14[%c48_107, %c0_108] : memref<64x256xf32, #tpu.memory_space<vmem>>, vector<8x128xf32>
    tpu.vector_store %arg14[%c48_107, %c0_108], %292 {strides = array<i32>} : memref<64x256xf32, #tpu.memory_space<vmem>>, vector<8x128xf32>,
    %c8_109 = arith.constant 8 : index
    %c128_110 = arith.constant 128 : index
    %315 = vector.load %arg14[%c8_109, %c128_110] : memref<64x256xf32, #tpu.memory_space<vmem>>, vector<8x128xf32>
    tpu.vector_store %arg14[%c8_109, %c128_110], %313 {strides = array<i32>} : memref<64x256xf32, #tpu.memory_space<vmem>>, vector<8x128xf32>,
    %c56_111 = arith.constant 56 : index
    %c0_112 = arith.constant 0 : index
    %316 = vector.load %arg13[%c56_111, %c0_112] : memref<64x1024xf32, #tpu.memory_space<vmem>>, vector<8x512xf32>
    %317 = arith.truncf %292 : vector<8x128xf32> to vector<8x128xbf16>
    %c0_113 = arith.constant 0 : index
    %c0_114 = arith.constant 0 : index
    %318 = vector.load %arg4[%c0_113, %c0_114] : memref<128x512xbf16, #tpu.memory_space<vmem>>, vector<128x512xbf16>
    %cst_115 = arith.constant dense<0.000000e+00> : vector<8x512xf32>
    %319 = tpu.matmul %317, %318, %cst_115 {dimension_numbers = #tpu.dot_dimension_numbers<[1], [0], [0], [1], [0, 0, 1, 1], [], []>} : vector<8x128xbf16>, vector<128x512xbf16>, vector<8x512xf32> -> vector<8x512xf32>
    %320 = arith.addf %316, %319 : vector<8x512xf32>
    %321 = vector.extract_strided_slice %320 {offsets = [0, 0], sizes = [8, 384], strides = [1, 1]} : vector<8x512xf32> to vector<8x384xf32>
    %322 = arith.negf %321 : vector<8x384xf32>
    %323 = math.exp %322 : vector<8x384xf32>
    %cst_116 = arith.constant 1.000000e+00 : f32
    %324 = vector.broadcast %cst_116 : f32 to vector<8x384xf32>
    %325 = arith.addf %324, %323 : vector<8x384xf32>
    %326 = arith.divf %324, %325 : vector<8x384xf32>
    %327 = vector.extract_strided_slice %326 {offsets = [0, 0], sizes = [8, 128], strides = [1, 1]} : vector<8x384xf32> to vector<8x128xf32>
    %328 = vector.extract_strided_slice %326 {offsets = [0, 128], sizes = [8, 128], strides = [1, 1]} : vector<8x384xf32> to vector<8x128xf32>
    %329 = vector.extract_strided_slice %326 {offsets = [0, 256], sizes = [8, 128], strides = [1, 1]} : vector<8x384xf32> to vector<8x128xf32>
    %330 = vector.extract_strided_slice %320 {offsets = [0, 384], sizes = [8, 128], strides = [1, 1]} : vector<8x512xf32> to vector<8x128xf32>
    %331 = math.tanh %330 : vector<8x128xf32>
    %332 = arith.mulf %328, %290 : vector<8x128xf32>
    %333 = arith.mulf %327, %331 : vector<8x128xf32>
    %334 = arith.addf %332, %333 : vector<8x128xf32>
    %335 = math.tanh %334 : vector<8x128xf32>
    %336 = arith.mulf %329, %335 : vector<8x128xf32>
    %c0_117 = arith.constant 0 : index
    %c512_118 = arith.constant 512 : index
    %337 = vector.load %arg13[%c0_117, %c512_118] : memref<64x1024xf32, #tpu.memory_space<vmem>>, vector<8x512xf32>
    %338 = arith.truncf %313 : vector<8x128xf32> to vector<8x128xbf16>
    %c0_119 = arith.constant 0 : index
    %c0_120 = arith.constant 0 : index
    %339 = vector.load %arg5[%c0_119, %c0_120] : memref<128x512xbf16, #tpu.memory_space<vmem>>, vector<128x512xbf16>
    %cst_121 = arith.constant dense<0.000000e+00> : vector<8x512xf32>
    %340 = tpu.matmul %338, %339, %cst_121 {dimension_numbers = #tpu.dot_dimension_numbers<[1], [0], [0], [1], [0, 0, 1, 1], [], []>} : vector<8x128xbf16>, vector<128x512xbf16>, vector<8x512xf32> -> vector<8x512xf32>
    %341 = arith.addf %337, %340 : vector<8x512xf32>
    %342 = vector.extract_strided_slice %341 {offsets = [0, 0], sizes = [8, 384], strides = [1, 1]} : vector<8x512xf32> to vector<8x384xf32>
    %343 = arith.negf %342 : vector<8x384xf32>
    %344 = math.exp %343 : vector<8x384xf32>
    %cst_122 = arith.constant 1.000000e+00 : f32
    %345 = vector.broadcast %cst_122 : f32 to vector<8x384xf32>
    %346 = arith.addf %345, %344 : vector<8x384xf32>
    %347 = arith.divf %345, %346 : vector<8x384xf32>
    %348 = vector.extract_strided_slice %347 {offsets = [0, 0], sizes = [8, 128], strides = [1, 1]} : vector<8x384xf32> to vector<8x128xf32>
    %349 = vector.extract_strided_slice %347 {offsets = [0, 128], sizes = [8, 128], strides = [1, 1]} : vector<8x384xf32> to vector<8x128xf32>
    %350 = vector.extract_strided_slice %347 {offsets = [0, 256], sizes = [8, 128], strides = [1, 1]} : vector<8x384xf32> to vector<8x128xf32>
    %351 = vector.extract_strided_slice %341 {offsets = [0, 384], sizes = [8, 128], strides = [1, 1]} : vector<8x512xf32> to vector<8x128xf32>
    %352 = math.tanh %351 : vector<8x128xf32>
    %353 = arith.mulf %349, %311 : vector<8x128xf32>
    %354 = arith.mulf %348, %352 : vector<8x128xf32>
    %355 = arith.addf %353, %354 : vector<8x128xf32>
    %356 = math.tanh %355 : vector<8x128xf32>
    %357 = arith.mulf %350, %356 : vector<8x128xf32>
    %c56_123 = arith.constant 56 : index
    %c0_124 = arith.constant 0 : index
    %358 = vector.load %arg14[%c56_123, %c0_124] : memref<64x256xf32, #tpu.memory_space<vmem>>, vector<8x128xf32>
    tpu.vector_store %arg14[%c56_123, %c0_124], %336 {strides = array<i32>} : memref<64x256xf32, #tpu.memory_space<vmem>>, vector<8x128xf32>,
    %c0_125 = arith.constant 0 : index
    %c128_126 = arith.constant 128 : index
    %359 = vector.load %arg14[%c0_125, %c128_126] : memref<64x256xf32, #tpu.memory_space<vmem>>, vector<8x128xf32>
    tpu.vector_store %arg14[%c0_125, %c128_126], %357 {strides = array<i32>} : memref<64x256xf32, #tpu.memory_space<vmem>>, vector<8x128xf32>,
    %c0_127 = arith.constant 0 : index
    %c0_128 = arith.constant 0 : index
    %360 = vector.load %arg14[%c0_127, %c0_128] : memref<64x256xf32, #tpu.memory_space<vmem>>, vector<64x256xf32>
    %361 = arith.truncf %360 : vector<64x256xf32> to vector<64x256xbf16>
    %c0_129 = arith.constant 0 : index
    %c0_130 = arith.constant 0 : index
    %362 = vector.load %arg6[%c0_129, %c0_130] : memref<256x1024xbf16, #tpu.memory_space<vmem>>, vector<256x1024xbf16>
    %cst_131 = arith.constant dense<0.000000e+00> : vector<64x1024xf32>
    %363 = tpu.matmul %361, %362, %cst_131 {dimension_numbers = #tpu.dot_dimension_numbers<[1], [0], [0], [1], [0, 0, 1, 1], [], []>} : vector<64x256xbf16>, vector<256x1024xbf16>, vector<64x1024xf32> -> vector<64x1024xf32>
    %c0_132 = arith.constant 0 : index
    %c0_133 = arith.constant 0 : index
    %364 = vector.load %arg7[%c0_132, %c0_133] : memref<1x1024xf32, #tpu.memory_space<vmem>>, vector<1x1024xf32>
    %365 = vector.broadcast %364 : vector<1x1024xf32> to vector<64x1024xf32>
    %366 = arith.addf %363, %365 : vector<64x1024xf32>
    %c0_134 = arith.constant 0 : index
    %c0_135 = arith.constant 0 : index
    %367 = vector.load %arg13[%c0_134, %c0_135] : memref<64x1024xf32, #tpu.memory_space<vmem>>, vector<64x1024xf32>
    tpu.vector_store %arg13[%c0_134, %c0_135], %366 {strides = array<i32>} : memref<64x1024xf32, #tpu.memory_space<vmem>>, vector<64x1024xf32>,
    %cst_136 = arith.constant 0.000000e+00 : f32
    %368 = vector.broadcast %cst_136 : f32 to vector<8x128xf32>
    %c0_137 = arith.constant 0 : index
    %c0_138 = arith.constant 0 : index
    %369 = vector.load %arg13[%c0_137, %c0_138] : memref<64x1024xf32, #tpu.memory_space<vmem>>, vector<8x512xf32>
    %370 = arith.truncf %368 : vector<8x128xf32> to vector<8x128xbf16>
    %c0_139 = arith.constant 0 : index
    %c0_140 = arith.constant 0 : index
    %371 = vector.load %arg8[%c0_139, %c0_140] : memref<128x512xbf16, #tpu.memory_space<vmem>>, vector<128x512xbf16>
    %cst_141 = arith.constant dense<0.000000e+00> : vector<8x512xf32>
    %372 = tpu.matmul %370, %371, %cst_141 {dimension_numbers = #tpu.dot_dimension_numbers<[1], [0], [0], [1], [0, 0, 1, 1], [], []>} : vector<8x128xbf16>, vector<128x512xbf16>, vector<8x512xf32> -> vector<8x512xf32>
    %373 = arith.addf %369, %372 : vector<8x512xf32>
    %374 = vector.extract_strided_slice %373 {offsets = [0, 0], sizes = [8, 384], strides = [1, 1]} : vector<8x512xf32> to vector<8x384xf32>
    %375 = arith.negf %374 : vector<8x384xf32>
    %376 = math.exp %375 : vector<8x384xf32>
    %cst_142 = arith.constant 1.000000e+00 : f32
    %377 = vector.broadcast %cst_142 : f32 to vector<8x384xf32>
    %378 = arith.addf %377, %376 : vector<8x384xf32>
    %379 = arith.divf %377, %378 : vector<8x384xf32>
    %380 = vector.extract_strided_slice %379 {offsets = [0, 0], sizes = [8, 128], strides = [1, 1]} : vector<8x384xf32> to vector<8x128xf32>
    %381 = vector.extract_strided_slice %379 {offsets = [0, 128], sizes = [8, 128], strides = [1, 1]} : vector<8x384xf32> to vector<8x128xf32>
    %382 = vector.extract_strided_slice %379 {offsets = [0, 256], sizes = [8, 128], strides = [1, 1]} : vector<8x384xf32> to vector<8x128xf32>
    %383 = vector.extract_strided_slice %373 {offsets = [0, 384], sizes = [8, 128], strides = [1, 1]} : vector<8x512xf32> to vector<8x128xf32>
    %384 = math.tanh %383 : vector<8x128xf32>
    %385 = arith.mulf %381, %368 : vector<8x128xf32>
    %386 = arith.mulf %380, %384 : vector<8x128xf32>
    %387 = arith.addf %385, %386 : vector<8x128xf32>
    %388 = math.tanh %387 : vector<8x128xf32>
    %389 = arith.mulf %382, %388 : vector<8x128xf32>
    %c56_143 = arith.constant 56 : index
    %c512_144 = arith.constant 512 : index
    %390 = vector.load %arg13[%c56_143, %c512_144] : memref<64x1024xf32, #tpu.memory_space<vmem>>, vector<8x512xf32>
    %391 = arith.truncf %368 : vector<8x128xf32> to vector<8x128xbf16>
    %c0_145 = arith.constant 0 : index
    %c0_146 = arith.constant 0 : index
    %392 = vector.load %arg9[%c0_145, %c0_146] : memref<128x512xbf16, #tpu.memory_space<vmem>>, vector<128x512xbf16>
    %cst_147 = arith.constant dense<0.000000e+00> : vector<8x512xf32>
    %393 = tpu.matmul %391, %392, %cst_147 {dimension_numbers = #tpu.dot_dimension_numbers<[1], [0], [0], [1], [0, 0, 1, 1], [], []>} : vector<8x128xbf16>, vector<128x512xbf16>, vector<8x512xf32> -> vector<8x512xf32>
    %394 = arith.addf %390, %393 : vector<8x512xf32>
    %395 = vector.extract_strided_slice %394 {offsets = [0, 0], sizes = [8, 384], strides = [1, 1]} : vector<8x512xf32> to vector<8x384xf32>
    %396 = arith.negf %395 : vector<8x384xf32>
    %397 = math.exp %396 : vector<8x384xf32>
    %cst_148 = arith.constant 1.000000e+00 : f32
    %398 = vector.broadcast %cst_148 : f32 to vector<8x384xf32>
    %399 = arith.addf %398, %397 : vector<8x384xf32>
    %400 = arith.divf %398, %399 : vector<8x384xf32>
    %401 = vector.extract_strided_slice %400 {offsets = [0, 0], sizes = [8, 128], strides = [1, 1]} : vector<8x384xf32> to vector<8x128xf32>
    %402 = vector.extract_strided_slice %400 {offsets = [0, 128], sizes = [8, 128], strides = [1, 1]} : vector<8x384xf32> to vector<8x128xf32>
    %403 = vector.extract_strided_slice %400 {offsets = [0, 256], sizes = [8, 128], strides = [1, 1]} : vector<8x384xf32> to vector<8x128xf32>
    %404 = vector.extract_strided_slice %394 {offsets = [0, 384], sizes = [8, 128], strides = [1, 1]} : vector<8x512xf32> to vector<8x128xf32>
    %405 = math.tanh %404 : vector<8x128xf32>
    %406 = arith.mulf %402, %368 : vector<8x128xf32>
    %407 = arith.mulf %401, %405 : vector<8x128xf32>
    %408 = arith.addf %406, %407 : vector<8x128xf32>
    %409 = math.tanh %408 : vector<8x128xf32>
    %410 = arith.mulf %403, %409 : vector<8x128xf32>
    %c0_149 = arith.constant 0 : index
    %c0_150 = arith.constant 0 : index
    %c0_151 = arith.constant 0 : index
    %411 = vector.load %arg15[%c0_149, %c0_150, %c0_151] : memref<8x8x256xf32, #tpu.memory_space<vmem>>, vector<1x8x128xf32>
    %412 = vector.shape_cast %411 : vector<1x8x128xf32> to vector<8x128xf32>
    %413 = vector.shape_cast %389 : vector<8x128xf32> to vector<1x8x128xf32>
    tpu.vector_store %arg15[%c0_149, %c0_150, %c0_151], %413 {strides = array<i32>} : memref<8x8x256xf32, #tpu.memory_space<vmem>>, vector<1x8x128xf32>,
    %c7 = arith.constant 7 : index
    %c0_152 = arith.constant 0 : index
    %c128_153 = arith.constant 128 : index
    %414 = vector.load %arg15[%c7, %c0_152, %c128_153] : memref<8x8x256xf32, #tpu.memory_space<vmem>>, vector<1x8x128xf32>
    %415 = vector.shape_cast %414 : vector<1x8x128xf32> to vector<8x128xf32>
    %416 = vector.shape_cast %410 : vector<8x128xf32> to vector<1x8x128xf32>
    tpu.vector_store %arg15[%c7, %c0_152, %c128_153], %416 {strides = array<i32>} : memref<8x8x256xf32, #tpu.memory_space<vmem>>, vector<1x8x128xf32>,
    %c8_154 = arith.constant 8 : index
    %c0_155 = arith.constant 0 : index
    %417 = vector.load %arg13[%c8_154, %c0_155] : memref<64x1024xf32, #tpu.memory_space<vmem>>, vector<8x512xf32>
    %418 = arith.truncf %389 : vector<8x128xf32> to vector<8x128xbf16>
    %c0_156 = arith.constant 0 : index
    %c0_157 = arith.constant 0 : index
    %419 = vector.load %arg8[%c0_156, %c0_157] : memref<128x512xbf16, #tpu.memory_space<vmem>>, vector<128x512xbf16>
    %cst_158 = arith.constant dense<0.000000e+00> : vector<8x512xf32>
    %420 = tpu.matmul %418, %419, %cst_158 {dimension_numbers = #tpu.dot_dimension_numbers<[1], [0], [0], [1], [0, 0, 1, 1], [], []>} : vector<8x128xbf16>, vector<128x512xbf16>, vector<8x512xf32> -> vector<8x512xf32>
    %421 = arith.addf %417, %420 : vector<8x512xf32>
    %422 = vector.extract_strided_slice %421 {offsets = [0, 0], sizes = [8, 384], strides = [1, 1]} : vector<8x512xf32> to vector<8x384xf32>
    %423 = arith.negf %422 : vector<8x384xf32>
    %424 = math.exp %423 : vector<8x384xf32>
    %cst_159 = arith.constant 1.000000e+00 : f32
    %425 = vector.broadcast %cst_159 : f32 to vector<8x384xf32>
    %426 = arith.addf %425, %424 : vector<8x384xf32>
    %427 = arith.divf %425, %426 : vector<8x384xf32>
    %428 = vector.extract_strided_slice %427 {offsets = [0, 0], sizes = [8, 128], strides = [1, 1]} : vector<8x384xf32> to vector<8x128xf32>
    %429 = vector.extract_strided_slice %427 {offsets = [0, 128], sizes = [8, 128], strides = [1, 1]} : vector<8x384xf32> to vector<8x128xf32>
    %430 = vector.extract_strided_slice %427 {offsets = [0, 256], sizes = [8, 128], strides = [1, 1]} : vector<8x384xf32> to vector<8x128xf32>
    %431 = vector.extract_strided_slice %421 {offsets = [0, 384], sizes = [8, 128], strides = [1, 1]} : vector<8x512xf32> to vector<8x128xf32>
    %432 = math.tanh %431 : vector<8x128xf32>
    %433 = arith.mulf %429, %387 : vector<8x128xf32>
    %434 = arith.mulf %428, %432 : vector<8x128xf32>
    %435 = arith.addf %433, %434 : vector<8x128xf32>
    %436 = math.tanh %435 : vector<8x128xf32>
    %437 = arith.mulf %430, %436 : vector<8x128xf32>
    %c48_160 = arith.constant 48 : index
    %c512_161 = arith.constant 512 : index
    %438 = vector.load %arg13[%c48_160, %c512_161] : memref<64x1024xf32, #tpu.memory_space<vmem>>, vector<8x512xf32>
    %439 = arith.truncf %410 : vector<8x128xf32> to vector<8x128xbf16>
    %c0_162 = arith.constant 0 : index
    %c0_163 = arith.constant 0 : index
    %440 = vector.load %arg9[%c0_162, %c0_163] : memref<128x512xbf16, #tpu.memory_space<vmem>>, vector<128x512xbf16>
    %cst_164 = arith.constant dense<0.000000e+00> : vector<8x512xf32>
    %441 = tpu.matmul %439, %440, %cst_164 {dimension_numbers = #tpu.dot_dimension_numbers<[1], [0], [0], [1], [0, 0, 1, 1], [], []>} : vector<8x128xbf16>, vector<128x512xbf16>, vector<8x512xf32> -> vector<8x512xf32>
    %442 = arith.addf %438, %441 : vector<8x512xf32>
    %443 = vector.extract_strided_slice %442 {offsets = [0, 0], sizes = [8, 384], strides = [1, 1]} : vector<8x512xf32> to vector<8x384xf32>
    %444 = arith.negf %443 : vector<8x384xf32>
    %445 = math.exp %444 : vector<8x384xf32>
    %cst_165 = arith.constant 1.000000e+00 : f32
    %446 = vector.broadcast %cst_165 : f32 to vector<8x384xf32>
    %447 = arith.addf %446, %445 : vector<8x384xf32>
    %448 = arith.divf %446, %447 : vector<8x384xf32>
    %449 = vector.extract_strided_slice %448 {offsets = [0, 0], sizes = [8, 128], strides = [1, 1]} : vector<8x384xf32> to vector<8x128xf32>
    %450 = vector.extract_strided_slice %448 {offsets = [0, 128], sizes = [8, 128], strides = [1, 1]} : vector<8x384xf32> to vector<8x128xf32>
    %451 = vector.extract_strided_slice %448 {offsets = [0, 256], sizes = [8, 128], strides = [1, 1]} : vector<8x384xf32> to vector<8x128xf32>
    %452 = vector.extract_strided_slice %442 {offsets = [0, 384], sizes = [8, 128], strides = [1, 1]} : vector<8x512xf32> to vector<8x128xf32>
    %453 = math.tanh %452 : vector<8x128xf32>
    %454 = arith.mulf %450, %408 : vector<8x128xf32>
    %455 = arith.mulf %449, %453 : vector<8x128xf32>
    %456 = arith.addf %454, %455 : vector<8x128xf32>
    %457 = math.tanh %456 : vector<8x128xf32>
    %458 = arith.mulf %451, %457 : vector<8x128xf32>
    %c1 = arith.constant 1 : index
    %c0_166 = arith.constant 0 : index
    %c0_167 = arith.constant 0 : index
    %459 = vector.load %arg15[%c1, %c0_166, %c0_167] : memref<8x8x256xf32, #tpu.memory_space<vmem>>, vector<1x8x128xf32>
    %460 = vector.shape_cast %459 : vector<1x8x128xf32> to vector<8x128xf32>
    %461 = vector.shape_cast %437 : vector<8x128xf32> to vector<1x8x128xf32>
    tpu.vector_store %arg15[%c1, %c0_166, %c0_167], %461 {strides = array<i32>} : memref<8x8x256xf32, #tpu.memory_space<vmem>>, vector<1x8x128xf32>,
    %c6 = arith.constant 6 : index
    %c0_168 = arith.constant 0 : index
    %c128_169 = arith.constant 128 : index
    %462 = vector.load %arg15[%c6, %c0_168, %c128_169] : memref<8x8x256xf32, #tpu.memory_space<vmem>>, vector<1x8x128xf32>
    %463 = vector.shape_cast %462 : vector<1x8x128xf32> to vector<8x128xf32>
    %464 = vector.shape_cast %458 : vector<8x128xf32> to vector<1x8x128xf32>
    tpu.vector_store %arg15[%c6, %c0_168, %c128_169], %464 {strides = array<i32>} : memref<8x8x256xf32, #tpu.memory_space<vmem>>, vector<1x8x128xf32>,
    %c16_170 = arith.constant 16 : index
    %c0_171 = arith.constant 0 : index
    %465 = vector.load %arg13[%c16_170, %c0_171] : memref<64x1024xf32, #tpu.memory_space<vmem>>, vector<8x512xf32>
    %466 = arith.truncf %437 : vector<8x128xf32> to vector<8x128xbf16>
    %c0_172 = arith.constant 0 : index
    %c0_173 = arith.constant 0 : index
    %467 = vector.load %arg8[%c0_172, %c0_173] : memref<128x512xbf16, #tpu.memory_space<vmem>>, vector<128x512xbf16>
    %cst_174 = arith.constant dense<0.000000e+00> : vector<8x512xf32>
    %468 = tpu.matmul %466, %467, %cst_174 {dimension_numbers = #tpu.dot_dimension_numbers<[1], [0], [0], [1], [0, 0, 1, 1], [], []>} : vector<8x128xbf16>, vector<128x512xbf16>, vector<8x512xf32> -> vector<8x512xf32>
    %469 = arith.addf %465, %468 : vector<8x512xf32>
    %470 = vector.extract_strided_slice %469 {offsets = [0, 0], sizes = [8, 384], strides = [1, 1]} : vector<8x512xf32> to vector<8x384xf32>
    %471 = arith.negf %470 : vector<8x384xf32>
    %472 = math.exp %471 : vector<8x384xf32>
    %cst_175 = arith.constant 1.000000e+00 : f32
    %473 = vector.broadcast %cst_175 : f32 to vector<8x384xf32>
    %474 = arith.addf %473, %472 : vector<8x384xf32>
    %475 = arith.divf %473, %474 : vector<8x384xf32>
    %476 = vector.extract_strided_slice %475 {offsets = [0, 0], sizes = [8, 128], strides = [1, 1]} : vector<8x384xf32> to vector<8x128xf32>
    %477 = vector.extract_strided_slice %475 {offsets = [0, 128], sizes = [8, 128], strides = [1, 1]} : vector<8x384xf32> to vector<8x128xf32>
    %478 = vector.extract_strided_slice %475 {offsets = [0, 256], sizes = [8, 128], strides = [1, 1]} : vector<8x384xf32> to vector<8x128xf32>
    %479 = vector.extract_strided_slice %469 {offsets = [0, 384], sizes = [8, 128], strides = [1, 1]} : vector<8x512xf32> to vector<8x128xf32>
    %480 = math.tanh %479 : vector<8x128xf32>
    %481 = arith.mulf %477, %435 : vector<8x128xf32>
    %482 = arith.mulf %476, %480 : vector<8x128xf32>
    %483 = arith.addf %481, %482 : vector<8x128xf32>
    %484 = math.tanh %483 : vector<8x128xf32>
    %485 = arith.mulf %478, %484 : vector<8x128xf32>
    %c40_176 = arith.constant 40 : index
    %c512_177 = arith.constant 512 : index
    %486 = vector.load %arg13[%c40_176, %c512_177] : memref<64x1024xf32, #tpu.memory_space<vmem>>, vector<8x512xf32>
    %487 = arith.truncf %458 : vector<8x128xf32> to vector<8x128xbf16>
    %c0_178 = arith.constant 0 : index
    %c0_179 = arith.constant 0 : index
    %488 = vector.load %arg9[%c0_178, %c0_179] : memref<128x512xbf16, #tpu.memory_space<vmem>>, vector<128x512xbf16>
    %cst_180 = arith.constant dense<0.000000e+00> : vector<8x512xf32>
    %489 = tpu.matmul %487, %488, %cst_180 {dimension_numbers = #tpu.dot_dimension_numbers<[1], [0], [0], [1], [0, 0, 1, 1], [], []>} : vector<8x128xbf16>, vector<128x512xbf16>, vector<8x512xf32> -> vector<8x512xf32>
    %490 = arith.addf %486, %489 : vector<8x512xf32>
    %491 = vector.extract_strided_slice %490 {offsets = [0, 0], sizes = [8, 384], strides = [1, 1]} : vector<8x512xf32> to vector<8x384xf32>
    %492 = arith.negf %491 : vector<8x384xf32>
    %493 = math.exp %492 : vector<8x384xf32>
    %cst_181 = arith.constant 1.000000e+00 : f32
    %494 = vector.broadcast %cst_181 : f32 to vector<8x384xf32>
    %495 = arith.addf %494, %493 : vector<8x384xf32>
    %496 = arith.divf %494, %495 : vector<8x384xf32>
    %497 = vector.extract_strided_slice %496 {offsets = [0, 0], sizes = [8, 128], strides = [1, 1]} : vector<8x384xf32> to vector<8x128xf32>
    %498 = vector.extract_strided_slice %496 {offsets = [0, 128], sizes = [8, 128], strides = [1, 1]} : vector<8x384xf32> to vector<8x128xf32>
    %499 = vector.extract_strided_slice %496 {offsets = [0, 256], sizes = [8, 128], strides = [1, 1]} : vector<8x384xf32> to vector<8x128xf32>
    %500 = vector.extract_strided_slice %490 {offsets = [0, 384], sizes = [8, 128], strides = [1, 1]} : vector<8x512xf32> to vector<8x128xf32>
    %501 = math.tanh %500 : vector<8x128xf32>
    %502 = arith.mulf %498, %456 : vector<8x128xf32>
    %503 = arith.mulf %497, %501 : vector<8x128xf32>
    %504 = arith.addf %502, %503 : vector<8x128xf32>
    %505 = math.tanh %504 : vector<8x128xf32>
    %506 = arith.mulf %499, %505 : vector<8x128xf32>
    %c2 = arith.constant 2 : index
    %c0_182 = arith.constant 0 : index
    %c0_183 = arith.constant 0 : index
    %507 = vector.load %arg15[%c2, %c0_182, %c0_183] : memref<8x8x256xf32, #tpu.memory_space<vmem>>, vector<1x8x128xf32>
    %508 = vector.shape_cast %507 : vector<1x8x128xf32> to vector<8x128xf32>
    %509 = vector.shape_cast %485 : vector<8x128xf32> to vector<1x8x128xf32>
    tpu.vector_store %arg15[%c2, %c0_182, %c0_183], %509 {strides = array<i32>} : memref<8x8x256xf32, #tpu.memory_space<vmem>>, vector<1x8x128xf32>,
    %c5 = arith.constant 5 : index
    %c0_184 = arith.constant 0 : index
    %c128_185 = arith.constant 128 : index
    %510 = vector.load %arg15[%c5, %c0_184, %c128_185] : memref<8x8x256xf32, #tpu.memory_space<vmem>>, vector<1x8x128xf32>
    %511 = vector.shape_cast %510 : vector<1x8x128xf32> to vector<8x128xf32>
    %512 = vector.shape_cast %506 : vector<8x128xf32> to vector<1x8x128xf32>
    tpu.vector_store %arg15[%c5, %c0_184, %c128_185], %512 {strides = array<i32>} : memref<8x8x256xf32, #tpu.memory_space<vmem>>, vector<1x8x128xf32>,
    %c24_186 = arith.constant 24 : index
    %c0_187 = arith.constant 0 : index
    %513 = vector.load %arg13[%c24_186, %c0_187] : memref<64x1024xf32, #tpu.memory_space<vmem>>, vector<8x512xf32>
    %514 = arith.truncf %485 : vector<8x128xf32> to vector<8x128xbf16>
    %c0_188 = arith.constant 0 : index
    %c0_189 = arith.constant 0 : index
    %515 = vector.load %arg8[%c0_188, %c0_189] : memref<128x512xbf16, #tpu.memory_space<vmem>>, vector<128x512xbf16>
    %cst_190 = arith.constant dense<0.000000e+00> : vector<8x512xf32>
    %516 = tpu.matmul %514, %515, %cst_190 {dimension_numbers = #tpu.dot_dimension_numbers<[1], [0], [0], [1], [0, 0, 1, 1], [], []>} : vector<8x128xbf16>, vector<128x512xbf16>, vector<8x512xf32> -> vector<8x512xf32>
    %517 = arith.addf %513, %516 : vector<8x512xf32>
    %518 = vector.extract_strided_slice %517 {offsets = [0, 0], sizes = [8, 384], strides = [1, 1]} : vector<8x512xf32> to vector<8x384xf32>
    %519 = arith.negf %518 : vector<8x384xf32>
    %520 = math.exp %519 : vector<8x384xf32>
    %cst_191 = arith.constant 1.000000e+00 : f32
    %521 = vector.broadcast %cst_191 : f32 to vector<8x384xf32>
    %522 = arith.addf %521, %520 : vector<8x384xf32>
    %523 = arith.divf %521, %522 : vector<8x384xf32>
    %524 = vector.extract_strided_slice %523 {offsets = [0, 0], sizes = [8, 128], strides = [1, 1]} : vector<8x384xf32> to vector<8x128xf32>
    %525 = vector.extract_strided_slice %523 {offsets = [0, 128], sizes = [8, 128], strides = [1, 1]} : vector<8x384xf32> to vector<8x128xf32>
    %526 = vector.extract_strided_slice %523 {offsets = [0, 256], sizes = [8, 128], strides = [1, 1]} : vector<8x384xf32> to vector<8x128xf32>
    %527 = vector.extract_strided_slice %517 {offsets = [0, 384], sizes = [8, 128], strides = [1, 1]} : vector<8x512xf32> to vector<8x128xf32>
    %528 = math.tanh %527 : vector<8x128xf32>
    %529 = arith.mulf %525, %483 : vector<8x128xf32>
    %530 = arith.mulf %524, %528 : vector<8x128xf32>
    %531 = arith.addf %529, %530 : vector<8x128xf32>
    %532 = math.tanh %531 : vector<8x128xf32>
    %533 = arith.mulf %526, %532 : vector<8x128xf32>
    %c32_192 = arith.constant 32 : index
    %c512_193 = arith.constant 512 : index
    %534 = vector.load %arg13[%c32_192, %c512_193] : memref<64x1024xf32, #tpu.memory_space<vmem>>, vector<8x512xf32>
    %535 = arith.truncf %506 : vector<8x128xf32> to vector<8x128xbf16>
    %c0_194 = arith.constant 0 : index
    %c0_195 = arith.constant 0 : index
    %536 = vector.load %arg9[%c0_194, %c0_195] : memref<128x512xbf16, #tpu.memory_space<vmem>>, vector<128x512xbf16>
    %cst_196 = arith.constant dense<0.000000e+00> : vector<8x512xf32>
    %537 = tpu.matmul %535, %536, %cst_196 {dimension_numbers = #tpu.dot_dimension_numbers<[1], [0], [0], [1], [0, 0, 1, 1], [], []>} : vector<8x128xbf16>, vector<128x512xbf16>, vector<8x512xf32> -> vector<8x512xf32>
    %538 = arith.addf %534, %537 : vector<8x512xf32>
    %539 = vector.extract_strided_slice %538 {offsets = [0, 0], sizes = [8, 384], strides = [1, 1]} : vector<8x512xf32> to vector<8x384xf32>
    %540 = arith.negf %539 : vector<8x384xf32>
    %541 = math.exp %540 : vector<8x384xf32>
    %cst_197 = arith.constant 1.000000e+00 : f32
    %542 = vector.broadcast %cst_197 : f32 to vector<8x384xf32>
    %543 = arith.addf %542, %541 : vector<8x384xf32>
    %544 = arith.divf %542, %543 : vector<8x384xf32>
    %545 = vector.extract_strided_slice %544 {offsets = [0, 0], sizes = [8, 128], strides = [1, 1]} : vector<8x384xf32> to vector<8x128xf32>
    %546 = vector.extract_strided_slice %544 {offsets = [0, 128], sizes = [8, 128], strides = [1, 1]} : vector<8x384xf32> to vector<8x128xf32>
    %547 = vector.extract_strided_slice %544 {offsets = [0, 256], sizes = [8, 128], strides = [1, 1]} : vector<8x384xf32> to vector<8x128xf32>
    %548 = vector.extract_strided_slice %538 {offsets = [0, 384], sizes = [8, 128], strides = [1, 1]} : vector<8x512xf32> to vector<8x128xf32>
    %549 = math.tanh %548 : vector<8x128xf32>
    %550 = arith.mulf %546, %504 : vector<8x128xf32>
    %551 = arith.mulf %545, %549 : vector<8x128xf32>
    %552 = arith.addf %550, %551 : vector<8x128xf32>
    %553 = math.tanh %552 : vector<8x128xf32>
    %554 = arith.mulf %547, %553 : vector<8x128xf32>
    %c3 = arith.constant 3 : index
    %c0_198 = arith.constant 0 : index
    %c0_199 = arith.constant 0 : index
    %555 = vector.load %arg15[%c3, %c0_198, %c0_199] : memref<8x8x256xf32, #tpu.memory_space<vmem>>, vector<1x8x128xf32>
    %556 = vector.shape_cast %555 : vector<1x8x128xf32> to vector<8x128xf32>
    %557 = vector.shape_cast %533 : vector<8x128xf32> to vector<1x8x128xf32>
    tpu.vector_store %arg15[%c3, %c0_198, %c0_199], %557 {strides = array<i32>} : memref<8x8x256xf32, #tpu.memory_space<vmem>>, vector<1x8x128xf32>,
    %c4 = arith.constant 4 : index
    %c0_200 = arith.constant 0 : index
    %c128_201 = arith.constant 128 : index
    %558 = vector.load %arg15[%c4, %c0_200, %c128_201] : memref<8x8x256xf32, #tpu.memory_space<vmem>>, vector<1x8x128xf32>
    %559 = vector.shape_cast %558 : vector<1x8x128xf32> to vector<8x128xf32>
    %560 = vector.shape_cast %554 : vector<8x128xf32> to vector<1x8x128xf32>
    tpu.vector_store %arg15[%c4, %c0_200, %c128_201], %560 {strides = array<i32>} : memref<8x8x256xf32, #tpu.memory_space<vmem>>, vector<1x8x128xf32>,
    %c32_202 = arith.constant 32 : index
    %c0_203 = arith.constant 0 : index
    %561 = vector.load %arg13[%c32_202, %c0_203] : memref<64x1024xf32, #tpu.memory_space<vmem>>, vector<8x512xf32>
    %562 = arith.truncf %533 : vector<8x128xf32> to vector<8x128xbf16>
    %c0_204 = arith.constant 0 : index
    %c0_205 = arith.constant 0 : index
    %563 = vector.load %arg8[%c0_204, %c0_205] : memref<128x512xbf16, #tpu.memory_space<vmem>>, vector<128x512xbf16>
    %cst_206 = arith.constant dense<0.000000e+00> : vector<8x512xf32>
    %564 = tpu.matmul %562, %563, %cst_206 {dimension_numbers = #tpu.dot_dimension_numbers<[1], [0], [0], [1], [0, 0, 1, 1], [], []>} : vector<8x128xbf16>, vector<128x512xbf16>, vector<8x512xf32> -> vector<8x512xf32>
    %565 = arith.addf %561, %564 : vector<8x512xf32>
    %566 = vector.extract_strided_slice %565 {offsets = [0, 0], sizes = [8, 384], strides = [1, 1]} : vector<8x512xf32> to vector<8x384xf32>
    %567 = arith.negf %566 : vector<8x384xf32>
    %568 = math.exp %567 : vector<8x384xf32>
    %cst_207 = arith.constant 1.000000e+00 : f32
    %569 = vector.broadcast %cst_207 : f32 to vector<8x384xf32>
    %570 = arith.addf %569, %568 : vector<8x384xf32>
    %571 = arith.divf %569, %570 : vector<8x384xf32>
    %572 = vector.extract_strided_slice %571 {offsets = [0, 0], sizes = [8, 128], strides = [1, 1]} : vector<8x384xf32> to vector<8x128xf32>
    %573 = vector.extract_strided_slice %571 {offsets = [0, 128], sizes = [8, 128], strides = [1, 1]} : vector<8x384xf32> to vector<8x128xf32>
    %574 = vector.extract_strided_slice %571 {offsets = [0, 256], sizes = [8, 128], strides = [1, 1]} : vector<8x384xf32> to vector<8x128xf32>
    %575 = vector.extract_strided_slice %565 {offsets = [0, 384], sizes = [8, 128], strides = [1, 1]} : vector<8x512xf32> to vector<8x128xf32>
    %576 = math.tanh %575 : vector<8x128xf32>
    %577 = arith.mulf %573, %531 : vector<8x128xf32>
    %578 = arith.mulf %572, %576 : vector<8x128xf32>
    %579 = arith.addf %577, %578 : vector<8x128xf32>
    %580 = math.tanh %579 : vector<8x128xf32>
    %581 = arith.mulf %574, %580 : vector<8x128xf32>
    %c24_208 = arith.constant 24 : index
    %c512_209 = arith.constant 512 : index
    %582 = vector.load %arg13[%c24_208, %c512_209] : memref<64x1024xf32, #tpu.memory_space<vmem>>, vector<8x512xf32>
    %583 = arith.truncf %554 : vector<8x128xf32> to vector<8x128xbf16>
    %c0_210 = arith.constant 0 : index
    %c0_211 = arith.constant 0 : index
    %584 = vector.load %arg9[%c0_210, %c0_211] : memref<128x512xbf16, #tpu.memory_space<vmem>>, vector<128x512xbf16>
    %cst_212 = arith.constant dense<0.000000e+00> : vector<8x512xf32>
    %585 = tpu.matmul %583, %584, %cst_212 {dimension_numbers = #tpu.dot_dimension_numbers<[1], [0], [0], [1], [0, 0, 1, 1], [], []>} : vector<8x128xbf16>, vector<128x512xbf16>, vector<8x512xf32> -> vector<8x512xf32>
    %586 = arith.addf %582, %585 : vector<8x512xf32>
    %587 = vector.extract_strided_slice %586 {offsets = [0, 0], sizes = [8, 384], strides = [1, 1]} : vector<8x512xf32> to vector<8x384xf32>
    %588 = arith.negf %587 : vector<8x384xf32>
    %589 = math.exp %588 : vector<8x384xf32>
    %cst_213 = arith.constant 1.000000e+00 : f32
    %590 = vector.broadcast %cst_213 : f32 to vector<8x384xf32>
    %591 = arith.addf %590, %589 : vector<8x384xf32>
    %592 = arith.divf %590, %591 : vector<8x384xf32>
    %593 = vector.extract_strided_slice %592 {offsets = [0, 0], sizes = [8, 128], strides = [1, 1]} : vector<8x384xf32> to vector<8x128xf32>
    %594 = vector.extract_strided_slice %592 {offsets = [0, 128], sizes = [8, 128], strides = [1, 1]} : vector<8x384xf32> to vector<8x128xf32>
    %595 = vector.extract_strided_slice %592 {offsets = [0, 256], sizes = [8, 128], strides = [1, 1]} : vector<8x384xf32> to vector<8x128xf32>
    %596 = vector.extract_strided_slice %586 {offsets = [0, 384], sizes = [8, 128], strides = [1, 1]} : vector<8x512xf32> to vector<8x128xf32>
    %597 = math.tanh %596 : vector<8x128xf32>
    %598 = arith.mulf %594, %552 : vector<8x128xf32>
    %599 = arith.mulf %593, %597 : vector<8x128xf32>
    %600 = arith.addf %598, %599 : vector<8x128xf32>
    %601 = math.tanh %600 : vector<8x128xf32>
    %602 = arith.mulf %595, %601 : vector<8x128xf32>
    %c4_214 = arith.constant 4 : index
    %c0_215 = arith.constant 0 : index
    %c0_216 = arith.constant 0 : index
    %603 = vector.load %arg15[%c4_214, %c0_215, %c0_216] : memref<8x8x256xf32, #tpu.memory_space<vmem>>, vector<1x8x128xf32>
    %604 = vector.shape_cast %603 : vector<1x8x128xf32> to vector<8x128xf32>
    %605 = vector.shape_cast %581 : vector<8x128xf32> to vector<1x8x128xf32>
    tpu.vector_store %arg15[%c4_214, %c0_215, %c0_216], %605 {strides = array<i32>} : memref<8x8x256xf32, #tpu.memory_space<vmem>>, vector<1x8x128xf32>,
    %c3_217 = arith.constant 3 : index
    %c0_218 = arith.constant 0 : index
    %c128_219 = arith.constant 128 : index
    %606 = vector.load %arg15[%c3_217, %c0_218, %c128_219] : memref<8x8x256xf32, #tpu.memory_space<vmem>>, vector<1x8x128xf32>
    %607 = vector.shape_cast %606 : vector<1x8x128xf32> to vector<8x128xf32>
    %608 = vector.shape_cast %602 : vector<8x128xf32> to vector<1x8x128xf32>
    tpu.vector_store %arg15[%c3_217, %c0_218, %c128_219], %608 {strides = array<i32>} : memref<8x8x256xf32, #tpu.memory_space<vmem>>, vector<1x8x128xf32>,
    %c40_220 = arith.constant 40 : index
    %c0_221 = arith.constant 0 : index
    %609 = vector.load %arg13[%c40_220, %c0_221] : memref<64x1024xf32, #tpu.memory_space<vmem>>, vector<8x512xf32>
    %610 = arith.truncf %581 : vector<8x128xf32> to vector<8x128xbf16>
    %c0_222 = arith.constant 0 : index
    %c0_223 = arith.constant 0 : index
    %611 = vector.load %arg8[%c0_222, %c0_223] : memref<128x512xbf16, #tpu.memory_space<vmem>>, vector<128x512xbf16>
    %cst_224 = arith.constant dense<0.000000e+00> : vector<8x512xf32>
    %612 = tpu.matmul %610, %611, %cst_224 {dimension_numbers = #tpu.dot_dimension_numbers<[1], [0], [0], [1], [0, 0, 1, 1], [], []>} : vector<8x128xbf16>, vector<128x512xbf16>, vector<8x512xf32> -> vector<8x512xf32>
    %613 = arith.addf %609, %612 : vector<8x512xf32>
    %614 = vector.extract_strided_slice %613 {offsets = [0, 0], sizes = [8, 384], strides = [1, 1]} : vector<8x512xf32> to vector<8x384xf32>
    %615 = arith.negf %614 : vector<8x384xf32>
    %616 = math.exp %615 : vector<8x384xf32>
    %cst_225 = arith.constant 1.000000e+00 : f32
    %617 = vector.broadcast %cst_225 : f32 to vector<8x384xf32>
    %618 = arith.addf %617, %616 : vector<8x384xf32>
    %619 = arith.divf %617, %618 : vector<8x384xf32>
    %620 = vector.extract_strided_slice %619 {offsets = [0, 0], sizes = [8, 128], strides = [1, 1]} : vector<8x384xf32> to vector<8x128xf32>
    %621 = vector.extract_strided_slice %619 {offsets = [0, 128], sizes = [8, 128], strides = [1, 1]} : vector<8x384xf32> to vector<8x128xf32>
    %622 = vector.extract_strided_slice %619 {offsets = [0, 256], sizes = [8, 128], strides = [1, 1]} : vector<8x384xf32> to vector<8x128xf32>
    %623 = vector.extract_strided_slice %613 {offsets = [0, 384], sizes = [8, 128], strides = [1, 1]} : vector<8x512xf32> to vector<8x128xf32>
    %624 = math.tanh %623 : vector<8x128xf32>
    %625 = arith.mulf %621, %579 : vector<8x128xf32>
    %626 = arith.mulf %620, %624 : vector<8x128xf32>
    %627 = arith.addf %625, %626 : vector<8x128xf32>
    %628 = math.tanh %627 : vector<8x128xf32>
    %629 = arith.mulf %622, %628 : vector<8x128xf32>
    %c16_226 = arith.constant 16 : index
    %c512_227 = arith.constant 512 : index
    %630 = vector.load %arg13[%c16_226, %c512_227] : memref<64x1024xf32, #tpu.memory_space<vmem>>, vector<8x512xf32>
    %631 = arith.truncf %602 : vector<8x128xf32> to vector<8x128xbf16>
    %c0_228 = arith.constant 0 : index
    %c0_229 = arith.constant 0 : index
    %632 = vector.load %arg9[%c0_228, %c0_229] : memref<128x512xbf16, #tpu.memory_space<vmem>>, vector<128x512xbf16>
    %cst_230 = arith.constant dense<0.000000e+00> : vector<8x512xf32>
    %633 = tpu.matmul %631, %632, %cst_230 {dimension_numbers = #tpu.dot_dimension_numbers<[1], [0], [0], [1], [0, 0, 1, 1], [], []>} : vector<8x128xbf16>, vector<128x512xbf16>, vector<8x512xf32> -> vector<8x512xf32>
    %634 = arith.addf %630, %633 : vector<8x512xf32>
    %635 = vector.extract_strided_slice %634 {offsets = [0, 0], sizes = [8, 384], strides = [1, 1]} : vector<8x512xf32> to vector<8x384xf32>
    %636 = arith.negf %635 : vector<8x384xf32>
    %637 = math.exp %636 : vector<8x384xf32>
    %cst_231 = arith.constant 1.000000e+00 : f32
    %638 = vector.broadcast %cst_231 : f32 to vector<8x384xf32>
    %639 = arith.addf %638, %637 : vector<8x384xf32>
    %640 = arith.divf %638, %639 : vector<8x384xf32>
    %641 = vector.extract_strided_slice %640 {offsets = [0, 0], sizes = [8, 128], strides = [1, 1]} : vector<8x384xf32> to vector<8x128xf32>
    %642 = vector.extract_strided_slice %640 {offsets = [0, 128], sizes = [8, 128], strides = [1, 1]} : vector<8x384xf32> to vector<8x128xf32>
    %643 = vector.extract_strided_slice %640 {offsets = [0, 256], sizes = [8, 128], strides = [1, 1]} : vector<8x384xf32> to vector<8x128xf32>
    %644 = vector.extract_strided_slice %634 {offsets = [0, 384], sizes = [8, 128], strides = [1, 1]} : vector<8x512xf32> to vector<8x128xf32>
    %645 = math.tanh %644 : vector<8x128xf32>
    %646 = arith.mulf %642, %600 : vector<8x128xf32>
    %647 = arith.mulf %641, %645 : vector<8x128xf32>
    %648 = arith.addf %646, %647 : vector<8x128xf32>
    %649 = math.tanh %648 : vector<8x128xf32>
    %650 = arith.mulf %643, %649 : vector<8x128xf32>
    %c5_232 = arith.constant 5 : index
    %c0_233 = arith.constant 0 : index
    %c0_234 = arith.constant 0 : index
    %651 = vector.load %arg15[%c5_232, %c0_233, %c0_234] : memref<8x8x256xf32, #tpu.memory_space<vmem>>, vector<1x8x128xf32>
    %652 = vector.shape_cast %651 : vector<1x8x128xf32> to vector<8x128xf32>
    %653 = vector.shape_cast %629 : vector<8x128xf32> to vector<1x8x128xf32>
    tpu.vector_store %arg15[%c5_232, %c0_233, %c0_234], %653 {strides = array<i32>} : memref<8x8x256xf32, #tpu.memory_space<vmem>>, vector<1x8x128xf32>,
    %c2_235 = arith.constant 2 : index
    %c0_236 = arith.constant 0 : index
    %c128_237 = arith.constant 128 : index
    %654 = vector.load %arg15[%c2_235, %c0_236, %c128_237] : memref<8x8x256xf32, #tpu.memory_space<vmem>>, vector<1x8x128xf32>
    %655 = vector.shape_cast %654 : vector<1x8x128xf32> to vector<8x128xf32>
    %656 = vector.shape_cast %650 : vector<8x128xf32> to vector<1x8x128xf32>
    tpu.vector_store %arg15[%c2_235, %c0_236, %c128_237], %656 {strides = array<i32>} : memref<8x8x256xf32, #tpu.memory_space<vmem>>, vector<1x8x128xf32>,
    %c48_238 = arith.constant 48 : index
    %c0_239 = arith.constant 0 : index
    %657 = vector.load %arg13[%c48_238, %c0_239] : memref<64x1024xf32, #tpu.memory_space<vmem>>, vector<8x512xf32>
    %658 = arith.truncf %629 : vector<8x128xf32> to vector<8x128xbf16>
    %c0_240 = arith.constant 0 : index
    %c0_241 = arith.constant 0 : index
    %659 = vector.load %arg8[%c0_240, %c0_241] : memref<128x512xbf16, #tpu.memory_space<vmem>>, vector<128x512xbf16>
    %cst_242 = arith.constant dense<0.000000e+00> : vector<8x512xf32>
    %660 = tpu.matmul %658, %659, %cst_242 {dimension_numbers = #tpu.dot_dimension_numbers<[1], [0], [0], [1], [0, 0, 1, 1], [], []>} : vector<8x128xbf16>, vector<128x512xbf16>, vector<8x512xf32> -> vector<8x512xf32>
    %661 = arith.addf %657, %660 : vector<8x512xf32>
    %662 = vector.extract_strided_slice %661 {offsets = [0, 0], sizes = [8, 384], strides = [1, 1]} : vector<8x512xf32> to vector<8x384xf32>
    %663 = arith.negf %662 : vector<8x384xf32>
    %664 = math.exp %663 : vector<8x384xf32>
    %cst_243 = arith.constant 1.000000e+00 : f32
    %665 = vector.broadcast %cst_243 : f32 to vector<8x384xf32>
    %666 = arith.addf %665, %664 : vector<8x384xf32>
    %667 = arith.divf %665, %666 : vector<8x384xf32>
    %668 = vector.extract_strided_slice %667 {offsets = [0, 0], sizes = [8, 128], strides = [1, 1]} : vector<8x384xf32> to vector<8x128xf32>
    %669 = vector.extract_strided_slice %667 {offsets = [0, 128], sizes = [8, 128], strides = [1, 1]} : vector<8x384xf32> to vector<8x128xf32>
    %670 = vector.extract_strided_slice %667 {offsets = [0, 256], sizes = [8, 128], strides = [1, 1]} : vector<8x384xf32> to vector<8x128xf32>
    %671 = vector.extract_strided_slice %661 {offsets = [0, 384], sizes = [8, 128], strides = [1, 1]} : vector<8x512xf32> to vector<8x128xf32>
    %672 = math.tanh %671 : vector<8x128xf32>
    %673 = arith.mulf %669, %627 : vector<8x128xf32>
    %674 = arith.mulf %668, %672 : vector<8x128xf32>
    %675 = arith.addf %673, %674 : vector<8x128xf32>
    %676 = math.tanh %675 : vector<8x128xf32>
    %677 = arith.mulf %670, %676 : vector<8x128xf32>
    %c8_244 = arith.constant 8 : index
    %c512_245 = arith.constant 512 : index
    %678 = vector.load %arg13[%c8_244, %c512_245] : memref<64x1024xf32, #tpu.memory_space<vmem>>, vector<8x512xf32>
    %679 = arith.truncf %650 : vector<8x128xf32> to vector<8x128xbf16>
    %c0_246 = arith.constant 0 : index
    %c0_247 = arith.constant 0 : index
    %680 = vector.load %arg9[%c0_246, %c0_247] : memref<128x512xbf16, #tpu.memory_space<vmem>>, vector<128x512xbf16>
    %cst_248 = arith.constant dense<0.000000e+00> : vector<8x512xf32>
    %681 = tpu.matmul %679, %680, %cst_248 {dimension_numbers = #tpu.dot_dimension_numbers<[1], [0], [0], [1], [0, 0, 1, 1], [], []>} : vector<8x128xbf16>, vector<128x512xbf16>, vector<8x512xf32> -> vector<8x512xf32>
    %682 = arith.addf %678, %681 : vector<8x512xf32>
    %683 = vector.extract_strided_slice %682 {offsets = [0, 0], sizes = [8, 384], strides = [1, 1]} : vector<8x512xf32> to vector<8x384xf32>
    %684 = arith.negf %683 : vector<8x384xf32>
    %685 = math.exp %684 : vector<8x384xf32>
    %cst_249 = arith.constant 1.000000e+00 : f32
    %686 = vector.broadcast %cst_249 : f32 to vector<8x384xf32>
    %687 = arith.addf %686, %685 : vector<8x384xf32>
    %688 = arith.divf %686, %687 : vector<8x384xf32>
    %689 = vector.extract_strided_slice %688 {offsets = [0, 0], sizes = [8, 128], strides = [1, 1]} : vector<8x384xf32> to vector<8x128xf32>
    %690 = vector.extract_strided_slice %688 {offsets = [0, 128], sizes = [8, 128], strides = [1, 1]} : vector<8x384xf32> to vector<8x128xf32>
    %691 = vector.extract_strided_slice %688 {offsets = [0, 256], sizes = [8, 128], strides = [1, 1]} : vector<8x384xf32> to vector<8x128xf32>
    %692 = vector.extract_strided_slice %682 {offsets = [0, 384], sizes = [8, 128], strides = [1, 1]} : vector<8x512xf32> to vector<8x128xf32>
    %693 = math.tanh %692 : vector<8x128xf32>
    %694 = arith.mulf %690, %648 : vector<8x128xf32>
    %695 = arith.mulf %689, %693 : vector<8x128xf32>
    %696 = arith.addf %694, %695 : vector<8x128xf32>
    %697 = math.tanh %696 : vector<8x128xf32>
    %698 = arith.mulf %691, %697 : vector<8x128xf32>
    %c6_250 = arith.constant 6 : index
    %c0_251 = arith.constant 0 : index
    %c0_252 = arith.constant 0 : index
    %699 = vector.load %arg15[%c6_250, %c0_251, %c0_252] : memref<8x8x256xf32, #tpu.memory_space<vmem>>, vector<1x8x128xf32>
    %700 = vector.shape_cast %699 : vector<1x8x128xf32> to vector<8x128xf32>
    %701 = vector.shape_cast %677 : vector<8x128xf32> to vector<1x8x128xf32>
    tpu.vector_store %arg15[%c6_250, %c0_251, %c0_252], %701 {strides = array<i32>} : memref<8x8x256xf32, #tpu.memory_space<vmem>>, vector<1x8x128xf32>,
    %c1_253 = arith.constant 1 : index
    %c0_254 = arith.constant 0 : index
    %c128_255 = arith.constant 128 : index
    %702 = vector.load %arg15[%c1_253, %c0_254, %c128_255] : memref<8x8x256xf32, #tpu.memory_space<vmem>>, vector<1x8x128xf32>
    %703 = vector.shape_cast %702 : vector<1x8x128xf32> to vector<8x128xf32>
    %704 = vector.shape_cast %698 : vector<8x128xf32> to vector<1x8x128xf32>
    tpu.vector_store %arg15[%c1_253, %c0_254, %c128_255], %704 {strides = array<i32>} : memref<8x8x256xf32, #tpu.memory_space<vmem>>, vector<1x8x128xf32>,
    %c56_256 = arith.constant 56 : index
    %c0_257 = arith.constant 0 : index
    %705 = vector.load %arg13[%c56_256, %c0_257] : memref<64x1024xf32, #tpu.memory_space<vmem>>, vector<8x512xf32>
    %706 = arith.truncf %677 : vector<8x128xf32> to vector<8x128xbf16>
    %c0_258 = arith.constant 0 : index
    %c0_259 = arith.constant 0 : index
    %707 = vector.load %arg8[%c0_258, %c0_259] : memref<128x512xbf16, #tpu.memory_space<vmem>>, vector<128x512xbf16>
    %cst_260 = arith.constant dense<0.000000e+00> : vector<8x512xf32>
    %708 = tpu.matmul %706, %707, %cst_260 {dimension_numbers = #tpu.dot_dimension_numbers<[1], [0], [0], [1], [0, 0, 1, 1], [], []>} : vector<8x128xbf16>, vector<128x512xbf16>, vector<8x512xf32> -> vector<8x512xf32>
    %709 = arith.addf %705, %708 : vector<8x512xf32>
    %710 = vector.extract_strided_slice %709 {offsets = [0, 0], sizes = [8, 384], strides = [1, 1]} : vector<8x512xf32> to vector<8x384xf32>
    %711 = arith.negf %710 : vector<8x384xf32>
    %712 = math.exp %711 : vector<8x384xf32>
    %cst_261 = arith.constant 1.000000e+00 : f32
    %713 = vector.broadcast %cst_261 : f32 to vector<8x384xf32>
    %714 = arith.addf %713, %712 : vector<8x384xf32>
    %715 = arith.divf %713, %714 : vector<8x384xf32>
    %716 = vector.extract_strided_slice %715 {offsets = [0, 0], sizes = [8, 128], strides = [1, 1]} : vector<8x384xf32> to vector<8x128xf32>
    %717 = vector.extract_strided_slice %715 {offsets = [0, 128], sizes = [8, 128], strides = [1, 1]} : vector<8x384xf32> to vector<8x128xf32>
    %718 = vector.extract_strided_slice %715 {offsets = [0, 256], sizes = [8, 128], strides = [1, 1]} : vector<8x384xf32> to vector<8x128xf32>
    %719 = vector.extract_strided_slice %709 {offsets = [0, 384], sizes = [8, 128], strides = [1, 1]} : vector<8x512xf32> to vector<8x128xf32>
    %720 = math.tanh %719 : vector<8x128xf32>
    %721 = arith.mulf %717, %675 : vector<8x128xf32>
    %722 = arith.mulf %716, %720 : vector<8x128xf32>
    %723 = arith.addf %721, %722 : vector<8x128xf32>
    %724 = math.tanh %723 : vector<8x128xf32>
    %725 = arith.mulf %718, %724 : vector<8x128xf32>
    %c0_262 = arith.constant 0 : index
    %c512_263 = arith.constant 512 : index
    %726 = vector.load %arg13[%c0_262, %c512_263] : memref<64x1024xf32, #tpu.memory_space<vmem>>, vector<8x512xf32>
    %727 = arith.truncf %698 : vector<8x128xf32> to vector<8x128xbf16>
    %c0_264 = arith.constant 0 : index
    %c0_265 = arith.constant 0 : index
    %728 = vector.load %arg9[%c0_264, %c0_265] : memref<128x512xbf16, #tpu.memory_space<vmem>>, vector<128x512xbf16>
    %cst_266 = arith.constant dense<0.000000e+00> : vector<8x512xf32>
    %729 = tpu.matmul %727, %728, %cst_266 {dimension_numbers = #tpu.dot_dimension_numbers<[1], [0], [0], [1], [0, 0, 1, 1], [], []>} : vector<8x128xbf16>, vector<128x512xbf16>, vector<8x512xf32> -> vector<8x512xf32>
    %730 = arith.addf %726, %729 : vector<8x512xf32>
    %731 = vector.extract_strided_slice %730 {offsets = [0, 0], sizes = [8, 384], strides = [1, 1]} : vector<8x512xf32> to vector<8x384xf32>
    %732 = arith.negf %731 : vector<8x384xf32>
    %733 = math.exp %732 : vector<8x384xf32>
    %cst_267 = arith.constant 1.000000e+00 : f32
    %734 = vector.broadcast %cst_267 : f32 to vector<8x384xf32>
    %735 = arith.addf %734, %733 : vector<8x384xf32>
    %736 = arith.divf %734, %735 : vector<8x384xf32>
    %737 = vector.extract_strided_slice %736 {offsets = [0, 0], sizes = [8, 128], strides = [1, 1]} : vector<8x384xf32> to vector<8x128xf32>
    %738 = vector.extract_strided_slice %736 {offsets = [0, 128], sizes = [8, 128], strides = [1, 1]} : vector<8x384xf32> to vector<8x128xf32>
    %739 = vector.extract_strided_slice %736 {offsets = [0, 256], sizes = [8, 128], strides = [1, 1]} : vector<8x384xf32> to vector<8x128xf32>
    %740 = vector.extract_strided_slice %730 {offsets = [0, 384], sizes = [8, 128], strides = [1, 1]} : vector<8x512xf32> to vector<8x128xf32>
    %741 = math.tanh %740 : vector<8x128xf32>
    %742 = arith.mulf %738, %696 : vector<8x128xf32>
    %743 = arith.mulf %737, %741 : vector<8x128xf32>
    %744 = arith.addf %742, %743 : vector<8x128xf32>
    %745 = math.tanh %744 : vector<8x128xf32>
    %746 = arith.mulf %739, %745 : vector<8x128xf32>
    %c7_268 = arith.constant 7 : index
    %c0_269 = arith.constant 0 : index
    %c0_270 = arith.constant 0 : index
    %747 = vector.load %arg15[%c7_268, %c0_269, %c0_270] : memref<8x8x256xf32, #tpu.memory_space<vmem>>, vector<1x8x128xf32>
    %748 = vector.shape_cast %747 : vector<1x8x128xf32> to vector<8x128xf32>
    %749 = vector.shape_cast %725 : vector<8x128xf32> to vector<1x8x128xf32>
    tpu.vector_store %arg15[%c7_268, %c0_269, %c0_270], %749 {strides = array<i32>} : memref<8x8x256xf32, #tpu.memory_space<vmem>>, vector<1x8x128xf32>,
    %c0_271 = arith.constant 0 : index
    %c0_272 = arith.constant 0 : index
    %c128_273 = arith.constant 128 : index
    %750 = vector.load %arg15[%c0_271, %c0_272, %c128_273] : memref<8x8x256xf32, #tpu.memory_space<vmem>>, vector<1x8x128xf32>
    %751 = vector.shape_cast %750 : vector<1x8x128xf32> to vector<8x128xf32>
    %752 = vector.shape_cast %746 : vector<8x128xf32> to vector<1x8x128xf32>
    tpu.vector_store %arg15[%c0_271, %c0_272, %c128_273], %752 {strides = array<i32>} : memref<8x8x256xf32, #tpu.memory_space<vmem>>, vector<1x8x128xf32>,
    %c0_274 = arith.constant 0 : index
    %753 = memref.load %arg0[%c0_274] : memref<8xi32, #tpu.memory_space<smem>>
    %c1_i32 = arith.constant 1 : i32
    %754 = arith.subi %753, %c1_i32 : i32
    %755 = arith.index_cast %754 : i32 to index
    %c0_275 = arith.constant 0 : index
    %c0_276 = arith.constant 0 : index
    %756 = vector.load %arg15[%755, %c0_275, %c0_276] : memref<8x8x256xf32, #tpu.memory_space<vmem>>, vector<1x8x256xf32>
    %757 = vector.shape_cast %756 : vector<1x8x256xf32> to vector<8x256xf32>
    %758 = vector.extract_strided_slice %757 {offsets = [0, 0], sizes = [1, 256], strides = [1, 1]} : vector<8x256xf32> to vector<1x256xf32>
    %c0_277 = arith.constant 0 : index
    %c0_278 = arith.constant 0 : index
    %759 = vector.load %arg16[%c0_277, %c0_278] : memref<8x256xf32, #tpu.memory_space<vmem>>, vector<1x256xf32>
    tpu.vector_store %arg16[%c0_277, %c0_278], %758 {strides = array<i32>} : memref<8x256xf32, #tpu.memory_space<vmem>>, vector<1x256xf32>,
    %c1_279 = arith.constant 1 : index
    %760 = memref.load %arg0[%c1_279] : memref<8xi32, #tpu.memory_space<smem>>
    %c1_i32_280 = arith.constant 1 : i32
    %761 = arith.subi %760, %c1_i32_280 : i32
    %762 = arith.index_cast %761 : i32 to index
    %c0_281 = arith.constant 0 : index
    %c0_282 = arith.constant 0 : index
    %763 = vector.load %arg15[%762, %c0_281, %c0_282] : memref<8x8x256xf32, #tpu.memory_space<vmem>>, vector<1x8x256xf32>
    %764 = vector.shape_cast %763 : vector<1x8x256xf32> to vector<8x256xf32>
    %765 = vector.extract_strided_slice %764 {offsets = [1, 0], sizes = [1, 256], strides = [1, 1]} : vector<8x256xf32> to vector<1x256xf32>
    %c1_283 = arith.constant 1 : index
    %c0_284 = arith.constant 0 : index
    %766 = vector.load %arg16[%c1_283, %c0_284] : memref<8x256xf32, #tpu.memory_space<vmem>>, vector<1x256xf32>
    tpu.vector_store %arg16[%c1_283, %c0_284], %765 {strides = array<i32>} : memref<8x256xf32, #tpu.memory_space<vmem>>, vector<1x256xf32>,
    %c2_285 = arith.constant 2 : index
    %767 = memref.load %arg0[%c2_285] : memref<8xi32, #tpu.memory_space<smem>>
    %c1_i32_286 = arith.constant 1 : i32
    %768 = arith.subi %767, %c1_i32_286 : i32
    %769 = arith.index_cast %768 : i32 to index
    %c0_287 = arith.constant 0 : index
    %c0_288 = arith.constant 0 : index
    %770 = vector.load %arg15[%769, %c0_287, %c0_288] : memref<8x8x256xf32, #tpu.memory_space<vmem>>, vector<1x8x256xf32>
    %771 = vector.shape_cast %770 : vector<1x8x256xf32> to vector<8x256xf32>
    %772 = vector.extract_strided_slice %771 {offsets = [2, 0], sizes = [1, 256], strides = [1, 1]} : vector<8x256xf32> to vector<1x256xf32>
    %c2_289 = arith.constant 2 : index
    %c0_290 = arith.constant 0 : index
    %773 = vector.load %arg16[%c2_289, %c0_290] : memref<8x256xf32, #tpu.memory_space<vmem>>, vector<1x256xf32>
    tpu.vector_store %arg16[%c2_289, %c0_290], %772 {strides = array<i32>} : memref<8x256xf32, #tpu.memory_space<vmem>>, vector<1x256xf32>,
    %c3_291 = arith.constant 3 : index
    %774 = memref.load %arg0[%c3_291] : memref<8xi32, #tpu.memory_space<smem>>
    %c1_i32_292 = arith.constant 1 : i32
    %775 = arith.subi %774, %c1_i32_292 : i32
    %776 = arith.index_cast %775 : i32 to index
    %c0_293 = arith.constant 0 : index
    %c0_294 = arith.constant 0 : index
    %777 = vector.load %arg15[%776, %c0_293, %c0_294] : memref<8x8x256xf32, #tpu.memory_space<vmem>>, vector<1x8x256xf32>
    %778 = vector.shape_cast %777 : vector<1x8x256xf32> to vector<8x256xf32>
    %779 = vector.extract_strided_slice %778 {offsets = [3, 0], sizes = [1, 256], strides = [1, 1]} : vector<8x256xf32> to vector<1x256xf32>
    %c3_295 = arith.constant 3 : index
    %c0_296 = arith.constant 0 : index
    %780 = vector.load %arg16[%c3_295, %c0_296] : memref<8x256xf32, #tpu.memory_space<vmem>>, vector<1x256xf32>
    tpu.vector_store %arg16[%c3_295, %c0_296], %779 {strides = array<i32>} : memref<8x256xf32, #tpu.memory_space<vmem>>, vector<1x256xf32>,
    %c4_297 = arith.constant 4 : index
    %781 = memref.load %arg0[%c4_297] : memref<8xi32, #tpu.memory_space<smem>>
    %c1_i32_298 = arith.constant 1 : i32
    %782 = arith.subi %781, %c1_i32_298 : i32
    %783 = arith.index_cast %782 : i32 to index
    %c0_299 = arith.constant 0 : index
    %c0_300 = arith.constant 0 : index
    %784 = vector.load %arg15[%783, %c0_299, %c0_300] : memref<8x8x256xf32, #tpu.memory_space<vmem>>, vector<1x8x256xf32>
    %785 = vector.shape_cast %784 : vector<1x8x256xf32> to vector<8x256xf32>
    %786 = vector.extract_strided_slice %785 {offsets = [4, 0], sizes = [1, 256], strides = [1, 1]} : vector<8x256xf32> to vector<1x256xf32>
    %c4_301 = arith.constant 4 : index
    %c0_302 = arith.constant 0 : index
    %787 = vector.load %arg16[%c4_301, %c0_302] : memref<8x256xf32, #tpu.memory_space<vmem>>, vector<1x256xf32>
    tpu.vector_store %arg16[%c4_301, %c0_302], %786 {strides = array<i32>} : memref<8x256xf32, #tpu.memory_space<vmem>>, vector<1x256xf32>,
    %c5_303 = arith.constant 5 : index
    %788 = memref.load %arg0[%c5_303] : memref<8xi32, #tpu.memory_space<smem>>
    %c1_i32_304 = arith.constant 1 : i32
    %789 = arith.subi %788, %c1_i32_304 : i32
    %790 = arith.index_cast %789 : i32 to index
    %c0_305 = arith.constant 0 : index
    %c0_306 = arith.constant 0 : index
    %791 = vector.load %arg15[%790, %c0_305, %c0_306] : memref<8x8x256xf32, #tpu.memory_space<vmem>>, vector<1x8x256xf32>
    %792 = vector.shape_cast %791 : vector<1x8x256xf32> to vector<8x256xf32>
    %793 = vector.extract_strided_slice %792 {offsets = [5, 0], sizes = [1, 256], strides = [1, 1]} : vector<8x256xf32> to vector<1x256xf32>
    %c5_307 = arith.constant 5 : index
    %c0_308 = arith.constant 0 : index
    %794 = vector.load %arg16[%c5_307, %c0_308] : memref<8x256xf32, #tpu.memory_space<vmem>>, vector<1x256xf32>
    tpu.vector_store %arg16[%c5_307, %c0_308], %793 {strides = array<i32>} : memref<8x256xf32, #tpu.memory_space<vmem>>, vector<1x256xf32>,
    %c6_309 = arith.constant 6 : index
    %795 = memref.load %arg0[%c6_309] : memref<8xi32, #tpu.memory_space<smem>>
    %c1_i32_310 = arith.constant 1 : i32
    %796 = arith.subi %795, %c1_i32_310 : i32
    %797 = arith.index_cast %796 : i32 to index
    %c0_311 = arith.constant 0 : index
    %c0_312 = arith.constant 0 : index
    %798 = vector.load %arg15[%797, %c0_311, %c0_312] : memref<8x8x256xf32, #tpu.memory_space<vmem>>, vector<1x8x256xf32>
    %799 = vector.shape_cast %798 : vector<1x8x256xf32> to vector<8x256xf32>
    %800 = vector.extract_strided_slice %799 {offsets = [6, 0], sizes = [1, 256], strides = [1, 1]} : vector<8x256xf32> to vector<1x256xf32>
    %c6_313 = arith.constant 6 : index
    %c0_314 = arith.constant 0 : index
    %801 = vector.load %arg16[%c6_313, %c0_314] : memref<8x256xf32, #tpu.memory_space<vmem>>, vector<1x256xf32>
    tpu.vector_store %arg16[%c6_313, %c0_314], %800 {strides = array<i32>} : memref<8x256xf32, #tpu.memory_space<vmem>>, vector<1x256xf32>,
    %c7_315 = arith.constant 7 : index
    %802 = memref.load %arg0[%c7_315] : memref<8xi32, #tpu.memory_space<smem>>
    %c1_i32_316 = arith.constant 1 : i32
    %803 = arith.subi %802, %c1_i32_316 : i32
    %804 = arith.index_cast %803 : i32 to index
    %c0_317 = arith.constant 0 : index
    %c0_318 = arith.constant 0 : index
    %805 = vector.load %arg15[%804, %c0_317, %c0_318] : memref<8x8x256xf32, #tpu.memory_space<vmem>>, vector<1x8x256xf32>
    %806 = vector.shape_cast %805 : vector<1x8x256xf32> to vector<8x256xf32>
    %807 = vector.extract_strided_slice %806 {offsets = [7, 0], sizes = [1, 256], strides = [1, 1]} : vector<8x256xf32> to vector<1x256xf32>
    %c7_319 = arith.constant 7 : index
    %c0_320 = arith.constant 0 : index
    %808 = vector.load %arg16[%c7_319, %c0_320] : memref<8x256xf32, #tpu.memory_space<vmem>>, vector<1x256xf32>
    tpu.vector_store %arg16[%c7_319, %c0_320], %807 {strides = array<i32>} : memref<8x256xf32, #tpu.memory_space<vmem>>, vector<1x256xf32>,
    %c0_321 = arith.constant 0 : index
    %c0_322 = arith.constant 0 : index
    %809 = vector.load %arg16[%c0_321, %c0_322] : memref<8x256xf32, #tpu.memory_space<vmem>>, vector<8x256xf32>
    %810 = arith.truncf %809 : vector<8x256xf32> to vector<8x256xbf16>
    %c0_323 = arith.constant 0 : index
    %c0_324 = arith.constant 0 : index
    %811 = vector.load %arg10[%c0_323, %c0_324] : memref<256x128xbf16, #tpu.memory_space<vmem>>, vector<256x128xbf16>
    %cst_325 = arith.constant dense<0.000000e+00> : vector<8x128xf32>
    %812 = tpu.matmul %810, %811, %cst_325 {dimension_numbers = #tpu.dot_dimension_numbers<[1], [0], [0], [1], [0, 0, 1, 1], [], []>} : vector<8x256xbf16>, vector<256x128xbf16>, vector<8x128xf32> -> vector<8x128xf32>
    %c0_326 = arith.constant 0 : index
    %c0_327 = arith.constant 0 : index
    %813 = vector.load %arg11[%c0_326, %c0_327] : memref<1x128xf32, #tpu.memory_space<vmem>>, vector<1x128xf32>
    %814 = vector.broadcast %813 : vector<1x128xf32> to vector<8x128xf32>
    %815 = arith.addf %812, %814 : vector<8x128xf32>
    %c0_328 = arith.constant 0 : index
    %c0_329 = arith.constant 0 : index
    %c0_330 = arith.constant 0 : index
    %816 = vector.load %arg15[%c0_328, %c0_329, %c0_330] : memref<8x8x256xf32, #tpu.memory_space<vmem>>, vector<1x8x256xf32>
    %817 = vector.shape_cast %816 : vector<1x8x256xf32> to vector<8x256xf32>
    %818 = arith.truncf %817 : vector<8x256xf32> to vector<8x256xbf16>
    %c0_331 = arith.constant 0 : index
    %c0_332 = arith.constant 0 : index
    %819 = vector.load %arg10[%c0_331, %c0_332] : memref<256x128xbf16, #tpu.memory_space<vmem>>, vector<256x128xbf16>
    %cst_333 = arith.constant dense<0.000000e+00> : vector<8x128xf32>
    %820 = tpu.matmul %818, %819, %cst_333 {dimension_numbers = #tpu.dot_dimension_numbers<[1], [0], [0], [1], [0, 0, 1, 1], [], []>} : vector<8x256xbf16>, vector<256x128xbf16>, vector<8x128xf32> -> vector<8x128xf32>
    %c0_334 = arith.constant 0 : index
    %c0_335 = arith.constant 0 : index
    %821 = vector.load %arg11[%c0_334, %c0_335] : memref<1x128xf32, #tpu.memory_space<vmem>>, vector<1x128xf32>
    %822 = vector.broadcast %821 : vector<1x128xf32> to vector<8x128xf32>
    %823 = arith.addf %820, %822 : vector<8x128xf32>
    %824 = tpu.iota {dimensions = array<i32: 1>} : vector<8x128xi32>
    %c5_i32 = arith.constant 5 : i32
    %825 = vector.broadcast %c5_i32 : i32 to vector<8x128xi32>
    %826 = arith.cmpi slt, %824, %825 : vector<8x128xi32>
    %827 = arith.select %826, %815, %823 : vector<8x128xi1>, vector<8x128xf32>
    %c0_336 = arith.constant 0 : index
    %c0_337 = arith.constant 0 : index
    %828 = vector.load %arg12[%c0_336, %c0_337] : memref<8x128xf32, #tpu.memory_space<vmem>>, vector<8x128xf32>
    tpu.vector_store %arg12[%c0_336, %c0_337], %827 {strides = array<i32>} : memref<8x128xf32, #tpu.memory_space<vmem>>, vector<8x128xf32>,
    return
  }
}

</mosaic_0001>

<bundles_post_ra>
// kernel: basic_lstm_forward.1
= control target key start
LH: loop header
LB: loop body
LE: loop exit
PB: predicated region body
PF: predicated region fallthrough
CT: control target
= control target key end

     0   :  { %17 = vsyncpa [#allocation8], 0  ;;  %s18572_s0 = inlined_call_operand.vmem [shape: s32[8], index: 0, kind: input, shape index: {}]   ;;  %s18573_s1 = inlined_call_operand.vmem [shape: bf16[64,128], index: 1, kind: input, shape index: {}]   ;;  %s18574_s2 = inlined_call_operand.hbm [shape: bf16[128,1024], index: 2, kind: input, shape index: {}]   ;;  %s18575_s3 = inlined_call_operand.vmem [shape: f32[1,1024], index: 3, kind: input, shape index: {}]   ;;  %s18576_s4 = inlined_call_operand.hbm [shape: bf16[128,512], index: 4, kind: input, shape index: {}]   ;;  %s18577_s5 = inlined_call_operand.hbm [shape: bf16[128,512], index: 5, kind: input, shape index: {}]   ;;  %s18578_s6 = inlined_call_operand.hbm [shape: bf16[256,1024], index: 6, kind: input, shape index: {}]   ;;  %s18579_s7 = inlined_call_operand.vmem [shape: f32[1,1024], index: 7, kind: input, shape index: {}]   ;;  %s18580_s8 = inlined_call_operand.hbm [shape: bf16[128,512], index: 8, kind: input, shape index: {}]   ;;  %s18581_s9 = inlined_call_operand.hbm [shape: bf16[128,512], index: 9, kind: input, shape index: {}]   ;;  %s18582_s10 = inlined_call_operand.hbm [shape: bf16[256,128], index: 10, kind: input, shape index: {}]   ;;  %s18583_s11 = inlined_call_operand.vmem [shape: f32[1,128], index: 11, kind: input, shape index: {}]   ;;  %s18584_s12 = inlined_call_operand.vmem [shape: f32[8,128], index: 12, kind: output, shape index: {}]  }
   0x1   :  { %18 = vsyncpa [#allocation7], 0 }
   0x2   :  { %19 = vsyncpa [#allocation11], 0 }
   0x3   :  { %20 = vsyncpa [#allocation14], 0 }
   0x4   :  { %21 = vsyncpa [#allocation17], 0  ;;  %s15447_s21 = smov [#allocation10]   ;;  %s15271_s25 = scalar_lea.hbm %s18576_s4, 4096 }
   0x5   :  { %s53_s22 = sshll.u32 %s15447_s21, 4  ;;  %p15272_p0 = scmp.ne.s32.totalorder %s18576_s4, %s15271_s25  ;;  %s54_s22 = int_to_ptr.vmem [resolvable:$true] %s53_s22 }
   0x6   :  { %p15275_p1 = scmp.lt.u32.totalorder %s15271_s25, %s18576_s4 }
   0x8   :  { %p15277_p2 = pnand %p15275_p1, %p15272_p0 }
   0xa   :  { %15280 = shalt.err (!%p15277_p2)
}
   0xb   :  { %s15281_s30 = scalar_lea.vmem %s54_s22, 4096  ;;  %p15286_p4 = scmp.lt.s32.totalorder %s54_s22, %s54_s22 }
   0xc   :  { %p15282_p3 = scmp.ne.s32.totalorder %s54_s22, %s15281_s30  ;;  %p15287_p5 = scmp.lt.s32.totalorder %s15281_s30, %s15281_s30 }
   0xe   :  { %p15288_p6 = por %p15287_p5, %p15286_p4 }
  0x10   :  { %p15289_p7 = pnand %p15288_p6, %p15282_p3 }
  0x12   :  { %15292 = shalt.err (!%p15289_p7)
}
  0x13   :  { %s15448_s13 = smov 256   ;;  %s15449_s14 = smov 16  }
  0x14   :  { %59 = dma.hbm_to_vmem [thread:$0]  %s18576_s4, 4096, %s54_s22, [#allocation11], %s15448_s13, %s15448_s13, %s15449_s14  }
  0x15   :  { %s15450_s17 = smov [#allocation13]   ;;  %s15451_s19 = smov [#allocation16]  }
  0x16   :  { %s77_s18 = sshll.u32 %s15450_s17, 4  ;;  %s103_s20 = sshll.u32 %s15451_s19, 4  ;;  %s78_s18 = int_to_ptr.vmem [resolvable:$true] %s77_s18  ;;  %s104_s20 = int_to_ptr.vmem [resolvable:$true] %s103_s20 }
  0x17   :  { %s15293_s24 = scalar_lea.hbm %s18578_s6, 16384 }
  0x18   :  { %p15294_p8 = scmp.ne.s32.totalorder %s18578_s6, %s15293_s24  ;;  %p15297_p9 = scmp.lt.u32.totalorder %s15293_s24, %s18578_s6 }
  0x1a   :  { %p15299_p10 = pnand %p15297_p9, %p15294_p8 }
  0x1c   :  { %15302 = shalt.err (!%p15299_p10)
}
  0x1d   :  { %s15303_s4 = scalar_lea.vmem %s78_s18, 16384  ;;  %p15308_p12 = scmp.lt.s32.totalorder %s78_s18, %s78_s18 }
  0x1e   :  { %p15304_p11 = scmp.ne.s32.totalorder %s78_s18, %s15303_s4  ;;  %p15309_p13 = scmp.lt.s32.totalorder %s15303_s4, %s15303_s4 }
  0x20   :  { %p15310_p0 = por %p15309_p13, %p15308_p12 }
  0x22   :  { %p15311_p1 = pnand %p15310_p0, %p15304_p11 }
  0x24   :  { %15314 = shalt.err (!%p15311_p1)
}
  0x25   :  { %s15452_s22 = smov 512   ;;  %s15453_s29 = smov 32  }
  0x26   :  { %83 = dma.hbm_to_vmem [thread:$0]  %s18578_s6, 16384, %s78_s18, [#allocation14], %s15452_s22, %s15452_s22, %s15453_s29  }
  0x27   :  { %s28_s19 = sshll.u32 %s18572_s0, 4  ;;  %s15315_s24 = scalar_lea.hbm %s18581_s9, 4096  ;;  %s29_s19 = int_to_ptr.vmem [resolvable:$true] %s28_s19 }
  0x28   :  { %p15316_p2 = scmp.ne.s32.totalorder %s18581_s9, %s15315_s24  ;;  %p15319_p3 = scmp.lt.u32.totalorder %s15315_s24, %s18581_s9 }
  0x2a   :  { %p15321_p4 = pnand %p15319_p3, %p15316_p2 }
  0x2c   :  { %15324 = shalt.err (!%p15321_p4)
}
  0x2d   :  { %s15325_s6 = scalar_lea.vmem %s104_s20, 4096  ;;  %p15330_p6 = scmp.lt.s32.totalorder %s104_s20, %s104_s20 }
  0x2e   :  { %p15326_p5 = scmp.ne.s32.totalorder %s104_s20, %s15325_s6  ;;  %p15331_p7 = scmp.lt.s32.totalorder %s15325_s6, %s15325_s6 }
  0x30   :  { %p15332_p8 = por %p15331_p7, %p15330_p6 }
  0x32   :  { %p15333_p9 = pnand %p15332_p8, %p15326_p5 }
  0x34   :  { %15336 = shalt.err (!%p15333_p9)
}
  0x35   :  { %109 = dma.hbm_to_vmem [thread:$0]  %s18581_s9, 4096, %s104_s20, [#allocation17], %s15448_s13, %s15448_s13, %s15449_s14  }
  0x36   :  { %s15337_s4 = scalar_lea.vmem %s29_s19, 16  ;;  %p15342_p11 = scmp.lt.s32.totalorder %s29_s19, %s29_s19 }
  0x37   :  { %p15338_p10 = scmp.ne.s32.totalorder %s29_s19, %s15337_s4  ;;  %p15343_p12 = scmp.lt.s32.totalorder %s15337_s4, %s15337_s4 }
  0x39   :  { %p15344_p13 = por %p15343_p12, %p15342_p11 }
  0x3b   :  { %p15345_p0 = pnand %p15344_p13, %p15338_p10 }
  0x3d   :  { %15348 = shalt.err (!%p15345_p0)
}
  0x3e   :  { %s15454_s30 = smov [#allocation6]   ;;  %s15455_s15 = smov [#allocation9]  }
  0x3f   :  { %31 = dma.vmem_to_smem %s29_s19, 16, %s15454_s30, [#allocation8]  }
  0x40   :  { %s39_s16 = sshll.u32 %s15455_s15, 4  ;;  %s15456_s17 = smov [#allocation12]   ;;  %s40_s16 = int_to_ptr.vmem [resolvable:$true] %s39_s16 }
  0x41   :  { %s65_s21 = sshll.u32 %s15456_s17, 4  ;;  %s15349_s9 = scalar_lea.hbm %s18574_s2, 8192  ;;  %s15576_s21 = int_to_ptr.vmem [resolvable:$true] %s65_s21 }
  0x42   :  { %p15350_p1 = scmp.ne.s32.totalorder %s18574_s2, %s15349_s9  ;;  %p15353_p2 = scmp.lt.u32.totalorder %s15349_s9, %s18574_s2 }
  0x44   :  { %p15355_p3 = pnand %p15353_p2, %p15350_p1 }
  0x46   :  { %15358 = shalt.err (!%p15355_p3)
}
  0x47   :  { %s15359_s19 = scalar_lea.vmem %s40_s16, 8192  ;;  %p15364_p5 = scmp.lt.s32.totalorder %s40_s16, %s40_s16 }
  0x48   :  { %p15360_p4 = scmp.ne.s32.totalorder %s40_s16, %s15359_s19  ;;  %p15365_p6 = scmp.lt.s32.totalorder %s15359_s19, %s15359_s19 }
  0x4a   :  { %p15366_p7 = por %p15365_p6, %p15364_p5 }
  0x4c   :  { %p15367_p8 = pnand %p15366_p7, %p15360_p4 }
  0x4e   :  { %15370 = shalt.err (!%p15367_p8)
}
  0x4f   :  { %45 = dma.hbm_to_vmem [thread:$0]  %s18574_s2, 8192, %s40_s16, [#allocation7], %s15452_s22, %s15452_s22, %s15453_s29  }
  0x50   :  { %s15371_s4 = scalar_lea.hbm %s18577_s5, 4096 }
  0x51   :  { %p15372_p9 = scmp.ne.s32.totalorder %s18577_s5, %s15371_s4  ;;  %p15375_p10 = scmp.lt.u32.totalorder %s15371_s4, %s18577_s5 }
  0x53   :  { %p15377_p11 = pnand %p15375_p10, %p15372_p9 }
  0x55   :  { %15380 = shalt.err (!%p15377_p11)
}
  0x56   :  { %s15381_s24 = scalar_lea.vmem %s15576_s21, 4096  ;;  %p15386_p13 = scmp.lt.s32.totalorder %s15576_s21, %s15576_s21 }
  0x57   :  { %p15382_p12 = scmp.ne.s32.totalorder %s15576_s21, %s15381_s24  ;;  %p15387_p0 = scmp.lt.s32.totalorder %s15381_s24, %s15381_s24 }
  0x59   :  { %p15388_p1 = por %p15387_p0, %p15386_p13 }
  0x5b   :  { %p15389_p2 = pnand %p15388_p1, %p15382_p12 }
  0x5d   :  { %15392 = shalt.err (!%p15389_p2)
}
  0x5e   :  { %71 = dma.hbm_to_vmem [thread:$0]  %s18577_s5, 4096, %s15576_s21, [#allocation11], %s15448_s13, %s15448_s13, %s15449_s14  }
  0x5f   :  { %s15457_s29 = smov [#allocation15]   ;;  %s15458_s9 = smov [#allocation18]  }
  0x60   :  { %s91_s16 = sshll.u32 %s15457_s29, 4  ;;  %s115_s20 = sshll.u32 %s15458_s9, 4  ;;  %s92_s16 = int_to_ptr.vmem [resolvable:$true] %s91_s16  ;;  %s15613_s20 = int_to_ptr.vmem [resolvable:$true] %s115_s20 }
  0x61   :  { %s15393_s27 = scalar_lea.hbm %s18580_s8, 4096 }
  0x62   :  { %p15394_p3 = scmp.ne.s32.totalorder %s18580_s8, %s15393_s27  ;;  %p15397_p4 = scmp.lt.u32.totalorder %s15393_s27, %s18580_s8 }
  0x64   :  { %p15399_p5 = pnand %p15397_p4, %p15394_p3 }
  0x66   :  { %15402 = shalt.err (!%p15399_p5)
}
  0x67   :  { %s15403_s5 = scalar_lea.vmem %s92_s16, 4096  ;;  %p15408_p7 = scmp.lt.s32.totalorder %s92_s16, %s92_s16 }
  0x68   :  { %p15404_p6 = scmp.ne.s32.totalorder %s92_s16, %s15403_s5  ;;  %p15409_p8 = scmp.lt.s32.totalorder %s15403_s5, %s15403_s5 }
  0x6a   :  { %p15410_p9 = por %p15409_p8, %p15408_p7 }
  0x6c   :  { %p15411_p10 = pnand %p15410_p9, %p15404_p6 }
  0x6e   :  { %15414 = shalt.err (!%p15411_p10)
}
  0x6f   :  { %97 = dma.hbm_to_vmem [thread:$0]  %s18580_s8, 4096, %s92_s16, [#allocation14], %s15448_s13, %s15448_s13, %s15449_s14  }
  0x70   :  { %s15415_s15 = scalar_lea.hbm %s18582_s10, 2048 }
  0x71   :  { %p15416_p11 = scmp.ne.s32.totalorder %s18582_s10, %s15415_s15  ;;  %p15419_p12 = scmp.lt.u32.totalorder %s15415_s15, %s18582_s10 }
  0x73   :  { %p15421_p13 = pnand %p15419_p12, %p15416_p11 }
  0x75   :  { %15424 = shalt.err (!%p15421_p13)
}
  0x76   :  { %s15425_s22 = scalar_lea.vmem %s15613_s20, 2048  ;;  %p15430_p1 = scmp.lt.s32.totalorder %s15613_s20, %s15613_s20 }
  0x77   :  { %p15426_p0 = scmp.ne.s32.totalorder %s15613_s20, %s15425_s22  ;;  %p15431_p2 = scmp.lt.s32.totalorder %s15425_s22, %s15425_s22 }
  0x79   :  { %p15432_p3 = por %p15431_p2, %p15430_p1 }
  0x7b   :  { %p15433_p4 = pnand %p15432_p3, %p15426_p0 }
  0x7d   :  { %15436 = shalt.err (!%p15433_p4)
}
  0x7e   :  { %s15459_s8 = smov 64   ;;  %s15460_s13 = smov 4  }
  0x7f   :  { %121 = dma.hbm_to_vmem [thread:$0]  %s18582_s10, 2048, %s15613_s20, [#allocation17], %s15459_s8, %s15459_s8, %s15460_s13  }
  0x80   :  { %15437 = dma.done.wait [#allocation8], 16  }
  0x81   :  { %15438 = vsyncadd [#allocation8], 4294967280 }
  0x82   :  { %15439 = dma.done.wait [#allocation7], 8192  }
  0x83   :  { %15440 = vsyncadd [#allocation7], 4294959104 }
  0x84   :  { %15441 = dma.done.wait [#allocation11], 8192  }
  0x85   :  { %15442 = vsyncadd [#allocation11], 4294959104 }
  0x86   :  { %15443 = dma.done.wait [#allocation14], 20480  }
  0x87   :  { %15444 = vsyncadd [#allocation14], 4294946816 }
  0x88   :  { %15445 = dma.done.wait [#allocation17], 6144  }
  0x89   :  { %15446 = vsyncadd [#allocation17], 4294961152 }
  0x8a   :  { %148 = sfence }
  0x8b   :  { %v158_v0 = vld [vmem:[#allocation9] sm:$0xff]  ;;  %v159_v2 = vld [vmem:[#allocation9 + $0x8] sm:$0xff]  ;;  %v18595_v8 = vmov 0   ;;  %v160_v63 = vld [vmem:[#allocation9 + $0x10] sm:$0xff]  ;;  %s13820_s0 = sld [smem:[#allocation6 + $0x1]]  ;;  %s13824_s5 = sld [smem:[#allocation6 + $0x2]] }
  0x8c   :  { %v162_v1 = vld [vmem:[#allocation9 + $0x20] sm:$0xff]  ;;  %v163_v4 = vld [vmem:[#allocation9 + $0x28] sm:$0xff]  ;;  %640 = vmatprep.mubr.bf16.mxu0 %v18595_v8  ;;  %713 = vmatprep.mubr.bf16.mxu1 %v18595_v8  ;;  %s13828_s21 = sld [smem:[#allocation6 + $0x3]]  ;;  %s13832_s18 = sld [smem:[#allocation6 + $0x4]] }
  0x8d   :  { %v12506_v3 = vcombine.high %v158_v0, %v162_v1  ;;  %v12505_v5 = vcombine.low %v158_v0, %v162_v1  ;;  %v166_v6 = vld [vmem:[#allocation9 + $0x40] sm:$0xff]  ;;  %v12508_v9 = vcombine.high %v159_v2, %v163_v4  ;;  %v12507_v10 = vcombine.low %v159_v2, %v163_v4  ;;  %v167_v12 = vld [vmem:[#allocation9 + $0x48] sm:$0xff]  ;;  %v164_v0 = vld [vmem:[#allocation9 + $0x30] sm:$0xff]  ;;  %s13836_s30 = sld [smem:[#allocation6 + $0x5]]  ;;  %s13840_s17 = sld [smem:[#allocation6 + $0x6]] }
  0x8e   :  { %v170_v7 = vld [vmem:[#allocation9 + $0x60] sm:$0xff]  ;;  %v171_v13 = vld [vmem:[#allocation9 + $0x68] sm:$0xff]  ;;  %v161_v1 = vld [vmem:[#allocation9 + $0x18] sm:$0xff]  ;;  %s13844_s23 = sld [smem:[#allocation6 + $0x7]] }
  0x8f   :  { %v12514_v11 = vcombine.high %v166_v6, %v170_v7  ;;  %v174_v14 = vld [vmem:[#allocation9 + $0x80] sm:$0xff]  ;;  %608 = vmatprep.subr.bf16.mxu0 %v12506_v3  ;;  %v12516_v15 = vcombine.high %v167_v12, %v171_v13  ;;  %v175_v17 = vld [vmem:[#allocation9 + $0x88] sm:$0xff]  ;;  %681 = vmatprep.subr.bf16.mxu1 %v12508_v9  ;;  %v12513_v19 = vcombine.low %v166_v6, %v170_v7  ;;  %v165_v2 = vld [vmem:[#allocation9 + $0x38] sm:$0xff] }
  0x90   :  { %v178_v16 = vld [vmem:[#allocation9 + $0xa0] sm:$0xff]  ;;  %v179_v18 = vld [vmem:[#allocation9 + $0xa8] sm:$0xff]  ;;  %609 = vmatpush1.bf16.msra.mxu0 %v12505_v5  ;;  %682 = vmatpush1.bf16.msra.mxu1 %v12507_v10  ;;  %v12515_v20 = vcombine.low %v167_v12, %v171_v13  ;;  %v15652_v5 = vld [vmem:[%s18573_s1] sm:$0xff]   ;;  %v12510_v6 = vcombine.high %v160_v63, %v164_v0  ;;  %v12512_v7 = vcombine.high %v161_v1, %v165_v2 }
  0x91   :  { %610 = vmatprep.subr.bf16.mxu0 %v12514_v11  ;;  %v12522_v21 = vcombine.high %v174_v14, %v178_v16  ;;  %683 = vmatprep.subr.bf16.mxu1 %v12516_v15  ;;  %v12524_v22 = vcombine.high %v175_v17, %v179_v18  ;;  %v182_v23 = vld [vmem:[#allocation9 + $0xc0] sm:$0xff]  ;;  %v183_v25 = vld [vmem:[#allocation9 + $0xc8] sm:$0xff]  ;;  %v12521_v27 = vcombine.low %v174_v14, %v178_v16  ;;  %v168_v9 = vld [vmem:[#allocation9 + $0x50] sm:$0xff]  ;;  %s13821_s15 = sadd.s32 4294967295, %s13820_s0  ;;  %s13825_s22 = sadd.s32 4294967295, %s13824_s5 }
  0x92   :  { %v186_v24 = vld [vmem:[#allocation9 + $0xe0] sm:$0xff]  ;;  %v187_v26 = vld [vmem:[#allocation9 + $0xe8] sm:$0xff]  ;;  %v12523_v28 = vcombine.low %v175_v17, %v179_v18  ;;  %v172_v10 = vld [vmem:[#allocation9 + $0x70] sm:$0xff]  ;;  %v12509_v13 = vcombine.low %v160_v63, %v164_v0  ;;  %v12511_v14 = vcombine.low %v161_v1, %v165_v2  ;;  %s13866_s2 = sshll.u32 %s13821_s15, 4  ;;  %s13829_s8 = sadd.s32 4294967295, %s13828_s21 }
  0x93   :  { %v12530_v29 = vcombine.high %v182_v23, %v186_v24  ;;  %v12532_v30 = vcombine.high %v183_v25, %v187_v26  ;;  %v190_v31 = vld [vmem:[#allocation9 + $0x100] sm:$0xff]  ;;  %v191_v33 = vld [vmem:[#allocation9 + $0x108] sm:$0xff]  ;;  %v12529_v35 = vcombine.low %v182_v23, %v186_v24  ;;  %v12531_v36 = vcombine.low %v183_v25, %v187_v26  ;;  %v169_v11 = vld [vmem:[#allocation9 + $0x58] sm:$0xff]  ;;  %s13833_s13 = sadd.s32 4294967295, %s13832_s18  ;;  %s13867_s14 = sshll.u32 %s13825_s22, 4 }
  0x94   :  { %611 = vmatpush1.bf16.msra.mxu0 %v12513_v19  ;;  %684 = vmatpush1.bf16.msra.mxu1 %v12515_v20  ;;  %v194_v32 = vld [vmem:[#allocation9 + $0x120] sm:$0xff]  ;;  %v195_v34 = vld [vmem:[#allocation9 + $0x128] sm:$0xff]  ;;  %v173_v12 = vld [vmem:[#allocation9 + $0x78] sm:$0xff]  ;;  %v12518_v15 = vcombine.high %v168_v9, %v172_v10  ;;  %s13837_s29 = sadd.s32 4294967295, %s13836_s30  ;;  %s13868_s10 = sshll.u32 %s13829_s8, 4 }
  0x95   :  { %612 = vmatprep.subr.bf16.mxu0 %v12522_v21  ;;  %685 = vmatprep.subr.bf16.mxu1 %v12524_v22  ;;  %v12538_v37 = vcombine.high %v190_v31, %v194_v32  ;;  %v198_v38 = vld [vmem:[#allocation9 + $0x140] sm:$0xff]  ;;  %v12540_v39 = vcombine.high %v191_v33, %v195_v34  ;;  %v199_v41 = vld [vmem:[#allocation9 + $0x148] sm:$0xff]  ;;  %v12537_v43 = vcombine.low %v190_v31, %v194_v32  ;;  %v176_v17 = vld [vmem:[#allocation9 + $0x90] sm:$0xff]  ;;  %s13841_s16 = sadd.s32 4294967295, %s13840_s17  ;;  %s13869_s9 = sshll.u32 %s13833_s13, 4 }
  0x96   :  { %v202_v40 = vld [vmem:[#allocation9 + $0x160] sm:$0xff]  ;;  %v203_v42 = vld [vmem:[#allocation9 + $0x168] sm:$0xff]  ;;  %v12539_v44 = vcombine.low %v191_v33, %v195_v34  ;;  %v12520_v16 = vcombine.high %v169_v11, %v173_v12  ;;  %v180_v18 = vld [vmem:[#allocation9 + $0xb0] sm:$0xff]  ;;  %v12517_v21 = vcombine.low %v168_v9, %v172_v10  ;;  %v12519_v22 = vcombine.low %v169_v11, %v173_v12  ;;  %s13845_s20 = sadd.s32 4294967295, %s13844_s23  ;;  %s13870_s25 = sshll.u32 %s13837_s29, 4 }
  0x97   :  { %v12546_v45 = vcombine.high %v198_v38, %v202_v40  ;;  %v206_v46 = vld [vmem:[#allocation9 + $0x180] sm:$0xff]  ;;  %v12548_v47 = vcombine.high %v199_v41, %v203_v42  ;;  %v207_v49 = vld [vmem:[#allocation9 + $0x188] sm:$0xff]  ;;  %v12545_v51 = vcombine.low %v198_v38, %v202_v40  ;;  %v12547_v52 = vcombine.low %v199_v41, %v203_v42  ;;  %v177_v19 = vld [vmem:[#allocation9 + $0x98] sm:$0xff]  ;;  %s13871_s27 = sshll.u32 %s13841_s16, 4  ;;  %s12048_s19 = scalar_lea.vmem [#allocation4], %s13866_s2 }
  0x98   :  { %613 = vmatpush1.bf16.msra.mxu0 %v12521_v27  ;;  %686 = vmatpush1.bf16.msra.mxu1 %v12523_v28  ;;  %v210_v48 = vld [vmem:[#allocation9 + $0x1a0] sm:$0xff]  ;;  %v211_v50 = vld [vmem:[#allocation9 + $0x1a8] sm:$0xff]  ;;  %v181_v20 = vld [vmem:[#allocation9 + $0xb8] sm:$0xff]  ;;  %v12526_v24 = vcombine.high %v176_v17, %v180_v18  ;;  %s12077_s28 = scalar_lea.vmem [#allocation4], %s13867_s14  ;;  %s12136_s6 = scalar_lea.vmem [#allocation4], %s13869_s9 }
  0x99   :  { %614 = vmatprep.subr.bf16.mxu0 %v12530_v29  ;;  %687 = vmatprep.subr.bf16.mxu1 %v12532_v30  ;;  %v12554_v53 = vcombine.high %v206_v46, %v210_v48  ;;  %v12556_v54 = vcombine.high %v207_v49, %v211_v50  ;;  %v214_v55 = vld [vmem:[#allocation9 + $0x1c0] sm:$0xff]  ;;  %v215_v57 = vld [vmem:[#allocation9 + $0x1c8] sm:$0xff]  ;;  %v12553_v59 = vcombine.low %v206_v46, %v210_v48  ;;  %v15659_v23 = vld [vmem:[%s18573_s1 + $0x8] sm:$0xff]   ;;  %s12193_s0 = scalar_lea.vmem [#allocation4], %s13871_s27 }
  0x9a   :  { %v218_v56 = vld [vmem:[#allocation9 + $0x1e0] sm:$0xff]  ;;  %v219_v58 = vld [vmem:[#allocation9 + $0x1e8] sm:$0xff]  ;;  %v12555_v60 = vcombine.low %v207_v49, %v211_v50  ;;  %v12528_v25 = vcombine.high %v177_v19, %v181_v20  ;;  %v184_v26 = vld [vmem:[#allocation9 + $0xd0] sm:$0xff]  ;;  %v12525_v30 = vcombine.low %v176_v17, %v180_v18  ;;  %v12527_v31 = vcombine.low %v177_v19, %v181_v20 }
  0x9b   :  { %v12562_v61 = vcombine.high %v214_v55, %v218_v56  ;;  %v12564_v62 = vcombine.high %v215_v57, %v219_v58  ;;  %v12561_v3 = vcombine.low %v214_v55, %v218_v56  ;;  %v12563_v4 = vcombine.low %v215_v57, %v219_v58  ;;  %v188_v27 = vld [vmem:[#allocation9 + $0xf0] sm:$0xff]  ;;  %v185_v28 = vld [vmem:[#allocation9 + $0xd8] sm:$0xff]  ;;  %v15668_v40 = vld [vmem:[%s18573_s1 + $0x10] sm:$0xff]  }
  0x9c   :  { %615 = vmatpush1.bf16.msra.mxu0 %v12529_v35  ;;  %688 = vmatpush1.bf16.msra.mxu1 %v12531_v36  ;;  %v189_v29 = vld [vmem:[#allocation9 + $0xf8] sm:$0xff]  ;;  %v12534_v32 = vcombine.high %v184_v26, %v188_v27  ;;  %v192_v34 = vld [vmem:[#allocation9 + $0x110] sm:$0xff]  ;;  %v12533_v38 = vcombine.low %v184_v26, %v188_v27  ;;  %v15677_v57 = vld [vmem:[%s18573_s1 + $0x18] sm:$0xff]   ;;  %s13872_s1 = sshll.u32 %s13845_s20, 4 }
  0x9d   :  { %616 = vmatprep.subr.bf16.mxu0 %v12538_v37  ;;  %689 = vmatprep.subr.bf16.mxu1 %v12540_v39  ;;  %v12536_v33 = vcombine.high %v185_v28, %v189_v29  ;;  %v196_v35 = vld [vmem:[#allocation9 + $0x130] sm:$0xff]  ;;  %v193_v36 = vld [vmem:[#allocation9 + $0x118] sm:$0xff]  ;;  %v12535_v39 = vcombine.low %v185_v28, %v189_v29  ;;  %s12222_s5 = scalar_lea.vmem [#allocation4], %s13872_s1 }
  0x9e   :  { %v197_v37 = vld [vmem:[#allocation9 + $0x138] sm:$0xff]  ;;  %v12542_v41 = vcombine.high %v192_v34, %v196_v35  ;;  %v15689_v10 = vld [vmem:[#allocation10] ss:$16 sps:$4 sm:$0xff]   ;;  %v15694_v12 = vld [vmem:[#allocation10 + $0x24] ss:$16 sps:$4 sm:$0xff]  }
  0x9f   :  { %v12544_v42 = vcombine.high %v193_v36, %v197_v37  ;;  %v205_v46 = vld [vmem:[#allocation9 + $0x178] sm:$0xff]  ;;  %v12543_v48 = vcombine.low %v193_v36, %v197_v37  ;;  %v15714_v18 = vld [vmem:[#allocation10 + $0x40] ss:$16 sps:$4 sm:$0xff]   ;;  %v15719_v20 = vld [vmem:[#allocation10 + $0x64] ss:$16 sps:$4 sm:$0xff]  }
  0xa0   :  { %617 = vmatpush1.bf16.msra.mxu0 %v12537_v43  ;;  %690 = vmatpush1.bf16.msra.mxu1 %v12539_v44  ;;  %v200_v43 = vld [vmem:[#allocation9 + $0x150] sm:$0xff]  ;;  %v221_v63 = vld [vmem:[#allocation9 + $0x1f8] sm:$0xff] }
  0xa1   :  { %618 = vmatprep.subr.bf16.mxu0 %v12546_v45  ;;  %691 = vmatprep.subr.bf16.mxu1 %v12548_v47  ;;  %v204_v44 = vld [vmem:[#allocation9 + $0x170] sm:$0xff]  ;;  %v201_v45 = vld [vmem:[#allocation9 + $0x158] sm:$0xff]  ;;  %v12541_v47 = vcombine.low %v192_v34, %v196_v35 }
  0xa2   :  { %v12550_v49 = vcombine.high %v200_v43, %v204_v44  ;;  %v12552_v50 = vcombine.high %v201_v45, %v205_v46  ;;  %v12549_v55 = vcombine.low %v200_v43, %v204_v44  ;;  %v12551_v56 = vcombine.low %v201_v45, %v205_v46  ;;  %v15686_v9 = vld [vmem:[#allocation10 + $0xc] ss:$16 sps:$4 sm:$0xff]   ;;  %v15691_v11 = vld [vmem:[#allocation10 + $0x8] ss:$16 sps:$4 sm:$0xff]   ;;  %v15742_v26 = vld [vmem:[#allocation10 + $0x80] ss:$16 sps:$4 sm:$0xff]  }
  0xa3   :  { %v15708_v17 = vld [vmem:[#allocation10 + $0x4c] ss:$16 sps:$4 sm:$0xff]   ;;  %v15717_v19 = vld [vmem:[#allocation10 + $0x48] ss:$16 sps:$4 sm:$0xff]   ;;  %v15747_v28 = vld [vmem:[#allocation10 + $0xa4] ss:$16 sps:$4 sm:$0xff]  }
  0xa4   :  { %619 = vmatpush1.bf16.msra.mxu0 %v12545_v51  ;;  %692 = vmatpush1.bf16.msra.mxu1 %v12547_v52  ;;  %v208_v51 = vld [vmem:[#allocation9 + $0x190] sm:$0xff]  ;;  %v15745_v27 = vld [vmem:[#allocation10 + $0x88] ss:$16 sps:$4 sm:$0xff]   ;;  %v15778_v36 = vld [vmem:[#allocation10 + $0xec] ss:$16 sps:$4 sm:$0xff]  }
  0xa5   :  { %620 = vmatprep.subr.bf16.mxu0 %v12554_v53  ;;  %693 = vmatprep.subr.bf16.mxu1 %v12556_v54  ;;  %v212_v52 = vld [vmem:[#allocation9 + $0x1b0] sm:$0xff]  ;;  %v209_v53 = vld [vmem:[#allocation9 + $0x198] sm:$0xff] }
  0xa6   :  { %v213_v54 = vld [vmem:[#allocation9 + $0x1b8] sm:$0xff]  ;;  %v12558_v58 = vcombine.high %v208_v51, %v212_v52  ;;  %v12557_v0 = vcombine.low %v208_v51, %v212_v52  ;;  %v15755_v29 = vld [vmem:[#allocation10 + $0xa0] ss:$16 sps:$4 sm:$0xff]   ;;  %v15775_v35 = vld [vmem:[#allocation10 + $0xe4] ss:$16 sps:$4 sm:$0xff]  }
  0xa7   :  { %v12559_v1 = vcombine.low %v209_v53, %v213_v54  ;;  %v15773_v34 = vld [vmem:[#allocation10 + $0xc8] ss:$16 sps:$4 sm:$0xff]   ;;  %v15783_v37 = vld [vmem:[#allocation10 + $0xe0] ss:$16 sps:$4 sm:$0xff]   ;;  %v13993_v43 = vld [vmem:[#allocation12 + $0x24] ss:$16 sps:$4 sm:$0xff]  }
  0xa8   :  { %621 = vmatpush1.bf16.msra.mxu0 %v12553_v59  ;;  %694 = vmatpush1.bf16.msra.mxu1 %v12555_v60  ;;  %v12560_v59 = vcombine.high %v209_v53, %v213_v54  ;;  %v216_v60 = vld [vmem:[#allocation9 + $0x1d0] sm:$0xff]  ;;  %v13996_v44 = vld [vmem:[#allocation12 + $0x2c] ss:$16 sps:$4 sm:$0xff]   ;;  %v13994_v46 = vld [vmem:[#allocation12 + $0x28] ss:$16 sps:$4 sm:$0xff]  }
  0xa9   :  { %622 = vmatprep.subr.bf16.mxu0 %v12562_v61  ;;  %695 = vmatprep.subr.bf16.mxu1 %v12564_v62  ;;  %v220_v61 = vld [vmem:[#allocation9 + $0x1f0] sm:$0xff]  ;;  %v217_v62 = vld [vmem:[#allocation9 + $0x1d8] sm:$0xff] }
  0xaa   :  { %v12566_v2 = vcombine.high %v216_v60, %v220_v61  ;;  %v13991_v45 = vld [vmem:[#allocation12 + $0x20] ss:$16 sps:$4 sm:$0xff]   ;;  %v14005_v51 = vld [vmem:[#allocation12 + $0x64] ss:$16 sps:$4 sm:$0xff]   ;;  %v14008_v52 = vld [vmem:[#allocation12 + $0x6c] ss:$16 sps:$4 sm:$0xff]  }
  0xab   :  { %v14003_v53 = vld [vmem:[#allocation12 + $0x60] ss:$16 sps:$4 sm:$0xff]   ;;  %v14006_v54 = vld [vmem:[#allocation12 + $0x68] ss:$16 sps:$4 sm:$0xff]  }
  0xac   :  { %623 = vmatpush1.bf16.msra.mxu0 %v12561_v3  ;;  %696 = vmatpush1.bf16.msra.mxu1 %v12563_v4  ;;  %v12568_v3 = vcombine.high %v217_v62, %v221_v63  ;;  %v12565_v4 = vcombine.low %v216_v60, %v220_v61  ;;  %v14020_v60 = vld [vmem:[#allocation12 + $0xac] ss:$16 sps:$4 sm:$0xff]   ;;  %v14015_v61 = vld [vmem:[#allocation12 + $0xa0] ss:$16 sps:$4 sm:$0xff]  }
  0xad   :  { %754 = vmatprep.subr.bf16.mxu0 %v12510_v6  ;;  %827 = vmatprep.subr.bf16.mxu1 %v12512_v7  ;;  %v12567_v6 = vcombine.low %v217_v62, %v221_v63  ;;  %v15683_v7 = vld [vmem:[#allocation10 + $0x4] ss:$16 sps:$4 sm:$0xff]   ;;  %v14018_v62 = vld [vmem:[#allocation12 + $0xa8] ss:$16 sps:$4 sm:$0xff]  }
  0xae   :  { %v14023_v63 = vld [vmem:[#allocation12 + $0xc4] ss:$16 sps:$4 sm:$0xff]  }
  0xaf   :  { %641 = vmatmul.mubr.bf16.vlgmr.msra.gmra.mrb[0].mxu0 %v15652_v5  ;;  %714 = vmatmul.mubr.bf16.vlgmr.msra.gmra.mrb[0].mxu1 %v15652_v5 }
  0xb0   :  { %755 = vmatpush1.bf16.msra.mxu0 %v12509_v13  ;;  %828 = vmatpush1.bf16.msra.mxu1 %v12511_v14  ;;  %v15697_v13 = vld [vmem:[#allocation10 + $0x20] ss:$16 sps:$4 sm:$0xff]   ;;  %v15699_v14 = vld [vmem:[#allocation10 + $0x2c] ss:$16 sps:$4 sm:$0xff]  }
  0xb1   :  { %756 = vmatprep.subr.bf16.mxu0 %v12518_v15  ;;  %829 = vmatprep.subr.bf16.mxu1 %v12520_v16  ;;  %v15702_v15 = vld [vmem:[#allocation10 + $0x28] ss:$16 sps:$4 sm:$0xff]   ;;  %v15704_v16 = vld [vmem:[#allocation10 + $0x44] ss:$16 sps:$4 sm:$0xff]  }
  0xb2   :  { %650 = vmatprep.mubr.bf16.mxu0 %v18595_v8  ;;  %723 = vmatprep.mubr.bf16.mxu1 %v18595_v8 }
  0xb4   :  { %757 = vmatpush1.bf16.msra.mxu0 %v12517_v21  ;;  %830 = vmatpush1.bf16.msra.mxu1 %v12519_v22  ;;  %v15727_v21 = vld [vmem:[#allocation10 + $0x60] ss:$16 sps:$4 sm:$0xff]   ;;  %v15730_v22 = vld [vmem:[#allocation10 + $0x68] ss:$16 sps:$4 sm:$0xff]  }
  0xb5   :  { %758 = vmatprep.subr.bf16.mxu0 %v12526_v24  ;;  %831 = vmatprep.subr.bf16.mxu1 %v12528_v25  ;;  %v15732_v24 = vld [vmem:[#allocation10 + $0x84] ss:$16 sps:$4 sm:$0xff]   ;;  %v15736_v25 = vld [vmem:[#allocation10 + $0x8c] ss:$16 sps:$4 sm:$0xff]  }
  0xb7   :  { %651 = vmatmul.mubr.bf16.gmra.mrb[4].mxu0 %v15659_v23  ;;  %724 = vmatmul.mubr.bf16.gmra.mrb[4].mxu1 %v15659_v23 }
  0xb8   :  { %759 = vmatpush1.bf16.msra.mxu0 %v12525_v30  ;;  %832 = vmatpush1.bf16.msra.mxu1 %v12527_v31  ;;  %v15758_v30 = vld [vmem:[#allocation10 + $0xa8] ss:$16 sps:$4 sm:$0xff]   ;;  %v15760_v31 = vld [vmem:[#allocation10 + $0xc4] ss:$16 sps:$4 sm:$0xff]  }
  0xb9   :  { %760 = vmatprep.subr.bf16.mxu0 %v12534_v32  ;;  %833 = vmatprep.subr.bf16.mxu1 %v12536_v33  ;;  %v15764_v32 = vld [vmem:[#allocation10 + $0xcc] ss:$16 sps:$4 sm:$0xff]   ;;  %v15770_v33 = vld [vmem:[#allocation10 + $0xc0] ss:$16 sps:$4 sm:$0xff]  }
  0xba   :  { %660 = vmatprep.mubr.bf16.mxu0 %v18595_v8  ;;  %733 = vmatprep.mubr.bf16.mxu1 %v18595_v8 }
  0xbc   :  { %761 = vmatpush1.bf16.msra.mxu0 %v12533_v38  ;;  %834 = vmatpush1.bf16.msra.mxu1 %v12535_v39  ;;  %v15786_v38 = vld [vmem:[#allocation10 + $0xe8] ss:$16 sps:$4 sm:$0xff]   ;;  %v15788_v39 = vld [vmem:[#allocation12 + $0x4] ss:$16 sps:$4 sm:$0xff]  }
  0xbd   :  { %762 = vmatprep.subr.bf16.mxu0 %v12542_v41  ;;  %835 = vmatprep.subr.bf16.mxu1 %v12544_v42  ;;  %v13985_v41 = vld [vmem:[#allocation12] ss:$16 sps:$4 sm:$0xff]   ;;  %v13988_v42 = vld [vmem:[#allocation12 + $0x8] ss:$16 sps:$4 sm:$0xff]  }
  0xbf   :  { %661 = vmatmul.mubr.bf16.gmra.mrb[8].mxu0 %v15668_v40  ;;  %734 = vmatmul.mubr.bf16.gmra.mrb[8].mxu1 %v15668_v40 }
  0xc0   :  { %763 = vmatpush1.bf16.msra.mxu0 %v12541_v47  ;;  %836 = vmatpush1.bf16.msra.mxu1 %v12543_v48  ;;  %v13999_v47 = vld [vmem:[#allocation12 + $0x44] ss:$16 sps:$4 sm:$0xff]   ;;  %v14002_v48 = vld [vmem:[#allocation12 + $0x4c] ss:$16 sps:$4 sm:$0xff]  }
  0xc1   :  { %764 = vmatprep.subr.bf16.mxu0 %v12550_v49  ;;  %837 = vmatprep.subr.bf16.mxu1 %v12552_v50  ;;  %v13997_v49 = vld [vmem:[#allocation12 + $0x40] ss:$16 sps:$4 sm:$0xff]   ;;  %v14000_v50 = vld [vmem:[#allocation12 + $0x48] ss:$16 sps:$4 sm:$0xff]  }
  0xc2   :  { %670 = vmatprep.mubr.bf16.mxu0 %v18595_v8  ;;  %743 = vmatprep.mubr.bf16.mxu1 %v18595_v8 }
  0xc4   :  { %765 = vmatpush1.bf16.msra.mxu0 %v12549_v55  ;;  %838 = vmatpush1.bf16.msra.mxu1 %v12551_v56  ;;  %v14011_v55 = vld [vmem:[#allocation12 + $0x84] ss:$16 sps:$4 sm:$0xff]   ;;  %v14014_v56 = vld [vmem:[#allocation12 + $0x8c] ss:$16 sps:$4 sm:$0xff]  }
  0xc5   :  { %766 = vmatprep.subr.bf16.mxu0 %v12558_v58  ;;  %839 = vmatprep.subr.bf16.mxu1 %v12560_v59  ;;  %v14012_v58 = vld [vmem:[#allocation12 + $0x88] ss:$16 sps:$4 sm:$0xff]   ;;  %v14017_v59 = vld [vmem:[#allocation12 + $0xa4] ss:$16 sps:$4 sm:$0xff]  }
  0xc7   :  { %671 = vmatmul.mubr.bf16.gmra.mrb[12].mxu0 %v15677_v57  ;;  %744 = vmatmul.mubr.bf16.gmra.mrb[12].mxu1 %v15677_v57 }
  0xc8   :  { %767 = vmatpush1.bf16.msra.mxu0 %v12557_v0  ;;  %840 = vmatpush1.bf16.msra.mxu1 %v12559_v1  ;;  %v14026_v0 = vld [vmem:[#allocation12 + $0xcc] ss:$16 sps:$4 sm:$0xff]   ;;  %v14021_v1 = vld [vmem:[#allocation12 + $0xc0] ss:$16 sps:$4 sm:$0xff]  }
  0xc9   :  { %768 = vmatprep.subr.bf16.mxu0 %v12566_v2  ;;  %841 = vmatprep.subr.bf16.mxu1 %v12568_v3  ;;  %v14024_v2 = vld [vmem:[#allocation12 + $0xc8] ss:$16 sps:$4 sm:$0xff]   ;;  %v14029_v3 = vld [vmem:[#allocation12 + $0xe4] ss:$16 sps:$4 sm:$0xff]  }
  0xca   :  { %786 = vmatprep.mubr.bf16.mxu0 %v18595_v8  ;;  %859 = vmatprep.mubr.bf16.mxu1 %v18595_v8 }
  0xcc   :  { %769 = vmatpush1.bf16.msra.mxu0 %v12565_v4  ;;  %842 = vmatpush1.bf16.msra.mxu1 %v12567_v6  ;;  %v14032_v4 = vld [vmem:[#allocation12 + $0xec] ss:$16 sps:$4 sm:$0xff]   ;;  %v14027_v6 = vld [vmem:[#allocation12 + $0xe0] ss:$16 sps:$4 sm:$0xff]  }
  0xcd   :  { %1160 = vmatprep.subr.bf16.mxu0 %v15683_v7  ;;  %1201 = vmatprep.subr.bf16.mxu1 %v15686_v9 }
  0xcf   :  { %787 = vmatmul.mubr.bf16.vlgmr.msra.gmra.mrb[16].mxu0 %v15652_v5  ;;  %860 = vmatmul.mubr.bf16.vlgmr.msra.gmra.mrb[16].mxu1 %v15652_v5  ;;  %v15722_v5 = vld [vmem:[#allocation10 + $0x6c] ss:$16 sps:$4 sm:$0xff]  }
  0xd0   :  { %1161 = vmatpush1.bf16.msra.mxu0 %v15689_v10  ;;  %1202 = vmatpush1.bf16.msra.mxu1 %v15691_v11 }
  0xd1   :  { %1162 = vmatprep.subr.bf16.mxu0 %v15694_v12  ;;  %1203 = vmatprep.subr.bf16.mxu1 %v15699_v14 }
  0xd2   :  { %796 = vmatprep.mubr.bf16.mxu0 %v18595_v8  ;;  %869 = vmatprep.mubr.bf16.mxu1 %v18595_v8 }
  0xd4   :  { %1163 = vmatpush1.bf16.msra.mxu0 %v15697_v13  ;;  %1204 = vmatpush1.bf16.msra.mxu1 %v15702_v15 }
  0xd5   :  { %1164 = vmatprep.subr.bf16.mxu0 %v15704_v16  ;;  %1205 = vmatprep.subr.bf16.mxu1 %v15708_v17 }
  0xd7   :  { %797 = vmatmul.mubr.bf16.gmra.mrb[20].mxu0 %v15659_v23  ;;  %870 = vmatmul.mubr.bf16.gmra.mrb[20].mxu1 %v15659_v23  ;;  %v15750_v23 = vld [vmem:[#allocation10 + $0xac] ss:$16 sps:$4 sm:$0xff]  }
  0xd8   :  { %1165 = vmatpush1.bf16.msra.mxu0 %v15714_v18  ;;  %1206 = vmatpush1.bf16.msra.mxu1 %v15717_v19 }
  0xd9   :  { %1166 = vmatprep.subr.bf16.mxu0 %v15719_v20  ;;  %1207 = vmatprep.subr.bf16.mxu1 %v15722_v5 }
  0xda   :  { %806 = vmatprep.mubr.bf16.mxu0 %v18595_v8  ;;  %879 = vmatprep.mubr.bf16.mxu1 %v18595_v8 }
  0xdc   :  { %1167 = vmatpush1.bf16.msra.mxu0 %v15727_v21  ;;  %1208 = vmatpush1.bf16.msra.mxu1 %v15730_v22 }
  0xdd   :  { %1168 = vmatprep.subr.bf16.mxu0 %v15732_v24  ;;  %1209 = vmatprep.subr.bf16.mxu1 %v15736_v25 }
  0xdf   :  { %807 = vmatmul.mubr.bf16.gmra.mrb[24].mxu0 %v15668_v40  ;;  %880 = vmatmul.mubr.bf16.gmra.mrb[24].mxu1 %v15668_v40  ;;  %v15792_v40 = vld [vmem:[#allocation12 + $0xc] ss:$16 sps:$4 sm:$0xff]  }
  0xe0   :  { %1169 = vmatpush1.bf16.msra.mxu0 %v15742_v26  ;;  %1210 = vmatpush1.bf16.msra.mxu1 %v15745_v27 }
  0xe1   :  { %1170 = vmatprep.subr.bf16.mxu0 %v15747_v28  ;;  %1211 = vmatprep.subr.bf16.mxu1 %v15750_v23 }
  0xe2   :  { %816 = vmatprep.mubr.bf16.mxu0 %v18595_v8  ;;  %889 = vmatprep.mubr.bf16.mxu1 %v18595_v8 }
  0xe4   :  { %1171 = vmatpush1.bf16.msra.mxu0 %v15755_v29  ;;  %1212 = vmatpush1.bf16.msra.mxu1 %v15758_v30 }
  0xe5   :  { %1172 = vmatprep.subr.bf16.mxu0 %v15760_v31  ;;  %1213 = vmatprep.subr.bf16.mxu1 %v15764_v32 }
  0xe7   :  { %817 = vmatmul.mubr.bf16.gmra.mrb[28].mxu0 %v15677_v57  ;;  %890 = vmatmul.mubr.bf16.gmra.mrb[28].mxu1 %v15677_v57  ;;  %v14009_v57 = vld [vmem:[#allocation12 + $0x80] ss:$16 sps:$4 sm:$0xff]  }
  0xe8   :  { %1173 = vmatpush1.bf16.msra.mxu0 %v15770_v33  ;;  %1214 = vmatpush1.bf16.msra.mxu1 %v15773_v34 }
  0xe9   :  { %1174 = vmatprep.subr.bf16.mxu0 %v15775_v35  ;;  %1215 = vmatprep.subr.bf16.mxu1 %v15778_v36 }
  0xea   :  { %1192 = vmatprep.mubr.bf16.mxu0 %v18595_v8  ;;  %1233 = vmatprep.mubr.bf16.mxu1 %v18595_v8 }
  0xec   :  { %1175 = vmatpush1.bf16.msra.mxu0 %v15783_v37  ;;  %1216 = vmatpush1.bf16.msra.mxu1 %v15786_v38 }
  0xed   :  { %1466 = vmatprep.subr.bf16.mxu0 %v15788_v39  ;;  %1507 = vmatprep.subr.bf16.mxu1 %v15792_v40 }
  0xef   :  { %1193 = vmatmul.mubr.bf16.vlgmr.msra.gmra.mrb[32].mxu0 %v18595_v8  ;;  %1234 = vmatmul.mubr.bf16.vlgmr.msra.gmra.mrb[32].mxu1 %v18595_v8 }
  0xf0   :  { %1467 = vmatpush1.bf16.msra.mxu0 %v13985_v41  ;;  %1508 = vmatpush1.bf16.msra.mxu1 %v13988_v42  ;;  %v14030_v41 = vld [vmem:[#allocation12 + $0xe8] ss:$16 sps:$4 sm:$0xff]  }
  0xf1   :  { %1468 = vmatprep.subr.bf16.mxu0 %v13993_v43  ;;  %1509 = vmatprep.subr.bf16.mxu1 %v13996_v44 }
  0xf2   :  { %1498 = vmatprep.mubr.bf16.mxu0 %v18595_v8  ;;  %1539 = vmatprep.mubr.bf16.mxu1 %v18595_v8 }
  0xf4   :  { %1469 = vmatpush1.bf16.msra.mxu0 %v13991_v45  ;;  %1510 = vmatpush1.bf16.msra.mxu1 %v13994_v46 }
  0xf5   :  { %1470 = vmatprep.subr.bf16.mxu0 %v13999_v47  ;;  %1511 = vmatprep.subr.bf16.mxu1 %v14002_v48 }
  0xf8   :  { %1471 = vmatpush1.bf16.msra.mxu0 %v13997_v49  ;;  %1512 = vmatpush1.bf16.msra.mxu1 %v14000_v50 }
  0xf9   :  { %1472 = vmatprep.subr.bf16.mxu0 %v14005_v51  ;;  %1513 = vmatprep.subr.bf16.mxu1 %v14008_v52 }
  0xfc   :  { %1473 = vmatpush1.bf16.msra.mxu0 %v14003_v53  ;;  %1514 = vmatpush1.bf16.msra.mxu1 %v14006_v54 }
  0xfd   :  { %1474 = vmatprep.subr.bf16.mxu0 %v14011_v55  ;;  %1515 = vmatprep.subr.bf16.mxu1 %v14014_v56 }
 0x100   :  { %1475 = vmatpush1.bf16.msra.mxu0 %v14009_v57  ;;  %1516 = vmatpush1.bf16.msra.mxu1 %v14012_v58 }
 0x101   :  { %1476 = vmatprep.subr.bf16.mxu0 %v14017_v59  ;;  %1517 = vmatprep.subr.bf16.mxu1 %v14020_v60 }
 0x104   :  { %1477 = vmatpush1.bf16.msra.mxu0 %v14015_v61  ;;  %1518 = vmatpush1.bf16.msra.mxu1 %v14018_v62 }
 0x105   :  { %1478 = vmatprep.subr.bf16.mxu0 %v14023_v63  ;;  %1519 = vmatprep.subr.bf16.mxu1 %v14026_v0 }
 0x108   :  { %1479 = vmatpush1.bf16.msra.mxu0 %v14021_v1  ;;  %1520 = vmatpush1.bf16.msra.mxu1 %v14024_v2 }
 0x109   :  { %1480 = vmatprep.subr.bf16.mxu0 %v14029_v3  ;;  %1521 = vmatprep.subr.bf16.mxu1 %v14032_v4 }
 0x10c   :  { %1481 = vmatpush1.bf16.msra.mxu0 %v14027_v6  ;;  %1522 = vmatpush1.bf16.msra.mxu1 %v14030_v41 }
 0x10d   :  { %1775 = vmatprep.subr.bf16.mxu0 %v15683_v7  ;;  %1816 = vmatprep.subr.bf16.mxu1 %v15686_v9  ;;  %v18585_v7 = vlaneseq }
 0x10f   :  { %1499 = vmatmul.mubr.bf16.vlgmr.msra.gmra.mrb[36].mxu0 %v18595_v8  ;;  %1540 = vmatmul.mubr.bf16.vlgmr.msra.gmra.mrb[36].mxu1 %v18595_v8  ;;  %v15846_v9 = vshrl.u32 %v18585_v7, 7 }
 0x110   :  { %1776 = vmatpush1.bf16.msra.mxu0 %v15689_v10  ;;  %1817 = vmatpush1.bf16.msra.mxu1 %v15691_v11  ;;  %v15852_v11 = vld [vmem:[%s18575_s3] sm:$0xff]  ;;  %s12106_s3 = scalar_lea.vmem [#allocation4], %s13868_s10 }
 0x111   :  { %1777 = vmatprep.subr.bf16.mxu0 %v15694_v12  ;;  %1818 = vmatprep.subr.bf16.mxu1 %v15699_v14  ;;  %18656 = vst [vmem:[#allocation24_spill] sm:$0xff] %v15846_v9  ;;  %v18594_v10 = vsub.s32 0, %v15846_v9  ;;  %v18593_v12 = vsub.s32 2, %v15846_v9  ;;  %v18592_v14 = vsub.s32 1, %v15846_v9  ;;  %v18590_v2 = vsub.s32 4, %v15846_v9 }
 0x112   :  { %1807 = vmatprep.mubr.bf16.mxu0 %v18595_v8  ;;  %1848 = vmatprep.mubr.bf16.mxu1 %v18595_v8  ;;  %v18588_v41 = vsub.s32 5, %v15846_v9 }
 0x114   :  { %1778 = vmatpush1.bf16.msra.mxu0 %v15697_v13  ;;  %1819 = vmatpush1.bf16.msra.mxu1 %v15702_v15  ;;  %v18591_v13 = vsub.s32 3, %v15846_v9  ;;  %v15860_v15 = vrot.slane %v15852_v11, %v18594_v10 }
 0x115   :  { %1779 = vmatprep.subr.bf16.mxu0 %v15704_v16  ;;  %1820 = vmatprep.subr.bf16.mxu1 %v15708_v17  ;;  %v15867_v17 = vrot.slane %v15852_v11, %v18593_v12 }
 0x118   :  { %1780 = vmatpush1.bf16.msra.mxu0 %v15714_v18  ;;  %1821 = vmatpush1.bf16.msra.mxu1 %v15717_v19 }
 0x119   :  { %1781 = vmatprep.subr.bf16.mxu0 %v15719_v20  ;;  %1822 = vmatprep.subr.bf16.mxu1 %v15722_v5  ;;  %v15876_v20 = vrot.slane %v15852_v11, %v18591_v13  ;;  %v15881_v5 = vrot.slane %v15852_v11, %v18592_v14 }
 0x11c   :  { %1782 = vmatpush1.bf16.msra.mxu0 %v15727_v21  ;;  %1823 = vmatpush1.bf16.msra.mxu1 %v15730_v22 }
 0x11d   :  { %1783 = vmatprep.subr.bf16.mxu0 %v15732_v24  ;;  %1824 = vmatprep.subr.bf16.mxu1 %v15736_v25 }
 0x120   :  { %1784 = vmatpush1.bf16.msra.mxu0 %v15742_v26  ;;  %1825 = vmatpush1.bf16.msra.mxu1 %v15745_v27 }
 0x121   :  { %1785 = vmatprep.subr.bf16.mxu0 %v15747_v28  ;;  %1826 = vmatprep.subr.bf16.mxu1 %v15750_v23 }
 0x124   :  { %1786 = vmatpush1.bf16.msra.mxu0 %v15755_v29  ;;  %1827 = vmatpush1.bf16.msra.mxu1 %v15758_v30 }
 0x125   :  { %1787 = vmatprep.subr.bf16.mxu0 %v15760_v31  ;;  %1828 = vmatprep.subr.bf16.mxu1 %v15764_v32 }
 0x128   :  { %1788 = vmatpush1.bf16.msra.mxu0 %v15770_v33  ;;  %1829 = vmatpush1.bf16.msra.mxu1 %v15773_v34 }
 0x129   :  { %1789 = vmatprep.subr.bf16.mxu0 %v15775_v35  ;;  %1830 = vmatprep.subr.bf16.mxu1 %v15778_v36 }
 0x12c   :  { %1790 = vmatpush1.bf16.msra.mxu0 %v15783_v37  ;;  %1831 = vmatpush1.bf16.msra.mxu1 %v15786_v38 }
 0x12d   :  { %2082 = vmatprep.subr.bf16.mxu0 %v15788_v39  ;;  %2123 = vmatprep.subr.bf16.mxu1 %v15792_v40 }
 0x182   :  { %v15862_v16 = vpop.f32.mrb[0].mxu0  ;;  %v15871_v19 = vpop.f32.mrb[0].mxu1 }
 0x183   :  { %v15869_v18 = vpop.f32.mrb[1].mxu0  ;;  %v15883_v22 = vpop.f32.mrb[1].mxu1 }
 0x184   :  { %v646_v21 = vpop.f32.mrb[2].mxu0  ;;  %v719_v26 = vpop.f32.mrb[2].mxu1 }
 0x185   :  { %v15886_v24 = vadd.f32 %v646_v21, %v15860_v15  ;;  %v648_v25 = vpop.f32.mrb[3].mxu0  ;;  %v15892_v28 = vadd.f32 %v719_v26, %v15867_v17  ;;  %v721_v23 = vpop.f32.mrb[3].mxu1  ;;  %v18589_v26 = vsub.s32 6, %v15846_v9 }
 0x186   :  { %v15889_v27 = vadd.f32 %v648_v25, %v15881_v5  ;;  %v15895_v29 = vadd.f32 %v721_v23, %v15876_v20 }
 0x18a   :  { %v652_v30 = vpop.f32.mrb[4].mxu0  ;;  %v725_v33 = vpop.f32.mrb[4].mxu1 }
 0x18b   :  { %v15898_v31 = vadd.f32 %v652_v30, %v15860_v15  ;;  %v654_v32 = vpop.f32.mrb[5].mxu0  ;;  %v15904_v36 = vadd.f32 %v725_v33, %v15867_v17  ;;  %v727_v37 = vpop.f32.mrb[5].mxu1 }
 0x18c   :  { %v15901_v34 = vadd.f32 %v654_v32, %v15881_v5  ;;  %v656_v35 = vpop.f32.mrb[6].mxu0  ;;  %v15910_v40 = vadd.f32 %v727_v37, %v15876_v20  ;;  %v729_v42 = vpop.f32.mrb[6].mxu1 }
 0x18d   :  { %v15907_v38 = vadd.f32 %v656_v35, %v15860_v15  ;;  %v658_v39 = vpop.f32.mrb[7].mxu0  ;;  %v15916_v44 = vadd.f32 %v729_v42, %v15867_v17  ;;  %v731_v45 = vpop.f32.mrb[7].mxu1  ;;  %v18587_v35 = vsub.s32 7, %v15846_v9 }
 0x18e   :  { %18657 = vst [vmem:[#allocation25_spill] sm:$0xff] %v15901_v34  ;;  %18659 = vst [vmem:[#allocation27_spill] sm:$0xff] %v15910_v40  ;;  %v15913_v43 = vadd.f32 %v658_v39, %v15881_v5  ;;  %v15919_v46 = vadd.f32 %v731_v45, %v15876_v20  ;;  %v15973_v45 = vrot.slane %v15852_v11, %v18590_v2 }
 0x18f   :  { %18658 = vst [vmem:[#allocation26_spill] sm:$0xff] %v15907_v38  ;;  %18661 = vst [vmem:[#allocation29_spill] sm:$0xff] %v15916_v44 }
 0x190   :  { %18660 = vst [vmem:[#allocation28_spill] sm:$0xff] %v15913_v43  ;;  %18662 = vst [vmem:[#allocation30_spill] sm:$0xff] %v15919_v46 }
 0x192   :  { %v662_v47 = vpop.f32.mrb[8].mxu0  ;;  %v735_v50 = vpop.f32.mrb[8].mxu1 }
 0x193   :  { %v15922_v48 = vadd.f32 %v662_v47, %v15860_v15  ;;  %v664_v49 = vpop.f32.mrb[9].mxu0  ;;  %v15928_v53 = vadd.f32 %v735_v50, %v15867_v17  ;;  %v737_v54 = vpop.f32.mrb[9].mxu1  ;;  %v15986_v50 = vrot.slane %v15852_v11, %v18589_v26 }
 0x194   :  { %v15925_v51 = vadd.f32 %v664_v49, %v15881_v5  ;;  %v666_v52 = vpop.f32.mrb[10].mxu0  ;;  %v15934_v57 = vadd.f32 %v737_v54, %v15876_v20  ;;  %v739_v58 = vpop.f32.mrb[10].mxu1  ;;  %v15981_v49 = vrot.slane %v15852_v11, %v18588_v41 }
 0x195   :  { %18663 = vst [vmem:[#allocation31_spill] sm:$0xff] %v15922_v48  ;;  %18665 = vst [vmem:[#allocation33_spill] sm:$0xff] %v15928_v53  ;;  %v15931_v55 = vadd.f32 %v666_v52, %v15860_v15  ;;  %v668_v56 = vpop.f32.mrb[11].mxu0  ;;  %v15940_v60 = vadd.f32 %v739_v58, %v15867_v17  ;;  %v741_v61 = vpop.f32.mrb[11].mxu1  ;;  %v15991_v52 = vrot.slane %v15852_v11, %v18587_v35 }
 0x196   :  { %18664 = vst [vmem:[#allocation32_spill] sm:$0xff] %v15925_v51  ;;  %18667 = vst [vmem:[#allocation35_spill] sm:$0xff] %v15934_v57  ;;  %v15937_v59 = vadd.f32 %v668_v56, %v15881_v5  ;;  %v15943_v62 = vadd.f32 %v741_v61, %v15876_v20  ;;  %v16205_v57 = vld [vmem:[#allocation12 + $0xc] ss:$16 sps:$4 sm:$0xff]  }
 0x197   :  { %18666 = vst [vmem:[#allocation34_spill] sm:$0xff] %v15931_v55  ;;  %18669 = vst [vmem:[#allocation37_spill] sm:$0xff] %v15940_v60  ;;  %v16191_v55 = vld [vmem:[#allocation10 + $0xe4] ss:$16 sps:$4 sm:$0xff]  }
 0x198   :  { %18668 = vst [vmem:[#allocation36_spill] sm:$0xff] %v15937_v59  ;;  %18670 = vst [vmem:[#allocation38_spill] sm:$0xff] %v15943_v62 }
 0x19a   :  { %v672_v63 = vpop.f32.mrb[12].mxu0  ;;  %v745_v3 = vpop.f32.mrb[12].mxu1 }
 0x19b   :  { %v15946_v0 = vadd.f32 %v672_v63, %v15860_v15  ;;  %v674_v1 = vpop.f32.mrb[13].mxu0  ;;  %v15954_v21 = vadd.f32 %v745_v3, %v15867_v17  ;;  %v747_v25 = vpop.f32.mrb[13].mxu1 }
 0x19c   :  { %v15950_v4 = vadd.f32 %v674_v1, %v15881_v5  ;;  %v676_v6 = vpop.f32.mrb[14].mxu0  ;;  %v15961_v32 = vadd.f32 %v747_v25, %v15876_v20  ;;  %v749_v33 = vpop.f32.mrb[14].mxu1 }
 0x19d   :  { %18671 = vst [vmem:[#allocation39_spill] sm:$0xff] %v15946_v0  ;;  %18673 = vst [vmem:[#allocation41_spill] sm:$0xff] %v15954_v21  ;;  %v15958_v23 = vadd.f32 %v676_v6, %v15860_v15  ;;  %v678_v30 = vpop.f32.mrb[15].mxu0  ;;  %v15968_v39 = vadd.f32 %v749_v33, %v15867_v17  ;;  %v751_v42 = vpop.f32.mrb[15].mxu1 }
 0x19e   :  { %18672 = vst [vmem:[#allocation40_spill] sm:$0xff] %v15950_v4  ;;  %18675 = vst [vmem:[#allocation43_spill] sm:$0xff] %v15961_v32  ;;  %v15965_v37 = vadd.f32 %v678_v30, %v15881_v5  ;;  %v15976_v47 = vadd.f32 %v751_v42, %v15876_v20  ;;  %v645_v32 = vadd.f32 %v15869_v18, %v15881_v5 }
 0x19f   :  { %18674 = vst [vmem:[#allocation42_spill] sm:$0xff] %v15958_v23  ;;  %18677 = vst [vmem:[#allocation45_spill] sm:$0xff] %v15968_v39 }
 0x1a0   :  { %18676 = vst [vmem:[#allocation44_spill] sm:$0xff] %v15965_v37  ;;  %18678 = vst [vmem:[#allocation46_spill] sm:$0xff] %v15976_v47 }
 0x1a2   :  { %v788_v54 = vpop.f32.mrb[16].mxu0  ;;  %v861_v61 = vpop.f32.mrb[16].mxu1 }
 0x1a3   :  { %v15994_v56 = vadd.f32 %v788_v54, %v15973_v45  ;;  %v790_v58 = vpop.f32.mrb[17].mxu0  ;;  %v16000_v3 = vadd.f32 %v861_v61, %v15986_v50  ;;  %v863_v6 = vpop.f32.mrb[17].mxu1 }
 0x1a4   :  { %v15997_v63 = vadd.f32 %v790_v58, %v15981_v49  ;;  %v792_v1 = vpop.f32.mrb[18].mxu0  ;;  %v16006_v11 = vadd.f32 %v863_v6, %v15991_v52  ;;  %v865_v33 = vpop.f32.mrb[18].mxu1 }
 0x1a5   :  { %18679 = vst [vmem:[#allocation47_spill] sm:$0xff] %v15994_v56  ;;  %18681 = vst [vmem:[#allocation49_spill] sm:$0xff] %v16000_v3  ;;  %v16003_v25 = vadd.f32 %v792_v1, %v15973_v45  ;;  %v794_v30 = vpop.f32.mrb[19].mxu0  ;;  %v16012_v54 = vadd.f32 %v865_v33, %v15986_v50  ;;  %v867_v58 = vpop.f32.mrb[19].mxu1 }
 0x1a6   :  { %18680 = vst [vmem:[#allocation48_spill] sm:$0xff] %v15997_v63  ;;  %18683 = vst [vmem:[#allocation51_spill] sm:$0xff] %v16006_v11  ;;  %v16009_v42 = vadd.f32 %v794_v30, %v15981_v49  ;;  %v16015_v7 = vadd.f32 %v867_v58, %v15991_v52 }
 0x1a7   :  { %18682 = vst [vmem:[#allocation50_spill] sm:$0xff] %v16003_v25  ;;  %18685 = vst [vmem:[#allocation53_spill] sm:$0xff] %v16012_v54 }
 0x1a8   :  { %18684 = vst [vmem:[#allocation52_spill] sm:$0xff] %v16009_v42  ;;  %18686 = vst [vmem:[#allocation54_spill] sm:$0xff] %v16015_v7 }
 0x1aa   :  { %v798_v61 = vpop.f32.mrb[20].mxu0  ;;  %v871_v41 = vpop.f32.mrb[20].mxu1 }
 0x1ab   :  { %v16018_v35 = vadd.f32 %v798_v61, %v15973_v45  ;;  %v800_v1 = vpop.f32.mrb[21].mxu0  ;;  %v16024_v30 = vadd.f32 %v871_v41, %v15986_v50  ;;  %v873_v2 = vpop.f32.mrb[21].mxu1 }
 0x1ac   :  { %v16021_v6 = vadd.f32 %v800_v1, %v15981_v49  ;;  %v802_v26 = vpop.f32.mrb[22].mxu0  ;;  %v16030_v58 = vadd.f32 %v873_v2, %v15991_v52  ;;  %v875_v14 = vpop.f32.mrb[22].mxu1 }
 0x1ad   :  { %18687 = vst [vmem:[#allocation55_spill] sm:$0xff] %v16018_v35  ;;  %18689 = vst [vmem:[#allocation57_spill] sm:$0xff] %v16024_v30  ;;  %v16027_v33 = vadd.f32 %v802_v26, %v15973_v45  ;;  %v804_v13 = vpop.f32.mrb[23].mxu0  ;;  %v16036_v12 = vadd.f32 %v875_v14, %v15986_v50  ;;  %v877_v1 = vpop.f32.mrb[23].mxu1 }
 0x1ae   :  { %18688 = vst [vmem:[#allocation56_spill] sm:$0xff] %v16021_v6  ;;  %18691 = vst [vmem:[#allocation59_spill] sm:$0xff] %v16030_v58  ;;  %v16033_v61 = vadd.f32 %v804_v13, %v15981_v49  ;;  %v16039_v10 = vadd.f32 %v877_v1, %v15991_v52 }
 0x1af   :  { %18690 = vst [vmem:[#allocation58_spill] sm:$0xff] %v16027_v33  ;;  %18693 = vst [vmem:[#allocation61_spill] sm:$0xff] %v16036_v12  ;;  %v16197_v12 = vld [vmem:[#allocation10 + $0xe8] ss:$16 sps:$4 sm:$0xff]   ;;  %v16203_v33 = vld [vmem:[#allocation12 + $0x4] ss:$16 sps:$4 sm:$0xff]  }
 0x1b0   :  { %18692 = vst [vmem:[#allocation60_spill] sm:$0xff] %v16033_v61  ;;  %18694 = vst [vmem:[#allocation62_spill] sm:$0xff] %v16039_v10  ;;  %v16193_v10 = vld [vmem:[#allocation10 + $0xec] ss:$16 sps:$4 sm:$0xff]   ;;  %v16195_v61 = vld [vmem:[#allocation10 + $0xe0] ss:$16 sps:$4 sm:$0xff]  }
 0x1b2   :  { %v808_v41 = vpop.f32.mrb[24].mxu0  ;;  %v881_v9 = vpop.f32.mrb[24].mxu1 }
 0x1b3   :  { %v16042_v8 = vadd.f32 %v808_v41, %v15973_v45  ;;  %v810_v26 = vpop.f32.mrb[25].mxu0  ;;  %v16048_v13 = vadd.f32 %v881_v9, %v15986_v50  ;;  %v883_v63 = vpop.f32.mrb[25].mxu1 }
 0x1b4   :  { %v16045_v2 = vadd.f32 %v810_v26, %v15981_v49  ;;  %v812_v11 = vpop.f32.mrb[26].mxu0  ;;  %v16054_v1 = vadd.f32 %v883_v63, %v15991_v52  ;;  %v885_v56 = vpop.f32.mrb[26].mxu1 }
 0x1b5   :  { %18695 = vst [vmem:[#allocation63_spill] sm:$0xff] %v16042_v8  ;;  %18697 = vst [vmem:[#allocation65_spill] sm:$0xff] %v16048_v13  ;;  %v16051_v14 = vadd.f32 %v812_v11, %v15973_v45  ;;  %v814_v3 = vpop.f32.mrb[27].mxu0  ;;  %v16060_v47 = vadd.f32 %v885_v56, %v15986_v50  ;;  %v887_v26 = vpop.f32.mrb[27].mxu1 }
 0x1b6   :  { %18696 = vst [vmem:[#allocation64_spill] sm:$0xff] %v16045_v2  ;;  %18699 = vst [vmem:[#allocation67_spill] sm:$0xff] %v16054_v1  ;;  %v16057_v41 = vadd.f32 %v814_v3, %v15981_v49  ;;  %v16063_v37 = vadd.f32 %v887_v26, %v15991_v52 }
 0x1b7   :  { %18698 = vst [vmem:[#allocation66_spill] sm:$0xff] %v16051_v14  ;;  %18701 = vst [vmem:[#allocation69_spill] sm:$0xff] %v16060_v47 }
 0x1b8   :  { %18700 = vst [vmem:[#allocation68_spill] sm:$0xff] %v16057_v41  ;;  %18702 = vst [vmem:[#allocation70_spill] sm:$0xff] %v16063_v37 }
 0x1ba   :  { %v818_v9 = vpop.f32.mrb[28].mxu0  ;;  %v891_v23 = vpop.f32.mrb[28].mxu1 }
 0x1bb   :  { %v16066_v39 = vadd.f32 %v818_v9, %v15973_v45  ;;  %v820_v11 = vpop.f32.mrb[29].mxu0  ;;  %v16072_v3 = vadd.f32 %v891_v23, %v15986_v50  ;;  %v893_v42 = vpop.f32.mrb[29].mxu1  ;;  %v643_v9 = vadd.f32 %v15862_v16, %v15860_v15  ;;  %v718_v23 = vadd.f32 %v15883_v22, %v15876_v20 }
 0x1bc   :  { %v16069_v63 = vadd.f32 %v820_v11, %v15981_v49  ;;  %v822_v7 = vpop.f32.mrb[30].mxu0  ;;  %v16075_v54 = vadd.f32 %v893_v42, %v15991_v52  ;;  %v895_v26 = vpop.f32.mrb[30].mxu1  ;;  %v716_v11 = vadd.f32 %v15871_v19, %v15867_v17 }
 0x1bd   :  { %v824_v56 = vpop.f32.mrb[31].mxu0  ;;  %v897_v25 = vpop.f32.mrb[31].mxu1 }
 0x1c2   :  { %v1194_v4 = vpop.f32.mrb[32].mxu0  ;;  %v1235_v0 = vpop.f32.mrb[32].mxu1 }
 0x1c3   :  { %v1242_v21 = vadd.f32 %v1194_v4, %v643_v9  ;;  %v1196_v58 = vpop.f32.mrb[33].mxu0  ;;  %v1244_v42 = vadd.f32 %v1235_v0, %v716_v11  ;;  %v1237_v30 = vpop.f32.mrb[33].mxu1  ;;  %v898_v11 = vadd.f32 %v897_v25, %v15991_v52 }
 0x1c4   :  { %v1243_v6 = vadd.f32 %v1196_v58, %v645_v32  ;;  %v1198_v35 = vpop.f32.mrb[34].mxu0  ;;  %v1245_v59 = vadd.f32 %v1237_v30, %v718_v23  ;;  %v1239_v16 = vpop.f32.mrb[34].mxu1 }
 0x1c5   :  { %v12601_v62 = vmul.f32 -1.442695, %v1242_v21  ;;  %v1199_v15 = vpop.f32.mrb[35].mxu0  ;;  %v1240_v18 = vpop.f32.mrb[35].mxu1  ;;  %v12603_v17 = vmul.f32 -1.442695, %v1244_v42 }
 0x1c6   :  { %v12602_v60 = vmul.f32 -1.442695, %v1243_v6  ;;  %v823_v6 = vadd.f32 %v822_v7, %v15973_v45 }
 0x1c7   :  { %14729 = vpow2.f32 %v12601_v62  ;;  %v896_v62 = vadd.f32 %v895_v26, %v15986_v50 }
 0x1c8   :  { %14731 = vpow2.f32 %v12602_v60  ;;  %v825_v60 = vadd.f32 %v824_v56, %v15981_v49 }
 0x1c9   :  { %14733 = vpow2.f32 %v12603_v17 }
 0x1ca   :  { %14735 = vtanh.f32 %v1245_v59 }
 0x1d1   :  { %v14730_v19 = vpop.eup %14729 }
 0x1d2   :  { %v1255_v5 = vadd.f32 1.0, %v14730_v19  ;;  %v14732_v20 = vpop.eup %14731 }
 0x1d3   :  { %v1256_v22 = vadd.f32 1.0, %v14732_v20  ;;  %v14734_v0 = vpop.eup %14733 }
 0x1d4   :  { %14737 = vrcp.f32 %v1255_v5  ;;  %v14736_v4 = vpop.eup %14735  ;;  %v1257_v30 = vadd.f32 1.0, %v14734_v0 }
 0x1d5   :  { %14739 = vrcp.f32 %v1256_v22 }
 0x1d6   :  { %14741 = vrcp.f32 %v1257_v30  ;;  %v15242_v30 = vld [vmem:[#allocation12 + $0x8] ss:$16 sps:$4 sm:$0xff]  }
 0x1de   :  { %v14738_v32 = vpop.eup %14737 }
 0x1df   :  { %v1266_v21 = vmul.f32 %v14738_v32, %v14736_v4  ;;  %v14740_v35 = vpop.eup %14739 }
 0x1e0   :  { %v1265_v58 = vmul.f32 0.0, %v14740_v35  ;;  %v14742_v52 = vpop.eup %14741  ;;  %v15241_v35 = vld [vmem:[#allocation12] ss:$16 sps:$4 sm:$0xff]  }
 0x1e2   :  { %v1500_v9 = vpop.f32.mrb[36].mxu0  ;;  %v16089_v59 = vadd.f32 %v1266_v21, %v1265_v58  ;;  %v1541_v42 = vpop.f32.mrb[36].mxu1  ;;  %v15244_v58 = vld [vmem:[#allocation12 + $0x2c] ss:$16 sps:$4 sm:$0xff]  }
 0x1e3   :  { %v1548_v23 = vadd.f32 %v1500_v9, %v823_v6  ;;  %v1502_v15 = vpop.f32.mrb[37].mxu0  ;;  %v1550_v16 = vadd.f32 %v1541_v42, %v896_v62  ;;  %v1543_v17 = vpop.f32.mrb[37].mxu1  ;;  %v15243_v6 = vld [vmem:[#allocation12 + $0x24] ss:$16 sps:$4 sm:$0xff]   ;;  %v15245_v62 = vld [vmem:[#allocation12 + $0x20] ss:$16 sps:$4 sm:$0xff]  }
 0x1e4   :  { %v1549_v18 = vadd.f32 %v1502_v15, %v825_v60  ;;  %v1504_v19 = vpop.f32.mrb[38].mxu0  ;;  %14743 = vtanh.f32 %v16089_v59  ;;  %v1551_v45 = vadd.f32 %v1543_v17, %v898_v11  ;;  %v1545_v56 = vpop.f32.mrb[38].mxu1  ;;  %v18704_v60 = vmov 0   ;;  %v15246_v9 = vld [vmem:[#allocation12 + $0x28] ss:$16 sps:$4 sm:$0xff]  }
 0x1e5   :  { %v12636_v7 = vmul.f32 -1.442695, %v1548_v23  ;;  %v1505_v49 = vpop.f32.mrb[39].mxu0  ;;  %v1546_v26 = vpop.f32.mrb[39].mxu1  ;;  %v12638_v25 = vmul.f32 -1.442695, %v1550_v16 }
 0x1e6   :  { %v12637_v50 = vmul.f32 -1.442695, %v1549_v18  ;;  %v15247_v11 = vld [vmem:[#allocation12 + $0x44] ss:$16 sps:$4 sm:$0xff]   ;;  %v15248_v23 = vld [vmem:[#allocation12 + $0x4c] ss:$16 sps:$4 sm:$0xff]  }
 0x1e7   :  { %14745 = vpow2.f32 %v12636_v7  ;;  %v15249_v16 = vld [vmem:[#allocation12 + $0x40] ss:$16 sps:$4 sm:$0xff]   ;;  %v15250_v18 = vld [vmem:[#allocation12 + $0x48] ss:$16 sps:$4 sm:$0xff]   ;;  %v15251_v19 = vld [vmem:[#allocation12 + $0x64] ss:$16 sps:$4 sm:$0xff]  }
 0x1e8   :  { %14747 = vpow2.f32 %v12637_v50  ;;  %v15252_v7 = vld [vmem:[#allocation12 + $0x6c] ss:$16 sps:$4 sm:$0xff]   ;;  %v15253_v26 = vld [vmem:[#allocation12 + $0x60] ss:$16 sps:$4 sm:$0xff]  }
 0x1e9   :  { %14749 = vpow2.f32 %v12638_v25  ;;  %v15255_v25 = vld [vmem:[#allocation12 + $0x84] ss:$16 sps:$4 sm:$0xff]  }
 0x1ea   :  { %14751 = vtanh.f32 %v1551_v45 }
 0x1ee   :  { %v14744_v5 = vpop.eup %14743 }
 0x1ef   :  { %v16092_v20 = vmul.f32 %v14744_v5, %v14742_v52  ;;  %v15254_v52 = vld [vmem:[#allocation12 + $0x68] ss:$16 sps:$4 sm:$0xff]   ;;  %v15256_v5 = vld [vmem:[#allocation12 + $0x8c] ss:$16 sps:$4 sm:$0xff]  }
 0x1f1   :  { %18703 = vst [vmem:[#allocation71_spill] sm:$0xff] %v16092_v20  ;;  %v14746_v22 = vpop.eup %14745  ;;  %v1582_v4 = vpack.c.bf16 %v16092_v20, %v16092_v20  ;;  %v16185_v20 = vld [vmem:[#allocation10 + $0xc8] ss:$16 sps:$4 sm:$0xff]  }
 0x1f2   :  { %v1561_v0 = vadd.f32 1.0, %v14746_v22  ;;  %v14748_v32 = vpop.eup %14747 }
 0x1f3   :  { %v1562_v21 = vadd.f32 1.0, %v14748_v32  ;;  %1808 = vmatmul.mubr.bf16.vlgmr.msra.gmra.mrb[40].mxu0 %v1582_v4  ;;  %1849 = vmatmul.mubr.bf16.vlgmr.msra.gmra.mrb[40].mxu1 %v1582_v4  ;;  %v14750_v42 = vpop.eup %14749  ;;  %v15258_v4 = vld [vmem:[#allocation12 + $0x88] ss:$16 sps:$4 sm:$0xff]   ;;  %v15259_v32 = vld [vmem:[#allocation12 + $0xa4] ss:$16 sps:$4 sm:$0xff]  }
 0x1f4   :  { %14753 = vrcp.f32 %v1561_v0  ;;  %2083 = vmatpush1.bf16.msra.mxu0 %v15241_v35  ;;  %2124 = vmatpush1.bf16.msra.mxu1 %v15242_v30  ;;  %v14752_v15 = vpop.eup %14751  ;;  %v1563_v56 = vadd.f32 1.0, %v14750_v42  ;;  %v15257_v0 = vld [vmem:[#allocation12 + $0x80] ss:$16 sps:$4 sm:$0xff]   ;;  %v15262_v30 = vld [vmem:[#allocation12 + $0xa8] ss:$16 sps:$4 sm:$0xff]  }
 0x1f5   :  { %14755 = vrcp.f32 %v1562_v21  ;;  %2084 = vmatprep.subr.bf16.mxu0 %v15243_v6  ;;  %2125 = vmatprep.subr.bf16.mxu1 %v15244_v58  ;;  %v15260_v21 = vld [vmem:[#allocation12 + $0xac] ss:$16 sps:$4 sm:$0xff]   ;;  %v15261_v35 = vld [vmem:[#allocation12 + $0xa0] ss:$16 sps:$4 sm:$0xff]   ;;  %v15263_v6 = vld [vmem:[#allocation12 + $0xc4] ss:$16 sps:$4 sm:$0xff]  }
 0x1f6   :  { %2114 = vmatprep.mubr.bf16.mxu0 %v18704_v60  ;;  %2155 = vmatprep.mubr.bf16.mxu1 %v18704_v60  ;;  %14757 = vrcp.f32 %v1563_v56  ;;  %v15264_v58 = vld [vmem:[#allocation12 + $0xcc] ss:$16 sps:$4 sm:$0xff]   ;;  %v16113_v56 = vld [vmem:[#allocation10 + $0x8] ss:$16 sps:$4 sm:$0xff]  }
 0x1f7   :  { %v15268_v42 = vld [vmem:[#allocation12 + $0xec] ss:$16 sps:$4 sm:$0xff]  }
 0x1f8   :  { %2085 = vmatpush1.bf16.msra.mxu0 %v15245_v62  ;;  %2126 = vmatpush1.bf16.msra.mxu1 %v15246_v9  ;;  %v15265_v62 = vld [vmem:[#allocation12 + $0xc0] ss:$16 sps:$4 sm:$0xff]   ;;  %v15266_v9 = vld [vmem:[#allocation12 + $0xc8] ss:$16 sps:$4 sm:$0xff]  }
 0x1f9   :  { %2086 = vmatprep.subr.bf16.mxu0 %v15247_v11  ;;  %2127 = vmatprep.subr.bf16.mxu1 %v15248_v23  ;;  %v15267_v23 = vld [vmem:[#allocation12 + $0xe4] ss:$16 sps:$4 sm:$0xff]  }
 0x1fc   :  { %2087 = vmatpush1.bf16.msra.mxu0 %v15249_v16  ;;  %2128 = vmatpush1.bf16.msra.mxu1 %v15250_v18  ;;  %v15269_v18 = vld [vmem:[#allocation12 + $0xe0] ss:$16 sps:$4 sm:$0xff]  }
 0x1fd   :  { %2088 = vmatprep.subr.bf16.mxu0 %v15251_v19  ;;  %2129 = vmatprep.subr.bf16.mxu1 %v15252_v7  ;;  %v16107_v7 = vld [vmem:[#allocation10 + $0x4] ss:$16 sps:$4 sm:$0xff]  }
 0x1fe   :  { %v14754_v17 = vpop.eup %14753 }
 0x1ff   :  { %v1572_v45 = vmul.f32 %v14754_v17, %v14752_v15  ;;  %v14756_v49 = vpop.eup %14755  ;;  %v15270_v17 = vld [vmem:[#allocation12 + $0xe8] ss:$16 sps:$4 sm:$0xff]  }
 0x200   :  { %v1571_v50 = vmul.f32 0.0, %v14756_v49  ;;  %2089 = vmatpush1.bf16.msra.mxu0 %v15253_v26  ;;  %2130 = vmatpush1.bf16.msra.mxu1 %v15254_v52  ;;  %v14758_v11 = vpop.eup %14757  ;;  %v16111_v49 = vld [vmem:[#allocation10] ss:$16 sps:$4 sm:$0xff]   ;;  %v16121_v26 = vld [vmem:[#allocation10 + $0x2c] ss:$16 sps:$4 sm:$0xff]  }
 0x201   :  { %2090 = vmatprep.subr.bf16.mxu0 %v15255_v25  ;;  %2131 = vmatprep.subr.bf16.mxu1 %v15256_v5  ;;  %v16123_v52 = vld [vmem:[#allocation10 + $0x20] ss:$16 sps:$4 sm:$0xff]   ;;  %v16125_v25 = vld [vmem:[#allocation10 + $0x28] ss:$16 sps:$4 sm:$0xff]   ;;  %v16131_v5 = vld [vmem:[#allocation10 + $0x44] ss:$16 sps:$4 sm:$0xff]  }
 0x202   :  { %v16098_v22 = vadd.f32 %v1572_v45, %v1571_v50  ;;  %v16109_v45 = vld [vmem:[#allocation10 + $0xc] ss:$16 sps:$4 sm:$0xff]   ;;  %v16119_v50 = vld [vmem:[#allocation10 + $0x24] ss:$16 sps:$4 sm:$0xff]  }
 0x204   :  { %14759 = vtanh.f32 %v16098_v22  ;;  %2091 = vmatpush1.bf16.msra.mxu0 %v15257_v0  ;;  %2132 = vmatpush1.bf16.msra.mxu1 %v15258_v4  ;;  %v16133_v0 = vld [vmem:[#allocation10 + $0x4c] ss:$16 sps:$4 sm:$0xff]   ;;  %v16135_v4 = vld [vmem:[#allocation10 + $0x40] ss:$16 sps:$4 sm:$0xff]  }
 0x205   :  { %2092 = vmatprep.subr.bf16.mxu0 %v15259_v32  ;;  %2133 = vmatprep.subr.bf16.mxu1 %v15260_v21  ;;  %v16137_v32 = vld [vmem:[#allocation10 + $0x48] ss:$16 sps:$4 sm:$0xff]   ;;  %v16143_v21 = vld [vmem:[#allocation10 + $0x64] ss:$16 sps:$4 sm:$0xff]  }
 0x208   :  { %2093 = vmatpush1.bf16.msra.mxu0 %v15261_v35  ;;  %2134 = vmatpush1.bf16.msra.mxu1 %v15262_v30  ;;  %v16145_v35 = vld [vmem:[#allocation10 + $0x6c] ss:$16 sps:$4 sm:$0xff]   ;;  %v16147_v30 = vld [vmem:[#allocation10 + $0x60] ss:$16 sps:$4 sm:$0xff]  }
 0x209   :  { %2094 = vmatprep.subr.bf16.mxu0 %v15263_v6  ;;  %2135 = vmatprep.subr.bf16.mxu1 %v15264_v58  ;;  %v16149_v6 = vld [vmem:[#allocation10 + $0x68] ss:$16 sps:$4 sm:$0xff]   ;;  %v16155_v58 = vld [vmem:[#allocation10 + $0x84] ss:$16 sps:$4 sm:$0xff]  }
 0x20c   :  { %2095 = vmatpush1.bf16.msra.mxu0 %v15265_v62  ;;  %2136 = vmatpush1.bf16.msra.mxu1 %v15266_v9  ;;  %v16157_v62 = vld [vmem:[#allocation10 + $0x8c] ss:$16 sps:$4 sm:$0xff]   ;;  %v16159_v9 = vld [vmem:[#allocation10 + $0x80] ss:$16 sps:$4 sm:$0xff]  }
 0x20d   :  { %2096 = vmatprep.subr.bf16.mxu0 %v15267_v23  ;;  %2137 = vmatprep.subr.bf16.mxu1 %v15268_v42  ;;  %v16167_v23 = vld [vmem:[#allocation10 + $0xa4] ss:$16 sps:$4 sm:$0xff]   ;;  %v16169_v42 = vld [vmem:[#allocation10 + $0xac] ss:$16 sps:$4 sm:$0xff]  }
 0x20e   :  { %v14760_v15 = vpop.eup %14759 }
 0x20f   :  { %v16101_v16 = vmul.f32 %v14760_v15, %v14758_v11  ;;  %v16161_v11 = vld [vmem:[#allocation10 + $0x88] ss:$16 sps:$4 sm:$0xff]   ;;  %v16171_v15 = vld [vmem:[#allocation10 + $0xa0] ss:$16 sps:$4 sm:$0xff]  }
 0x210   :  { %2097 = vmatpush1.bf16.msra.mxu0 %v15269_v18  ;;  %2138 = vmatpush1.bf16.msra.mxu1 %v15270_v17  ;;  %v16173_v18 = vld [vmem:[#allocation10 + $0xa8] ss:$16 sps:$4 sm:$0xff]   ;;  %v16179_v17 = vld [vmem:[#allocation10 + $0xc4] ss:$16 sps:$4 sm:$0xff]  }
 0x211   :  { %18705 = vst [vmem:[#allocation72_spill] sm:$0xff] %v16101_v16  ;;  %v1889_v19 = vpack.c.bf16 %v16101_v16, %v16101_v16  ;;  %2391 = vmatprep.subr.bf16.mxu0 %v16107_v7  ;;  %2432 = vmatprep.subr.bf16.mxu1 %v16109_v45  ;;  %v16183_v16 = vld [vmem:[#allocation10 + $0xc0] ss:$16 sps:$4 sm:$0xff]  }
 0x213   :  { %2115 = vmatmul.mubr.bf16.vlgmr.msra.gmra.mrb[44].mxu0 %v1889_v19  ;;  %2156 = vmatmul.mubr.bf16.vlgmr.msra.gmra.mrb[44].mxu1 %v1889_v19  ;;  %v16181_v19 = vld [vmem:[#allocation10 + $0xcc] ss:$16 sps:$4 sm:$0xff]  }
 0x214   :  { %2423 = vmatprep.mubr.bf16.mxu0 %v18704_v60  ;;  %2464 = vmatprep.mubr.bf16.mxu1 %v18704_v60 }
 0x215   :  { %2392 = vmatpush1.bf16.msra.mxu0 %v16111_v49  ;;  %2433 = vmatpush1.bf16.msra.mxu1 %v16113_v56 }
 0x216   :  { %2393 = vmatprep.subr.bf16.mxu0 %v16119_v50  ;;  %2434 = vmatprep.subr.bf16.mxu1 %v16121_v26 }
 0x219   :  { %2394 = vmatpush1.bf16.msra.mxu0 %v16123_v52  ;;  %2435 = vmatpush1.bf16.msra.mxu1 %v16125_v25 }
 0x21a   :  { %2395 = vmatprep.subr.bf16.mxu0 %v16131_v5  ;;  %2436 = vmatprep.subr.bf16.mxu1 %v16133_v0 }
 0x21d   :  { %2396 = vmatpush1.bf16.msra.mxu0 %v16135_v4  ;;  %2437 = vmatpush1.bf16.msra.mxu1 %v16137_v32 }
 0x21e   :  { %2397 = vmatprep.subr.bf16.mxu0 %v16143_v21  ;;  %2438 = vmatprep.subr.bf16.mxu1 %v16145_v35 }
 0x221   :  { %2398 = vmatpush1.bf16.msra.mxu0 %v16147_v30  ;;  %2439 = vmatpush1.bf16.msra.mxu1 %v16149_v6 }
 0x222   :  { %2399 = vmatprep.subr.bf16.mxu0 %v16155_v58  ;;  %2440 = vmatprep.subr.bf16.mxu1 %v16157_v62 }
 0x225   :  { %2400 = vmatpush1.bf16.msra.mxu0 %v16159_v9  ;;  %2441 = vmatpush1.bf16.msra.mxu1 %v16161_v11 }
 0x226   :  { %2401 = vmatprep.subr.bf16.mxu0 %v16167_v23  ;;  %2442 = vmatprep.subr.bf16.mxu1 %v16169_v42 }
 0x229   :  { %2402 = vmatpush1.bf16.msra.mxu0 %v16171_v15  ;;  %2443 = vmatpush1.bf16.msra.mxu1 %v16173_v18 }
 0x22a   :  { %2403 = vmatprep.subr.bf16.mxu0 %v16179_v17  ;;  %2444 = vmatprep.subr.bf16.mxu1 %v16181_v19 }
 0x22d   :  { %2404 = vmatpush1.bf16.msra.mxu0 %v16183_v16  ;;  %2445 = vmatpush1.bf16.msra.mxu1 %v16185_v20 }
 0x22e   :  { %2405 = vmatprep.subr.bf16.mxu0 %v16191_v55  ;;  %2446 = vmatprep.subr.bf16.mxu1 %v16193_v10 }
 0x231   :  { %2406 = vmatpush1.bf16.msra.mxu0 %v16195_v61  ;;  %2447 = vmatpush1.bf16.msra.mxu1 %v16197_v12 }
 0x232   :  { %2698 = vmatprep.subr.bf16.mxu0 %v16203_v33  ;;  %2739 = vmatprep.subr.bf16.mxu1 %v16205_v57 }
 0x2c6   :  { %v1809_v51 = vpop.f32.mrb[40].mxu0  ;;  %v1850_v53 = vpop.f32.mrb[40].mxu1 }
 0x2c7   :  { %v1857_v48 = vadd.f32 %v1809_v51, %v15886_v24  ;;  %v1859_v1 = vadd.f32 %v1850_v53, %v15892_v28  ;;  %v1811_v2 = vpop.f32.mrb[41].mxu0  ;;  %v1852_v13 = vpop.f32.mrb[41].mxu1 }
 0x2c8   :  { %v1858_v8 = vadd.f32 %v1811_v2, %v15889_v27  ;;  %v1860_v46 = vadd.f32 %v1852_v13, %v15895_v29  ;;  %v1813_v43 = vpop.f32.mrb[42].mxu0  ;;  %v1854_v44 = vpop.f32.mrb[42].mxu1 }
 0x2c9   :  { %v12671_v38 = vmul.f32 -1.442695, %v1857_v48  ;;  %v1814_v37 = vpop.f32.mrb[43].mxu0  ;;  %v1855_v41 = vpop.f32.mrb[43].mxu1  ;;  %v12673_v14 = vmul.f32 -1.442695, %v1859_v1 }
 0x2ca   :  { %v12672_v47 = vmul.f32 -1.442695, %v1858_v8 }
 0x2cb   :  { %14761 = vpow2.f32 %v12671_v38 }
 0x2cc   :  { %14763 = vpow2.f32 %v12672_v47 }
 0x2cd   :  { %14765 = vtanh.f32 %v1860_v46 }
 0x2ce   :  { %14767 = vpow2.f32 %v12673_v14 }
 0x2d5   :  { %v14762_v40 = vpop.eup %14761 }
 0x2d6   :  { %v1870_v34 = vadd.f32 1.0, %v14762_v40  ;;  %v14764_v24 = vpop.eup %14763 }
 0x2d7   :  { %v1871_v28 = vadd.f32 1.0, %v14764_v24  ;;  %v14766_v27 = vpop.eup %14765 }
 0x2d8   :  { %14769 = vrcp.f32 %v1870_v34  ;;  %v14768_v51 = vpop.eup %14767 }
 0x2d9   :  { %14771 = vrcp.f32 %v1871_v28  ;;  %v1872_v48 = vadd.f32 1.0, %v14768_v51 }
 0x2db   :  { %14773 = vrcp.f32 %v1872_v48  ;;  %v16229_v48 = vld [vmem:[#allocation12 + $0x24] ss:$16 sps:$4 sm:$0xff]  }
 0x2e2   :  { %v14770_v29 = vpop.eup %14769 }
 0x2e3   :  { %v1881_v43 = vmul.f32 %v14770_v29, %v14766_v27  ;;  %v14772_v44 = vpop.eup %14771 }
 0x2e4   :  { %v1880_v53 = vmul.f32 %v14772_v44, %v16089_v59 }
 0x2e6   :  { %v2116_v8 = vpop.f32.mrb[44].mxu0  ;;  %v2157_v38 = vpop.f32.mrb[44].mxu1  ;;  %v16214_v37 = vadd.f32 %v1881_v43, %v1880_v53  ;;  %v16223_v43 = vld [vmem:[#allocation12] ss:$16 sps:$4 sm:$0xff]   ;;  %v16231_v53 = vld [vmem:[#allocation12 + $0x2c] ss:$16 sps:$4 sm:$0xff]  }
 0x2e7   :  { %v2164_v40 = vadd.f32 %v2116_v8, %v16066_v39  ;;  %v2166_v46 = vadd.f32 %v2157_v38, %v16072_v3  ;;  %v2118_v47 = vpop.f32.mrb[45].mxu0  ;;  %v2159_v34 = vpop.f32.mrb[45].mxu1 }
 0x2e8   :  { %v2165_v2 = vadd.f32 %v2118_v47, %v16069_v63  ;;  %v2167_v13 = vadd.f32 %v2159_v34, %v16075_v54  ;;  %v2120_v14 = vpop.f32.mrb[46].mxu0  ;;  %v2161_v1 = vpop.f32.mrb[46].mxu1  ;;  %14775 = vtanh.f32 %v16214_v37  ;;  %v16225_v63 = vld [vmem:[#allocation12 + $0x8] ss:$16 sps:$4 sm:$0xff]   ;;  %v16241_v47 = vld [vmem:[#allocation12 + $0x44] ss:$16 sps:$4 sm:$0xff]  }
 0x2e9   :  { %v12706_v41 = vmul.f32 -1.442695, %v2164_v40  ;;  %v2121_v59 = vpop.f32.mrb[47].mxu0  ;;  %v2162_v24 = vpop.f32.mrb[47].mxu1  ;;  %v12708_v3 = vmul.f32 -1.442695, %v2166_v46 }
 0x2ea   :  { %v12707_v28 = vmul.f32 -1.442695, %v2165_v2  ;;  %v14774_v39 = vpop.eup %14773  ;;  %v16235_v40 = vld [vmem:[#allocation12 + $0x20] ss:$16 sps:$4 sm:$0xff]   ;;  %v16237_v46 = vld [vmem:[#allocation12 + $0x28] ss:$16 sps:$4 sm:$0xff]  }
 0x2eb   :  { %14777 = vpow2.f32 %v12706_v41  ;;  %v16243_v34 = vld [vmem:[#allocation12 + $0x4c] ss:$16 sps:$4 sm:$0xff]   ;;  %v16249_v2 = vld [vmem:[#allocation12 + $0x40] ss:$16 sps:$4 sm:$0xff]   ;;  %v16255_v14 = vld [vmem:[#allocation12 + $0x64] ss:$16 sps:$4 sm:$0xff]  }
 0x2ec   :  { %14779 = vpow2.f32 %v12707_v28  ;;  %18707 = vst [vmem:[#allocation74_spill] sm:$0xff] %v16255_v14  ;;  %v16257_v1 = vld [vmem:[#allocation12 + $0x6c] ss:$16 sps:$4 sm:$0xff]   ;;  %v16261_v24 = vld [vmem:[#allocation12 + $0x60] ss:$16 sps:$4 sm:$0xff]  }
 0x2ed   :  { %14781 = vtanh.f32 %v2167_v13  ;;  %v16251_v13 = vld [vmem:[#allocation12 + $0x48] ss:$16 sps:$4 sm:$0xff]   ;;  %18708 = vst [vmem:[#allocation75_spill] sm:$0xff] %v16257_v1 }
 0x2ee   :  { %14783 = vpow2.f32 %v12708_v3  ;;  %v16263_v28 = vld [vmem:[#allocation12 + $0x68] ss:$16 sps:$4 sm:$0xff]   ;;  %v16269_v3 = vld [vmem:[#allocation12 + $0x8c] ss:$16 sps:$4 sm:$0xff]  }
 0x2f2   :  { %v14776_v27 = vpop.eup %14775 }
 0x2f3   :  { %v16221_v51 = vmul.f32 %v14776_v27, %v14774_v39  ;;  %v16267_v27 = vld [vmem:[#allocation12 + $0x84] ss:$16 sps:$4 sm:$0xff]  }
 0x2f5   :  { %18706 = vst [vmem:[#allocation73_spill] sm:$0xff] %v16221_v51  ;;  %v14778_v29 = vpop.eup %14777  ;;  %v2198_v44 = vpack.c.bf16 %v16221_v51, %v16221_v51  ;;  %v16276_v51 = vld [vmem:[#allocation12 + $0x88] ss:$16 sps:$4 sm:$0xff]  }
 0x2f6   :  { %v2177_v54 = vadd.f32 1.0, %v14778_v29  ;;  %v14780_v8 = vpop.eup %14779  ;;  %18709 = vst [vmem:[#allocation76_spill] sm:$0xff] %v16276_v51 }
 0x2f7   :  { %v2178_v38 = vadd.f32 1.0, %v14780_v8  ;;  %2424 = vmatmul.mubr.bf16.vlgmr.msra.gmra.mrb[48].mxu0 %v2198_v44  ;;  %2465 = vmatmul.mubr.bf16.vlgmr.msra.gmra.mrb[48].mxu1 %v2198_v44  ;;  %v14782_v41 = vpop.eup %14781 }
 0x2f8   :  { %14785 = vrcp.f32 %v2177_v54  ;;  %2699 = vmatpush1.bf16.msra.mxu0 %v16223_v43  ;;  %2740 = vmatpush1.bf16.msra.mxu1 %v16225_v63  ;;  %v14784_v59 = vpop.eup %14783 }
 0x2f9   :  { %14787 = vrcp.f32 %v2178_v38  ;;  %2700 = vmatprep.subr.bf16.mxu0 %v16229_v48  ;;  %2741 = vmatprep.subr.bf16.mxu1 %v16231_v53  ;;  %v2179_v44 = vadd.f32 1.0, %v14784_v59  ;;  %v16274_v38 = vld [vmem:[#allocation12 + $0x80] ss:$16 sps:$4 sm:$0xff]   ;;  %v16291_v59 = vld [vmem:[#allocation12 + $0xa8] ss:$16 sps:$4 sm:$0xff]  }
 0x2fa   :  { %2730 = vmatprep.mubr.bf16.mxu0 %v18704_v60  ;;  %2771 = vmatprep.mubr.bf16.mxu1 %v18704_v60  ;;  %18713 = vst [vmem:[#allocation80_spill] sm:$0xff] %v16291_v59 }
 0x2fb   :  { %14789 = vrcp.f32 %v2179_v44  ;;  %v16303_v44 = vld [vmem:[#allocation12 + $0xc8] ss:$16 sps:$4 sm:$0xff]  }
 0x2fc   :  { %2701 = vmatpush1.bf16.msra.mxu0 %v16235_v40  ;;  %2742 = vmatpush1.bf16.msra.mxu1 %v16237_v46 }
 0x2fd   :  { %2702 = vmatprep.subr.bf16.mxu0 %v16241_v47  ;;  %2743 = vmatprep.subr.bf16.mxu1 %v16243_v34 }
 0x300   :  { %2703 = vmatpush1.bf16.msra.mxu0 %v16249_v2  ;;  %2744 = vmatpush1.bf16.msra.mxu1 %v16251_v13 }
 0x301   :  { %2704 = vmatprep.subr.bf16.mxu0 %v16255_v14  ;;  %2745 = vmatprep.subr.bf16.mxu1 %v16257_v1  ;;  %v16280_v1 = vld [vmem:[#allocation12 + $0xa4] ss:$16 sps:$4 sm:$0xff]   ;;  %v16282_v14 = vld [vmem:[#allocation12 + $0xac] ss:$16 sps:$4 sm:$0xff]  }
 0x302   :  { %v14786_v39 = vpop.eup %14785  ;;  %18710 = vst [vmem:[#allocation77_spill] sm:$0xff] %v16280_v1  ;;  %18711 = vst [vmem:[#allocation78_spill] sm:$0xff] %v16282_v14 }
 0x303   :  { %v2188_v29 = vmul.f32 %v14786_v39, %v14782_v41  ;;  %v14788_v54 = vpop.eup %14787  ;;  %v16295_v39 = vld [vmem:[#allocation12 + $0xc4] ss:$16 sps:$4 sm:$0xff]  }
 0x304   :  { %v2187_v8 = vmul.f32 %v14788_v54, %v16098_v22  ;;  %2705 = vmatpush1.bf16.msra.mxu0 %v16261_v24  ;;  %2746 = vmatpush1.bf16.msra.mxu1 %v16263_v28  ;;  %v16289_v22 = vld [vmem:[#allocation12 + $0xa0] ss:$16 sps:$4 sm:$0xff]   ;;  %18714 = vst [vmem:[#allocation81_spill] sm:$0xff] %v16295_v39  ;;  %v16297_v54 = vld [vmem:[#allocation12 + $0xcc] ss:$16 sps:$4 sm:$0xff]  }
 0x305   :  { %2706 = vmatprep.subr.bf16.mxu0 %v16267_v27  ;;  %2747 = vmatprep.subr.bf16.mxu1 %v16269_v3  ;;  %18712 = vst [vmem:[#allocation79_spill] sm:$0xff] %v16289_v22 }
 0x306   :  { %v16284_v41 = vadd.f32 %v2188_v29, %v2187_v8  ;;  %v16301_v29 = vld [vmem:[#allocation12 + $0xc0] ss:$16 sps:$4 sm:$0xff]   ;;  %v16307_v8 = vld [vmem:[#allocation12 + $0xe4] ss:$16 sps:$4 sm:$0xff]  }
 0x307   :  { %18715 = vst [vmem:[#allocation82_spill] sm:$0xff] %v16301_v29 }
 0x308   :  { %14791 = vtanh.f32 %v16284_v41  ;;  %2707 = vmatpush1.bf16.msra.mxu0 %v16274_v38  ;;  %2748 = vmatpush1.bf16.msra.mxu1 %v16276_v51 }
 0x309   :  { %2708 = vmatprep.subr.bf16.mxu0 %v16280_v1  ;;  %2749 = vmatprep.subr.bf16.mxu1 %v16282_v14  ;;  %v16309_v1 = vld [vmem:[#allocation12 + $0xec] ss:$16 sps:$4 sm:$0xff]   ;;  %v16313_v14 = vld [vmem:[#allocation12 + $0xe0] ss:$16 sps:$4 sm:$0xff]  }
 0x30c   :  { %2709 = vmatpush1.bf16.msra.mxu0 %v16289_v22  ;;  %2750 = vmatpush1.bf16.msra.mxu1 %v16291_v59  ;;  %v16315_v22 = vld [vmem:[#allocation12 + $0xe8] ss:$16 sps:$4 sm:$0xff]   ;;  %v14790_v59 = vpop.eup %14789 }
 0x30d   :  { %2710 = vmatprep.subr.bf16.mxu0 %v16295_v39  ;;  %2751 = vmatprep.subr.bf16.mxu1 %v16297_v54 }
 0x310   :  { %2711 = vmatpush1.bf16.msra.mxu0 %v16301_v29  ;;  %2752 = vmatpush1.bf16.msra.mxu1 %v16303_v44 }
 0x311   :  { %2712 = vmatprep.subr.bf16.mxu0 %v16307_v8  ;;  %2753 = vmatprep.subr.bf16.mxu1 %v16309_v1 }
 0x312   :  { %v14792_v39 = vpop.eup %14791 }
 0x313   :  { %v16319_v51 = vmul.f32 %v14792_v39, %v14790_v59  ;;  %v18721_v39 = vld [vmem:[#allocation68_spill] sm:$0xff] }
 0x314   :  { %2713 = vmatpush1.bf16.msra.mxu0 %v16313_v14  ;;  %2754 = vmatpush1.bf16.msra.mxu1 %v16315_v22 }
 0x315   :  { %18716 = vst [vmem:[#allocation83_spill] sm:$0xff] %v16319_v51  ;;  %v2505_v29 = vpack.c.bf16 %v16319_v51, %v16319_v51  ;;  %3007 = vmatprep.subr.bf16.mxu0 %v16107_v7  ;;  %3048 = vmatprep.subr.bf16.mxu1 %v16109_v45  ;;  %v16586_v51 = vld [vmem:[#allocation12 + $0x80] ss:$16 sps:$4 sm:$0xff]  }
 0x317   :  { %2731 = vmatmul.mubr.bf16.vlgmr.msra.gmra.mrb[52].mxu0 %v2505_v29  ;;  %2772 = vmatmul.mubr.bf16.vlgmr.msra.gmra.mrb[52].mxu1 %v2505_v29 }
 0x318   :  { %3008 = vmatpush1.bf16.msra.mxu0 %v16111_v49  ;;  %3049 = vmatpush1.bf16.msra.mxu1 %v16113_v56 }
 0x319   :  { %3009 = vmatprep.subr.bf16.mxu0 %v16119_v50  ;;  %3050 = vmatprep.subr.bf16.mxu1 %v16121_v26  ;;  %v18717_v50 = vld [vmem:[#allocation25_spill] sm:$0xff]  ;;  %v18718_v26 = vld [vmem:[#allocation27_spill] sm:$0xff] }
 0x31a   :  { %3039 = vmatprep.mubr.bf16.mxu0 %v18704_v60  ;;  %3080 = vmatprep.mubr.bf16.mxu1 %v18704_v60 }
 0x31c   :  { %3010 = vmatpush1.bf16.msra.mxu0 %v16123_v52  ;;  %3051 = vmatpush1.bf16.msra.mxu1 %v16125_v25 }
 0x31d   :  { %3011 = vmatprep.subr.bf16.mxu0 %v16131_v5  ;;  %3052 = vmatprep.subr.bf16.mxu1 %v16133_v0 }
 0x320   :  { %3012 = vmatpush1.bf16.msra.mxu0 %v16135_v4  ;;  %3053 = vmatpush1.bf16.msra.mxu1 %v16137_v32 }
 0x321   :  { %3013 = vmatprep.subr.bf16.mxu0 %v16143_v21  ;;  %3054 = vmatprep.subr.bf16.mxu1 %v16145_v35 }
 0x324   :  { %3014 = vmatpush1.bf16.msra.mxu0 %v16147_v30  ;;  %3055 = vmatpush1.bf16.msra.mxu1 %v16149_v6 }
 0x325   :  { %3015 = vmatprep.subr.bf16.mxu0 %v16155_v58  ;;  %3056 = vmatprep.subr.bf16.mxu1 %v16157_v62 }
 0x328   :  { %3016 = vmatpush1.bf16.msra.mxu0 %v16159_v9  ;;  %3057 = vmatpush1.bf16.msra.mxu1 %v16161_v11 }
 0x329   :  { %3017 = vmatprep.subr.bf16.mxu0 %v16167_v23  ;;  %3058 = vmatprep.subr.bf16.mxu1 %v16169_v42  ;;  %v18719_v42 = vld [vmem:[#allocation66_spill] sm:$0xff] }
 0x32c   :  { %3018 = vmatpush1.bf16.msra.mxu0 %v16171_v15  ;;  %3059 = vmatpush1.bf16.msra.mxu1 %v16173_v18  ;;  %v18720_v18 = vld [vmem:[#allocation69_spill] sm:$0xff] }
 0x32d   :  { %3019 = vmatprep.subr.bf16.mxu0 %v16179_v17  ;;  %3060 = vmatprep.subr.bf16.mxu1 %v16181_v19 }
 0x330   :  { %3020 = vmatpush1.bf16.msra.mxu0 %v16183_v16  ;;  %3061 = vmatpush1.bf16.msra.mxu1 %v16185_v20 }
 0x331   :  { %3021 = vmatprep.subr.bf16.mxu0 %v16191_v55  ;;  %3062 = vmatprep.subr.bf16.mxu1 %v16193_v10 }
 0x334   :  { %3022 = vmatpush1.bf16.msra.mxu0 %v16195_v61  ;;  %3063 = vmatpush1.bf16.msra.mxu1 %v16197_v12 }
 0x335   :  { %3314 = vmatprep.subr.bf16.mxu0 %v16203_v33  ;;  %3355 = vmatprep.subr.bf16.mxu1 %v16205_v57 }
 0x3ca   :  { %v2425_v7 = vpop.f32.mrb[48].mxu0  ;;  %v2466_v45 = vpop.f32.mrb[48].mxu1 }
 0x3cb   :  { %v2473_v49 = vadd.f32 %v2425_v7, %v15898_v31  ;;  %v2475_v16 = vadd.f32 %v2466_v45, %v15904_v36  ;;  %v2427_v56 = vpop.f32.mrb[49].mxu0  ;;  %v2468_v20 = vpop.f32.mrb[49].mxu1  ;;  %v18722_v7 = vld [vmem:[#allocation70_spill] sm:$0xff] }
 0x3cc   :  { %v2474_v55 = vadd.f32 %v2427_v56, %v18717_v50  ;;  %v2476_v10 = vadd.f32 %v2468_v20, %v18718_v26  ;;  %v2429_v52 = vpop.f32.mrb[50].mxu0  ;;  %v2470_v61 = vpop.f32.mrb[50].mxu1 }
 0x3cd   :  { %v12741_v25 = vmul.f32 -1.442695, %v2473_v49  ;;  %v2430_v12 = vpop.f32.mrb[51].mxu0  ;;  %v2471_v5 = vpop.f32.mrb[51].mxu1  ;;  %v12743_v57 = vmul.f32 -1.442695, %v2475_v16 }
 0x3ce   :  { %v12742_v33 = vmul.f32 -1.442695, %v2474_v55 }
 0x3cf   :  { %14793 = vpow2.f32 %v12741_v25 }
 0x3d0   :  { %14795 = vpow2.f32 %v12742_v33 }
 0x3d1   :  { %14797 = vtanh.f32 %v2476_v10 }
 0x3d2   :  { %14799 = vpow2.f32 %v12743_v57 }
 0x3d9   :  { %v14794_v0 = vpop.eup %14793 }
 0x3da   :  { %v2486_v4 = vadd.f32 1.0, %v14794_v0  ;;  %v14796_v31 = vpop.eup %14795 }
 0x3db   :  { %v2487_v36 = vadd.f32 1.0, %v14796_v31  ;;  %v14798_v32 = vpop.eup %14797 }
 0x3dc   :  { %14801 = vrcp.f32 %v2486_v4  ;;  %v14800_v21 = vpop.eup %14799 }
 0x3dd   :  { %14803 = vrcp.f32 %v2487_v36  ;;  %v2488_v58 = vadd.f32 1.0, %v14800_v21  ;;  %v16437_v21 = vld [vmem:[#allocation10 + $0x28] ss:$16 sps:$4 sm:$0xff]  }
 0x3df   :  { %14805 = vrcp.f32 %v2488_v58  ;;  %v16449_v58 = vld [vmem:[#allocation10 + $0x48] ss:$16 sps:$4 sm:$0xff]  }
 0x3e6   :  { %v14802_v35 = vpop.eup %14801 }
 0x3e7   :  { %v2497_v30 = vmul.f32 %v14802_v35, %v14798_v32  ;;  %v14804_v6 = vpop.eup %14803  ;;  %v16435_v32 = vld [vmem:[#allocation10 + $0x20] ss:$16 sps:$4 sm:$0xff]   ;;  %v16443_v35 = vld [vmem:[#allocation10 + $0x44] ss:$16 sps:$4 sm:$0xff]  }
 0x3e8   :  { %v2496_v62 = vmul.f32 %v14804_v6, %v16214_v37  ;;  %v16447_v6 = vld [vmem:[#allocation10 + $0x40] ss:$16 sps:$4 sm:$0xff]  }
 0x3e9   :  { %v14806_v55 = vpop.eup %14805 }
 0x3ea   :  { %v2732_v9 = vpop.f32.mrb[52].mxu0  ;;  %v2773_v11 = vpop.f32.mrb[52].mxu1  ;;  %v16366_v23 = vadd.f32 %v2497_v30, %v2496_v62  ;;  %v16445_v30 = vld [vmem:[#allocation10 + $0x4c] ss:$16 sps:$4 sm:$0xff]   ;;  %v16455_v62 = vld [vmem:[#allocation10 + $0x64] ss:$16 sps:$4 sm:$0xff]  }
 0x3eb   :  { %v2780_v15 = vadd.f32 %v2732_v9, %v18719_v42  ;;  %v2782_v17 = vadd.f32 %v2773_v11, %v18720_v18  ;;  %v2734_v19 = vpop.f32.mrb[53].mxu0  ;;  %v2775_v59 = vpop.f32.mrb[53].mxu1  ;;  %v16457_v9 = vld [vmem:[#allocation10 + $0x6c] ss:$16 sps:$4 sm:$0xff]   ;;  %v16459_v11 = vld [vmem:[#allocation10 + $0x60] ss:$16 sps:$4 sm:$0xff]  }
 0x3ec   :  { %v2781_v29 = vadd.f32 %v2734_v19, %v18721_v39  ;;  %v2783_v45 = vadd.f32 %v2775_v59, %v18722_v7  ;;  %v2736_v49 = vpop.f32.mrb[54].mxu0  ;;  %v2777_v16 = vpop.f32.mrb[54].mxu1  ;;  %14807 = vtanh.f32 %v16366_v23  ;;  %v16461_v42 = vld [vmem:[#allocation10 + $0x68] ss:$16 sps:$4 sm:$0xff]   ;;  %v16469_v18 = vld [vmem:[#allocation10 + $0x8c] ss:$16 sps:$4 sm:$0xff]  }
 0x3ed   :  { %v12776_v37 = vmul.f32 -1.442695, %v2780_v15  ;;  %v2737_v56 = vpop.f32.mrb[55].mxu0  ;;  %v2778_v20 = vpop.f32.mrb[55].mxu1  ;;  %v12778_v10 = vmul.f32 -1.442695, %v2782_v17 }
 0x3ee   :  { %v12777_v50 = vmul.f32 -1.442695, %v2781_v29  ;;  %v16467_v15 = vld [vmem:[#allocation10 + $0x84] ss:$16 sps:$4 sm:$0xff]   ;;  %v16471_v17 = vld [vmem:[#allocation10 + $0x80] ss:$16 sps:$4 sm:$0xff]  }
 0x3ef   :  { %14809 = vpow2.f32 %v12776_v37  ;;  %v16473_v19 = vld [vmem:[#allocation10 + $0x88] ss:$16 sps:$4 sm:$0xff]   ;;  %v16479_v59 = vld [vmem:[#allocation10 + $0xa4] ss:$16 sps:$4 sm:$0xff]   ;;  %v16481_v39 = vld [vmem:[#allocation10 + $0xac] ss:$16 sps:$4 sm:$0xff]  }
 0x3f0   :  { %14811 = vpow2.f32 %v12777_v50  ;;  %v16483_v29 = vld [vmem:[#allocation10 + $0xa0] ss:$16 sps:$4 sm:$0xff]   ;;  %v16485_v7 = vld [vmem:[#allocation10 + $0xa8] ss:$16 sps:$4 sm:$0xff]   ;;  %v16493_v49 = vld [vmem:[#allocation10 + $0xcc] ss:$16 sps:$4 sm:$0xff]  }
 0x3f1   :  { %14813 = vtanh.f32 %v2783_v45  ;;  %v16491_v45 = vld [vmem:[#allocation10 + $0xc4] ss:$16 sps:$4 sm:$0xff]   ;;  %v16495_v16 = vld [vmem:[#allocation10 + $0xc0] ss:$16 sps:$4 sm:$0xff]   ;;  %v16497_v37 = vld [vmem:[#allocation10 + $0xc8] ss:$16 sps:$4 sm:$0xff]  }
 0x3f2   :  { %14815 = vpow2.f32 %v12778_v10  ;;  %v16503_v56 = vld [vmem:[#allocation10 + $0xe4] ss:$16 sps:$4 sm:$0xff]   ;;  %v16505_v20 = vld [vmem:[#allocation10 + $0xec] ss:$16 sps:$4 sm:$0xff]   ;;  %v16507_v50 = vld [vmem:[#allocation10 + $0xe0] ss:$16 sps:$4 sm:$0xff]  }
 0x3f3   :  { %v16517_v10 = vld [vmem:[#allocation12 + $0xc] ss:$16 sps:$4 sm:$0xff]  }
 0x3f6   :  { %v14808_v26 = vpop.eup %14807 }
 0x3f7   :  { %v16373_v52 = vmul.f32 %v14808_v26, %v14806_v55  ;;  %v16509_v55 = vld [vmem:[#allocation10 + $0xe8] ss:$16 sps:$4 sm:$0xff]   ;;  %v16515_v26 = vld [vmem:[#allocation12 + $0x4] ss:$16 sps:$4 sm:$0xff]  }
 0x3f9   :  { %18723 = vst [vmem:[#allocation25_spill] sm:$0xff] %v16373_v52  ;;  %v14810_v61 = vpop.eup %14809  ;;  %v2814_v12 = vpack.c.bf16 %v16373_v52, %v16373_v52  ;;  %v16594_v52 = vld [vmem:[#allocation12 + $0xac] ss:$16 sps:$4 sm:$0xff]  }
 0x3fa   :  { %v2793_v25 = vadd.f32 1.0, %v14810_v61  ;;  %v14812_v5 = vpop.eup %14811  ;;  %18745 = vst [vmem:[#allocation70_spill] sm:$0xff] %v16594_v52 }
 0x3fb   :  { %v2794_v33 = vadd.f32 1.0, %v14812_v5  ;;  %3040 = vmatmul.mubr.bf16.vlgmr.msra.gmra.mrb[56].mxu0 %v2814_v12  ;;  %3081 = vmatmul.mubr.bf16.vlgmr.msra.gmra.mrb[56].mxu1 %v2814_v12  ;;  %v18734_v12 = vld [vmem:[#allocation26_spill] sm:$0xff] }
 0x3fc   :  { %14817 = vrcp.f32 %v2793_v25  ;;  %3315 = vmatpush1.bf16.msra.mxu0 %v16223_v43  ;;  %3356 = vmatpush1.bf16.msra.mxu1 %v16225_v63  ;;  %v14814_v43 = vpop.eup %14813 }
 0x3fd   :  { %14819 = vrcp.f32 %v2794_v33  ;;  %3316 = vmatprep.subr.bf16.mxu0 %v16229_v48  ;;  %3357 = vmatprep.subr.bf16.mxu1 %v16231_v53  ;;  %v14816_v57 = vpop.eup %14815  ;;  %v18724_v48 = vld [vmem:[#allocation74_spill] sm:$0xff]  ;;  %v18725_v53 = vld [vmem:[#allocation75_spill] sm:$0xff]  ;;  %v18735_v33 = vld [vmem:[#allocation29_spill] sm:$0xff] }
 0x3fe   :  { %3346 = vmatprep.mubr.bf16.mxu0 %v18704_v60  ;;  %3387 = vmatprep.mubr.bf16.mxu1 %v18704_v60 }
 0x400   :  { %3317 = vmatpush1.bf16.msra.mxu0 %v16235_v40  ;;  %3358 = vmatpush1.bf16.msra.mxu1 %v16237_v46  ;;  %v2795_v40 = vadd.f32 1.0, %v14816_v57 }
 0x401   :  { %3318 = vmatprep.subr.bf16.mxu0 %v16241_v47  ;;  %3359 = vmatprep.subr.bf16.mxu1 %v16243_v34  ;;  %v18726_v34 = vld [vmem:[#allocation76_spill] sm:$0xff] }
 0x402   :  { %14821 = vrcp.f32 %v2795_v40 }
 0x404   :  { %3319 = vmatpush1.bf16.msra.mxu0 %v16249_v2  ;;  %3360 = vmatpush1.bf16.msra.mxu1 %v16251_v13  ;;  %v18727_v2 = vld [vmem:[#allocation77_spill] sm:$0xff]  ;;  %v18728_v13 = vld [vmem:[#allocation78_spill] sm:$0xff] }
 0x405   :  { %3320 = vmatprep.subr.bf16.mxu0 %v18724_v48  ;;  %3361 = vmatprep.subr.bf16.mxu1 %v18725_v53  ;;  %v18736_v48 = vld [vmem:[#allocation28_spill] sm:$0xff] }
 0x406   :  { %v14818_v63 = vpop.eup %14817 }
 0x407   :  { %v2804_v0 = vmul.f32 %v14818_v63, %v14814_v43  ;;  %v14820_v4 = vpop.eup %14819 }
 0x408   :  { %v2803_v46 = vmul.f32 %v14820_v4, %v16284_v41  ;;  %3321 = vmatpush1.bf16.msra.mxu0 %v16261_v24  ;;  %3362 = vmatpush1.bf16.msra.mxu1 %v16263_v28  ;;  %v18729_v24 = vld [vmem:[#allocation79_spill] sm:$0xff]  ;;  %v18730_v28 = vld [vmem:[#allocation80_spill] sm:$0xff] }
 0x409   :  { %3322 = vmatprep.subr.bf16.mxu0 %v16267_v27  ;;  %3363 = vmatprep.subr.bf16.mxu1 %v16269_v3  ;;  %v18731_v27 = vld [vmem:[#allocation81_spill] sm:$0xff]  ;;  %v18732_v3 = vld [vmem:[#allocation82_spill] sm:$0xff] }
 0x40a   :  { %v16396_v47 = vadd.f32 %v2804_v0, %v2803_v46  ;;  %v18737_v0 = vld [vmem:[#allocation30_spill] sm:$0xff] }
 0x40c   :  { %14823 = vtanh.f32 %v16396_v47  ;;  %3323 = vmatpush1.bf16.msra.mxu0 %v16274_v38  ;;  %3364 = vmatpush1.bf16.msra.mxu1 %v18726_v34  ;;  %v14822_v41 = vpop.eup %14821 }
 0x40d   :  { %3324 = vmatprep.subr.bf16.mxu0 %v18727_v2  ;;  %3365 = vmatprep.subr.bf16.mxu1 %v18728_v13 }
 0x410   :  { %3325 = vmatpush1.bf16.msra.mxu0 %v18729_v24  ;;  %3366 = vmatpush1.bf16.msra.mxu1 %v18730_v28 }
 0x411   :  { %3326 = vmatprep.subr.bf16.mxu0 %v18731_v27  ;;  %3367 = vmatprep.subr.bf16.mxu1 %v16297_v54  ;;  %v16419_v54 = vld [vmem:[#allocation10 + $0x4] ss:$16 sps:$4 sm:$0xff]  }
 0x414   :  { %3327 = vmatpush1.bf16.msra.mxu0 %v18732_v3  ;;  %3368 = vmatpush1.bf16.msra.mxu1 %v16303_v44  ;;  %v16421_v44 = vld [vmem:[#allocation10 + $0xc] ss:$16 sps:$4 sm:$0xff]  }
 0x415   :  { %3328 = vmatprep.subr.bf16.mxu0 %v16307_v8  ;;  %3369 = vmatprep.subr.bf16.mxu1 %v16309_v1  ;;  %v16423_v1 = vld [vmem:[#allocation10] ss:$16 sps:$4 sm:$0xff]   ;;  %v16425_v8 = vld [vmem:[#allocation10 + $0x8] ss:$16 sps:$4 sm:$0xff]  }
 0x416   :  { %v14824_v38 = vpop.eup %14823 }
 0x417   :  { %v16411_v31 = vmul.f32 %v14824_v38, %v14822_v41 }
 0x418   :  { %3329 = vmatpush1.bf16.msra.mxu0 %v16313_v14  ;;  %3370 = vmatpush1.bf16.msra.mxu1 %v16315_v22  ;;  %v16431_v14 = vld [vmem:[#allocation10 + $0x24] ss:$16 sps:$4 sm:$0xff]   ;;  %v16433_v22 = vld [vmem:[#allocation10 + $0x2c] ss:$16 sps:$4 sm:$0xff]  }
 0x419   :  { %18733 = vst [vmem:[#allocation27_spill] sm:$0xff] %v16411_v31  ;;  %v3121_v36 = vpack.c.bf16 %v16411_v31, %v16411_v31  ;;  %3623 = vmatprep.subr.bf16.mxu0 %v16419_v54  ;;  %3664 = vmatprep.subr.bf16.mxu1 %v16421_v44  ;;  %v16588_v31 = vld [vmem:[#allocation12 + $0x88] ss:$16 sps:$4 sm:$0xff]  }
 0x41a   :  { %18743 = vst [vmem:[#allocation69_spill] sm:$0xff] %v16588_v31 }
 0x41b   :  { %3347 = vmatmul.mubr.bf16.vlgmr.msra.gmra.mrb[60].mxu0 %v3121_v36  ;;  %3388 = vmatmul.mubr.bf16.vlgmr.msra.gmra.mrb[60].mxu1 %v3121_v36 }
 0x41c   :  { %3655 = vmatprep.mubr.bf16.mxu0 %v18704_v60  ;;  %3696 = vmatprep.mubr.bf16.mxu1 %v18704_v60 }
 0x41d   :  { %3624 = vmatpush1.bf16.msra.mxu0 %v16423_v1  ;;  %3665 = vmatpush1.bf16.msra.mxu1 %v16425_v8 }
 0x41e   :  { %3625 = vmatprep.subr.bf16.mxu0 %v16431_v14  ;;  %3666 = vmatprep.subr.bf16.mxu1 %v16433_v22 }
 0x421   :  { %3626 = vmatpush1.bf16.msra.mxu0 %v16435_v32  ;;  %3667 = vmatpush1.bf16.msra.mxu1 %v16437_v21 }
 0x422   :  { %3627 = vmatprep.subr.bf16.mxu0 %v16443_v35  ;;  %3668 = vmatprep.subr.bf16.mxu1 %v16445_v30 }
 0x425   :  { %3628 = vmatpush1.bf16.msra.mxu0 %v16447_v6  ;;  %3669 = vmatpush1.bf16.msra.mxu1 %v16449_v58 }
 0x426   :  { %3629 = vmatprep.subr.bf16.mxu0 %v16455_v62  ;;  %3670 = vmatprep.subr.bf16.mxu1 %v16457_v9 }
 0x429   :  { %3630 = vmatpush1.bf16.msra.mxu0 %v16459_v11  ;;  %3671 = vmatpush1.bf16.msra.mxu1 %v16461_v42 }
 0x42a   :  { %3631 = vmatprep.subr.bf16.mxu0 %v16467_v15  ;;  %3672 = vmatprep.subr.bf16.mxu1 %v16469_v18 }
 0x42d   :  { %3632 = vmatpush1.bf16.msra.mxu0 %v16471_v17  ;;  %3673 = vmatpush1.bf16.msra.mxu1 %v16473_v19 }
 0x42e   :  { %3633 = vmatprep.subr.bf16.mxu0 %v16479_v59  ;;  %3674 = vmatprep.subr.bf16.mxu1 %v16481_v39 }
 0x431   :  { %3634 = vmatpush1.bf16.msra.mxu0 %v16483_v29  ;;  %3675 = vmatpush1.bf16.msra.mxu1 %v16485_v7 }
 0x432   :  { %3635 = vmatprep.subr.bf16.mxu0 %v16491_v45  ;;  %3676 = vmatprep.subr.bf16.mxu1 %v16493_v49 }
 0x435   :  { %3636 = vmatpush1.bf16.msra.mxu0 %v16495_v16  ;;  %3677 = vmatpush1.bf16.msra.mxu1 %v16497_v37 }
 0x436   :  { %3637 = vmatprep.subr.bf16.mxu0 %v16503_v56  ;;  %3678 = vmatprep.subr.bf16.mxu1 %v16505_v20 }
 0x439   :  { %3638 = vmatpush1.bf16.msra.mxu0 %v16507_v50  ;;  %3679 = vmatpush1.bf16.msra.mxu1 %v16509_v55 }
 0x43a   :  { %3930 = vmatprep.subr.bf16.mxu0 %v16515_v26  ;;  %3971 = vmatprep.subr.bf16.mxu1 %v16517_v10 }
 0x4ce   :  { %v3041_v61 = vpop.f32.mrb[56].mxu0  ;;  %v3082_v25 = vpop.f32.mrb[56].mxu1 }
 0x4cf   :  { %v3089_v5 = vadd.f32 %v3041_v61, %v18734_v12  ;;  %v3091_v43 = vadd.f32 %v3082_v25, %v18735_v33  ;;  %v3043_v57 = vpop.f32.mrb[57].mxu0  ;;  %v3084_v63 = vpop.f32.mrb[57].mxu1 }
 0x4d0   :  { %v3090_v53 = vadd.f32 %v3043_v57, %v18736_v48  ;;  %v3092_v4 = vadd.f32 %v3084_v63, %v18737_v0  ;;  %v3045_v40 = vpop.f32.mrb[58].mxu0  ;;  %v3086_v46 = vpop.f32.mrb[58].mxu1 }
 0x4d1   :  { %v12811_v34 = vmul.f32 -1.442695, %v3089_v5  ;;  %v3046_v2 = vpop.f32.mrb[59].mxu0  ;;  %v3087_v13 = vpop.f32.mrb[59].mxu1  ;;  %v12813_v28 = vmul.f32 -1.442695, %v3091_v43 }
 0x4d2   :  { %v12812_v24 = vmul.f32 -1.442695, %v3090_v53  ;;  %v18738_v43 = vld [vmem:[#allocation63_spill] sm:$0xff]  ;;  %v18740_v2 = vld [vmem:[#allocation64_spill] sm:$0xff] }
 0x4d3   :  { %14825 = vpow2.f32 %v12811_v34 }
 0x4d4   :  { %14827 = vpow2.f32 %v12812_v24  ;;  %v18741_v24 = vld [vmem:[#allocation67_spill] sm:$0xff] }
 0x4d5   :  { %14829 = vtanh.f32 %v3092_v4  ;;  %v18739_v4 = vld [vmem:[#allocation65_spill] sm:$0xff] }
 0x4d6   :  { %14831 = vpow2.f32 %v12813_v28 }
 0x4dd   :  { %v14826_v27 = vpop.eup %14825 }
 0x4de   :  { %v3102_v3 = vadd.f32 1.0, %v14826_v27  ;;  %v14828_v41 = vpop.eup %14827 }
 0x4df   :  { %v3103_v38 = vadd.f32 1.0, %v14828_v41  ;;  %v14830_v36 = vpop.eup %14829 }
 0x4e0   :  { %14833 = vrcp.f32 %v3102_v3  ;;  %v14832_v61 = vpop.eup %14831 }
 0x4e1   :  { %14835 = vrcp.f32 %v3103_v38  ;;  %v3104_v5 = vadd.f32 1.0, %v14832_v61 }
 0x4e3   :  { %14837 = vrcp.f32 %v3104_v5 }
 0x4ea   :  { %v14834_v25 = vpop.eup %14833 }
 0x4eb   :  { %v3113_v12 = vmul.f32 %v14834_v25, %v14830_v36  ;;  %v14836_v33 = vpop.eup %14835 }
 0x4ec   :  { %v3112_v57 = vmul.f32 %v14836_v33, %v16366_v23 }
 0x4ed   :  { %v14838_v61 = vpop.eup %14837 }
 0x4ee   :  { %v3348_v63 = vpop.f32.mrb[60].mxu0  ;;  %v3389_v48 = vpop.f32.mrb[60].mxu1  ;;  %v16526_v53 = vadd.f32 %v3113_v12, %v3112_v57  ;;  %v16535_v57 = vld [vmem:[#allocation12] ss:$16 sps:$4 sm:$0xff]  }
 0x4ef   :  { %v3396_v0 = vadd.f32 %v3348_v63, %v18738_v43  ;;  %v3398_v40 = vadd.f32 %v3389_v48, %v18739_v4  ;;  %v3350_v46 = vpop.f32.mrb[61].mxu0  ;;  %v3391_v34 = vpop.f32.mrb[61].mxu1  ;;  %v16537_v63 = vld [vmem:[#allocation12 + $0x8] ss:$16 sps:$4 sm:$0xff]   ;;  %v16543_v4 = vld [vmem:[#allocation12 + $0x2c] ss:$16 sps:$4 sm:$0xff]  }
 0x4f0   :  { %v3397_v13 = vadd.f32 %v3350_v46, %v18740_v2  ;;  %v3399_v28 = vadd.f32 %v3391_v34, %v18741_v24  ;;  %v3352_v27 = vpop.f32.mrb[62].mxu0  ;;  %v3393_v3 = vpop.f32.mrb[62].mxu1  ;;  %14839 = vtanh.f32 %v16526_v53  ;;  %v16547_v34 = vld [vmem:[#allocation12 + $0x20] ss:$16 sps:$4 sm:$0xff]   ;;  %v16549_v2 = vld [vmem:[#allocation12 + $0x28] ss:$16 sps:$4 sm:$0xff]  }
 0x4f1   :  { %v12846_v23 = vmul.f32 -1.442695, %v3396_v0  ;;  %v3353_v41 = vpop.f32.mrb[63].mxu0  ;;  %v3394_v38 = vpop.f32.mrb[63].mxu1  ;;  %v12848_v12 = vmul.f32 -1.442695, %v3398_v40 }
 0x4f2   :  { %v12847_v36 = vmul.f32 -1.442695, %v3397_v13  ;;  %v16541_v0 = vld [vmem:[#allocation12 + $0x24] ss:$16 sps:$4 sm:$0xff]   ;;  %v16555_v24 = vld [vmem:[#allocation12 + $0x4c] ss:$16 sps:$4 sm:$0xff]  }
 0x4f3   :  { %14841 = vpow2.f32 %v12846_v23  ;;  %v16553_v13 = vld [vmem:[#allocation12 + $0x44] ss:$16 sps:$4 sm:$0xff]   ;;  %v16563_v27 = vld [vmem:[#allocation12 + $0x48] ss:$16 sps:$4 sm:$0xff]   ;;  %v16569_v23 = vld [vmem:[#allocation12 + $0x6c] ss:$16 sps:$4 sm:$0xff]  }
 0x4f4   :  { %14843 = vpow2.f32 %v12847_v36  ;;  %v16567_v3 = vld [vmem:[#allocation12 + $0x64] ss:$16 sps:$4 sm:$0xff]   ;;  %v16573_v36 = vld [vmem:[#allocation12 + $0x60] ss:$16 sps:$4 sm:$0xff]  }
 0x4f5   :  { %14845 = vtanh.f32 %v3399_v28  ;;  %v16561_v28 = vld [vmem:[#allocation12 + $0x40] ss:$16 sps:$4 sm:$0xff]  }
 0x4f6   :  { %14847 = vpow2.f32 %v12848_v12  ;;  %v16579_v12 = vld [vmem:[#allocation12 + $0x84] ss:$16 sps:$4 sm:$0xff]  }
 0x4fa   :  { %v14840_v25 = vpop.eup %14839 }
 0x4fb   :  { %v16533_v33 = vmul.f32 %v14840_v25, %v14838_v61  ;;  %v16575_v61 = vld [vmem:[#allocation12 + $0x68] ss:$16 sps:$4 sm:$0xff]  }
 0x4fd   :  { %18742 = vst [vmem:[#allocation66_spill] sm:$0xff] %v16533_v33  ;;  %v14842_v5 = vpop.eup %14841  ;;  %v3430_v43 = vpack.c.bf16 %v16533_v33, %v16533_v33  ;;  %v16592_v33 = vld [vmem:[#allocation12 + $0xa4] ss:$16 sps:$4 sm:$0xff]  }
 0x4fe   :  { %v3409_v48 = vadd.f32 1.0, %v14842_v5  ;;  %v14844_v46 = vpop.eup %14843  ;;  %v16581_v5 = vld [vmem:[#allocation12 + $0x8c] ss:$16 sps:$4 sm:$0xff]   ;;  %18744 = vst [vmem:[#allocation68_spill] sm:$0xff] %v16592_v33 }
 0x4ff   :  { %v3410_v40 = vadd.f32 1.0, %v14844_v46  ;;  %3656 = vmatmul.mubr.bf16.vlgmr.msra.gmra.mrb[64].mxu0 %v3430_v43  ;;  %3697 = vmatmul.mubr.bf16.vlgmr.msra.gmra.mrb[64].mxu1 %v3430_v43  ;;  %v14846_v41 = vpop.eup %14845 }
 0x500   :  { %14849 = vrcp.f32 %v3409_v48  ;;  %3931 = vmatpush1.bf16.msra.mxu0 %v16535_v57  ;;  %3972 = vmatpush1.bf16.msra.mxu1 %v16537_v63  ;;  %v14848_v38 = vpop.eup %14847 }
 0x501   :  { %14851 = vrcp.f32 %v3410_v40  ;;  %3932 = vmatprep.subr.bf16.mxu0 %v16541_v0  ;;  %3973 = vmatprep.subr.bf16.mxu1 %v16543_v4  ;;  %v3411_v46 = vadd.f32 1.0, %v14848_v38  ;;  %v16603_v38 = vld [vmem:[#allocation12 + $0xa8] ss:$16 sps:$4 sm:$0xff]  }
 0x502   :  { %3962 = vmatprep.mubr.bf16.mxu0 %v18704_v60  ;;  %4003 = vmatprep.mubr.bf16.mxu1 %v18704_v60  ;;  %18747 = vst [vmem:[#allocation75_spill] sm:$0xff] %v16603_v38 }
 0x503   :  { %14853 = vrcp.f32 %v3411_v46  ;;  %v16615_v46 = vld [vmem:[#allocation12 + $0xc8] ss:$16 sps:$4 sm:$0xff]  }
 0x504   :  { %3933 = vmatpush1.bf16.msra.mxu0 %v16547_v34  ;;  %3974 = vmatpush1.bf16.msra.mxu1 %v16549_v2 }
 0x505   :  { %3934 = vmatprep.subr.bf16.mxu0 %v16553_v13  ;;  %3975 = vmatprep.subr.bf16.mxu1 %v16555_v24 }
 0x508   :  { %3935 = vmatpush1.bf16.msra.mxu0 %v16561_v28  ;;  %3976 = vmatpush1.bf16.msra.mxu1 %v16563_v27 }
 0x509   :  { %3936 = vmatprep.subr.bf16.mxu0 %v16567_v3  ;;  %3977 = vmatprep.subr.bf16.mxu1 %v16569_v23 }
 0x50a   :  { %v14850_v25 = vpop.eup %14849 }
 0x50b   :  { %v3420_v48 = vmul.f32 %v14850_v25, %v14846_v41  ;;  %v14852_v43 = vpop.eup %14851  ;;  %v16607_v25 = vld [vmem:[#allocation12 + $0xc4] ss:$16 sps:$4 sm:$0xff]  }
 0x50c   :  { %v3419_v40 = vmul.f32 %v14852_v43, %v16396_v47  ;;  %3937 = vmatpush1.bf16.msra.mxu0 %v16573_v36  ;;  %3978 = vmatpush1.bf16.msra.mxu1 %v16575_v61  ;;  %v16601_v47 = vld [vmem:[#allocation12 + $0xa0] ss:$16 sps:$4 sm:$0xff]   ;;  %18748 = vst [vmem:[#allocation76_spill] sm:$0xff] %v16607_v25  ;;  %v16609_v43 = vld [vmem:[#allocation12 + $0xcc] ss:$16 sps:$4 sm:$0xff]  }
 0x50d   :  { %3938 = vmatprep.subr.bf16.mxu0 %v16579_v12  ;;  %3979 = vmatprep.subr.bf16.mxu1 %v16581_v5  ;;  %18746 = vst [vmem:[#allocation74_spill] sm:$0xff] %v16601_v47 }
 0x50e   :  { %v16596_v41 = vadd.f32 %v3420_v48, %v3419_v40  ;;  %v16613_v48 = vld [vmem:[#allocation12 + $0xc0] ss:$16 sps:$4 sm:$0xff]   ;;  %v16619_v40 = vld [vmem:[#allocation12 + $0xe4] ss:$16 sps:$4 sm:$0xff]  }
 0x50f   :  { %18749 = vst [vmem:[#allocation77_spill] sm:$0xff] %v16613_v48 }
 0x510   :  { %14855 = vtanh.f32 %v16596_v41  ;;  %3939 = vmatpush1.bf16.msra.mxu0 %v16586_v51  ;;  %3980 = vmatpush1.bf16.msra.mxu1 %v16588_v31 }
 0x511   :  { %3940 = vmatprep.subr.bf16.mxu0 %v16592_v33  ;;  %3981 = vmatprep.subr.bf16.mxu1 %v16594_v52  ;;  %v16621_v33 = vld [vmem:[#allocation12 + $0xec] ss:$16 sps:$4 sm:$0xff]   ;;  %v16625_v52 = vld [vmem:[#allocation12 + $0xe0] ss:$16 sps:$4 sm:$0xff]  }
 0x514   :  { %3941 = vmatpush1.bf16.msra.mxu0 %v16601_v47  ;;  %3982 = vmatpush1.bf16.msra.mxu1 %v16603_v38  ;;  %v16627_v47 = vld [vmem:[#allocation12 + $0xe8] ss:$16 sps:$4 sm:$0xff]   ;;  %v14854_v38 = vpop.eup %14853 }
 0x515   :  { %3942 = vmatprep.subr.bf16.mxu0 %v16607_v25  ;;  %3983 = vmatprep.subr.bf16.mxu1 %v16609_v43 }
 0x518   :  { %3943 = vmatpush1.bf16.msra.mxu0 %v16613_v48  ;;  %3984 = vmatpush1.bf16.msra.mxu1 %v16615_v46 }
 0x519   :  { %3944 = vmatprep.subr.bf16.mxu0 %v16619_v40  ;;  %3985 = vmatprep.subr.bf16.mxu1 %v16621_v33 }
 0x51a   :  { %v14856_v25 = vpop.eup %14855 }
 0x51b   :  { %v16631_v31 = vmul.f32 %v14856_v25, %v14854_v38  ;;  %v18756_v25 = vld [vmem:[#allocation61_spill] sm:$0xff] }
 0x51c   :  { %3945 = vmatpush1.bf16.msra.mxu0 %v16625_v52  ;;  %3986 = vmatpush1.bf16.msra.mxu1 %v16627_v47 }
 0x51d   :  { %18750 = vst [vmem:[#allocation78_spill] sm:$0xff] %v16631_v31  ;;  %v3737_v48 = vpack.c.bf16 %v16631_v31, %v16631_v31  ;;  %4239 = vmatprep.subr.bf16.mxu0 %v16419_v54  ;;  %4280 = vmatprep.subr.bf16.mxu1 %v16421_v44  ;;  %v16904_v31 = vld [vmem:[#allocation12 + $0xa4] ss:$16 sps:$4 sm:$0xff]  }
 0x51e   :  { %18778 = vst [vmem:[#allocation26_spill] sm:$0xff] %v16904_v31 }
 0x51f   :  { %3963 = vmatmul.mubr.bf16.vlgmr.msra.gmra.mrb[68].mxu0 %v3737_v48  ;;  %4004 = vmatmul.mubr.bf16.vlgmr.msra.gmra.mrb[68].mxu1 %v3737_v48 }
 0x520   :  { %4240 = vmatpush1.bf16.msra.mxu0 %v16423_v1  ;;  %4281 = vmatpush1.bf16.msra.mxu1 %v16425_v8  ;;  %v18751_v1 = vld [vmem:[#allocation31_spill] sm:$0xff] }
 0x521   :  { %4241 = vmatprep.subr.bf16.mxu0 %v16431_v14  ;;  %4282 = vmatprep.subr.bf16.mxu1 %v16433_v22  ;;  %v18752_v14 = vld [vmem:[#allocation33_spill] sm:$0xff] }
 0x522   :  { %4271 = vmatprep.mubr.bf16.mxu0 %v18704_v60  ;;  %4312 = vmatprep.mubr.bf16.mxu1 %v18704_v60 }
 0x524   :  { %4242 = vmatpush1.bf16.msra.mxu0 %v16435_v32  ;;  %4283 = vmatpush1.bf16.msra.mxu1 %v16437_v21 }
 0x525   :  { %4243 = vmatprep.subr.bf16.mxu0 %v16443_v35  ;;  %4284 = vmatprep.subr.bf16.mxu1 %v16445_v30  ;;  %v18753_v35 = vld [vmem:[#allocation32_spill] sm:$0xff] }
 0x528   :  { %4244 = vmatpush1.bf16.msra.mxu0 %v16447_v6  ;;  %4285 = vmatpush1.bf16.msra.mxu1 %v16449_v58  ;;  %v18754_v6 = vld [vmem:[#allocation35_spill] sm:$0xff] }
 0x529   :  { %4245 = vmatprep.subr.bf16.mxu0 %v16455_v62  ;;  %4286 = vmatprep.subr.bf16.mxu1 %v16457_v9 }
 0x52c   :  { %4246 = vmatpush1.bf16.msra.mxu0 %v16459_v11  ;;  %4287 = vmatpush1.bf16.msra.mxu1 %v16461_v42 }
 0x52d   :  { %4247 = vmatprep.subr.bf16.mxu0 %v16467_v15  ;;  %4288 = vmatprep.subr.bf16.mxu1 %v16469_v18 }
 0x530   :  { %4248 = vmatpush1.bf16.msra.mxu0 %v16471_v17  ;;  %4289 = vmatpush1.bf16.msra.mxu1 %v16473_v19 }
 0x531   :  { %4249 = vmatprep.subr.bf16.mxu0 %v16479_v59  ;;  %4290 = vmatprep.subr.bf16.mxu1 %v16481_v39 }
 0x534   :  { %4250 = vmatpush1.bf16.msra.mxu0 %v16483_v29  ;;  %4291 = vmatpush1.bf16.msra.mxu1 %v16485_v7 }
 0x535   :  { %4251 = vmatprep.subr.bf16.mxu0 %v16491_v45  ;;  %4292 = vmatprep.subr.bf16.mxu1 %v16493_v49 }
 0x538   :  { %4252 = vmatpush1.bf16.msra.mxu0 %v16495_v16  ;;  %4293 = vmatpush1.bf16.msra.mxu1 %v16497_v37 }
 0x539   :  { %4253 = vmatprep.subr.bf16.mxu0 %v16503_v56  ;;  %4294 = vmatprep.subr.bf16.mxu1 %v16505_v20 }
 0x53c   :  { %4254 = vmatpush1.bf16.msra.mxu0 %v16507_v50  ;;  %4295 = vmatpush1.bf16.msra.mxu1 %v16509_v55 }
 0x53d   :  { %4546 = vmatprep.subr.bf16.mxu0 %v16515_v26  ;;  %4587 = vmatprep.subr.bf16.mxu1 %v16517_v10  ;;  %v18755_v10 = vld [vmem:[#allocation58_spill] sm:$0xff] }
 0x5d2   :  { %v3657_v54 = vpop.f32.mrb[64].mxu0  ;;  %v3698_v44 = vpop.f32.mrb[64].mxu1 }
 0x5d3   :  { %v3705_v8 = vadd.f32 %v3657_v54, %v18751_v1  ;;  %v3707_v22 = vadd.f32 %v3698_v44, %v18752_v14  ;;  %v3659_v32 = vpop.f32.mrb[65].mxu0  ;;  %v3700_v21 = vpop.f32.mrb[65].mxu1  ;;  %v18757_v1 = vld [vmem:[#allocation60_spill] sm:$0xff]  ;;  %v18758_v14 = vld [vmem:[#allocation62_spill] sm:$0xff] }
 0x5d4   :  { %v3706_v30 = vadd.f32 %v3659_v32, %v18753_v35  ;;  %v3708_v58 = vadd.f32 %v3700_v21, %v18754_v6  ;;  %v3661_v62 = vpop.f32.mrb[66].mxu0  ;;  %v3702_v9 = vpop.f32.mrb[66].mxu1 }
 0x5d5   :  { %v12881_v11 = vmul.f32 -1.442695, %v3705_v8  ;;  %v3662_v42 = vpop.f32.mrb[67].mxu0  ;;  %v3703_v15 = vpop.f32.mrb[67].mxu1  ;;  %v12883_v17 = vmul.f32 -1.442695, %v3707_v22 }
 0x5d6   :  { %v12882_v18 = vmul.f32 -1.442695, %v3706_v30 }
 0x5d7   :  { %14857 = vpow2.f32 %v12881_v11 }
 0x5d8   :  { %14859 = vpow2.f32 %v12882_v18 }
 0x5d9   :  { %14861 = vtanh.f32 %v3708_v58 }
 0x5da   :  { %14863 = vpow2.f32 %v12883_v17 }
 0x5e1   :  { %v14858_v19 = vpop.eup %14857 }
 0x5e2   :  { %v3718_v59 = vadd.f32 1.0, %v14858_v19  ;;  %v14860_v39 = vpop.eup %14859 }
 0x5e3   :  { %v3719_v29 = vadd.f32 1.0, %v14860_v39  ;;  %v14862_v7 = vpop.eup %14861  ;;  %v16747_v39 = vld [vmem:[#allocation10 + $0x20] ss:$16 sps:$4 sm:$0xff]  }
 0x5e4   :  { %14865 = vrcp.f32 %v3718_v59  ;;  %v14864_v45 = vpop.eup %14863 }
 0x5e5   :  { %14867 = vrcp.f32 %v3719_v29  ;;  %v3720_v56 = vadd.f32 1.0, %v14864_v45  ;;  %v16749_v29 = vld [vmem:[#allocation10 + $0x28] ss:$16 sps:$4 sm:$0xff]   ;;  %v16757_v45 = vld [vmem:[#allocation10 + $0x4c] ss:$16 sps:$4 sm:$0xff]  }
 0x5e7   :  { %14869 = vrcp.f32 %v3720_v56  ;;  %v16769_v56 = vld [vmem:[#allocation10 + $0x6c] ss:$16 sps:$4 sm:$0xff]  }
 0x5ee   :  { %v14866_v49 = vpop.eup %14865 }
 0x5ef   :  { %v3729_v16 = vmul.f32 %v14866_v49, %v14862_v7  ;;  %v14868_v37 = vpop.eup %14867  ;;  %v16755_v7 = vld [vmem:[#allocation10 + $0x44] ss:$16 sps:$4 sm:$0xff]   ;;  %v16759_v49 = vld [vmem:[#allocation10 + $0x40] ss:$16 sps:$4 sm:$0xff]  }
 0x5f0   :  { %v3728_v20 = vmul.f32 %v14868_v37, %v16526_v53  ;;  %v16767_v37 = vld [vmem:[#allocation10 + $0x64] ss:$16 sps:$4 sm:$0xff]  }
 0x5f1   :  { %v14870_v58 = vpop.eup %14869 }
 0x5f2   :  { %v3964_v50 = vpop.f32.mrb[68].mxu0  ;;  %v4005_v55 = vpop.f32.mrb[68].mxu1  ;;  %v16678_v26 = vadd.f32 %v3729_v16, %v3728_v20  ;;  %v16761_v16 = vld [vmem:[#allocation10 + $0x48] ss:$16 sps:$4 sm:$0xff]   ;;  %v16771_v20 = vld [vmem:[#allocation10 + $0x60] ss:$16 sps:$4 sm:$0xff]  }
 0x5f3   :  { %v4012_v38 = vadd.f32 %v3964_v50, %v18755_v10  ;;  %v4014_v48 = vadd.f32 %v4005_v55, %v18756_v25  ;;  %v3966_v54 = vpop.f32.mrb[69].mxu0  ;;  %v4007_v44 = vpop.f32.mrb[69].mxu1  ;;  %v16773_v50 = vld [vmem:[#allocation10 + $0x68] ss:$16 sps:$4 sm:$0xff]   ;;  %v16779_v55 = vld [vmem:[#allocation10 + $0x84] ss:$16 sps:$4 sm:$0xff]  }
 0x5f4   :  { %v4013_v8 = vadd.f32 %v3966_v54, %v18757_v1  ;;  %v4015_v22 = vadd.f32 %v4007_v44, %v18758_v14  ;;  %v3968_v32 = vpop.f32.mrb[70].mxu0  ;;  %v4009_v21 = vpop.f32.mrb[70].mxu1  ;;  %14871 = vtanh.f32 %v16678_v26  ;;  %v16781_v10 = vld [vmem:[#allocation10 + $0x8c] ss:$16 sps:$4 sm:$0xff]   ;;  %v16785_v25 = vld [vmem:[#allocation10 + $0x88] ss:$16 sps:$4 sm:$0xff]  }
 0x5f5   :  { %v12916_v53 = vmul.f32 -1.442695, %v4012_v38  ;;  %v3969_v35 = vpop.f32.mrb[71].mxu0  ;;  %v4010_v30 = vpop.f32.mrb[71].mxu1  ;;  %v12918_v9 = vmul.f32 -1.442695, %v4014_v48 }
 0x5f6   :  { %v12917_v6 = vmul.f32 -1.442695, %v4013_v8  ;;  %v16783_v38 = vld [vmem:[#allocation10 + $0x80] ss:$16 sps:$4 sm:$0xff]   ;;  %v16791_v48 = vld [vmem:[#allocation10 + $0xa4] ss:$16 sps:$4 sm:$0xff]  }
 0x5f7   :  { %14873 = vpow2.f32 %v12916_v53  ;;  %v16793_v54 = vld [vmem:[#allocation10 + $0xac] ss:$16 sps:$4 sm:$0xff]   ;;  %v16795_v44 = vld [vmem:[#allocation10 + $0xa0] ss:$16 sps:$4 sm:$0xff]   ;;  %v16797_v1 = vld [vmem:[#allocation10 + $0xa8] ss:$16 sps:$4 sm:$0xff]  }
 0x5f8   :  { %14875 = vpow2.f32 %v12917_v6  ;;  %v16803_v8 = vld [vmem:[#allocation10 + $0xc4] ss:$16 sps:$4 sm:$0xff]   ;;  %v16805_v14 = vld [vmem:[#allocation10 + $0xcc] ss:$16 sps:$4 sm:$0xff]   ;;  %v16809_v32 = vld [vmem:[#allocation10 + $0xc8] ss:$16 sps:$4 sm:$0xff]  }
 0x5f9   :  { %14877 = vtanh.f32 %v4015_v22  ;;  %v16807_v22 = vld [vmem:[#allocation10 + $0xc0] ss:$16 sps:$4 sm:$0xff]   ;;  %v16815_v21 = vld [vmem:[#allocation10 + $0xe4] ss:$16 sps:$4 sm:$0xff]   ;;  %v16817_v53 = vld [vmem:[#allocation10 + $0xec] ss:$16 sps:$4 sm:$0xff]  }
 0x5fa   :  { %14879 = vpow2.f32 %v12918_v9  ;;  %v16819_v35 = vld [vmem:[#allocation10 + $0xe0] ss:$16 sps:$4 sm:$0xff]   ;;  %v16821_v30 = vld [vmem:[#allocation10 + $0xe8] ss:$16 sps:$4 sm:$0xff]   ;;  %v16827_v6 = vld [vmem:[#allocation12 + $0x4] ss:$16 sps:$4 sm:$0xff]  }
 0x5fe   :  { %v14872_v62 = vpop.eup %14871 }
 0x5ff   :  { %v16685_v11 = vmul.f32 %v14872_v62, %v14870_v58  ;;  %v16829_v58 = vld [vmem:[#allocation12 + $0xc] ss:$16 sps:$4 sm:$0xff]  }
 0x601   :  { %18759 = vst [vmem:[#allocation79_spill] sm:$0xff] %v16685_v11  ;;  %v14874_v42 = vpop.eup %14873  ;;  %v4046_v18 = vpack.c.bf16 %v16685_v11, %v16685_v11  ;;  %v16900_v11 = vld [vmem:[#allocation12 + $0x88] ss:$16 sps:$4 sm:$0xff]  }
 0x602   :  { %v4025_v15 = vadd.f32 1.0, %v14874_v42  ;;  %v14876_v17 = vpop.eup %14875  ;;  %v18768_v42 = vld [vmem:[#allocation34_spill] sm:$0xff]  ;;  %18777 = vst [vmem:[#allocation82_spill] sm:$0xff] %v16900_v11 }
 0x603   :  { %v4026_v19 = vadd.f32 1.0, %v14876_v17  ;;  %4272 = vmatmul.mubr.bf16.vlgmr.msra.gmra.mrb[72].mxu0 %v4046_v18  ;;  %4313 = vmatmul.mubr.bf16.vlgmr.msra.gmra.mrb[72].mxu1 %v4046_v18  ;;  %v18769_v18 = vld [vmem:[#allocation37_spill] sm:$0xff] }
 0x604   :  { %14881 = vrcp.f32 %v4025_v15  ;;  %4547 = vmatpush1.bf16.msra.mxu0 %v16535_v57  ;;  %4588 = vmatpush1.bf16.msra.mxu1 %v16537_v63  ;;  %v14878_v57 = vpop.eup %14877 }
 0x605   :  { %14883 = vrcp.f32 %v4026_v19  ;;  %4548 = vmatprep.subr.bf16.mxu0 %v16541_v0  ;;  %4589 = vmatprep.subr.bf16.mxu1 %v16543_v4  ;;  %v14880_v59 = vpop.eup %14879 }
 0x606   :  { %4578 = vmatprep.mubr.bf16.mxu0 %v18704_v60  ;;  %4619 = vmatprep.mubr.bf16.mxu1 %v18704_v60 }
 0x608   :  { %4549 = vmatpush1.bf16.msra.mxu0 %v16547_v34  ;;  %4590 = vmatpush1.bf16.msra.mxu1 %v16549_v2  ;;  %v4027_v34 = vadd.f32 1.0, %v14880_v59  ;;  %v18770_v59 = vld [vmem:[#allocation36_spill] sm:$0xff] }
 0x609   :  { %4550 = vmatprep.subr.bf16.mxu0 %v16553_v13  ;;  %4591 = vmatprep.subr.bf16.mxu1 %v16555_v24  ;;  %v18760_v24 = vld [vmem:[#allocation69_spill] sm:$0xff] }
 0x60a   :  { %14885 = vrcp.f32 %v4027_v34 }
 0x60c   :  { %4551 = vmatpush1.bf16.msra.mxu0 %v16561_v28  ;;  %4592 = vmatpush1.bf16.msra.mxu1 %v16563_v27  ;;  %v18761_v28 = vld [vmem:[#allocation68_spill] sm:$0xff]  ;;  %v18762_v27 = vld [vmem:[#allocation70_spill] sm:$0xff] }
 0x60d   :  { %4552 = vmatprep.subr.bf16.mxu0 %v16567_v3  ;;  %4593 = vmatprep.subr.bf16.mxu1 %v16569_v23  ;;  %v18763_v3 = vld [vmem:[#allocation74_spill] sm:$0xff]  ;;  %v18764_v23 = vld [vmem:[#allocation75_spill] sm:$0xff] }
 0x60e   :  { %v14882_v63 = vpop.eup %14881 }
 0x60f   :  { %v4036_v0 = vmul.f32 %v14882_v63, %v14878_v57  ;;  %v14884_v4 = vpop.eup %14883 }
 0x610   :  { %v4035_v2 = vmul.f32 %v14884_v4, %v16596_v41  ;;  %4553 = vmatpush1.bf16.msra.mxu0 %v16573_v36  ;;  %4594 = vmatpush1.bf16.msra.mxu1 %v16575_v61  ;;  %v18765_v36 = vld [vmem:[#allocation76_spill] sm:$0xff]  ;;  %v18766_v61 = vld [vmem:[#allocation77_spill] sm:$0xff] }
 0x611   :  { %4554 = vmatprep.subr.bf16.mxu0 %v16579_v12  ;;  %4595 = vmatprep.subr.bf16.mxu1 %v16581_v5 }
 0x612   :  { %v16708_v13 = vadd.f32 %v4036_v0, %v4035_v2  ;;  %v18771_v0 = vld [vmem:[#allocation38_spill] sm:$0xff] }
 0x614   :  { %14887 = vtanh.f32 %v16708_v13  ;;  %4555 = vmatpush1.bf16.msra.mxu0 %v16586_v51  ;;  %4596 = vmatpush1.bf16.msra.mxu1 %v18760_v24  ;;  %v14886_v12 = vpop.eup %14885 }
 0x615   :  { %4556 = vmatprep.subr.bf16.mxu0 %v18761_v28  ;;  %4597 = vmatprep.subr.bf16.mxu1 %v18762_v27 }
 0x618   :  { %4557 = vmatpush1.bf16.msra.mxu0 %v18763_v3  ;;  %4598 = vmatpush1.bf16.msra.mxu1 %v18764_v23 }
 0x619   :  { %4558 = vmatprep.subr.bf16.mxu0 %v18765_v36  ;;  %4599 = vmatprep.subr.bf16.mxu1 %v16609_v43  ;;  %v16731_v43 = vld [vmem:[#allocation10 + $0x4] ss:$16 sps:$4 sm:$0xff]  }
 0x61c   :  { %4559 = vmatpush1.bf16.msra.mxu0 %v18766_v61  ;;  %4600 = vmatpush1.bf16.msra.mxu1 %v16615_v46  ;;  %v16733_v46 = vld [vmem:[#allocation10 + $0xc] ss:$16 sps:$4 sm:$0xff]  }
 0x61d   :  { %4560 = vmatprep.subr.bf16.mxu0 %v16619_v40  ;;  %4601 = vmatprep.subr.bf16.mxu1 %v16621_v33  ;;  %v16735_v33 = vld [vmem:[#allocation10] ss:$16 sps:$4 sm:$0xff]   ;;  %v16737_v40 = vld [vmem:[#allocation10 + $0x8] ss:$16 sps:$4 sm:$0xff]  }
 0x61e   :  { %v14888_v51 = vpop.eup %14887 }
 0x61f   :  { %v16723_v5 = vmul.f32 %v14888_v51, %v14886_v12 }
 0x620   :  { %4561 = vmatpush1.bf16.msra.mxu0 %v16625_v52  ;;  %4602 = vmatpush1.bf16.msra.mxu1 %v16627_v47  ;;  %v16743_v52 = vld [vmem:[#allocation10 + $0x24] ss:$16 sps:$4 sm:$0xff]   ;;  %v16745_v47 = vld [vmem:[#allocation10 + $0x2c] ss:$16 sps:$4 sm:$0xff]  }
 0x621   :  { %18767 = vst [vmem:[#allocation80_spill] sm:$0xff] %v16723_v5  ;;  %v4353_v41 = vpack.c.bf16 %v16723_v5, %v16723_v5  ;;  %4855 = vmatprep.subr.bf16.mxu0 %v16731_v43  ;;  %4896 = vmatprep.subr.bf16.mxu1 %v16733_v46  ;;  %v16906_v5 = vld [vmem:[#allocation12 + $0xac] ss:$16 sps:$4 sm:$0xff]  }
 0x622   :  { %18779 = vst [vmem:[#allocation29_spill] sm:$0xff] %v16906_v5 }
 0x623   :  { %4579 = vmatmul.mubr.bf16.vlgmr.msra.gmra.mrb[76].mxu0 %v4353_v41  ;;  %4620 = vmatmul.mubr.bf16.vlgmr.msra.gmra.mrb[76].mxu1 %v4353_v41 }
 0x624   :  { %4887 = vmatprep.mubr.bf16.mxu0 %v18704_v60  ;;  %4928 = vmatprep.mubr.bf16.mxu1 %v18704_v60 }
 0x625   :  { %4856 = vmatpush1.bf16.msra.mxu0 %v16735_v33  ;;  %4897 = vmatpush1.bf16.msra.mxu1 %v16737_v40 }
 0x626   :  { %4857 = vmatprep.subr.bf16.mxu0 %v16743_v52  ;;  %4898 = vmatprep.subr.bf16.mxu1 %v16745_v47 }
 0x629   :  { %4858 = vmatpush1.bf16.msra.mxu0 %v16747_v39  ;;  %4899 = vmatpush1.bf16.msra.mxu1 %v16749_v29 }
 0x62a   :  { %4859 = vmatprep.subr.bf16.mxu0 %v16755_v7  ;;  %4900 = vmatprep.subr.bf16.mxu1 %v16757_v45 }
 0x62d   :  { %4860 = vmatpush1.bf16.msra.mxu0 %v16759_v49  ;;  %4901 = vmatpush1.bf16.msra.mxu1 %v16761_v16 }
 0x62e   :  { %4861 = vmatprep.subr.bf16.mxu0 %v16767_v37  ;;  %4902 = vmatprep.subr.bf16.mxu1 %v16769_v56 }
 0x631   :  { %4862 = vmatpush1.bf16.msra.mxu0 %v16771_v20  ;;  %4903 = vmatpush1.bf16.msra.mxu1 %v16773_v50 }
 0x632   :  { %4863 = vmatprep.subr.bf16.mxu0 %v16779_v55  ;;  %4904 = vmatprep.subr.bf16.mxu1 %v16781_v10 }
 0x635   :  { %4864 = vmatpush1.bf16.msra.mxu0 %v16783_v38  ;;  %4905 = vmatpush1.bf16.msra.mxu1 %v16785_v25 }
 0x636   :  { %4865 = vmatprep.subr.bf16.mxu0 %v16791_v48  ;;  %4906 = vmatprep.subr.bf16.mxu1 %v16793_v54 }
 0x639   :  { %4866 = vmatpush1.bf16.msra.mxu0 %v16795_v44  ;;  %4907 = vmatpush1.bf16.msra.mxu1 %v16797_v1 }
 0x63a   :  { %4867 = vmatprep.subr.bf16.mxu0 %v16803_v8  ;;  %4908 = vmatprep.subr.bf16.mxu1 %v16805_v14 }
 0x63d   :  { %4868 = vmatpush1.bf16.msra.mxu0 %v16807_v22  ;;  %4909 = vmatpush1.bf16.msra.mxu1 %v16809_v32 }
 0x63e   :  { %4869 = vmatprep.subr.bf16.mxu0 %v16815_v21  ;;  %4910 = vmatprep.subr.bf16.mxu1 %v16817_v53 }
 0x641   :  { %4870 = vmatpush1.bf16.msra.mxu0 %v16819_v35  ;;  %4911 = vmatpush1.bf16.msra.mxu1 %v16821_v30 }
 0x642   :  { %5162 = vmatprep.subr.bf16.mxu0 %v16827_v6  ;;  %5203 = vmatprep.subr.bf16.mxu1 %v16829_v58 }
 0x6d6   :  { %v4273_v62 = vpop.f32.mrb[72].mxu0  ;;  %v4314_v9 = vpop.f32.mrb[72].mxu1 }
 0x6d7   :  { %v4321_v15 = vadd.f32 %v4273_v62, %v18768_v42  ;;  %v4323_v17 = vadd.f32 %v4314_v9, %v18769_v18  ;;  %v4275_v19 = vpop.f32.mrb[73].mxu0  ;;  %v4316_v57 = vpop.f32.mrb[73].mxu1 }
 0x6d8   :  { %v4322_v63 = vadd.f32 %v4275_v19, %v18770_v59  ;;  %v4324_v4 = vadd.f32 %v4316_v57, %v18771_v0  ;;  %v4277_v34 = vpop.f32.mrb[74].mxu0  ;;  %v4318_v2 = vpop.f32.mrb[74].mxu1 }
 0x6d9   :  { %v12951_v24 = vmul.f32 -1.442695, %v4321_v15  ;;  %v4278_v28 = vpop.f32.mrb[75].mxu0  ;;  %v4319_v27 = vpop.f32.mrb[75].mxu1  ;;  %v12953_v23 = vmul.f32 -1.442695, %v4323_v17 }
 0x6da   :  { %v12952_v3 = vmul.f32 -1.442695, %v4322_v63  ;;  %v18772_v17 = vld [vmem:[#allocation55_spill] sm:$0xff]  ;;  %v18774_v28 = vld [vmem:[#allocation56_spill] sm:$0xff] }
 0x6db   :  { %14889 = vpow2.f32 %v12951_v24 }
 0x6dc   :  { %14891 = vpow2.f32 %v12952_v3  ;;  %v18775_v3 = vld [vmem:[#allocation59_spill] sm:$0xff] }
 0x6dd   :  { %14893 = vtanh.f32 %v4324_v4  ;;  %v18773_v4 = vld [vmem:[#allocation57_spill] sm:$0xff] }
 0x6de   :  { %14895 = vpow2.f32 %v12953_v23 }
 0x6e5   :  { %v14890_v36 = vpop.eup %14889 }
 0x6e6   :  { %v4334_v61 = vadd.f32 1.0, %v14890_v36  ;;  %v14892_v12 = vpop.eup %14891 }
 0x6e7   :  { %v4335_v51 = vadd.f32 1.0, %v14892_v12  ;;  %v14894_v41 = vpop.eup %14893 }
 0x6e8   :  { %14897 = vrcp.f32 %v4334_v61  ;;  %v14896_v62 = vpop.eup %14895 }
 0x6e9   :  { %14899 = vrcp.f32 %v4335_v51  ;;  %v4336_v15 = vadd.f32 1.0, %v14896_v62 }
 0x6eb   :  { %14901 = vrcp.f32 %v4336_v15 }
 0x6f2   :  { %v14898_v9 = vpop.eup %14897 }
 0x6f3   :  { %v4345_v42 = vmul.f32 %v14898_v9, %v14894_v41  ;;  %v14900_v18 = vpop.eup %14899 }
 0x6f4   :  { %v4344_v19 = vmul.f32 %v14900_v18, %v16678_v26 }
 0x6f5   :  { %v14902_v62 = vpop.eup %14901 }
 0x6f6   :  { %v4580_v57 = vpop.f32.mrb[76].mxu0  ;;  %v4621_v59 = vpop.f32.mrb[76].mxu1  ;;  %v16838_v63 = vadd.f32 %v4345_v42, %v4344_v19  ;;  %v16847_v19 = vld [vmem:[#allocation12] ss:$16 sps:$4 sm:$0xff]  }
 0x6f7   :  { %v4628_v0 = vadd.f32 %v4580_v57, %v18772_v17  ;;  %v4630_v34 = vadd.f32 %v4621_v59, %v18773_v4  ;;  %v4582_v2 = vpop.f32.mrb[77].mxu0  ;;  %v4623_v24 = vpop.f32.mrb[77].mxu1  ;;  %v16849_v57 = vld [vmem:[#allocation12 + $0x8] ss:$16 sps:$4 sm:$0xff]   ;;  %v16855_v4 = vld [vmem:[#allocation12 + $0x2c] ss:$16 sps:$4 sm:$0xff]  }
 0x6f8   :  { %v4629_v27 = vadd.f32 %v4582_v2, %v18774_v28  ;;  %v4631_v23 = vadd.f32 %v4623_v24, %v18775_v3  ;;  %v4584_v36 = vpop.f32.mrb[78].mxu0  ;;  %v4625_v61 = vpop.f32.mrb[78].mxu1  ;;  %14903 = vtanh.f32 %v16838_v63  ;;  %v16859_v24 = vld [vmem:[#allocation12 + $0x20] ss:$16 sps:$4 sm:$0xff]   ;;  %v16861_v28 = vld [vmem:[#allocation12 + $0x28] ss:$16 sps:$4 sm:$0xff]  }
 0x6f9   :  { %v12986_v26 = vmul.f32 -1.442695, %v4628_v0  ;;  %v4585_v12 = vpop.f32.mrb[79].mxu0  ;;  %v4626_v51 = vpop.f32.mrb[79].mxu1  ;;  %v12988_v42 = vmul.f32 -1.442695, %v4630_v34 }
 0x6fa   :  { %v12987_v41 = vmul.f32 -1.442695, %v4629_v27  ;;  %v16853_v0 = vld [vmem:[#allocation12 + $0x24] ss:$16 sps:$4 sm:$0xff]   ;;  %v16867_v3 = vld [vmem:[#allocation12 + $0x4c] ss:$16 sps:$4 sm:$0xff]  }
 0x6fb   :  { %14905 = vpow2.f32 %v12986_v26  ;;  %v16865_v27 = vld [vmem:[#allocation12 + $0x44] ss:$16 sps:$4 sm:$0xff]   ;;  %v16875_v36 = vld [vmem:[#allocation12 + $0x48] ss:$16 sps:$4 sm:$0xff]   ;;  %v16881_v26 = vld [vmem:[#allocation12 + $0x6c] ss:$16 sps:$4 sm:$0xff]  }
 0x6fc   :  { %14907 = vpow2.f32 %v12987_v41  ;;  %v16879_v61 = vld [vmem:[#allocation12 + $0x64] ss:$16 sps:$4 sm:$0xff]   ;;  %v16885_v41 = vld [vmem:[#allocation12 + $0x60] ss:$16 sps:$4 sm:$0xff]  }
 0x6fd   :  { %14909 = vtanh.f32 %v4631_v23  ;;  %v16873_v23 = vld [vmem:[#allocation12 + $0x40] ss:$16 sps:$4 sm:$0xff]  }
 0x6fe   :  { %14911 = vpow2.f32 %v12988_v42  ;;  %v16891_v42 = vld [vmem:[#allocation12 + $0x84] ss:$16 sps:$4 sm:$0xff]  }
 0x702   :  { %v14904_v9 = vpop.eup %14903 }
 0x703   :  { %v16845_v18 = vmul.f32 %v14904_v9, %v14902_v62  ;;  %v16887_v62 = vld [vmem:[#allocation12 + $0x68] ss:$16 sps:$4 sm:$0xff]  }
 0x705   :  { %18776 = vst [vmem:[#allocation81_spill] sm:$0xff] %v16845_v18  ;;  %v14906_v15 = vpop.eup %14905  ;;  %v4662_v17 = vpack.c.bf16 %v16845_v18, %v16845_v18  ;;  %v16898_v18 = vld [vmem:[#allocation12 + $0x80] ss:$16 sps:$4 sm:$0xff]  }
 0x706   :  { %v4641_v59 = vadd.f32 1.0, %v14906_v15  ;;  %v14908_v2 = vpop.eup %14907  ;;  %v16893_v15 = vld [vmem:[#allocation12 + $0x8c] ss:$16 sps:$4 sm:$0xff]  }
 0x707   :  { %v4642_v34 = vadd.f32 1.0, %v14908_v2  ;;  %4888 = vmatmul.mubr.bf16.vlgmr.msra.gmra.mrb[80].mxu0 %v4662_v17  ;;  %4929 = vmatmul.mubr.bf16.vlgmr.msra.gmra.mrb[80].mxu1 %v4662_v17  ;;  %v14910_v12 = vpop.eup %14909 }
 0x708   :  { %14913 = vrcp.f32 %v4641_v59  ;;  %5163 = vmatpush1.bf16.msra.mxu0 %v16847_v19  ;;  %5204 = vmatpush1.bf16.msra.mxu1 %v16849_v57  ;;  %v14912_v51 = vpop.eup %14911 }
 0x709   :  { %14915 = vrcp.f32 %v4642_v34  ;;  %5164 = vmatprep.subr.bf16.mxu0 %v16853_v0  ;;  %5205 = vmatprep.subr.bf16.mxu1 %v16855_v4  ;;  %v4643_v2 = vadd.f32 1.0, %v14912_v51  ;;  %v16915_v51 = vld [vmem:[#allocation12 + $0xa8] ss:$16 sps:$4 sm:$0xff]  }
 0x70a   :  { %5194 = vmatprep.mubr.bf16.mxu0 %v18704_v60  ;;  %5235 = vmatprep.mubr.bf16.mxu1 %v18704_v60  ;;  %18781 = vst [vmem:[#allocation30_spill] sm:$0xff] %v16915_v51 }
 0x70b   :  { %14917 = vrcp.f32 %v4643_v2  ;;  %v16927_v2 = vld [vmem:[#allocation12 + $0xc8] ss:$16 sps:$4 sm:$0xff]  }
 0x70c   :  { %5165 = vmatpush1.bf16.msra.mxu0 %v16859_v24  ;;  %5206 = vmatpush1.bf16.msra.mxu1 %v16861_v28 }
 0x70d   :  { %5166 = vmatprep.subr.bf16.mxu0 %v16865_v27  ;;  %5207 = vmatprep.subr.bf16.mxu1 %v16867_v3 }
 0x710   :  { %5167 = vmatpush1.bf16.msra.mxu0 %v16873_v23  ;;  %5208 = vmatpush1.bf16.msra.mxu1 %v16875_v36 }
 0x711   :  { %5168 = vmatprep.subr.bf16.mxu0 %v16879_v61  ;;  %5209 = vmatprep.subr.bf16.mxu1 %v16881_v26 }
 0x712   :  { %v14914_v9 = vpop.eup %14913 }
 0x713   :  { %v4652_v59 = vmul.f32 %v14914_v9, %v14910_v12  ;;  %v14916_v17 = vpop.eup %14915  ;;  %v16919_v9 = vld [vmem:[#allocation12 + $0xc4] ss:$16 sps:$4 sm:$0xff]  }
 0x714   :  { %v4651_v34 = vmul.f32 %v14916_v17, %v16708_v13  ;;  %5169 = vmatpush1.bf16.msra.mxu0 %v16885_v41  ;;  %5210 = vmatpush1.bf16.msra.mxu1 %v16887_v62  ;;  %v16913_v13 = vld [vmem:[#allocation12 + $0xa0] ss:$16 sps:$4 sm:$0xff]   ;;  %18782 = vst [vmem:[#allocation63_spill] sm:$0xff] %v16919_v9  ;;  %v16921_v17 = vld [vmem:[#allocation12 + $0xcc] ss:$16 sps:$4 sm:$0xff]  }
 0x715   :  { %5170 = vmatprep.subr.bf16.mxu0 %v16891_v42  ;;  %5211 = vmatprep.subr.bf16.mxu1 %v16893_v15  ;;  %18780 = vst [vmem:[#allocation28_spill] sm:$0xff] %v16913_v13 }
 0x716   :  { %v16908_v12 = vadd.f32 %v4652_v59, %v4651_v34  ;;  %v16925_v59 = vld [vmem:[#allocation12 + $0xc0] ss:$16 sps:$4 sm:$0xff]   ;;  %v16931_v34 = vld [vmem:[#allocation12 + $0xe4] ss:$16 sps:$4 sm:$0xff]  }
 0x717   :  { %18783 = vst [vmem:[#allocation65_spill] sm:$0xff] %v16925_v59 }
 0x718   :  { %14919 = vtanh.f32 %v16908_v12  ;;  %5171 = vmatpush1.bf16.msra.mxu0 %v16898_v18  ;;  %5212 = vmatpush1.bf16.msra.mxu1 %v16900_v11 }
 0x719   :  { %5172 = vmatprep.subr.bf16.mxu0 %v16904_v31  ;;  %5213 = vmatprep.subr.bf16.mxu1 %v16906_v5  ;;  %v16933_v31 = vld [vmem:[#allocation12 + $0xec] ss:$16 sps:$4 sm:$0xff]   ;;  %v16937_v5 = vld [vmem:[#allocation12 + $0xe0] ss:$16 sps:$4 sm:$0xff]  }
 0x71c   :  { %5173 = vmatpush1.bf16.msra.mxu0 %v16913_v13  ;;  %5214 = vmatpush1.bf16.msra.mxu1 %v16915_v51  ;;  %v16939_v13 = vld [vmem:[#allocation12 + $0xe8] ss:$16 sps:$4 sm:$0xff]   ;;  %v14918_v51 = vpop.eup %14917 }
 0x71d   :  { %5174 = vmatprep.subr.bf16.mxu0 %v16919_v9  ;;  %5215 = vmatprep.subr.bf16.mxu1 %v16921_v17 }
 0x720   :  { %5175 = vmatpush1.bf16.msra.mxu0 %v16925_v59  ;;  %5216 = vmatpush1.bf16.msra.mxu1 %v16927_v2 }
 0x721   :  { %5176 = vmatprep.subr.bf16.mxu0 %v16931_v34  ;;  %5217 = vmatprep.subr.bf16.mxu1 %v16933_v31 }
 0x722   :  { %v14920_v9 = vpop.eup %14919 }
 0x723   :  { %v16943_v11 = vmul.f32 %v14920_v9, %v14918_v51  ;;  %v18789_v9 = vld [vmem:[#allocation53_spill] sm:$0xff] }
 0x724   :  { %5177 = vmatpush1.bf16.msra.mxu0 %v16937_v5  ;;  %5218 = vmatpush1.bf16.msra.mxu1 %v16939_v13 }
 0x725   :  { %v4969_v59 = vpack.c.bf16 %v16943_v11, %v16943_v11  ;;  %5471 = vmatprep.subr.bf16.mxu0 %v16731_v43  ;;  %5512 = vmatprep.subr.bf16.mxu1 %v16733_v46 }
 0x727   :  { %5195 = vmatmul.mubr.bf16.vlgmr.msra.gmra.mrb[84].mxu0 %v4969_v59  ;;  %5236 = vmatmul.mubr.bf16.vlgmr.msra.gmra.mrb[84].mxu1 %v4969_v59 }
 0x728   :  { %5472 = vmatpush1.bf16.msra.mxu0 %v16735_v33  ;;  %5513 = vmatpush1.bf16.msra.mxu1 %v16737_v40  ;;  %v18784_v33 = vld [vmem:[#allocation39_spill] sm:$0xff] }
 0x729   :  { %5473 = vmatprep.subr.bf16.mxu0 %v16743_v52  ;;  %5514 = vmatprep.subr.bf16.mxu1 %v16745_v47  ;;  %v18785_v52 = vld [vmem:[#allocation41_spill] sm:$0xff] }
 0x72a   :  { %5503 = vmatprep.mubr.bf16.mxu0 %v18704_v60  ;;  %5544 = vmatprep.mubr.bf16.mxu1 %v18704_v60 }
 0x72c   :  { %5474 = vmatpush1.bf16.msra.mxu0 %v16747_v39  ;;  %5515 = vmatpush1.bf16.msra.mxu1 %v16749_v29 }
 0x72d   :  { %5475 = vmatprep.subr.bf16.mxu0 %v16755_v7  ;;  %5516 = vmatprep.subr.bf16.mxu1 %v16757_v45  ;;  %v18786_v7 = vld [vmem:[#allocation40_spill] sm:$0xff] }
 0x730   :  { %5476 = vmatpush1.bf16.msra.mxu0 %v16759_v49  ;;  %5517 = vmatpush1.bf16.msra.mxu1 %v16761_v16  ;;  %v18787_v49 = vld [vmem:[#allocation43_spill] sm:$0xff] }
 0x731   :  { %5477 = vmatprep.subr.bf16.mxu0 %v16767_v37  ;;  %5518 = vmatprep.subr.bf16.mxu1 %v16769_v56 }
 0x734   :  { %5478 = vmatpush1.bf16.msra.mxu0 %v16771_v20  ;;  %5519 = vmatpush1.bf16.msra.mxu1 %v16773_v50 }
 0x735   :  { %5479 = vmatprep.subr.bf16.mxu0 %v16779_v55  ;;  %5520 = vmatprep.subr.bf16.mxu1 %v16781_v10 }
 0x738   :  { %5480 = vmatpush1.bf16.msra.mxu0 %v16783_v38  ;;  %5521 = vmatpush1.bf16.msra.mxu1 %v16785_v25 }
 0x739   :  { %5481 = vmatprep.subr.bf16.mxu0 %v16791_v48  ;;  %5522 = vmatprep.subr.bf16.mxu1 %v16793_v54 }
 0x73c   :  { %5482 = vmatpush1.bf16.msra.mxu0 %v16795_v44  ;;  %5523 = vmatpush1.bf16.msra.mxu1 %v16797_v1 }
 0x73d   :  { %5483 = vmatprep.subr.bf16.mxu0 %v16803_v8  ;;  %5524 = vmatprep.subr.bf16.mxu1 %v16805_v14 }
 0x740   :  { %5484 = vmatpush1.bf16.msra.mxu0 %v16807_v22  ;;  %5525 = vmatpush1.bf16.msra.mxu1 %v16809_v32 }
 0x741   :  { %5485 = vmatprep.subr.bf16.mxu0 %v16815_v21  ;;  %5526 = vmatprep.subr.bf16.mxu1 %v16817_v53 }
 0x744   :  { %5486 = vmatpush1.bf16.msra.mxu0 %v16819_v35  ;;  %5527 = vmatpush1.bf16.msra.mxu1 %v16821_v30 }
 0x745   :  { %5778 = vmatprep.subr.bf16.mxu0 %v16827_v6  ;;  %5819 = vmatprep.subr.bf16.mxu1 %v16829_v58  ;;  %v18788_v58 = vld [vmem:[#allocation50_spill] sm:$0xff] }
 0x7da   :  { %v4889_v43 = vpop.f32.mrb[80].mxu0  ;;  %v4930_v46 = vpop.f32.mrb[80].mxu1 }
 0x7db   :  { %v4937_v40 = vadd.f32 %v4889_v43, %v18784_v33  ;;  %v4939_v47 = vadd.f32 %v4930_v46, %v18785_v52  ;;  %v4891_v39 = vpop.f32.mrb[81].mxu0  ;;  %v4932_v29 = vpop.f32.mrb[81].mxu1  ;;  %v18790_v33 = vld [vmem:[#allocation52_spill] sm:$0xff]  ;;  %v18791_v52 = vld [vmem:[#allocation54_spill] sm:$0xff] }
 0x7dc   :  { %v4938_v45 = vadd.f32 %v4891_v39, %v18786_v7  ;;  %v4940_v16 = vadd.f32 %v4932_v29, %v18787_v49  ;;  %v4893_v37 = vpop.f32.mrb[82].mxu0  ;;  %v4934_v56 = vpop.f32.mrb[82].mxu1 }
 0x7dd   :  { %v13021_v20 = vmul.f32 -1.442695, %v4937_v40  ;;  %v4894_v50 = vpop.f32.mrb[83].mxu0  ;;  %v4935_v55 = vpop.f32.mrb[83].mxu1  ;;  %v13023_v38 = vmul.f32 -1.442695, %v4939_v47 }
 0x7de   :  { %v13022_v10 = vmul.f32 -1.442695, %v4938_v45 }
 0x7df   :  { %14921 = vpow2.f32 %v13021_v20 }
 0x7e0   :  { %14923 = vpow2.f32 %v13022_v10 }
 0x7e1   :  { %14925 = vtanh.f32 %v4940_v16 }
 0x7e2   :  { %14927 = vpow2.f32 %v13023_v38 }
 0x7e9   :  { %v14922_v25 = vpop.eup %14921 }
 0x7ea   :  { %v4950_v48 = vadd.f32 1.0, %v14922_v25  ;;  %v14924_v54 = vpop.eup %14923 }
 0x7eb   :  { %v4951_v44 = vadd.f32 1.0, %v14924_v54  ;;  %v14926_v1 = vpop.eup %14925  ;;  %v5918_v54 = vld [vmem:[#allocation13 + $0x20] sm:$0xff] }
 0x7ec   :  { %14929 = vrcp.f32 %v4950_v48  ;;  %v14928_v8 = vpop.eup %14927 }
 0x7ed   :  { %14931 = vrcp.f32 %v4951_v44  ;;  %v4952_v21 = vadd.f32 1.0, %v14928_v8 }
 0x7ef   :  { %14933 = vrcp.f32 %v4952_v21 }
 0x7f6   :  { %v14930_v14 = vpop.eup %14929 }
 0x7f7   :  { %v4961_v22 = vmul.f32 %v14930_v14, %v14926_v1  ;;  %v14932_v32 = vpop.eup %14931  ;;  %v5919_v1 = vld [vmem:[#allocation13 + $0x28] sm:$0xff]  ;;  %v5922_v14 = vld [vmem:[#allocation13 + $0x40] sm:$0xff] }
 0x7f8   :  { %v4960_v53 = vmul.f32 %v14932_v32, %v16838_v63  ;;  %v5927_v32 = vld [vmem:[#allocation13 + $0x68] sm:$0xff] }
 0x7f9   :  { %v14934_v16 = vpop.eup %14933 }
 0x7fa   :  { %v5196_v35 = vpop.f32.mrb[84].mxu0  ;;  %v5237_v30 = vpop.f32.mrb[84].mxu1  ;;  %v16990_v6 = vadd.f32 %v4961_v22, %v4960_v53  ;;  %v5923_v22 = vld [vmem:[#allocation13 + $0x48] sm:$0xff] }
 0x7fb   :  { %v5244_v51 = vadd.f32 %v5196_v35, %v18788_v58  ;;  %v5246_v59 = vadd.f32 %v5237_v30, %v18789_v9  ;;  %v5198_v43 = vpop.f32.mrb[85].mxu0  ;;  %v5239_v46 = vpop.f32.mrb[85].mxu1  ;;  %v13139_v53 = vcombine.low %v5923_v22, %v5927_v32  ;;  %v13140_v35 = vcombine.high %v5923_v22, %v5927_v32  ;;  %v5930_v30 = vld [vmem:[#allocation13 + $0x80] sm:$0xff]  ;;  %v5983_v22 = vld [vmem:[#allocation13 + $0x228] sm:$0xff] }
 0x7fc   :  { %v5245_v40 = vadd.f32 %v5198_v43, %v18790_v33  ;;  %v5247_v47 = vadd.f32 %v5239_v46, %v18791_v52  ;;  %v5200_v39 = vpop.f32.mrb[86].mxu0  ;;  %v5241_v29 = vpop.f32.mrb[86].mxu1  ;;  %14935 = vtanh.f32 %v16990_v6  ;;  %v5934_v58 = vld [vmem:[#allocation13 + $0xa0] sm:$0xff] }
 0x7fd   :  { %v13056_v63 = vmul.f32 -1.442695, %v5244_v51  ;;  %v5201_v7 = vpop.f32.mrb[87].mxu0  ;;  %v5242_v45 = vpop.f32.mrb[87].mxu1  ;;  %v13058_v56 = vmul.f32 -1.442695, %v5246_v59  ;;  %v13146_v9 = vcombine.high %v5930_v30, %v5934_v58  ;;  %v13145_v43 = vcombine.low %v5930_v30, %v5934_v58 }
 0x7fe   :  { %v13057_v49 = vmul.f32 -1.442695, %v5245_v40  ;;  %v5931_v51 = vld [vmem:[#allocation13 + $0x88] sm:$0xff]  ;;  %v5938_v40 = vld [vmem:[#allocation13 + $0xc0] sm:$0xff] }
 0x7ff   :  { %14937 = vpow2.f32 %v13056_v63  ;;  %v5935_v59 = vld [vmem:[#allocation13 + $0xa8] sm:$0xff]  ;;  %v5942_v52 = vld [vmem:[#allocation13 + $0xe0] sm:$0xff] }
 0x800   :  { %14939 = vpow2.f32 %v13057_v49  ;;  %v13147_v46 = vcombine.low %v5931_v51, %v5935_v59  ;;  %v13148_v33 = vcombine.high %v5931_v51, %v5935_v59  ;;  %v13154_v39 = vcombine.high %v5938_v40, %v5942_v52  ;;  %v5943_v29 = vld [vmem:[#allocation13 + $0xe8] sm:$0xff]  ;;  %v5946_v49 = vld [vmem:[#allocation13 + $0x100] sm:$0xff] }
 0x801   :  { %14941 = vtanh.f32 %v5247_v47  ;;  %v5939_v47 = vld [vmem:[#allocation13 + $0xc8] sm:$0xff]  ;;  %v13153_v63 = vcombine.low %v5938_v40, %v5942_v52 }
 0x802   :  { %14943 = vpow2.f32 %v13058_v56  ;;  %v13155_v7 = vcombine.low %v5939_v47, %v5943_v29  ;;  %v13156_v45 = vcombine.high %v5939_v47, %v5943_v29  ;;  %v5987_v30 = vld [vmem:[#allocation13 + $0x248] sm:$0xff] }
 0x803   :  { %v5991_v51 = vld [vmem:[#allocation13 + $0x268] sm:$0xff] }
 0x804   :  { %v13203_v59 = vcombine.low %v5987_v30, %v5991_v51  ;;  %v5995_v40 = vld [vmem:[#allocation13 + $0x288] sm:$0xff] }
 0x805   :  { %v5999_v47 = vld [vmem:[#allocation13 + $0x2a8] sm:$0xff] }
 0x806   :  { %v14936_v37 = vpop.eup %14935  ;;  %v13211_v29 = vcombine.low %v5995_v40, %v5999_v47 }
 0x807   :  { %v16997_v20 = vmul.f32 %v14936_v37, %v14934_v16  ;;  %v5950_v16 = vld [vmem:[#allocation13 + $0x120] sm:$0xff]  ;;  %v5947_v37 = vld [vmem:[#allocation13 + $0x108] sm:$0xff] }
 0x808   :  { %v13162_v56 = vcombine.high %v5946_v49, %v5950_v16 }
 0x809   :  { %v14938_v50 = vpop.eup %14937  ;;  %v5278_v10 = vpack.c.bf16 %v16997_v20, %v16997_v20 }
 0x80a   :  { %v5257_v55 = vadd.f32 1.0, %v14938_v50  ;;  %v14940_v38 = vpop.eup %14939  ;;  %v5951_v50 = vld [vmem:[#allocation13 + $0x128] sm:$0xff] }
 0x80b   :  { %v5258_v25 = vadd.f32 1.0, %v14940_v38  ;;  %5504 = vmatmul.mubr.bf16.vlgmr.msra.gmra.mrb[88].mxu0 %v5278_v10  ;;  %5545 = vmatmul.mubr.bf16.vlgmr.msra.gmra.mrb[88].mxu1 %v5278_v10  ;;  %v13163_v10 = vcombine.low %v5947_v37, %v5951_v50  ;;  %v13164_v38 = vcombine.high %v5947_v37, %v5951_v50  ;;  %v6007_v37 = vld [vmem:[#allocation13 + $0x2e8] sm:$0xff] }
 0x80c   :  { %14945 = vrcp.f32 %v5257_v55  ;;  %5779 = vmatpush1.bf16.msra.mxu0 %v16847_v19  ;;  %5820 = vmatpush1.bf16.msra.mxu1 %v16849_v57  ;;  %v14942_v19 = vpop.eup %14941  ;;  %v13161_v55 = vcombine.low %v5946_v49, %v5950_v16  ;;  %v6003_v49 = vld [vmem:[#allocation13 + $0x2c8] sm:$0xff] }
 0x80d   :  { %14947 = vrcp.f32 %v5258_v25  ;;  %5780 = vmatprep.subr.bf16.mxu0 %v16853_v0  ;;  %5821 = vmatprep.subr.bf16.mxu1 %v16855_v4  ;;  %v14944_v48 = vpop.eup %14943  ;;  %v5954_v25 = vld [vmem:[#allocation13 + $0x140] sm:$0xff]  ;;  %v13219_v50 = vcombine.low %v6003_v49, %v6007_v37 }
 0x80e   :  { %5810 = vmatprep.mubr.bf16.mxu0 %v18704_v60  ;;  %5851 = vmatprep.mubr.bf16.mxu1 %v18704_v60 }
 0x810   :  { %5781 = vmatpush1.bf16.msra.mxu0 %v16859_v24  ;;  %5822 = vmatpush1.bf16.msra.mxu1 %v16861_v28  ;;  %v5259_v24 = vadd.f32 1.0, %v14944_v48  ;;  %v5955_v48 = vld [vmem:[#allocation13 + $0x148] sm:$0xff] }
 0x811   :  { %5782 = vmatprep.subr.bf16.mxu0 %v16865_v27  ;;  %5823 = vmatprep.subr.bf16.mxu1 %v16867_v3  ;;  %v18792_v3 = vld [vmem:[#allocation82_spill] sm:$0xff] }
 0x812   :  { %14949 = vrcp.f32 %v5259_v24 }
 0x814   :  { %5783 = vmatpush1.bf16.msra.mxu0 %v16873_v23  ;;  %5824 = vmatpush1.bf16.msra.mxu1 %v16875_v36  ;;  %v18793_v23 = vld [vmem:[#allocation26_spill] sm:$0xff]  ;;  %v18794_v36 = vld [vmem:[#allocation29_spill] sm:$0xff] }
 0x815   :  { %5784 = vmatprep.subr.bf16.mxu0 %v16879_v61  ;;  %5825 = vmatprep.subr.bf16.mxu1 %v16881_v26  ;;  %v18795_v61 = vld [vmem:[#allocation28_spill] sm:$0xff]  ;;  %v18796_v26 = vld [vmem:[#allocation30_spill] sm:$0xff] }
 0x816   :  { %v14946_v57 = vpop.eup %14945 }
 0x817   :  { %v5268_v0 = vmul.f32 %v14946_v57, %v14942_v19  ;;  %v14948_v4 = vpop.eup %14947  ;;  %v5958_v19 = vld [vmem:[#allocation13 + $0x160] sm:$0xff] }
 0x818   :  { %v5267_v28 = vmul.f32 %v14948_v4, %v16908_v12  ;;  %5785 = vmatpush1.bf16.msra.mxu0 %v16885_v41  ;;  %5826 = vmatpush1.bf16.msra.mxu1 %v16887_v62  ;;  %v18797_v41 = vld [vmem:[#allocation63_spill] sm:$0xff]  ;;  %v18798_v62 = vld [vmem:[#allocation65_spill] sm:$0xff]  ;;  %v13170_v57 = vcombine.high %v5954_v25, %v5958_v19  ;;  %v13169_v4 = vcombine.low %v5954_v25, %v5958_v19 }
 0x819   :  { %5786 = vmatprep.subr.bf16.mxu0 %v16891_v42  ;;  %5827 = vmatprep.subr.bf16.mxu1 %v16893_v15  ;;  %v6011_v25 = vld [vmem:[#allocation13 + $0x308] sm:$0xff] }
 0x81a   :  { %v17020_v27 = vadd.f32 %v5268_v0, %v5267_v28  ;;  %v5959_v0 = vld [vmem:[#allocation13 + $0x168] sm:$0xff] }
 0x81b   :  { %v13171_v24 = vcombine.low %v5955_v48, %v5959_v0  ;;  %v13172_v28 = vcombine.high %v5955_v48, %v5959_v0  ;;  %v6015_v48 = vld [vmem:[#allocation13 + $0x328] sm:$0xff] }
 0x81c   :  { %14951 = vtanh.f32 %v17020_v27  ;;  %5787 = vmatpush1.bf16.msra.mxu0 %v16898_v18  ;;  %5828 = vmatpush1.bf16.msra.mxu1 %v18792_v3  ;;  %v14950_v42 = vpop.eup %14949  ;;  %v5962_v3 = vld [vmem:[#allocation13 + $0x180] sm:$0xff]  ;;  %v13227_v0 = vcombine.low %v6011_v25, %v6015_v48 }
 0x81d   :  { %5788 = vmatprep.subr.bf16.mxu0 %v18793_v23  ;;  %5829 = vmatprep.subr.bf16.mxu1 %v18794_v36  ;;  %v5966_v23 = vld [vmem:[#allocation13 + $0x1a0] sm:$0xff]  ;;  %v5963_v36 = vld [vmem:[#allocation13 + $0x188] sm:$0xff] }
 0x820   :  { %5789 = vmatpush1.bf16.msra.mxu0 %v18795_v61  ;;  %5830 = vmatpush1.bf16.msra.mxu1 %v18796_v26  ;;  %v13178_v61 = vcombine.high %v5962_v3, %v5966_v23  ;;  %v5967_v26 = vld [vmem:[#allocation13 + $0x1a8] sm:$0xff] }
 0x821   :  { %5790 = vmatprep.subr.bf16.mxu0 %v18797_v41  ;;  %5831 = vmatprep.subr.bf16.mxu1 %v16921_v17  ;;  %v5914_v17 = vld [vmem:[#allocation13] sm:$0xff]  ;;  %v13177_v41 = vcombine.low %v5962_v3, %v5966_v23  ;;  %v6019_v3 = vld [vmem:[#allocation13 + $0x348] sm:$0xff] }
 0x822   :  { %v13130_v44 = vcombine.high %v5914_v17, %v5918_v54 }
 0x824   :  { %5791 = vmatpush1.bf16.msra.mxu0 %v18798_v62  ;;  %5832 = vmatpush1.bf16.msra.mxu1 %v16927_v2  ;;  %v5915_v2 = vld [vmem:[#allocation13 + $0x8] sm:$0xff]  ;;  %v13179_v62 = vcombine.low %v5963_v36, %v5967_v26 }
 0x825   :  { %5792 = vmatprep.subr.bf16.mxu0 %v16931_v34  ;;  %5833 = vmatprep.subr.bf16.mxu1 %v16933_v31  ;;  %v13129_v34 = vcombine.low %v5914_v17, %v5918_v54  ;;  %v13131_v8 = vcombine.low %v5915_v2, %v5919_v1  ;;  %v13132_v31 = vcombine.high %v5915_v2, %v5919_v1  ;;  %v5971_v17 = vld [vmem:[#allocation13 + $0x1c8] sm:$0xff] }
 0x826   :  { %v14952_v18 = vpop.eup %14951  ;;  %v5975_v2 = vld [vmem:[#allocation13 + $0x1e8] sm:$0xff] }
 0x827   :  { %v17035_v15 = vmul.f32 %v14952_v18, %v14950_v42  ;;  %v13180_v42 = vcombine.high %v5963_v36, %v5967_v26  ;;  %v5970_v18 = vld [vmem:[#allocation13 + $0x1c0] sm:$0xff]  ;;  %v13187_v1 = vcombine.low %v5971_v17, %v5975_v2 }
 0x828   :  { %5793 = vmatpush1.bf16.msra.mxu0 %v16937_v5  ;;  %5834 = vmatpush1.bf16.msra.mxu1 %v16939_v13  ;;  %v5926_v5 = vld [vmem:[#allocation13 + $0x60] sm:$0xff] }
 0x829   :  { %v5585_v12 = vpack.c.bf16 %v17035_v15, %v17035_v15  ;;  %6724 = vmatprep.subr.bf16.mxu0 %v13130_v44  ;;  %6797 = vmatprep.subr.bf16.mxu1 %v13132_v31  ;;  %v13138_v13 = vcombine.high %v5922_v14, %v5926_v5  ;;  %v13137_v21 = vcombine.low %v5922_v14, %v5926_v5  ;;  %v5982_v31 = vld [vmem:[#allocation13 + $0x220] sm:$0xff]  ;;  %v5979_v14 = vld [vmem:[#allocation13 + $0x208] sm:$0xff] }
 0x82a   :  { %v13195_v32 = vcombine.low %v5979_v14, %v5983_v22  ;;  %v6026_v26 = vld [vmem:[#allocation13 + $0x380] sm:$0xff] }
 0x82b   :  { %5811 = vmatmul.mubr.bf16.vlgmr.msra.gmra.mrb[92].mxu0 %v5585_v12  ;;  %5852 = vmatmul.mubr.bf16.vlgmr.msra.gmra.mrb[92].mxu1 %v5585_v12  ;;  %v5974_v12 = vld [vmem:[#allocation13 + $0x1e0] sm:$0xff] }
 0x82c   :  { %6725 = vmatpush1.bf16.msra.mxu0 %v13129_v34  ;;  %6798 = vmatpush1.bf16.msra.mxu1 %v13131_v8  ;;  %v13186_v54 = vcombine.high %v5970_v18, %v5974_v12  ;;  %v13185_v44 = vcombine.low %v5970_v18, %v5974_v12  ;;  %v13188_v34 = vcombine.high %v5971_v17, %v5975_v2  ;;  %v5978_v8 = vld [vmem:[#allocation13 + $0x200] sm:$0xff]  ;;  %v6027_v12 = vld [vmem:[#allocation13 + $0x388] sm:$0xff] }
 0x82d   :  { %6726 = vmatprep.subr.bf16.mxu0 %v13138_v13  ;;  %6799 = vmatprep.subr.bf16.mxu1 %v13140_v35  ;;  %v13194_v5 = vcombine.high %v5978_v8, %v5982_v31  ;;  %v13193_v13 = vcombine.low %v5978_v8, %v5982_v31  ;;  %v5990_v35 = vld [vmem:[#allocation13 + $0x260] sm:$0xff]  ;;  %v6031_v17 = vld [vmem:[#allocation13 + $0x3a8] sm:$0xff] }
 0x82e   :  { %v13244_v2 = vcombine.high %v6027_v12, %v6031_v17  ;;  %v13243_v31 = vcombine.low %v6027_v12, %v6031_v17 }
 0x830   :  { %6727 = vmatpush1.bf16.msra.mxu0 %v13137_v21  ;;  %6800 = vmatpush1.bf16.msra.mxu1 %v13139_v53  ;;  %v13196_v21 = vcombine.high %v5979_v14, %v5983_v22  ;;  %v5986_v53 = vld [vmem:[#allocation13 + $0x240] sm:$0xff] }
 0x831   :  { %6728 = vmatprep.subr.bf16.mxu0 %v13146_v9  ;;  %6801 = vmatprep.subr.bf16.mxu1 %v13148_v33  ;;  %v13202_v58 = vcombine.high %v5986_v53, %v5990_v35  ;;  %v13201_v9 = vcombine.low %v5986_v53, %v5990_v35  ;;  %v5998_v33 = vld [vmem:[#allocation13 + $0x2a0] sm:$0xff]  ;;  %v17045_v53 = vld [vmem:[#allocation13 + $0x18] sm:$0xff] }
 0x834   :  { %6729 = vmatpush1.bf16.msra.mxu0 %v13145_v43  ;;  %6802 = vmatpush1.bf16.msra.mxu1 %v13147_v46  ;;  %v13204_v43 = vcombine.high %v5987_v30, %v5991_v51  ;;  %v5994_v46 = vld [vmem:[#allocation13 + $0x280] sm:$0xff]  ;;  %v17049_v30 = vld [vmem:[#allocation13 + $0x38] sm:$0xff] }
 0x835   :  { %6730 = vmatprep.subr.bf16.mxu0 %v13154_v39  ;;  %6803 = vmatprep.subr.bf16.mxu1 %v13156_v45  ;;  %v13210_v52 = vcombine.high %v5994_v46, %v5998_v33  ;;  %v13209_v39 = vcombine.low %v5994_v46, %v5998_v33  ;;  %v6006_v45 = vld [vmem:[#allocation13 + $0x2e0] sm:$0xff]  ;;  %v13135_v51 = vcombine.low %v17045_v53, %v17049_v30  ;;  %v18799_v46 = vld [vmem:[#allocation42_spill] sm:$0xff] }
 0x838   :  { %6731 = vmatpush1.bf16.msra.mxu0 %v13153_v63  ;;  %6804 = vmatpush1.bf16.msra.mxu1 %v13155_v7  ;;  %v13212_v63 = vcombine.high %v5995_v40, %v5999_v47  ;;  %v6002_v7 = vld [vmem:[#allocation13 + $0x2c0] sm:$0xff]  ;;  %v18800_v40 = vld [vmem:[#allocation45_spill] sm:$0xff] }
 0x839   :  { %6732 = vmatprep.subr.bf16.mxu0 %v13162_v56  ;;  %6805 = vmatprep.subr.bf16.mxu1 %v13164_v38  ;;  %v13218_v16 = vcombine.high %v6002_v7, %v6006_v45  ;;  %v13217_v56 = vcombine.low %v6002_v7, %v6006_v45  ;;  %v6014_v38 = vld [vmem:[#allocation13 + $0x320] sm:$0xff]  ;;  %v18802_v7 = vld [vmem:[#allocation46_spill] sm:$0xff] }
 0x83c   :  { %6733 = vmatpush1.bf16.msra.mxu0 %v13161_v55  ;;  %6806 = vmatpush1.bf16.msra.mxu1 %v13163_v10  ;;  %v13220_v55 = vcombine.high %v6003_v49, %v6007_v37  ;;  %v6010_v10 = vld [vmem:[#allocation13 + $0x300] sm:$0xff] }
 0x83d   :  { %6734 = vmatprep.subr.bf16.mxu0 %v13170_v57  ;;  %6807 = vmatprep.subr.bf16.mxu1 %v13172_v28  ;;  %v13226_v19 = vcombine.high %v6010_v10, %v6014_v38  ;;  %v13225_v57 = vcombine.low %v6010_v10, %v6014_v38  ;;  %v6022_v28 = vld [vmem:[#allocation13 + $0x360] sm:$0xff] }
 0x840   :  { %6735 = vmatpush1.bf16.msra.mxu0 %v13169_v4  ;;  %6808 = vmatpush1.bf16.msra.mxu1 %v13171_v24  ;;  %v13228_v4 = vcombine.high %v6011_v25, %v6015_v48  ;;  %v6018_v24 = vld [vmem:[#allocation13 + $0x340] sm:$0xff] }
 0x841   :  { %6736 = vmatprep.subr.bf16.mxu0 %v13178_v61  ;;  %6809 = vmatprep.subr.bf16.mxu1 %v13180_v42  ;;  %v13233_v23 = vcombine.low %v6018_v24, %v6022_v28  ;;  %v13234_v36 = vcombine.high %v6018_v24, %v6022_v28  ;;  %v6023_v61 = vld [vmem:[#allocation13 + $0x368] sm:$0xff] }
 0x842   :  { %v13236_v42 = vcombine.high %v6019_v3, %v6023_v61 }
 0x844   :  { %6737 = vmatpush1.bf16.msra.mxu0 %v13177_v41  ;;  %6810 = vmatpush1.bf16.msra.mxu1 %v13179_v62  ;;  %v6030_v41 = vld [vmem:[#allocation13 + $0x3a0] sm:$0xff]  ;;  %v13235_v62 = vcombine.low %v6019_v3, %v6023_v61 }
 0x845   :  { %6738 = vmatprep.subr.bf16.mxu0 %v13186_v54  ;;  %6811 = vmatprep.subr.bf16.mxu1 %v13188_v34  ;;  %v13242_v18 = vcombine.high %v6026_v26, %v6030_v41  ;;  %v6034_v54 = vld [vmem:[#allocation13 + $0x3c0] sm:$0xff]  ;;  %v6039_v34 = vld [vmem:[#allocation13 + $0x3e8] sm:$0xff]  ;;  %v13241_v8 = vcombine.low %v6026_v26, %v6030_v41  ;;  %v18803_v41 = vld [vmem:[#allocation47_spill] sm:$0xff] }
 0x848   :  { %6739 = vmatpush1.bf16.msra.mxu0 %v13185_v44  ;;  %6812 = vmatpush1.bf16.msra.mxu1 %v13187_v1  ;;  %v6038_v44 = vld [vmem:[#allocation13 + $0x3e0] sm:$0xff]  ;;  %v6035_v1 = vld [vmem:[#allocation13 + $0x3c8] sm:$0xff] }
 0x849   :  { %6740 = vmatprep.subr.bf16.mxu0 %v13194_v5  ;;  %6813 = vmatprep.subr.bf16.mxu1 %v13196_v21  ;;  %v13250_v14 = vcombine.high %v6034_v54, %v6038_v44  ;;  %v13252_v5 = vcombine.high %v6035_v1, %v6039_v34  ;;  %v13249_v22 = vcombine.low %v6034_v54, %v6038_v44  ;;  %v17043_v21 = vld [vmem:[#allocation13 + $0x30] sm:$0xff]  ;;  %v18805_v54 = vld [vmem:[#allocation48_spill] sm:$0xff]  ;;  %v18806_v44 = vld [vmem:[#allocation51_spill] sm:$0xff] }
 0x84c   :  { %6741 = vmatpush1.bf16.msra.mxu0 %v13193_v13  ;;  %6814 = vmatpush1.bf16.msra.mxu1 %v13195_v32  ;;  %v13251_v13 = vcombine.low %v6035_v1, %v6039_v34  ;;  %v17041_v32 = vld [vmem:[#allocation13 + $0x10] sm:$0xff] }
 0x84d   :  { %6742 = vmatprep.subr.bf16.mxu0 %v13202_v58  ;;  %6815 = vmatprep.subr.bf16.mxu1 %v13204_v43  ;;  %v13134_v35 = vcombine.high %v17041_v32, %v17043_v21  ;;  %v13133_v58 = vcombine.low %v17041_v32, %v17043_v21 }
 0x850   :  { %6743 = vmatpush1.bf16.msra.mxu0 %v13201_v9  ;;  %6816 = vmatpush1.bf16.msra.mxu1 %v13203_v59  ;;  %v13136_v9 = vcombine.high %v17045_v53, %v17049_v30  ;;  %v18810_v53 = vld [vmem:[#allocation25_spill] sm:$0xff]  ;;  %v18811_v30 = vld [vmem:[#allocation66_spill] sm:$0xff] }
 0x851   :  { %6744 = vmatprep.subr.bf16.mxu0 %v13210_v52  ;;  %6817 = vmatprep.subr.bf16.mxu1 %v13212_v63 }
 0x854   :  { %6745 = vmatpush1.bf16.msra.mxu0 %v13209_v39  ;;  %6818 = vmatpush1.bf16.msra.mxu1 %v13211_v29  ;;  %v18801_v29 = vld [vmem:[#allocation44_spill] sm:$0xff] }
 0x855   :  { %6746 = vmatprep.subr.bf16.mxu0 %v13218_v16  ;;  %6819 = vmatprep.subr.bf16.mxu1 %v13220_v55 }
 0x858   :  { %6747 = vmatpush1.bf16.msra.mxu0 %v13217_v56  ;;  %6820 = vmatpush1.bf16.msra.mxu1 %v13219_v50 }
 0x859   :  { %6748 = vmatprep.subr.bf16.mxu0 %v13226_v19  ;;  %6821 = vmatprep.subr.bf16.mxu1 %v13228_v4 }
 0x85c   :  { %6749 = vmatpush1.bf16.msra.mxu0 %v13225_v57  ;;  %6822 = vmatpush1.bf16.msra.mxu1 %v13227_v0 }
 0x85d   :  { %6750 = vmatprep.subr.bf16.mxu0 %v13234_v36  ;;  %6823 = vmatprep.subr.bf16.mxu1 %v13236_v42  ;;  %v18804_v42 = vld [vmem:[#allocation49_spill] sm:$0xff] }
 0x860   :  { %6751 = vmatpush1.bf16.msra.mxu0 %v13233_v23  ;;  %6824 = vmatpush1.bf16.msra.mxu1 %v13235_v62 }
 0x861   :  { %6752 = vmatprep.subr.bf16.mxu0 %v13242_v18  ;;  %6825 = vmatprep.subr.bf16.mxu1 %v13244_v2 }
 0x864   :  { %6753 = vmatpush1.bf16.msra.mxu0 %v13241_v8  ;;  %6826 = vmatpush1.bf16.msra.mxu1 %v13243_v31 }
 0x865   :  { %6754 = vmatprep.subr.bf16.mxu0 %v13250_v14  ;;  %6827 = vmatprep.subr.bf16.mxu1 %v13252_v5 }
 0x868   :  { %6755 = vmatpush1.bf16.msra.mxu0 %v13249_v22  ;;  %6828 = vmatpush1.bf16.msra.mxu1 %v13251_v13 }
 0x869   :  { %6870 = vmatprep.subr.bf16.mxu0 %v13134_v35  ;;  %6943 = vmatprep.subr.bf16.mxu1 %v13136_v9 }
 0x8de   :  { %v5505_v59 = vpop.f32.mrb[88].mxu0  ;;  %v5546_v43 = vpop.f32.mrb[88].mxu1 }
 0x8df   :  { %v5553_v33 = vadd.f32 %v5505_v59, %v18799_v46  ;;  %v5555_v52 = vadd.f32 %v5546_v43, %v18800_v40  ;;  %v5507_v47 = vpop.f32.mrb[89].mxu0  ;;  %v5548_v39 = vpop.f32.mrb[89].mxu1 }
 0x8e0   :  { %v5554_v63 = vadd.f32 %v5507_v47, %v18801_v29  ;;  %v5556_v45 = vadd.f32 %v5548_v39, %v18802_v7  ;;  %v5509_v49 = vpop.f32.mrb[90].mxu0  ;;  %v5550_v16 = vpop.f32.mrb[90].mxu1 }
 0x8e1   :  { %v13091_v37 = vmul.f32 -1.442695, %v5553_v33  ;;  %v5510_v56 = vpop.f32.mrb[91].mxu0  ;;  %v5551_v50 = vpop.f32.mrb[91].mxu1  ;;  %v13093_v10 = vmul.f32 -1.442695, %v5555_v52 }
 0x8e2   :  { %v13092_v55 = vmul.f32 -1.442695, %v5554_v63  ;;  %v5924_v56 = vld [vmem:[#allocation13 + $0x50] sm:$0xff] }
 0x8e3   :  { %14953 = vpow2.f32 %v13091_v37  ;;  %v5928_v50 = vld [vmem:[#allocation13 + $0x70] sm:$0xff] }
 0x8e4   :  { %14955 = vpow2.f32 %v13092_v55  ;;  %v5925_v55 = vld [vmem:[#allocation13 + $0x58] sm:$0xff] }
 0x8e5   :  { %14957 = vtanh.f32 %v5556_v45 }
 0x8e6   :  { %14959 = vpow2.f32 %v13093_v10  ;;  %v5929_v10 = vld [vmem:[#allocation13 + $0x78] sm:$0xff] }
 0x8ed   :  { %v14954_v38 = vpop.eup %14953 }
 0x8ee   :  { %v5566_v25 = vadd.f32 1.0, %v14954_v38  ;;  %v14956_v19 = vpop.eup %14955 }
 0x8ef   :  { %v5567_v48 = vadd.f32 1.0, %v14956_v19  ;;  %v14958_v57 = vpop.eup %14957  ;;  %v18808_v19 = vld [vmem:[#allocation73_spill] sm:$0xff] }
 0x8f0   :  { %14961 = vrcp.f32 %v5566_v25  ;;  %v14960_v0 = vpop.eup %14959  ;;  %v18807_v25 = vld [vmem:[#allocation71_spill] sm:$0xff] }
 0x8f1   :  { %14963 = vrcp.f32 %v5567_v48  ;;  %v5568_v3 = vadd.f32 1.0, %v14960_v0  ;;  %v17074_v48 = vpack.c.bf16 %v18808_v19, %v18807_v25  ;;  %v13144_v0 = vcombine.high %v5925_v55, %v5929_v10  ;;  %v5976_v25 = vld [vmem:[#allocation13 + $0x1f0] sm:$0xff]  ;;  %v5973_v19 = vld [vmem:[#allocation13 + $0x1d8] sm:$0xff] }
 0x8f3   :  { %14965 = vrcp.f32 %v5568_v3 }
 0x8fa   :  { %v14962_v4 = vpop.eup %14961 }
 0x8fb   :  { %v5577_v24 = vmul.f32 %v14962_v4, %v14958_v57  ;;  %v14964_v28 = vpop.eup %14963  ;;  %v5932_v57 = vld [vmem:[#allocation13 + $0x90] sm:$0xff] }
 0x8fc   :  { %v5576_v23 = vmul.f32 %v14964_v28, %v16990_v6  ;;  %v5936_v4 = vld [vmem:[#allocation13 + $0xb0] sm:$0xff]  ;;  %v5937_v28 = vld [vmem:[#allocation13 + $0xb8] sm:$0xff] }
 0x8fd   :  { %v14966_v22 = vpop.eup %14965  ;;  %v13149_v32 = vcombine.low %v5932_v57, %v5936_v4 }
 0x8fe   :  { %v5812_v36 = vpop.f32.mrb[92].mxu0  ;;  %v5853_v61 = vpop.f32.mrb[92].mxu1  ;;  %v5578_v26 = vadd.f32 %v5577_v24, %v5576_v23  ;;  %v5933_v24 = vld [vmem:[#allocation13 + $0x98] sm:$0xff]  ;;  %v13141_v23 = vcombine.low %v5924_v56, %v5928_v50 }
 0x8ff   :  { %v5860_v62 = vadd.f32 %v5812_v36, %v18803_v41  ;;  %v5862_v18 = vadd.f32 %v5853_v61, %v18804_v42  ;;  %v5814_v12 = vpop.f32.mrb[93].mxu0  ;;  %v5855_v17 = vpop.f32.mrb[93].mxu1  ;;  %v13143_v36 = vcombine.low %v5925_v55, %v5929_v10  ;;  %v13150_v61 = vcombine.high %v5932_v57, %v5936_v4  ;;  %v5944_v41 = vld [vmem:[#allocation13 + $0xf0] sm:$0xff]  ;;  %v5945_v42 = vld [vmem:[#allocation13 + $0xf8] sm:$0xff] }
 0x900   :  { %v5861_v2 = vadd.f32 %v5814_v12, %v18805_v54  ;;  %v5863_v1 = vadd.f32 %v5855_v17, %v18806_v44  ;;  %v5816_v34 = vpop.f32.mrb[94].mxu0  ;;  %v5857_v8 = vpop.f32.mrb[94].mxu1  ;;  %14967 = vtanh.f32 %v5578_v26  ;;  %v13152_v26 = vcombine.high %v5933_v24, %v5937_v28  ;;  %v5952_v17 = vld [vmem:[#allocation13 + $0x130] sm:$0xff]  ;;  %v5949_v54 = vld [vmem:[#allocation13 + $0x118] sm:$0xff] }
 0x901   :  { %v13126_v31 = vmul.f32 -1.442695, %v5860_v62  ;;  %v5817_v14 = vpop.f32.mrb[95].mxu0  ;;  %v5858_v6 = vpop.f32.mrb[95].mxu1  ;;  %v13128_v35 = vmul.f32 -1.442695, %v5862_v18  ;;  %v13151_v21 = vcombine.low %v5933_v24, %v5937_v28 }
 0x902   :  { %v13127_v5 = vmul.f32 -1.442695, %v5861_v2  ;;  %v5941_v62 = vld [vmem:[#allocation13 + $0xd8] sm:$0xff]  ;;  %v18812_v44 = vld [vmem:[#allocation78_spill] sm:$0xff] }
 0x903   :  { %14969 = vpow2.f32 %v13126_v31  ;;  %v13160_v12 = vcombine.high %v5941_v62, %v5945_v42  ;;  %v5953_v2 = vld [vmem:[#allocation13 + $0x138] sm:$0xff]  ;;  %v13159_v31 = vcombine.low %v5941_v62, %v5945_v42  ;;  %v5972_v10 = vld [vmem:[#allocation13 + $0x1d0] sm:$0xff] }
 0x904   :  { %14971 = vpow2.f32 %v13127_v5  ;;  %v13168_v6 = vcombine.high %v5949_v54, %v5953_v2  ;;  %v5956_v5 = vld [vmem:[#allocation13 + $0x150] sm:$0xff]  ;;  %v5977_v57 = vld [vmem:[#allocation13 + $0x1f8] sm:$0xff]  ;;  %v13190_v28 = vcombine.high %v5972_v10, %v5976_v25 }
 0x905   :  { %14973 = vtanh.f32 %v5863_v1  ;;  %v18813_v1 = vld [vmem:[#allocation27_spill] sm:$0xff]  ;;  %v5980_v24 = vld [vmem:[#allocation13 + $0x210] sm:$0xff] }
 0x906   :  { %14975 = vpow2.f32 %v13128_v35  ;;  %v17100_v34 = vpack.c.bf16 %v18813_v1, %v18812_v44  ;;  %v5961_v35 = vld [vmem:[#allocation13 + $0x178] sm:$0xff]  ;;  %v5992_v62 = vld [vmem:[#allocation13 + $0x270] sm:$0xff] }
 0x907   :  { %v5989_v42 = vld [vmem:[#allocation13 + $0x258] sm:$0xff] }
 0x90a   :  { %v14968_v13 = vpop.eup %14967 }
 0x90b   :  { %v17066_v9 = vmul.f32 %v14968_v13, %v14966_v22  ;;  %v5960_v22 = vld [vmem:[#allocation13 + $0x170] sm:$0xff]  ;;  %v5957_v13 = vld [vmem:[#allocation13 + $0x158] sm:$0xff] }
 0x90d   :  { %v14970_v59 = vpop.eup %14969  ;;  %v17118_v4 = vpack.c.bf16 %v17066_v9, %v16997_v20 }
 0x90e   :  { %v5873_v43 = vadd.f32 1.0, %v14970_v59  ;;  %v14972_v46 = vpop.eup %14971 }
 0x90f   :  { %v5874_v33 = vadd.f32 1.0, %v14972_v46  ;;  %v14974_v40 = vpop.eup %14973  ;;  %v18814_v46 = vld [vmem:[#allocation79_spill] sm:$0xff] }
 0x910   :  { %14977 = vrcp.f32 %v5873_v43  ;;  %v14976_v52 = vpop.eup %14975  ;;  %v13167_v43 = vcombine.low %v5949_v54, %v5953_v2 }
 0x911   :  { %14979 = vrcp.f32 %v5874_v33  ;;  %v5875_v63 = vadd.f32 1.0, %v14976_v52  ;;  %v18815_v33 = vld [vmem:[#allocation81_spill] sm:$0xff]  ;;  %v5964_v52 = vld [vmem:[#allocation13 + $0x190] sm:$0xff] }
 0x913   :  { %14981 = vrcp.f32 %v5875_v63  ;;  %v5965_v63 = vld [vmem:[#allocation13 + $0x198] sm:$0xff] }
 0x91a   :  { %v14978_v47 = vpop.eup %14977 }
 0x91b   :  { %v5884_v39 = vmul.f32 %v14978_v47, %v14974_v40  ;;  %v14980_v29 = vpop.eup %14979  ;;  %v17106_v40 = vpack.c.bf16 %v18815_v33, %v18814_v46  ;;  %v13174_v47 = vcombine.high %v5956_v5, %v5960_v22  ;;  %v6013_v46 = vld [vmem:[#allocation13 + $0x318] sm:$0xff] }
 0x91c   :  { %v5883_v7 = vmul.f32 %v14980_v29, %v17020_v27  ;;  %v13142_v27 = vcombine.high %v5924_v56, %v5928_v50  ;;  %v5968_v29 = vld [vmem:[#allocation13 + $0x1b0] sm:$0xff]  ;;  %v13175_v56 = vcombine.low %v5957_v13, %v5961_v35  ;;  %v6017_v33 = vld [vmem:[#allocation13 + $0x338] sm:$0xff] }
 0x91d   :  { %v14982_v49 = vpop.eup %14981  ;;  %v13182_v50 = vcombine.high %v5964_v52, %v5968_v29 }
 0x91e   :  { %v5885_v45 = vadd.f32 %v5884_v39, %v5883_v7  ;;  %v13176_v39 = vcombine.high %v5957_v13, %v5961_v35  ;;  %v5969_v7 = vld [vmem:[#allocation13 + $0x1b8] sm:$0xff] }
 0x91f   :  { %v13184_v55 = vcombine.high %v5965_v63, %v5969_v7 }
 0x920   :  { %14983 = vtanh.f32 %v5885_v45  ;;  %v18816_v45 = vld [vmem:[#allocation83_spill] sm:$0xff] }
 0x92a   :  { %v14984_v16 = vpop.eup %14983 }
 0x92b   :  { %v5887_v37 = vmul.f32 %v14984_v16, %v14982_v49  ;;  %v18817_v49 = vld [vmem:[#allocation72_spill] sm:$0xff] }
 0x92c   :  { %v17112_v16 = vpack.c.bf16 %v18817_v49, %v18816_v45  ;;  %v6021_v45 = vld [vmem:[#allocation13 + $0x358] sm:$0xff] }
 0x92d   :  { %v17070_v38 = vpack.c.bf16 %v17035_v15, %v5887_v37  ;;  %v18809_v15 = vld [vmem:[#allocation80_spill] sm:$0xff]  ;;  %v13173_v37 = vcombine.low %v5956_v5, %v5960_v22  ;;  %v6025_v49 = vld [vmem:[#allocation13 + $0x378] sm:$0xff] }
 0x92e   :  { %v17082_v3 = vpack.c.bf16 %v18809_v15, %v16943_v11  ;;  %v5940_v11 = vld [vmem:[#allocation13 + $0xd0] sm:$0xff]  ;;  %v13192_v15 = vcombine.high %v5973_v19, %v5977_v57 }
 0x92f   :  { %6756 = vmatprep.mubr.bf16.mxu0 %v17070_v38  ;;  %6829 = vmatprep.mubr.bf16.mxu1 %v17070_v38  ;;  %v13158_v18 = vcombine.high %v5940_v11, %v5944_v41  ;;  %v13157_v8 = vcombine.low %v5940_v11, %v5944_v41  ;;  %v13191_v11 = vcombine.low %v5973_v19, %v5977_v57  ;;  %v5988_v41 = vld [vmem:[#allocation13 + $0x250] sm:$0xff]  ;;  %v6029_v19 = vld [vmem:[#allocation13 + $0x398] sm:$0xff] }
 0x930   :  { %6757 = vmatmul.mubr.bf16.vlgmr.msra.gmra.mrb[96].mxu0 %v17074_v48  ;;  %6830 = vmatmul.mubr.bf16.vlgmr.msra.gmra.mrb[96].mxu1 %v17074_v48  ;;  %v13205_v54 = vcombine.low %v5988_v41, %v5992_v62  ;;  %v6033_v57 = vld [vmem:[#allocation13 + $0x3b8] sm:$0xff] }
 0x931   :  { %6871 = vmatpush1.bf16.msra.mxu0 %v13133_v58  ;;  %6944 = vmatpush1.bf16.msra.mxu1 %v13135_v51  ;;  %v17094_v58 = vpack.c.bf16 %v18811_v30, %v18810_v53  ;;  %v5948_v51 = vld [vmem:[#allocation13 + $0x110] sm:$0xff]  ;;  %v13206_v30 = vcombine.high %v5988_v41, %v5992_v62 }
 0x932   :  { %6766 = vmatprep.mubr.bf16.mxu0 %v17082_v3  ;;  %6839 = vmatprep.mubr.bf16.mxu1 %v17082_v3  ;;  %v13166_v14 = vcombine.high %v5948_v51, %v5952_v17  ;;  %v13165_v59 = vcombine.low %v5948_v51, %v5952_v17  ;;  %v5997_v17 = vld [vmem:[#allocation13 + $0x298] sm:$0xff] }
 0x933   :  { %6872 = vmatprep.subr.bf16.mxu0 %v13142_v27  ;;  %6945 = vmatprep.subr.bf16.mxu1 %v13144_v0  ;;  %v13181_v27 = vcombine.low %v5964_v52, %v5968_v29  ;;  %v13183_v0 = vcombine.low %v5965_v63, %v5969_v7  ;;  %v13232_v29 = vcombine.high %v6013_v46, %v6017_v33  ;;  %v6020_v63 = vld [vmem:[#allocation13 + $0x350] sm:$0xff] }
 0x934   :  { %v6024_v7 = vld [vmem:[#allocation13 + $0x370] sm:$0xff] }
 0x935   :  { %6873 = vmatpush1.bf16.msra.mxu0 %v13141_v23  ;;  %6946 = vmatpush1.bf16.msra.mxu1 %v13143_v36  ;;  %v5984_v23 = vld [vmem:[#allocation13 + $0x230] sm:$0xff]  ;;  %v5981_v36 = vld [vmem:[#allocation13 + $0x218] sm:$0xff] }
 0x936   :  { %6874 = vmatprep.subr.bf16.mxu0 %v13150_v61  ;;  %6947 = vmatprep.subr.bf16.mxu1 %v13152_v26  ;;  %v5985_v61 = vld [vmem:[#allocation13 + $0x238] sm:$0xff]  ;;  %v13189_v26 = vcombine.low %v5972_v10, %v5976_v25  ;;  %v13198_v20 = vcombine.high %v5980_v24, %v5984_v23  ;;  %v6028_v10 = vld [vmem:[#allocation13 + $0x390] sm:$0xff] }
 0x937   :  { %v13200_v9 = vcombine.high %v5981_v36, %v5985_v61  ;;  %v13199_v53 = vcombine.low %v5981_v36, %v5985_v61  ;;  %v6032_v25 = vld [vmem:[#allocation13 + $0x3b0] sm:$0xff]  ;;  %v6037_v36 = vld [vmem:[#allocation13 + $0x3d8] sm:$0xff] }
 0x938   :  { %6767 = vmatmul.mubr.bf16.gmra.mrb[100].mxu0 %v17094_v58  ;;  %6840 = vmatmul.mubr.bf16.gmra.mrb[100].mxu1 %v17094_v58  ;;  %v6041_v61 = vld [vmem:[#allocation13 + $0x3f8] sm:$0xff] }
 0x939   :  { %6875 = vmatpush1.bf16.msra.mxu0 %v13149_v32  ;;  %6948 = vmatpush1.bf16.msra.mxu1 %v13151_v21  ;;  %v5993_v32 = vld [vmem:[#allocation13 + $0x278] sm:$0xff]  ;;  %v13197_v21 = vcombine.low %v5980_v24, %v5984_v23  ;;  %v13246_v24 = vcombine.high %v6028_v10, %v6032_v25  ;;  %v6040_v23 = vld [vmem:[#allocation13 + $0x3f0] sm:$0xff]  ;;  %v13255_v62 = vcombine.low %v6037_v36, %v6041_v61 }
 0x93a   :  { %6776 = vmatprep.mubr.bf16.mxu0 %v17100_v34  ;;  %6849 = vmatprep.mubr.bf16.mxu1 %v17100_v34  ;;  %v13208_v51 = vcombine.high %v5989_v42, %v5993_v32  ;;  %v13207_v2 = vcombine.low %v5989_v42, %v5993_v32  ;;  %v17124_v42 = vld [vmem:[#allocation15 + $0x4] ss:$16 sps:$4 sm:$0xff]   ;;  %v17126_v32 = vld [vmem:[#allocation15 + $0xc] ss:$16 sps:$4 sm:$0xff]  }
 0x93b   :  { %6876 = vmatprep.subr.bf16.mxu0 %v13158_v18  ;;  %6949 = vmatprep.subr.bf16.mxu1 %v13160_v12  ;;  %v5996_v18 = vld [vmem:[#allocation13 + $0x290] sm:$0xff] }
 0x93c   :  { %v6000_v12 = vld [vmem:[#allocation13 + $0x2b0] sm:$0xff] }
 0x93d   :  { %6877 = vmatpush1.bf16.msra.mxu0 %v13157_v8  ;;  %6950 = vmatpush1.bf16.msra.mxu1 %v13159_v31  ;;  %v13214_v44 = vcombine.high %v5996_v18, %v6000_v12  ;;  %v6004_v8 = vld [vmem:[#allocation13 + $0x2d0] sm:$0xff]  ;;  %v13213_v5 = vcombine.low %v5996_v18, %v6000_v12  ;;  %v17146_v12 = vld [vmem:[#allocation15 + $0x28] ss:$16 sps:$4 sm:$0xff]  }
 0x93e   :  { %6878 = vmatprep.subr.bf16.mxu0 %v13166_v14  ;;  %6951 = vmatprep.subr.bf16.mxu1 %v13168_v6  ;;  %v6008_v31 = vld [vmem:[#allocation13 + $0x2f0] sm:$0xff]  ;;  %v6005_v14 = vld [vmem:[#allocation13 + $0x2d8] sm:$0xff] }
 0x93f   :  { %v6009_v6 = vld [vmem:[#allocation13 + $0x2f8] sm:$0xff]  ;;  %v13222_v13 = vcombine.high %v6004_v8, %v6008_v31  ;;  %v13221_v52 = vcombine.low %v6004_v8, %v6008_v31  ;;  %v17144_v18 = vld [vmem:[#allocation15 + $0x20] ss:$16 sps:$4 sm:$0xff]   ;;  %v17178_v8 = vld [vmem:[#allocation15 + $0x84] ss:$16 sps:$4 sm:$0xff]  }
 0x940   :  { %6777 = vmatmul.mubr.bf16.gmra.mrb[104].mxu0 %v17106_v40  ;;  %6850 = vmatmul.mubr.bf16.gmra.mrb[104].mxu1 %v17106_v40  ;;  %v13224_v35 = vcombine.high %v6005_v14, %v6009_v6  ;;  %v17180_v31 = vld [vmem:[#allocation15 + $0x8c] ss:$16 sps:$4 sm:$0xff]  }
 0x941   :  { %6879 = vmatpush1.bf16.msra.mxu0 %v13165_v59  ;;  %6952 = vmatpush1.bf16.msra.mxu1 %v13167_v43  ;;  %v6012_v59 = vld [vmem:[#allocation13 + $0x310] sm:$0xff] }
 0x942   :  { %6786 = vmatprep.mubr.bf16.mxu0 %v17112_v16  ;;  %6859 = vmatprep.mubr.bf16.mxu1 %v17112_v16  ;;  %v6016_v43 = vld [vmem:[#allocation13 + $0x330] sm:$0xff] }
 0x943   :  { %6880 = vmatprep.subr.bf16.mxu0 %v13174_v47  ;;  %6953 = vmatprep.subr.bf16.mxu1 %v13176_v39  ;;  %v13223_v47 = vcombine.low %v6005_v14, %v6009_v6  ;;  %v13230_v39 = vcombine.high %v6012_v59, %v6016_v43  ;;  %v17190_v14 = vld [vmem:[#allocation15 + $0xa4] ss:$16 sps:$4 sm:$0xff]   ;;  %v17192_v6 = vld [vmem:[#allocation15 + $0xac] ss:$16 sps:$4 sm:$0xff]  }
 0x945   :  { %6881 = vmatpush1.bf16.msra.mxu0 %v13173_v37  ;;  %6954 = vmatpush1.bf16.msra.mxu1 %v13175_v56  ;;  %v13229_v37 = vcombine.low %v6012_v59, %v6016_v43  ;;  %v13231_v56 = vcombine.low %v6013_v46, %v6017_v33  ;;  %v17218_v59 = vld [vmem:[#allocation15 + $0xe4] ss:$16 sps:$4 sm:$0xff]   ;;  %v17220_v43 = vld [vmem:[#allocation15 + $0xec] ss:$16 sps:$4 sm:$0xff]   ;;  %v17228_v46 = vld [vmem:[#allocation15 + $0xe0] ss:$16 sps:$4 sm:$0xff]  }
 0x946   :  { %6882 = vmatprep.subr.bf16.mxu0 %v13182_v50  ;;  %6955 = vmatprep.subr.bf16.mxu1 %v13184_v55  ;;  %v13238_v50 = vcombine.high %v6020_v63, %v6024_v7  ;;  %v13240_v55 = vcombine.high %v6021_v45, %v6025_v49  ;;  %v17230_v33 = vld [vmem:[#allocation15 + $0xe8] ss:$16 sps:$4 sm:$0xff]  }
 0x948   :  { %6787 = vmatmul.mubr.bf16.gmra.mrb[108].mxu0 %v17118_v4  ;;  %6860 = vmatmul.mubr.bf16.gmra.mrb[108].mxu1 %v17118_v4 }
 0x949   :  { %6883 = vmatpush1.bf16.msra.mxu0 %v13181_v27  ;;  %6956 = vmatpush1.bf16.msra.mxu1 %v13183_v0  ;;  %v13237_v27 = vcombine.low %v6020_v63, %v6024_v7  ;;  %v13239_v0 = vcombine.low %v6021_v45, %v6025_v49  ;;  %v17248_v63 = vld [vmem:[#allocation16 + $0x2c] ss:$16 sps:$4 sm:$0xff]   ;;  %v17254_v7 = vld [vmem:[#allocation16 + $0x20] ss:$16 sps:$4 sm:$0xff]   ;;  %v17256_v45 = vld [vmem:[#allocation16 + $0x28] ss:$16 sps:$4 sm:$0xff]  }
 0x94a   :  { %6902 = vmatprep.mubr.bf16.mxu0 %v17070_v38  ;;  %6975 = vmatprep.mubr.bf16.mxu1 %v17070_v38  ;;  %v6001_v38 = vld [vmem:[#allocation13 + $0x2b8] sm:$0xff]  ;;  %v17260_v49 = vld [vmem:[#allocation16 + $0x44] ss:$16 sps:$4 sm:$0xff]  }
 0x94b   :  { %6884 = vmatprep.subr.bf16.mxu0 %v13190_v28  ;;  %6957 = vmatprep.subr.bf16.mxu1 %v13192_v15  ;;  %v13216_v1 = vcombine.high %v5997_v17, %v6001_v38  ;;  %v13215_v22 = vcombine.low %v5997_v17, %v6001_v38  ;;  %v13248_v28 = vcombine.high %v6029_v19, %v6033_v57  ;;  %v6036_v15 = vld [vmem:[#allocation13 + $0x3d0] sm:$0xff]  ;;  %v17152_v38 = vld [vmem:[#allocation15 + $0x4c] ss:$16 sps:$4 sm:$0xff]  }
 0x94c   :  { %v13253_v41 = vcombine.low %v6036_v15, %v6040_v23  ;;  %v17150_v17 = vld [vmem:[#allocation15 + $0x44] ss:$16 sps:$4 sm:$0xff]  }
 0x94d   :  { %6885 = vmatpush1.bf16.msra.mxu0 %v13189_v26  ;;  %6958 = vmatpush1.bf16.msra.mxu1 %v13191_v11  ;;  %v13245_v26 = vcombine.low %v6028_v10, %v6032_v25  ;;  %v13247_v11 = vcombine.low %v6029_v19, %v6033_v57  ;;  %v17276_v10 = vld [vmem:[#allocation16 + $0x6c] ss:$16 sps:$4 sm:$0xff]   ;;  %v17280_v25 = vld [vmem:[#allocation16 + $0x60] ss:$16 sps:$4 sm:$0xff]   ;;  %v17282_v19 = vld [vmem:[#allocation16 + $0x68] ss:$16 sps:$4 sm:$0xff]  }
 0x94e   :  { %6886 = vmatprep.subr.bf16.mxu0 %v13198_v20  ;;  %6959 = vmatprep.subr.bf16.mxu1 %v13200_v9  ;;  %v13254_v20 = vcombine.high %v6036_v15, %v6040_v23  ;;  %v13256_v9 = vcombine.high %v6037_v36, %v6041_v61  ;;  %v17286_v57 = vld [vmem:[#allocation16 + $0x84] ss:$16 sps:$4 sm:$0xff]   ;;  %v17300_v15 = vld [vmem:[#allocation16 + $0xac] ss:$16 sps:$4 sm:$0xff]   ;;  %v17304_v23 = vld [vmem:[#allocation16 + $0xa0] ss:$16 sps:$4 sm:$0xff]  }
 0x94f   :  { %18818 = vst [vmem:[#allocation64_spill] sm:$0xff] %v17304_v23  ;;  %v17306_v36 = vld [vmem:[#allocation16 + $0xa8] ss:$16 sps:$4 sm:$0xff]   ;;  %v17310_v61 = vld [vmem:[#allocation16 + $0xc4] ss:$16 sps:$4 sm:$0xff]  }
 0x951   :  { %6887 = vmatpush1.bf16.msra.mxu0 %v13197_v21  ;;  %6960 = vmatpush1.bf16.msra.mxu1 %v13199_v53  ;;  %v17128_v21 = vld [vmem:[#allocation15] ss:$16 sps:$4 sm:$0xff]   ;;  %v17131_v53 = vld [vmem:[#allocation15 + $0x8] ss:$16 sps:$4 sm:$0xff]  }
 0x952   :  { %6888 = vmatprep.subr.bf16.mxu0 %v13206_v30  ;;  %6961 = vmatprep.subr.bf16.mxu1 %v13208_v51  ;;  %v17134_v30 = vld [vmem:[#allocation15 + $0x24] ss:$16 sps:$4 sm:$0xff]   ;;  %v17136_v51 = vld [vmem:[#allocation15 + $0x2c] ss:$16 sps:$4 sm:$0xff]  }
 0x955   :  { %6889 = vmatpush1.bf16.msra.mxu0 %v13205_v54  ;;  %6962 = vmatpush1.bf16.msra.mxu1 %v13207_v2  ;;  %v17162_v54 = vld [vmem:[#allocation15 + $0x64] ss:$16 sps:$4 sm:$0xff]   ;;  %v17164_v2 = vld [vmem:[#allocation15 + $0x6c] ss:$16 sps:$4 sm:$0xff]  }
 0x956   :  { %6890 = vmatprep.subr.bf16.mxu0 %v13214_v44  ;;  %6963 = vmatprep.subr.bf16.mxu1 %v13216_v1  ;;  %v17172_v44 = vld [vmem:[#allocation15 + $0x60] ss:$16 sps:$4 sm:$0xff]   ;;  %v17174_v1 = vld [vmem:[#allocation15 + $0x68] ss:$16 sps:$4 sm:$0xff]  }
 0x959   :  { %6891 = vmatpush1.bf16.msra.mxu0 %v13213_v5  ;;  %6964 = vmatpush1.bf16.msra.mxu1 %v13215_v22  ;;  %v17200_v5 = vld [vmem:[#allocation15 + $0xa0] ss:$16 sps:$4 sm:$0xff]   ;;  %v17202_v22 = vld [vmem:[#allocation15 + $0xa8] ss:$16 sps:$4 sm:$0xff]  }
 0x95a   :  { %6892 = vmatprep.subr.bf16.mxu0 %v13222_v13  ;;  %6965 = vmatprep.subr.bf16.mxu1 %v13224_v35  ;;  %v17206_v13 = vld [vmem:[#allocation15 + $0xc4] ss:$16 sps:$4 sm:$0xff]   ;;  %v17208_v35 = vld [vmem:[#allocation15 + $0xcc] ss:$16 sps:$4 sm:$0xff]  }
 0x95d   :  { %6893 = vmatpush1.bf16.msra.mxu0 %v13221_v52  ;;  %6966 = vmatpush1.bf16.msra.mxu1 %v13223_v47  ;;  %v17234_v52 = vld [vmem:[#allocation16 + $0x4] ss:$16 sps:$4 sm:$0xff]   ;;  %v17236_v47 = vld [vmem:[#allocation16 + $0xc] ss:$16 sps:$4 sm:$0xff]  }
 0x95e   :  { %6894 = vmatprep.subr.bf16.mxu0 %v13230_v39  ;;  %6967 = vmatprep.subr.bf16.mxu1 %v13232_v29  ;;  %v17242_v39 = vld [vmem:[#allocation16 + $0x8] ss:$16 sps:$4 sm:$0xff]   ;;  %v17246_v29 = vld [vmem:[#allocation16 + $0x24] ss:$16 sps:$4 sm:$0xff]  }
 0x961   :  { %6895 = vmatpush1.bf16.msra.mxu0 %v13229_v37  ;;  %6968 = vmatpush1.bf16.msra.mxu1 %v13231_v56  ;;  %v17262_v37 = vld [vmem:[#allocation16 + $0x4c] ss:$16 sps:$4 sm:$0xff]   ;;  %v17268_v56 = vld [vmem:[#allocation16 + $0x40] ss:$16 sps:$4 sm:$0xff]  }
 0x962   :  { %6896 = vmatprep.subr.bf16.mxu0 %v13238_v50  ;;  %6969 = vmatprep.subr.bf16.mxu1 %v13240_v55  ;;  %v17270_v50 = vld [vmem:[#allocation16 + $0x48] ss:$16 sps:$4 sm:$0xff]   ;;  %v17274_v55 = vld [vmem:[#allocation16 + $0x64] ss:$16 sps:$4 sm:$0xff]  }
 0x965   :  { %6897 = vmatpush1.bf16.msra.mxu0 %v13237_v27  ;;  %6970 = vmatpush1.bf16.msra.mxu1 %v13239_v0  ;;  %v17288_v27 = vld [vmem:[#allocation16 + $0x8c] ss:$16 sps:$4 sm:$0xff]   ;;  %v17292_v0 = vld [vmem:[#allocation16 + $0x80] ss:$16 sps:$4 sm:$0xff]  }
 0x966   :  { %6898 = vmatprep.subr.bf16.mxu0 %v13246_v24  ;;  %6971 = vmatprep.subr.bf16.mxu1 %v13248_v28  ;;  %v17294_v24 = vld [vmem:[#allocation16 + $0x88] ss:$16 sps:$4 sm:$0xff]   ;;  %v17298_v28 = vld [vmem:[#allocation16 + $0xa4] ss:$16 sps:$4 sm:$0xff]  }
 0x969   :  { %6899 = vmatpush1.bf16.msra.mxu0 %v13245_v26  ;;  %6972 = vmatpush1.bf16.msra.mxu1 %v13247_v11  ;;  %v17312_v26 = vld [vmem:[#allocation16 + $0xcc] ss:$16 sps:$4 sm:$0xff]   ;;  %v17316_v11 = vld [vmem:[#allocation16 + $0xc0] ss:$16 sps:$4 sm:$0xff]  }
 0x96a   :  { %6900 = vmatprep.subr.bf16.mxu0 %v13254_v20  ;;  %6973 = vmatprep.subr.bf16.mxu1 %v13256_v9  ;;  %v17318_v20 = vld [vmem:[#allocation16 + $0xc8] ss:$16 sps:$4 sm:$0xff]   ;;  %v17322_v9 = vld [vmem:[#allocation16 + $0xe4] ss:$16 sps:$4 sm:$0xff]  }
 0x96d   :  { %6901 = vmatpush1.bf16.msra.mxu0 %v13253_v41  ;;  %6974 = vmatpush1.bf16.msra.mxu1 %v13255_v62  ;;  %v17324_v41 = vld [vmem:[#allocation16 + $0xec] ss:$16 sps:$4 sm:$0xff]   ;;  %v17328_v62 = vld [vmem:[#allocation16 + $0xe0] ss:$16 sps:$4 sm:$0xff]  }
 0x96e   :  { %7276 = vmatprep.subr.bf16.mxu0 %v17124_v42  ;;  %7317 = vmatprep.subr.bf16.mxu1 %v17126_v32 }
 0x970   :  { %6903 = vmatmul.mubr.bf16.vlgmr.msra.gmra.mrb[112].mxu0 %v17074_v48  ;;  %6976 = vmatmul.mubr.bf16.vlgmr.msra.gmra.mrb[112].mxu1 %v17074_v48  ;;  %v17156_v48 = vld [vmem:[#allocation15 + $0x40] ss:$16 sps:$4 sm:$0xff]  }
 0x971   :  { %6912 = vmatprep.mubr.bf16.mxu0 %v17082_v3  ;;  %6985 = vmatprep.mubr.bf16.mxu1 %v17082_v3  ;;  %v17158_v3 = vld [vmem:[#allocation15 + $0x48] ss:$16 sps:$4 sm:$0xff]  }
 0x972   :  { %7277 = vmatpush1.bf16.msra.mxu0 %v17128_v21  ;;  %7318 = vmatpush1.bf16.msra.mxu1 %v17131_v53 }
 0x973   :  { %7278 = vmatprep.subr.bf16.mxu0 %v17134_v30  ;;  %7319 = vmatprep.subr.bf16.mxu1 %v17136_v51 }
 0x976   :  { %7279 = vmatpush1.bf16.msra.mxu0 %v17144_v18  ;;  %7320 = vmatpush1.bf16.msra.mxu1 %v17146_v12 }
 0x977   :  { %7280 = vmatprep.subr.bf16.mxu0 %v17150_v17  ;;  %7321 = vmatprep.subr.bf16.mxu1 %v17152_v38 }
 0x978   :  { %6913 = vmatmul.mubr.bf16.gmra.mrb[116].mxu0 %v17094_v58  ;;  %6986 = vmatmul.mubr.bf16.gmra.mrb[116].mxu1 %v17094_v58  ;;  %v17184_v58 = vld [vmem:[#allocation15 + $0x80] ss:$16 sps:$4 sm:$0xff]  }
 0x979   :  { %6922 = vmatprep.mubr.bf16.mxu0 %v17100_v34  ;;  %6995 = vmatprep.mubr.bf16.mxu1 %v17100_v34  ;;  %v17186_v34 = vld [vmem:[#allocation15 + $0x88] ss:$16 sps:$4 sm:$0xff]  }
 0x97a   :  { %7281 = vmatpush1.bf16.msra.mxu0 %v17156_v48  ;;  %7322 = vmatpush1.bf16.msra.mxu1 %v17158_v3 }
 0x97b   :  { %7282 = vmatprep.subr.bf16.mxu0 %v17162_v54  ;;  %7323 = vmatprep.subr.bf16.mxu1 %v17164_v2 }
 0x97e   :  { %7283 = vmatpush1.bf16.msra.mxu0 %v17172_v44  ;;  %7324 = vmatpush1.bf16.msra.mxu1 %v17174_v1 }
 0x97f   :  { %7284 = vmatprep.subr.bf16.mxu0 %v17178_v8  ;;  %7325 = vmatprep.subr.bf16.mxu1 %v17180_v31 }
 0x980   :  { %6923 = vmatmul.mubr.bf16.gmra.mrb[120].mxu0 %v17106_v40  ;;  %6996 = vmatmul.mubr.bf16.gmra.mrb[120].mxu1 %v17106_v40  ;;  %v17212_v40 = vld [vmem:[#allocation15 + $0xc0] ss:$16 sps:$4 sm:$0xff]  }
 0x981   :  { %6932 = vmatprep.mubr.bf16.mxu0 %v17112_v16  ;;  %7005 = vmatprep.mubr.bf16.mxu1 %v17112_v16  ;;  %v17214_v16 = vld [vmem:[#allocation15 + $0xc8] ss:$16 sps:$4 sm:$0xff]  }
 0x982   :  { %7285 = vmatpush1.bf16.msra.mxu0 %v17184_v58  ;;  %7326 = vmatpush1.bf16.msra.mxu1 %v17186_v34 }
 0x983   :  { %7286 = vmatprep.subr.bf16.mxu0 %v17190_v14  ;;  %7327 = vmatprep.subr.bf16.mxu1 %v17192_v6 }
 0x986   :  { %7287 = vmatpush1.bf16.msra.mxu0 %v17200_v5  ;;  %7328 = vmatpush1.bf16.msra.mxu1 %v17202_v22 }
 0x987   :  { %7288 = vmatprep.subr.bf16.mxu0 %v17206_v13  ;;  %7329 = vmatprep.subr.bf16.mxu1 %v17208_v35 }
 0x988   :  { %6933 = vmatmul.mubr.bf16.gmra.mrb[124].mxu0 %v17118_v4  ;;  %7006 = vmatmul.mubr.bf16.gmra.mrb[124].mxu1 %v17118_v4  ;;  %v17240_v4 = vld [vmem:[#allocation16] ss:$16 sps:$4 sm:$0xff]  }
 0x989   :  { %7308 = vmatprep.mubr.bf16.mxu0 %v18704_v60  ;;  %7349 = vmatprep.mubr.bf16.mxu1 %v18704_v60 }
 0x98a   :  { %7289 = vmatpush1.bf16.msra.mxu0 %v17212_v40  ;;  %7330 = vmatpush1.bf16.msra.mxu1 %v17214_v16 }
 0x98b   :  { %7290 = vmatprep.subr.bf16.mxu0 %v17218_v59  ;;  %7331 = vmatprep.subr.bf16.mxu1 %v17220_v43 }
 0x98e   :  { %7291 = vmatpush1.bf16.msra.mxu0 %v17228_v46  ;;  %7332 = vmatpush1.bf16.msra.mxu1 %v17230_v33 }
 0x98f   :  { %7582 = vmatprep.subr.bf16.mxu0 %v17234_v52  ;;  %7623 = vmatprep.subr.bf16.mxu1 %v17236_v47 }
 0x991   :  { %7309 = vmatmul.mubr.bf16.vlgmr.msra.gmra.mrb[128].mxu0 %v18704_v60  ;;  %7350 = vmatmul.mubr.bf16.vlgmr.msra.gmra.mrb[128].mxu1 %v18704_v60 }
 0x992   :  { %7583 = vmatpush1.bf16.msra.mxu0 %v17240_v4  ;;  %7624 = vmatpush1.bf16.msra.mxu1 %v17242_v39 }
 0x993   :  { %7584 = vmatprep.subr.bf16.mxu0 %v17246_v29  ;;  %7625 = vmatprep.subr.bf16.mxu1 %v17248_v63 }
 0x994   :  { %7614 = vmatprep.mubr.bf16.mxu0 %v18704_v60  ;;  %7655 = vmatprep.mubr.bf16.mxu1 %v18704_v60 }
 0x996   :  { %7585 = vmatpush1.bf16.msra.mxu0 %v17254_v7  ;;  %7626 = vmatpush1.bf16.msra.mxu1 %v17256_v45 }
 0x997   :  { %7586 = vmatprep.subr.bf16.mxu0 %v17260_v49  ;;  %7627 = vmatprep.subr.bf16.mxu1 %v17262_v37 }
 0x99a   :  { %7587 = vmatpush1.bf16.msra.mxu0 %v17268_v56  ;;  %7628 = vmatpush1.bf16.msra.mxu1 %v17270_v50 }
 0x99b   :  { %7588 = vmatprep.subr.bf16.mxu0 %v17274_v55  ;;  %7629 = vmatprep.subr.bf16.mxu1 %v17276_v10 }
 0x99e   :  { %7589 = vmatpush1.bf16.msra.mxu0 %v17280_v25  ;;  %7630 = vmatpush1.bf16.msra.mxu1 %v17282_v19 }
 0x99f   :  { %7590 = vmatprep.subr.bf16.mxu0 %v17286_v57  ;;  %7631 = vmatprep.subr.bf16.mxu1 %v17288_v27 }
 0x9a2   :  { %7591 = vmatpush1.bf16.msra.mxu0 %v17292_v0  ;;  %7632 = vmatpush1.bf16.msra.mxu1 %v17294_v24 }
 0x9a3   :  { %7592 = vmatprep.subr.bf16.mxu0 %v17298_v28  ;;  %7633 = vmatprep.subr.bf16.mxu1 %v17300_v15 }
 0x9a6   :  { %7593 = vmatpush1.bf16.msra.mxu0 %v17304_v23  ;;  %7634 = vmatpush1.bf16.msra.mxu1 %v17306_v36  ;;  %v17330_v23 = vld [vmem:[#allocation16 + $0xe8] ss:$16 sps:$4 sm:$0xff]  }
 0x9a7   :  { %7594 = vmatprep.subr.bf16.mxu0 %v17310_v61  ;;  %7635 = vmatprep.subr.bf16.mxu1 %v17312_v26 }
 0x9aa   :  { %7595 = vmatpush1.bf16.msra.mxu0 %v17316_v11  ;;  %7636 = vmatpush1.bf16.msra.mxu1 %v17318_v20 }
 0x9ab   :  { %7596 = vmatprep.subr.bf16.mxu0 %v17322_v9  ;;  %7637 = vmatprep.subr.bf16.mxu1 %v17324_v41 }
 0x9ae   :  { %7597 = vmatpush1.bf16.msra.mxu0 %v17328_v62  ;;  %7638 = vmatpush1.bf16.msra.mxu1 %v17330_v23 }
 0x9af   :  { %7892 = vmatprep.subr.bf16.mxu0 %v17124_v42  ;;  %7933 = vmatprep.subr.bf16.mxu1 %v17126_v32  ;;  %v17377_v42 = vld [vmem:[%s18579_s7] sm:$0xff]  ;;  %s12013_s7 = sld [smem:[#allocation6]] }
 0x9b1   :  { %7615 = vmatmul.mubr.bf16.vlgmr.msra.gmra.mrb[132].mxu0 %v18704_v60  ;;  %7656 = vmatmul.mubr.bf16.vlgmr.msra.gmra.mrb[132].mxu1 %v18704_v60 }
 0x9b2   :  { %7893 = vmatpush1.bf16.msra.mxu0 %v17128_v21  ;;  %7934 = vmatpush1.bf16.msra.mxu1 %v17131_v53  ;;  %v18819_v53 = vld [vmem:[#allocation24_spill] sm:$0xff] }
 0x9b3   :  { %7894 = vmatprep.subr.bf16.mxu0 %v17134_v30  ;;  %7935 = vmatprep.subr.bf16.mxu1 %v17136_v51  ;;  %v18820_v30 = vsub.s32 0, %v18819_v53 }
 0x9b4   :  { %7924 = vmatprep.mubr.bf16.mxu0 %v18704_v60  ;;  %7965 = vmatprep.mubr.bf16.mxu1 %v18704_v60 }
 0x9b5   :  { %v17386_v51 = vrot.slane %v17377_v42, %v18820_v30  ;;  %s13817_s4 = sadd.s32 4294967295, %s12013_s7  ;;  %s12164_s7 = scalar_lea.vmem [#allocation4], %s13870_s25 }
 0x9b6   :  { %7895 = vmatpush1.bf16.msra.mxu0 %v17144_v18  ;;  %7936 = vmatpush1.bf16.msra.mxu1 %v17146_v12  ;;  %v18821_v18 = vsub.s32 2, %v18819_v53  ;;  %s13865_s24 = sshll.u32 %s13817_s4, 4 }
 0x9b7   :  { %7896 = vmatprep.subr.bf16.mxu0 %v17150_v17  ;;  %7937 = vmatprep.subr.bf16.mxu1 %v17152_v38  ;;  %s12017_s26 = scalar_lea.vmem [#allocation4], %s13865_s24 }
 0x9b8   :  { %v17391_v12 = vrot.slane %v17377_v42, %v18821_v18 }
 0x9ba   :  { %7897 = vmatpush1.bf16.msra.mxu0 %v17156_v48  ;;  %7938 = vmatpush1.bf16.msra.mxu1 %v17158_v3  ;;  %v18822_v48 = vsub.s32 1, %v18819_v53 }
 0x9bb   :  { %7898 = vmatprep.subr.bf16.mxu0 %v17162_v54  ;;  %7939 = vmatprep.subr.bf16.mxu1 %v17164_v2  ;;  %v18823_v54 = vsub.s32 3, %v18819_v53 }
 0x9bc   :  { %v17400_v3 = vrot.slane %v17377_v42, %v18822_v48 }
 0x9bd   :  { %v17405_v2 = vrot.slane %v17377_v42, %v18823_v54 }
 0x9be   :  { %7899 = vmatpush1.bf16.msra.mxu0 %v17172_v44  ;;  %7940 = vmatpush1.bf16.msra.mxu1 %v17174_v1 }
 0x9bf   :  { %7900 = vmatprep.subr.bf16.mxu0 %v17178_v8  ;;  %7941 = vmatprep.subr.bf16.mxu1 %v17180_v31 }
 0x9c2   :  { %7901 = vmatpush1.bf16.msra.mxu0 %v17184_v58  ;;  %7942 = vmatpush1.bf16.msra.mxu1 %v17186_v34 }
 0x9c3   :  { %7902 = vmatprep.subr.bf16.mxu0 %v17190_v14  ;;  %7943 = vmatprep.subr.bf16.mxu1 %v17192_v6 }
 0x9c6   :  { %7903 = vmatpush1.bf16.msra.mxu0 %v17200_v5  ;;  %7944 = vmatpush1.bf16.msra.mxu1 %v17202_v22 }
 0x9c7   :  { %7904 = vmatprep.subr.bf16.mxu0 %v17206_v13  ;;  %7945 = vmatprep.subr.bf16.mxu1 %v17208_v35 }
 0x9ca   :  { %7905 = vmatpush1.bf16.msra.mxu0 %v17212_v40  ;;  %7946 = vmatpush1.bf16.msra.mxu1 %v17214_v16 }
 0x9cb   :  { %7906 = vmatprep.subr.bf16.mxu0 %v17218_v59  ;;  %7947 = vmatprep.subr.bf16.mxu1 %v17220_v43 }
 0x9ce   :  { %7907 = vmatpush1.bf16.msra.mxu0 %v17228_v46  ;;  %7948 = vmatpush1.bf16.msra.mxu1 %v17230_v33 }
 0x9cf   :  { %8199 = vmatprep.subr.bf16.mxu0 %v17234_v52  ;;  %8240 = vmatprep.subr.bf16.mxu1 %v17236_v47 }
 0xa03   :  { %v17379_v32 = vpop.f32.mrb[96].mxu0  ;;  %v17381_v21 = vpop.f32.mrb[96].mxu1 }
 0xa04   :  { %v17393_v17 = vpop.f32.mrb[97].mxu0  ;;  %v17395_v38 = vpop.f32.mrb[97].mxu1 }
 0xa05   :  { %v6762_v44 = vpop.f32.mrb[98].mxu0  ;;  %v6835_v1 = vpop.f32.mrb[98].mxu1 }
 0xa06   :  { %v17408_v8 = vadd.f32 %v6762_v44, %v17386_v51  ;;  %v17411_v31 = vadd.f32 %v6835_v1, %v17391_v12  ;;  %v6764_v58 = vpop.f32.mrb[99].mxu0  ;;  %v6837_v34 = vpop.f32.mrb[99].mxu1 }
 0xa07   :  { %v17414_v14 = vadd.f32 %v6764_v58, %v17400_v3  ;;  %v17417_v6 = vadd.f32 %v6837_v34, %v17405_v2 }
 0xa09   :  { %18824 = vst [vmem:[#allocation67_spill] sm:$0xff] %v17417_v6 }
 0xa0b   :  { %v6768_v5 = vpop.f32.mrb[100].mxu0  ;;  %v6841_v22 = vpop.f32.mrb[100].mxu1 }
 0xa0c   :  { %v17420_v13 = vadd.f32 %v6768_v5, %v17386_v51  ;;  %v17423_v35 = vadd.f32 %v6841_v22, %v17391_v12  ;;  %v6770_v40 = vpop.f32.mrb[101].mxu0  ;;  %v6843_v16 = vpop.f32.mrb[101].mxu1 }
 0xa0d   :  { %v17426_v59 = vadd.f32 %v6770_v40, %v17400_v3  ;;  %v17429_v43 = vadd.f32 %v6843_v16, %v17405_v2  ;;  %v6772_v46 = vpop.f32.mrb[102].mxu0  ;;  %v6845_v33 = vpop.f32.mrb[102].mxu1 }
 0xa0e   :  { %18825 = vst [vmem:[#allocation31_spill] sm:$0xff] %v17420_v13  ;;  %18826 = vst [vmem:[#allocation33_spill] sm:$0xff] %v17423_v35  ;;  %v17432_v52 = vadd.f32 %v6772_v46, %v17386_v51  ;;  %v17435_v47 = vadd.f32 %v6845_v33, %v17391_v12  ;;  %v6774_v30 = vpop.f32.mrb[103].mxu0  ;;  %v6847_v18 = vpop.f32.mrb[103].mxu1 }
 0xa0f   :  { %18827 = vst [vmem:[#allocation32_spill] sm:$0xff] %v17426_v59  ;;  %18828 = vst [vmem:[#allocation35_spill] sm:$0xff] %v17429_v43  ;;  %v17438_v48 = vadd.f32 %v6774_v30, %v17400_v3  ;;  %v17441_v54 = vadd.f32 %v6847_v18, %v17405_v2 }
 0xa10   :  { %18829 = vst [vmem:[#allocation58_spill] sm:$0xff] %v17432_v52  ;;  %18830 = vst [vmem:[#allocation61_spill] sm:$0xff] %v17435_v47 }
 0xa11   :  { %18831 = vst [vmem:[#allocation60_spill] sm:$0xff] %v17438_v48  ;;  %18832 = vst [vmem:[#allocation62_spill] sm:$0xff] %v17441_v54 }
 0xa13   :  { %v6778_v44 = vpop.f32.mrb[104].mxu0  ;;  %v6851_v1 = vpop.f32.mrb[104].mxu1 }
 0xa14   :  { %v17444_v58 = vadd.f32 %v6778_v44, %v17386_v51  ;;  %v17447_v34 = vadd.f32 %v6851_v1, %v17391_v12  ;;  %v6780_v5 = vpop.f32.mrb[105].mxu0  ;;  %v6853_v22 = vpop.f32.mrb[105].mxu1 }
 0xa15   :  { %v17450_v40 = vadd.f32 %v6780_v5, %v17400_v3  ;;  %v17453_v16 = vadd.f32 %v6853_v22, %v17405_v2  ;;  %v6782_v46 = vpop.f32.mrb[106].mxu0  ;;  %v6855_v33 = vpop.f32.mrb[106].mxu1 }
 0xa16   :  { %18833 = vst [vmem:[#allocation69_spill] sm:$0xff] %v17444_v58  ;;  %18834 = vst [vmem:[#allocation68_spill] sm:$0xff] %v17447_v34  ;;  %v17456_v30 = vadd.f32 %v6782_v46, %v17386_v51  ;;  %v17459_v18 = vadd.f32 %v6855_v33, %v17391_v12  ;;  %v6784_v44 = vpop.f32.mrb[107].mxu0  ;;  %v6857_v58 = vpop.f32.mrb[107].mxu1 }
 0xa17   :  { %18835 = vst [vmem:[#allocation70_spill] sm:$0xff] %v17450_v40  ;;  %18836 = vst [vmem:[#allocation74_spill] sm:$0xff] %v17453_v16  ;;  %v17462_v1 = vadd.f32 %v6784_v44, %v17400_v3  ;;  %v17465_v34 = vadd.f32 %v6857_v58, %v17405_v2 }
 0xa18   :  { %18837 = vst [vmem:[#allocation75_spill] sm:$0xff] %v17456_v30  ;;  %18838 = vst [vmem:[#allocation76_spill] sm:$0xff] %v17459_v18 }
 0xa19   :  { %18839 = vst [vmem:[#allocation77_spill] sm:$0xff] %v17462_v1  ;;  %18840 = vst [vmem:[#allocation34_spill] sm:$0xff] %v17465_v34 }
 0xa1b   :  { %v6788_v5 = vpop.f32.mrb[108].mxu0  ;;  %v6861_v40 = vpop.f32.mrb[108].mxu1 }
 0xa1c   :  { %v17468_v22 = vadd.f32 %v6788_v5, %v17386_v51  ;;  %v17471_v16 = vadd.f32 %v6861_v40, %v17391_v12  ;;  %v6790_v46 = vpop.f32.mrb[109].mxu0  ;;  %v6863_v30 = vpop.f32.mrb[109].mxu1 }
 0xa1d   :  { %v17474_v33 = vadd.f32 %v6790_v46, %v17400_v3  ;;  %v17477_v18 = vadd.f32 %v6863_v30, %v17405_v2  ;;  %v6792_v44 = vpop.f32.mrb[110].mxu0  ;;  %v6865_v1 = vpop.f32.mrb[110].mxu1  ;;  %v18849_v46 = vsub.s32 4, %v18819_v53 }
 0xa1e   :  { %18841 = vst [vmem:[#allocation37_spill] sm:$0xff] %v17468_v22  ;;  %18842 = vst [vmem:[#allocation36_spill] sm:$0xff] %v17471_v16  ;;  %v17480_v58 = vadd.f32 %v6792_v44, %v17386_v51  ;;  %v17483_v34 = vadd.f32 %v6865_v1, %v17391_v12  ;;  %v6794_v5 = vpop.f32.mrb[111].mxu0  ;;  %v6867_v22 = vpop.f32.mrb[111].mxu1  ;;  %v18851_v1 = vsub.s32 5, %v18819_v53 }
 0xa1f   :  { %18843 = vst [vmem:[#allocation38_spill] sm:$0xff] %v17474_v33  ;;  %18844 = vst [vmem:[#allocation55_spill] sm:$0xff] %v17477_v18  ;;  %v17486_v40 = vadd.f32 %v6794_v5, %v17400_v3  ;;  %v17489_v16 = vadd.f32 %v6867_v22, %v17405_v2  ;;  %v17494_v30 = vrot.slane %v17377_v42, %v18849_v46  ;;  %v18850_v18 = vsub.s32 6, %v18819_v53 }
 0xa20   :  { %18845 = vst [vmem:[#allocation57_spill] sm:$0xff] %v17480_v58  ;;  %18846 = vst [vmem:[#allocation56_spill] sm:$0xff] %v17483_v34  ;;  %v17504_v34 = vrot.slane %v17377_v42, %v18851_v1  ;;  %v18852_v5 = vsub.s32 7, %v18819_v53 }
 0xa21   :  { %18847 = vst [vmem:[#allocation59_spill] sm:$0xff] %v17486_v40  ;;  %18848 = vst [vmem:[#allocation39_spill] sm:$0xff] %v17489_v16  ;;  %v17499_v44 = vrot.slane %v17377_v42, %v18850_v18 }
 0xa22   :  { %v17509_v22 = vrot.slane %v17377_v42, %v18852_v5 }
 0xa43   :  { %v6904_v16 = vpop.f32.mrb[112].mxu0  ;;  %v6977_v40 = vpop.f32.mrb[112].mxu1 }
 0xa44   :  { %v17512_v46 = vadd.f32 %v6904_v16, %v17494_v30  ;;  %v17515_v58 = vadd.f32 %v6977_v40, %v17499_v44  ;;  %v6906_v18 = vpop.f32.mrb[113].mxu0  ;;  %v6979_v33 = vpop.f32.mrb[113].mxu1 }
 0xa45   :  { %v17518_v54 = vadd.f32 %v6906_v18, %v17504_v34  ;;  %v17521_v1 = vadd.f32 %v6979_v33, %v17509_v22  ;;  %v6908_v53 = vpop.f32.mrb[114].mxu0  ;;  %v6981_v48 = vpop.f32.mrb[114].mxu1 }
 0xa46   :  { %18853 = vst [vmem:[#allocation41_spill] sm:$0xff] %v17512_v46  ;;  %18854 = vst [vmem:[#allocation40_spill] sm:$0xff] %v17515_v58  ;;  %v17524_v42 = vadd.f32 %v6908_v53, %v17494_v30  ;;  %v17527_v5 = vadd.f32 %v6981_v48, %v17499_v44  ;;  %v6910_v16 = vpop.f32.mrb[115].mxu0  ;;  %v6983_v46 = vpop.f32.mrb[115].mxu1 }
 0xa47   :  { %18855 = vst [vmem:[#allocation43_spill] sm:$0xff] %v17518_v54  ;;  %18856 = vst [vmem:[#allocation50_spill] sm:$0xff] %v17521_v1  ;;  %v17530_v40 = vadd.f32 %v6910_v16, %v17504_v34  ;;  %v17533_v58 = vadd.f32 %v6983_v46, %v17509_v22 }
 0xa48   :  { %18857 = vst [vmem:[#allocation53_spill] sm:$0xff] %v17524_v42  ;;  %18858 = vst [vmem:[#allocation52_spill] sm:$0xff] %v17527_v5 }
 0xa49   :  { %18859 = vst [vmem:[#allocation54_spill] sm:$0xff] %v17530_v40  ;;  %18860 = vst [vmem:[#allocation82_spill] sm:$0xff] %v17533_v58 }
 0xa4b   :  { %v6914_v18 = vpop.f32.mrb[116].mxu0  ;;  %v6987_v54 = vpop.f32.mrb[116].mxu1 }
 0xa4c   :  { %v17536_v33 = vadd.f32 %v6914_v18, %v17494_v30  ;;  %v17539_v1 = vadd.f32 %v6987_v54, %v17499_v44  ;;  %v6916_v53 = vpop.f32.mrb[117].mxu0  ;;  %v6989_v42 = vpop.f32.mrb[117].mxu1 }
 0xa4d   :  { %v17542_v48 = vadd.f32 %v6916_v53, %v17504_v34  ;;  %v17545_v5 = vadd.f32 %v6989_v42, %v17509_v22  ;;  %v6918_v16 = vpop.f32.mrb[118].mxu0  ;;  %v6991_v40 = vpop.f32.mrb[118].mxu1 }
 0xa4e   :  { %18861 = vst [vmem:[#allocation26_spill] sm:$0xff] %v17536_v33  ;;  %18862 = vst [vmem:[#allocation29_spill] sm:$0xff] %v17539_v1  ;;  %v17548_v46 = vadd.f32 %v6918_v16, %v17494_v30  ;;  %v17551_v58 = vadd.f32 %v6991_v40, %v17499_v44  ;;  %v6920_v18 = vpop.f32.mrb[119].mxu0  ;;  %v6993_v33 = vpop.f32.mrb[119].mxu1 }
 0xa4f   :  { %18863 = vst [vmem:[#allocation28_spill] sm:$0xff] %v17542_v48  ;;  %18864 = vst [vmem:[#allocation30_spill] sm:$0xff] %v17545_v5  ;;  %v17554_v54 = vadd.f32 %v6920_v18, %v17504_v34  ;;  %v17557_v1 = vadd.f32 %v6993_v33, %v17509_v22 }
 0xa50   :  { %18865 = vst [vmem:[#allocation63_spill] sm:$0xff] %v17548_v46  ;;  %18866 = vst [vmem:[#allocation65_spill] sm:$0xff] %v17551_v58 }
 0xa51   :  { %18867 = vst [vmem:[#allocation42_spill] sm:$0xff] %v17554_v54  ;;  %18868 = vst [vmem:[#allocation45_spill] sm:$0xff] %v17557_v1 }
 0xa53   :  { %v6924_v53 = vpop.f32.mrb[120].mxu0  ;;  %v6997_v48 = vpop.f32.mrb[120].mxu1 }
 0xa54   :  { %v17560_v42 = vadd.f32 %v6924_v53, %v17494_v30  ;;  %v17563_v5 = vadd.f32 %v6997_v48, %v17499_v44  ;;  %v6926_v16 = vpop.f32.mrb[121].mxu0  ;;  %v6999_v46 = vpop.f32.mrb[121].mxu1 }
 0xa55   :  { %v17566_v40 = vadd.f32 %v6926_v16, %v17504_v34  ;;  %v17569_v58 = vadd.f32 %v6999_v46, %v17509_v22  ;;  %v6928_v18 = vpop.f32.mrb[122].mxu0  ;;  %v7001_v54 = vpop.f32.mrb[122].mxu1 }
 0xa56   :  { %18869 = vst [vmem:[#allocation44_spill] sm:$0xff] %v17560_v42  ;;  %18870 = vst [vmem:[#allocation46_spill] sm:$0xff] %v17563_v5  ;;  %v17572_v33 = vadd.f32 %v6928_v18, %v17494_v30  ;;  %v17575_v1 = vadd.f32 %v7001_v54, %v17499_v44  ;;  %v6930_v53 = vpop.f32.mrb[123].mxu0  ;;  %v7003_v42 = vpop.f32.mrb[123].mxu1 }
 0xa57   :  { %18871 = vst [vmem:[#allocation47_spill] sm:$0xff] %v17566_v40  ;;  %18872 = vst [vmem:[#allocation49_spill] sm:$0xff] %v17569_v58  ;;  %v17578_v48 = vadd.f32 %v6930_v53, %v17504_v34  ;;  %v17581_v5 = vadd.f32 %v7003_v42, %v17509_v22 }
 0xa58   :  { %18873 = vst [vmem:[#allocation48_spill] sm:$0xff] %v17572_v33  ;;  %18874 = vst [vmem:[#allocation51_spill] sm:$0xff] %v17575_v1  ;;  %v6759_v1 = vadd.f32 %v17379_v32, %v17386_v51 }
 0xa59   :  { %18875 = vst [vmem:[#allocation71_spill] sm:$0xff] %v17578_v48  ;;  %18876 = vst [vmem:[#allocation73_spill] sm:$0xff] %v17581_v5 }
 0xa5b   :  { %v6934_v16 = vpop.f32.mrb[124].mxu0  ;;  %v7007_v40 = vpop.f32.mrb[124].mxu1 }
 0xa5c   :  { %v17584_v46 = vadd.f32 %v6934_v16, %v17494_v30  ;;  %v17587_v58 = vadd.f32 %v7007_v40, %v17499_v44  ;;  %v6936_v18 = vpop.f32.mrb[125].mxu0  ;;  %v7009_v47 = vpop.f32.mrb[125].mxu1  ;;  %v6832_v16 = vadd.f32 %v17381_v21, %v17391_v12  ;;  %v6761_v40 = vadd.f32 %v17393_v17, %v17400_v3 }
 0xa5d   :  { %v17590_v54 = vadd.f32 %v6936_v18, %v17504_v34  ;;  %v17593_v52 = vadd.f32 %v7009_v47, %v17509_v22  ;;  %v6938_v53 = vpop.f32.mrb[126].mxu0  ;;  %v7011_v48 = vpop.f32.mrb[126].mxu1  ;;  %v6834_v18 = vadd.f32 %v17395_v38, %v17405_v2 }
 0xa5e   :  { %18877 = vst [vmem:[#allocation80_spill] sm:$0xff] %v17584_v46  ;;  %18878 = vst [vmem:[#allocation25_spill] sm:$0xff] %v17587_v58  ;;  %v6940_v42 = vpop.f32.mrb[127].mxu0  ;;  %v7013_v5 = vpop.f32.mrb[127].mxu1 }
 0xa5f   :  { %18879 = vst [vmem:[#allocation66_spill] sm:$0xff] %v17590_v54  ;;  %18880 = vst [vmem:[#allocation78_spill] sm:$0xff] %v17593_v52 }
 0xa64   :  { %v7310_v33 = vpop.f32.mrb[128].mxu0  ;;  %v7351_v43 = vpop.f32.mrb[128].mxu1 }
 0xa65   :  { %v7358_v47 = vadd.f32 %v7310_v33, %v6759_v1  ;;  %v7360_v59 = vadd.f32 %v7351_v43, %v6832_v16  ;;  %v7312_v35 = vpop.f32.mrb[129].mxu0  ;;  %v7353_v13 = vpop.f32.mrb[129].mxu1 }
 0xa66   :  { %v7359_v52 = vadd.f32 %v7312_v35, %v6761_v40  ;;  %v7361_v54 = vadd.f32 %v7353_v13, %v6834_v18  ;;  %v7314_v58 = vpop.f32.mrb[130].mxu0  ;;  %v7355_v46 = vpop.f32.mrb[130].mxu1 }
 0xa67   :  { %v13289_v32 = vmul.f32 -1.442695, %v7358_v47  ;;  %v7315_v51 = vpop.f32.mrb[131].mxu0  ;;  %v7356_v6 = vpop.f32.mrb[131].mxu1  ;;  %v13291_v12 = vmul.f32 -1.442695, %v7360_v59  ;;  %v6941_v59 = vadd.f32 %v6940_v42, %v17504_v34 }
 0xa68   :  { %v13290_v21 = vmul.f32 -1.442695, %v7359_v52  ;;  %v6939_v6 = vadd.f32 %v6938_v53, %v17494_v30  ;;  %v7012_v52 = vadd.f32 %v7011_v48, %v17499_v44 }
 0xa69   :  { %14985 = vpow2.f32 %v13289_v32 }
 0xa6a   :  { %14987 = vpow2.f32 %v13290_v21 }
 0xa6b   :  { %14989 = vtanh.f32 %v7361_v54  ;;  %v7014_v54 = vadd.f32 %v7013_v5, %v17509_v22 }
 0xa6c   :  { %14991 = vpow2.f32 %v13291_v12 }
 0xa73   :  { %v14986_v17 = vpop.eup %14985 }
 0xa74   :  { %v7371_v3 = vadd.f32 1.0, %v14986_v17  ;;  %v14988_v38 = vpop.eup %14987 }
 0xa75   :  { %v7372_v2 = vadd.f32 1.0, %v14988_v38  ;;  %v14990_v43 = vpop.eup %14989 }
 0xa76   :  { %14993 = vrcp.f32 %v7371_v3  ;;  %v14992_v35 = vpop.eup %14991 }
 0xa77   :  { %14995 = vrcp.f32 %v7372_v2  ;;  %v7373_v33 = vadd.f32 1.0, %v14992_v35 }
 0xa79   :  { %14997 = vrcp.f32 %v7373_v33 }
 0xa80   :  { %v14994_v13 = vpop.eup %14993 }
 0xa81   :  { %v7382_v58 = vmul.f32 %v14994_v13, %v14990_v43  ;;  %v14996_v1 = vpop.eup %14995 }
 0xa82   :  { %v7381_v46 = vmul.f32 0.0, %v14996_v1 }
 0xa83   :  { %v14998_v22 = vpop.eup %14997 }
 0xa84   :  { %v7616_v16 = vpop.f32.mrb[132].mxu0  ;;  %v7657_v40 = vpop.f32.mrb[132].mxu1  ;;  %v17607_v18 = vadd.f32 %v7382_v58, %v7381_v46  ;;  %v17707_v46 = vld [vmem:[#allocation15 + $0xa4] ss:$16 sps:$4 sm:$0xff]  }
 0xa85   :  { %v7664_v47 = vadd.f32 %v7616_v16, %v6939_v6  ;;  %v7666_v32 = vadd.f32 %v7657_v40, %v7012_v52  ;;  %v7618_v51 = vpop.f32.mrb[133].mxu0  ;;  %v7659_v21 = vpop.f32.mrb[133].mxu1  ;;  %v17699_v6 = vld [vmem:[#allocation15 + $0x80] ss:$16 sps:$4 sm:$0xff]   ;;  %v17701_v52 = vld [vmem:[#allocation15 + $0x88] ss:$16 sps:$4 sm:$0xff]  }
 0xa86   :  { %v7665_v12 = vadd.f32 %v7618_v51, %v6941_v59  ;;  %v7667_v17 = vadd.f32 %v7659_v21, %v7014_v54  ;;  %v7620_v3 = vpop.f32.mrb[134].mxu0  ;;  %v7661_v30 = vpop.f32.mrb[134].mxu1  ;;  %14999 = vtanh.f32 %v17607_v18  ;;  %v17709_v59 = vld [vmem:[#allocation15 + $0xac] ss:$16 sps:$4 sm:$0xff]   ;;  %v17711_v54 = vld [vmem:[#allocation15 + $0xa0] ss:$16 sps:$4 sm:$0xff]  }
 0xa87   :  { %v13324_v44 = vmul.f32 -1.442695, %v7664_v47  ;;  %v7621_v48 = vpop.f32.mrb[135].mxu0  ;;  %v7662_v34 = vpop.f32.mrb[135].mxu1  ;;  %v13326_v42 = vmul.f32 -1.442695, %v7666_v32 }
 0xa88   :  { %v13325_v53 = vmul.f32 -1.442695, %v7665_v12  ;;  %v17713_v16 = vld [vmem:[#allocation15 + $0xa8] ss:$16 sps:$4 sm:$0xff]   ;;  %v17719_v40 = vld [vmem:[#allocation15 + $0xc4] ss:$16 sps:$4 sm:$0xff]  }
 0xa89   :  { %15001 = vpow2.f32 %v13324_v44  ;;  %v17721_v47 = vld [vmem:[#allocation15 + $0xcc] ss:$16 sps:$4 sm:$0xff]   ;;  %v17723_v32 = vld [vmem:[#allocation15 + $0xc0] ss:$16 sps:$4 sm:$0xff]   ;;  %v17725_v51 = vld [vmem:[#allocation15 + $0xc8] ss:$16 sps:$4 sm:$0xff]  }
 0xa8a   :  { %15003 = vpow2.f32 %v13325_v53  ;;  %v17731_v21 = vld [vmem:[#allocation15 + $0xe4] ss:$16 sps:$4 sm:$0xff]   ;;  %v17733_v12 = vld [vmem:[#allocation15 + $0xec] ss:$16 sps:$4 sm:$0xff]   ;;  %v17737_v3 = vld [vmem:[#allocation15 + $0xe8] ss:$16 sps:$4 sm:$0xff]  }
 0xa8b   :  { %15005 = vtanh.f32 %v7667_v17  ;;  %v17735_v17 = vld [vmem:[#allocation15 + $0xe0] ss:$16 sps:$4 sm:$0xff]   ;;  %v17743_v30 = vld [vmem:[#allocation16 + $0x4] ss:$16 sps:$4 sm:$0xff]   ;;  %v17745_v44 = vld [vmem:[#allocation16 + $0xc] ss:$16 sps:$4 sm:$0xff]  }
 0xa8c   :  { %15007 = vpow2.f32 %v13326_v42 }
 0xa90   :  { %v15000_v5 = vpop.eup %14999 }
 0xa91   :  { %v7385_v38 = vmul.f32 %v15000_v5, %v14998_v22 }
 0xa93   :  { %v15002_v2 = vpop.eup %15001  ;;  %7692 = vst [vmem:[#allocation4] sm:$0xff] %v7385_v38  ;;  %v7699_v35 = vpack.c.bf16 %v7385_v38, %v7385_v38 }
 0xa94   :  { %v7677_v43 = vadd.f32 1.0, %v15002_v2  ;;  %v15004_v13 = vpop.eup %15003  ;;  %v18882_v2 = vld [vmem:[#allocation67_spill] sm:$0xff] }
 0xa95   :  { %v7678_v58 = vadd.f32 1.0, %v15004_v13  ;;  %7925 = vmatmul.mubr.bf16.vlgmr.msra.gmra.mrb[136].mxu0 %v7699_v35  ;;  %7966 = vmatmul.mubr.bf16.vlgmr.msra.gmra.mrb[136].mxu1 %v7699_v35 }
 0xa96   :  { %15009 = vrcp.f32 %v7677_v43  ;;  %8200 = vmatpush1.bf16.msra.mxu0 %v17240_v4  ;;  %8241 = vmatpush1.bf16.msra.mxu1 %v17242_v39  ;;  %v15006_v4 = vpop.eup %15005 }
 0xa97   :  { %15011 = vrcp.f32 %v7678_v58  ;;  %8201 = vmatprep.subr.bf16.mxu0 %v17246_v29  ;;  %8242 = vmatprep.subr.bf16.mxu1 %v17248_v63  ;;  %v15008_v1 = vpop.eup %15007 }
 0xa98   :  { %8231 = vmatprep.mubr.bf16.mxu0 %v18704_v60  ;;  %8272 = vmatprep.mubr.bf16.mxu1 %v18704_v60 }
 0xa9a   :  { %8202 = vmatpush1.bf16.msra.mxu0 %v17254_v7  ;;  %8243 = vmatpush1.bf16.msra.mxu1 %v17256_v45  ;;  %v7679_v7 = vadd.f32 1.0, %v15008_v1 }
 0xa9b   :  { %8203 = vmatprep.subr.bf16.mxu0 %v17260_v49  ;;  %8244 = vmatprep.subr.bf16.mxu1 %v17262_v37  ;;  %v18881_v49 = vld [vmem:[#allocation64_spill] sm:$0xff] }
 0xa9c   :  { %15013 = vrcp.f32 %v7679_v7 }
 0xa9e   :  { %8204 = vmatpush1.bf16.msra.mxu0 %v17268_v56  ;;  %8245 = vmatpush1.bf16.msra.mxu1 %v17270_v50 }
 0xa9f   :  { %8205 = vmatprep.subr.bf16.mxu0 %v17274_v55  ;;  %8246 = vmatprep.subr.bf16.mxu1 %v17276_v10  ;;  %v17647_v10 = vld [vmem:[#allocation15 + $0x4] ss:$16 sps:$4 sm:$0xff]  }
 0xaa0   :  { %v15010_v39 = vpop.eup %15009 }
 0xaa1   :  { %v7688_v29 = vmul.f32 %v15010_v39, %v15006_v4  ;;  %v15012_v63 = vpop.eup %15011 }
 0xaa2   :  { %v7687_v33 = vmul.f32 0.0, %v15012_v63  ;;  %8206 = vmatpush1.bf16.msra.mxu0 %v17280_v25  ;;  %8247 = vmatpush1.bf16.msra.mxu1 %v17282_v19  ;;  %v17649_v25 = vld [vmem:[#allocation15 + $0xc] ss:$16 sps:$4 sm:$0xff]   ;;  %v17651_v19 = vld [vmem:[#allocation15] ss:$16 sps:$4 sm:$0xff]  }
 0xaa3   :  { %8207 = vmatprep.subr.bf16.mxu0 %v17286_v57  ;;  %8248 = vmatprep.subr.bf16.mxu1 %v17288_v27  ;;  %v17653_v57 = vld [vmem:[#allocation15 + $0x8] ss:$16 sps:$4 sm:$0xff]   ;;  %v17659_v27 = vld [vmem:[#allocation15 + $0x24] ss:$16 sps:$4 sm:$0xff]  }
 0xaa4   :  { %v17628_v45 = vadd.f32 %v7688_v29, %v7687_v33 }
 0xaa6   :  { %15015 = vtanh.f32 %v17628_v45  ;;  %8208 = vmatpush1.bf16.msra.mxu0 %v17292_v0  ;;  %8249 = vmatpush1.bf16.msra.mxu1 %v17294_v24  ;;  %v15014_v37 = vpop.eup %15013  ;;  %v17661_v0 = vld [vmem:[#allocation15 + $0x2c] ss:$16 sps:$4 sm:$0xff]   ;;  %v17663_v24 = vld [vmem:[#allocation15 + $0x20] ss:$16 sps:$4 sm:$0xff]  }
 0xaa7   :  { %8209 = vmatprep.subr.bf16.mxu0 %v17298_v28  ;;  %8250 = vmatprep.subr.bf16.mxu1 %v17300_v15  ;;  %v17665_v28 = vld [vmem:[#allocation15 + $0x28] ss:$16 sps:$4 sm:$0xff]   ;;  %v17671_v15 = vld [vmem:[#allocation15 + $0x44] ss:$16 sps:$4 sm:$0xff]  }
 0xaaa   :  { %8210 = vmatpush1.bf16.msra.mxu0 %v18881_v49  ;;  %8251 = vmatpush1.bf16.msra.mxu1 %v17306_v36  ;;  %v17675_v36 = vld [vmem:[#allocation15 + $0x40] ss:$16 sps:$4 sm:$0xff]  }
 0xaab   :  { %8211 = vmatprep.subr.bf16.mxu0 %v17310_v61  ;;  %8252 = vmatprep.subr.bf16.mxu1 %v17312_v26  ;;  %v17677_v61 = vld [vmem:[#allocation15 + $0x48] ss:$16 sps:$4 sm:$0xff]   ;;  %v17683_v26 = vld [vmem:[#allocation15 + $0x64] ss:$16 sps:$4 sm:$0xff]  }
 0xaae   :  { %8212 = vmatpush1.bf16.msra.mxu0 %v17316_v11  ;;  %8253 = vmatpush1.bf16.msra.mxu1 %v17318_v20  ;;  %v17685_v11 = vld [vmem:[#allocation15 + $0x6c] ss:$16 sps:$4 sm:$0xff]   ;;  %v17687_v20 = vld [vmem:[#allocation15 + $0x60] ss:$16 sps:$4 sm:$0xff]  }
 0xaaf   :  { %8213 = vmatprep.subr.bf16.mxu0 %v17322_v9  ;;  %8254 = vmatprep.subr.bf16.mxu1 %v17324_v41  ;;  %v17689_v9 = vld [vmem:[#allocation15 + $0x68] ss:$16 sps:$4 sm:$0xff]   ;;  %v17695_v41 = vld [vmem:[#allocation15 + $0x84] ss:$16 sps:$4 sm:$0xff]  }
 0xab0   :  { %v15016_v56 = vpop.eup %15015 }
 0xab1   :  { %v7691_v50 = vmul.f32 %v15016_v56, %v15014_v37 }
 0xab2   :  { %8214 = vmatpush1.bf16.msra.mxu0 %v17328_v62  ;;  %8255 = vmatpush1.bf16.msra.mxu1 %v17330_v23  ;;  %v17673_v23 = vld [vmem:[#allocation15 + $0x4c] ss:$16 sps:$4 sm:$0xff]  }
 0xab3   :  { %7694 = vst [vmem:[#allocation4 + $0x78] sm:$0xff] %v7691_v50  ;;  %v8006_v55 = vpack.c.bf16 %v7691_v50, %v7691_v50  ;;  %8510 = vmatprep.subr.bf16.mxu0 %v17647_v10  ;;  %8551 = vmatprep.subr.bf16.mxu1 %v17649_v25  ;;  %v17697_v62 = vld [vmem:[#allocation15 + $0x8c] ss:$16 sps:$4 sm:$0xff]  }
 0xab5   :  { %8232 = vmatmul.mubr.bf16.vlgmr.msra.gmra.mrb[140].mxu0 %v8006_v55  ;;  %8273 = vmatmul.mubr.bf16.vlgmr.msra.gmra.mrb[140].mxu1 %v8006_v55 }
 0xab6   :  { %8542 = vmatprep.mubr.bf16.mxu0 %v18704_v60  ;;  %8583 = vmatprep.mubr.bf16.mxu1 %v18704_v60 }
 0xab7   :  { %8511 = vmatpush1.bf16.msra.mxu0 %v17651_v19  ;;  %8552 = vmatpush1.bf16.msra.mxu1 %v17653_v57 }
 0xab8   :  { %8512 = vmatprep.subr.bf16.mxu0 %v17659_v27  ;;  %8553 = vmatprep.subr.bf16.mxu1 %v17661_v0 }
 0xabb   :  { %8513 = vmatpush1.bf16.msra.mxu0 %v17663_v24  ;;  %8554 = vmatpush1.bf16.msra.mxu1 %v17665_v28 }
 0xabc   :  { %8514 = vmatprep.subr.bf16.mxu0 %v17671_v15  ;;  %8555 = vmatprep.subr.bf16.mxu1 %v17673_v23 }
 0xabf   :  { %8515 = vmatpush1.bf16.msra.mxu0 %v17675_v36  ;;  %8556 = vmatpush1.bf16.msra.mxu1 %v17677_v61 }
 0xac0   :  { %8516 = vmatprep.subr.bf16.mxu0 %v17683_v26  ;;  %8557 = vmatprep.subr.bf16.mxu1 %v17685_v11 }
 0xac3   :  { %8517 = vmatpush1.bf16.msra.mxu0 %v17687_v20  ;;  %8558 = vmatpush1.bf16.msra.mxu1 %v17689_v9 }
 0xac4   :  { %8518 = vmatprep.subr.bf16.mxu0 %v17695_v41  ;;  %8559 = vmatprep.subr.bf16.mxu1 %v17697_v62 }
 0xac7   :  { %8519 = vmatpush1.bf16.msra.mxu0 %v17699_v6  ;;  %8560 = vmatpush1.bf16.msra.mxu1 %v17701_v52 }
 0xac8   :  { %8520 = vmatprep.subr.bf16.mxu0 %v17707_v46  ;;  %8561 = vmatprep.subr.bf16.mxu1 %v17709_v59 }
 0xacb   :  { %8521 = vmatpush1.bf16.msra.mxu0 %v17711_v54  ;;  %8562 = vmatpush1.bf16.msra.mxu1 %v17713_v16 }
 0xacc   :  { %8522 = vmatprep.subr.bf16.mxu0 %v17719_v40  ;;  %8563 = vmatprep.subr.bf16.mxu1 %v17721_v47 }
 0xacf   :  { %8523 = vmatpush1.bf16.msra.mxu0 %v17723_v32  ;;  %8564 = vmatpush1.bf16.msra.mxu1 %v17725_v51 }
 0xad0   :  { %8524 = vmatprep.subr.bf16.mxu0 %v17731_v21  ;;  %8565 = vmatprep.subr.bf16.mxu1 %v17733_v12 }
 0xad3   :  { %8525 = vmatpush1.bf16.msra.mxu0 %v17735_v17  ;;  %8566 = vmatpush1.bf16.msra.mxu1 %v17737_v3 }
 0xad4   :  { %8817 = vmatprep.subr.bf16.mxu0 %v17743_v30  ;;  %8858 = vmatprep.subr.bf16.mxu1 %v17745_v44 }
 0xb68   :  { %v7926_v48 = vpop.f32.mrb[136].mxu0  ;;  %v7967_v34 = vpop.f32.mrb[136].mxu1 }
 0xb69   :  { %v7974_v53 = vadd.f32 %v7926_v48, %v17408_v8  ;;  %v7976_v22 = vadd.f32 %v7967_v34, %v17411_v31  ;;  %v7928_v5 = vpop.f32.mrb[137].mxu0  ;;  %v7969_v42 = vpop.f32.mrb[137].mxu1 }
 0xb6a   :  { %v7975_v38 = vadd.f32 %v7928_v5, %v17414_v14  ;;  %v7977_v43 = vadd.f32 %v7969_v42, %v18882_v2  ;;  %v7930_v35 = vpop.f32.mrb[138].mxu0  ;;  %v7971_v13 = vpop.f32.mrb[138].mxu1  ;;  %v18884_v42 = vld [vmem:[#allocation25_spill] sm:$0xff] }
 0xb6b   :  { %v13359_v58 = vmul.f32 -1.442695, %v7974_v53  ;;  %v7931_v4 = vpop.f32.mrb[139].mxu0  ;;  %v7972_v1 = vpop.f32.mrb[139].mxu1  ;;  %v13361_v29 = vmul.f32 -1.442695, %v7976_v22 }
 0xb6c   :  { %v13360_v39 = vmul.f32 -1.442695, %v7975_v38  ;;  %v18883_v22 = vld [vmem:[#allocation80_spill] sm:$0xff]  ;;  %v18885_v35 = vld [vmem:[#allocation66_spill] sm:$0xff] }
 0xb6d   :  { %15017 = vpow2.f32 %v13359_v58  ;;  %v18886_v58 = vld [vmem:[#allocation78_spill] sm:$0xff] }
 0xb6e   :  { %15019 = vpow2.f32 %v13360_v39 }
 0xb6f   :  { %15021 = vtanh.f32 %v7977_v43 }
 0xb70   :  { %15023 = vpow2.f32 %v13361_v29 }
 0xb77   :  { %v15018_v63 = vpop.eup %15017 }
 0xb78   :  { %v7987_v7 = vadd.f32 1.0, %v15018_v63  ;;  %v15020_v8 = vpop.eup %15019 }
 0xb79   :  { %v7988_v31 = vadd.f32 1.0, %v15020_v8  ;;  %v15022_v14 = vpop.eup %15021 }
 0xb7a   :  { %15025 = vrcp.f32 %v7987_v7  ;;  %v15024_v33 = vpop.eup %15023 }
 0xb7b   :  { %15027 = vrcp.f32 %v7988_v31  ;;  %v7989_v50 = vadd.f32 1.0, %v15024_v33 }
 0xb7d   :  { %15029 = vrcp.f32 %v7989_v50 }
 0xb84   :  { %v15026_v49 = vpop.eup %15025 }
 0xb85   :  { %v7998_v37 = vmul.f32 %v15026_v49, %v15022_v14  ;;  %v15028_v56 = vpop.eup %15027 }
 0xb86   :  { %v7997_v55 = vmul.f32 %v15028_v56, %v17607_v18  ;;  %v17763_v56 = vld [vmem:[#allocation16 + $0x8] ss:$16 sps:$4 sm:$0xff]  }
 0xb87   :  { %v15030_v8 = vpop.eup %15029 }
 0xb88   :  { %v8233_v48 = vpop.f32.mrb[140].mxu0  ;;  %v8274_v34 = vpop.f32.mrb[140].mxu1  ;;  %v17754_v53 = vadd.f32 %v7998_v37, %v7997_v55  ;;  %v17761_v37 = vld [vmem:[#allocation16] ss:$16 sps:$4 sm:$0xff]  }
 0xb89   :  { %v8281_v5 = vadd.f32 %v8233_v48, %v18883_v22  ;;  %v8283_v38 = vadd.f32 %v8274_v34, %v18884_v42  ;;  %v8235_v2 = vpop.f32.mrb[141].mxu0  ;;  %v8276_v43 = vpop.f32.mrb[141].mxu1  ;;  %v17765_v48 = vld [vmem:[#allocation16 + $0x24] ss:$16 sps:$4 sm:$0xff]   ;;  %v17767_v34 = vld [vmem:[#allocation16 + $0x2c] ss:$16 sps:$4 sm:$0xff]  }
 0xb8a   :  { %v8282_v13 = vadd.f32 %v8235_v2, %v18885_v35  ;;  %v8284_v4 = vadd.f32 %v8276_v43, %v18886_v58  ;;  %v8237_v1 = vpop.f32.mrb[142].mxu0  ;;  %v8278_v39 = vpop.f32.mrb[142].mxu1  ;;  %15031 = vtanh.f32 %v17754_v53  ;;  %v17771_v42 = vld [vmem:[#allocation16 + $0x20] ss:$16 sps:$4 sm:$0xff]   ;;  %v17777_v2 = vld [vmem:[#allocation16 + $0x44] ss:$16 sps:$4 sm:$0xff]  }
 0xb8b   :  { %v13394_v18 = vmul.f32 -1.442695, %v8281_v5  ;;  %v8238_v29 = vpop.f32.mrb[143].mxu0  ;;  %v8279_v63 = vpop.f32.mrb[143].mxu1  ;;  %v13396_v14 = vmul.f32 -1.442695, %v8283_v38 }
 0xb8c   :  { %v13395_v7 = vmul.f32 -1.442695, %v8282_v13  ;;  %v17773_v38 = vld [vmem:[#allocation16 + $0x28] ss:$16 sps:$4 sm:$0xff]   ;;  %v17779_v43 = vld [vmem:[#allocation16 + $0x4c] ss:$16 sps:$4 sm:$0xff]  }
 0xb8d   :  { %15033 = vpow2.f32 %v13394_v18  ;;  %v17785_v35 = vld [vmem:[#allocation16 + $0x40] ss:$16 sps:$4 sm:$0xff]   ;;  %v17787_v13 = vld [vmem:[#allocation16 + $0x48] ss:$16 sps:$4 sm:$0xff]   ;;  %v17791_v58 = vld [vmem:[#allocation16 + $0x64] ss:$16 sps:$4 sm:$0xff]  }
 0xb8e   :  { %15035 = vpow2.f32 %v13395_v7  ;;  %v17797_v18 = vld [vmem:[#allocation16 + $0x60] ss:$16 sps:$4 sm:$0xff]   ;;  %v17799_v29 = vld [vmem:[#allocation16 + $0x68] ss:$16 sps:$4 sm:$0xff]   ;;  %v17803_v7 = vld [vmem:[#allocation16 + $0x84] ss:$16 sps:$4 sm:$0xff]  }
 0xb8f   :  { %15037 = vtanh.f32 %v8284_v4  ;;  %v17793_v4 = vld [vmem:[#allocation16 + $0x6c] ss:$16 sps:$4 sm:$0xff]  }
 0xb90   :  { %15039 = vpow2.f32 %v13396_v14 }
 0xb94   :  { %v15032_v31 = vpop.eup %15031 }
 0xb95   :  { %v8001_v33 = vmul.f32 %v15032_v31, %v15030_v8  ;;  %v17805_v8 = vld [vmem:[#allocation16 + $0x8c] ss:$16 sps:$4 sm:$0xff]  }
 0xb97   :  { %v15034_v49 = vpop.eup %15033  ;;  %8310 = vst [vmem:[#allocation4 + $0x10] sm:$0xff] %v8001_v33  ;;  %v8317_v55 = vpack.c.bf16 %v8001_v33, %v8001_v33 }
 0xb98   :  { %v8294_v50 = vadd.f32 1.0, %v15034_v49  ;;  %v15036_v22 = vpop.eup %15035 }
 0xb99   :  { %v8295_v5 = vadd.f32 1.0, %v15036_v22  ;;  %8543 = vmatmul.mubr.bf16.vlgmr.msra.gmra.mrb[144].mxu0 %v8317_v55  ;;  %8584 = vmatmul.mubr.bf16.vlgmr.msra.gmra.mrb[144].mxu1 %v8317_v55  ;;  %v15038_v1 = vpop.eup %15037  ;;  %v17812_v55 = vld [vmem:[#allocation16 + $0x88] ss:$16 sps:$4 sm:$0xff]   ;;  %v17816_v22 = vld [vmem:[#allocation16 + $0xa4] ss:$16 sps:$4 sm:$0xff]  }
 0xb9a   :  { %15041 = vrcp.f32 %v8294_v50  ;;  %8818 = vmatpush1.bf16.msra.mxu0 %v17761_v37  ;;  %8859 = vmatpush1.bf16.msra.mxu1 %v17763_v56  ;;  %v15040_v39 = vpop.eup %15039  ;;  %v17810_v50 = vld [vmem:[#allocation16 + $0x80] ss:$16 sps:$4 sm:$0xff]   ;;  %18887 = vst [vmem:[#allocation27_spill] sm:$0xff] %v17812_v55  ;;  %18888 = vst [vmem:[#allocation79_spill] sm:$0xff] %v17816_v22 }
 0xb9b   :  { %15043 = vrcp.f32 %v8295_v5  ;;  %8819 = vmatprep.subr.bf16.mxu0 %v17765_v48  ;;  %8860 = vmatprep.subr.bf16.mxu1 %v17767_v34  ;;  %v8296_v33 = vadd.f32 1.0, %v15040_v39  ;;  %v17818_v5 = vld [vmem:[#allocation16 + $0xac] ss:$16 sps:$4 sm:$0xff]   ;;  %v17827_v39 = vld [vmem:[#allocation16 + $0xa8] ss:$16 sps:$4 sm:$0xff]  }
 0xb9c   :  { %8849 = vmatprep.mubr.bf16.mxu0 %v18704_v60  ;;  %8890 = vmatprep.mubr.bf16.mxu1 %v18704_v60  ;;  %18889 = vst [vmem:[#allocation81_spill] sm:$0xff] %v17818_v5  ;;  %18891 = vst [vmem:[#allocation72_spill] sm:$0xff] %v17827_v39 }
 0xb9d   :  { %15045 = vrcp.f32 %v8296_v33  ;;  %v17839_v33 = vld [vmem:[#allocation16 + $0xc8] ss:$16 sps:$4 sm:$0xff]  }
 0xb9e   :  { %8820 = vmatpush1.bf16.msra.mxu0 %v17771_v42  ;;  %8861 = vmatpush1.bf16.msra.mxu1 %v17773_v38 }
 0xb9f   :  { %8821 = vmatprep.subr.bf16.mxu0 %v17777_v2  ;;  %8862 = vmatprep.subr.bf16.mxu1 %v17779_v43 }
 0xba2   :  { %8822 = vmatpush1.bf16.msra.mxu0 %v17785_v35  ;;  %8863 = vmatpush1.bf16.msra.mxu1 %v17787_v13 }
 0xba3   :  { %8823 = vmatprep.subr.bf16.mxu0 %v17791_v58  ;;  %8864 = vmatprep.subr.bf16.mxu1 %v17793_v4 }
 0xba4   :  { %v15042_v63 = vpop.eup %15041 }
 0xba5   :  { %v8305_v31 = vmul.f32 %v15042_v63, %v15038_v1  ;;  %v15044_v14 = vpop.eup %15043  ;;  %v17831_v63 = vld [vmem:[#allocation16 + $0xc4] ss:$16 sps:$4 sm:$0xff]  }
 0xba6   :  { %v8304_v49 = vmul.f32 %v15044_v14, %v17628_v45  ;;  %8824 = vmatpush1.bf16.msra.mxu0 %v17797_v18  ;;  %8865 = vmatpush1.bf16.msra.mxu1 %v17799_v29  ;;  %v17825_v45 = vld [vmem:[#allocation16 + $0xa0] ss:$16 sps:$4 sm:$0xff]   ;;  %18892 = vst [vmem:[#allocation64_spill] sm:$0xff] %v17831_v63  ;;  %v17833_v14 = vld [vmem:[#allocation16 + $0xcc] ss:$16 sps:$4 sm:$0xff]  }
 0xba7   :  { %8825 = vmatprep.subr.bf16.mxu0 %v17803_v7  ;;  %8866 = vmatprep.subr.bf16.mxu1 %v17805_v8  ;;  %18890 = vst [vmem:[#allocation83_spill] sm:$0xff] %v17825_v45  ;;  %18893 = vst [vmem:[#allocation67_spill] sm:$0xff] %v17833_v14 }
 0xba8   :  { %v17820_v1 = vadd.f32 %v8305_v31, %v8304_v49  ;;  %v17837_v31 = vld [vmem:[#allocation16 + $0xc0] ss:$16 sps:$4 sm:$0xff]   ;;  %v17843_v49 = vld [vmem:[#allocation16 + $0xe4] ss:$16 sps:$4 sm:$0xff]  }
 0xbaa   :  { %15047 = vtanh.f32 %v17820_v1  ;;  %8826 = vmatpush1.bf16.msra.mxu0 %v17810_v50  ;;  %8867 = vmatpush1.bf16.msra.mxu1 %v17812_v55 }
 0xbab   :  { %8827 = vmatprep.subr.bf16.mxu0 %v17816_v22  ;;  %8868 = vmatprep.subr.bf16.mxu1 %v17818_v5  ;;  %v17845_v22 = vld [vmem:[#allocation16 + $0xec] ss:$16 sps:$4 sm:$0xff]   ;;  %v17849_v5 = vld [vmem:[#allocation16 + $0xe0] ss:$16 sps:$4 sm:$0xff]  }
 0xbae   :  { %8828 = vmatpush1.bf16.msra.mxu0 %v17825_v45  ;;  %8869 = vmatpush1.bf16.msra.mxu1 %v17827_v39  ;;  %v17851_v45 = vld [vmem:[#allocation16 + $0xe8] ss:$16 sps:$4 sm:$0xff]   ;;  %v15046_v39 = vpop.eup %15045 }
 0xbaf   :  { %8829 = vmatprep.subr.bf16.mxu0 %v17831_v63  ;;  %8870 = vmatprep.subr.bf16.mxu1 %v17833_v14 }
 0xbb2   :  { %8830 = vmatpush1.bf16.msra.mxu0 %v17837_v31  ;;  %8871 = vmatpush1.bf16.msra.mxu1 %v17839_v33 }
 0xbb3   :  { %8831 = vmatprep.subr.bf16.mxu0 %v17843_v49  ;;  %8872 = vmatprep.subr.bf16.mxu1 %v17845_v22 }
 0xbb4   :  { %v15048_v63 = vpop.eup %15047 }
 0xbb5   :  { %v8308_v55 = vmul.f32 %v15048_v63, %v15046_v39  ;;  %v18899_v39 = vld [vmem:[#allocation51_spill] sm:$0xff] }
 0xbb6   :  { %8832 = vmatpush1.bf16.msra.mxu0 %v17849_v5  ;;  %8873 = vmatpush1.bf16.msra.mxu1 %v17851_v45 }
 0xbb7   :  { %8312 = vst [vmem:[#allocation4 + $0x68] sm:$0xff] %v8308_v55  ;;  %v8624_v14 = vpack.c.bf16 %v8308_v55, %v8308_v55  ;;  %9128 = vmatprep.subr.bf16.mxu0 %v17647_v10  ;;  %9169 = vmatprep.subr.bf16.mxu1 %v17649_v25 }
 0xbb9   :  { %8850 = vmatmul.mubr.bf16.vlgmr.msra.gmra.mrb[148].mxu0 %v8624_v14  ;;  %8891 = vmatmul.mubr.bf16.vlgmr.msra.gmra.mrb[148].mxu1 %v8624_v14 }
 0xbba   :  { %9129 = vmatpush1.bf16.msra.mxu0 %v17651_v19  ;;  %9170 = vmatpush1.bf16.msra.mxu1 %v17653_v57  ;;  %v18894_v19 = vld [vmem:[#allocation31_spill] sm:$0xff] }
 0xbbb   :  { %9130 = vmatprep.subr.bf16.mxu0 %v17659_v27  ;;  %9171 = vmatprep.subr.bf16.mxu1 %v17661_v0  ;;  %v18895_v27 = vld [vmem:[#allocation33_spill] sm:$0xff] }
 0xbbc   :  { %9160 = vmatprep.mubr.bf16.mxu0 %v18704_v60  ;;  %9201 = vmatprep.mubr.bf16.mxu1 %v18704_v60 }
 0xbbe   :  { %9131 = vmatpush1.bf16.msra.mxu0 %v17663_v24  ;;  %9172 = vmatpush1.bf16.msra.mxu1 %v17665_v28 }
 0xbbf   :  { %9132 = vmatprep.subr.bf16.mxu0 %v17671_v15  ;;  %9173 = vmatprep.subr.bf16.mxu1 %v17673_v23  ;;  %v18896_v15 = vld [vmem:[#allocation32_spill] sm:$0xff] }
 0xbc2   :  { %9133 = vmatpush1.bf16.msra.mxu0 %v17675_v36  ;;  %9174 = vmatpush1.bf16.msra.mxu1 %v17677_v61  ;;  %v18897_v36 = vld [vmem:[#allocation35_spill] sm:$0xff] }
 0xbc3   :  { %9134 = vmatprep.subr.bf16.mxu0 %v17683_v26  ;;  %9175 = vmatprep.subr.bf16.mxu1 %v17685_v11 }
 0xbc6   :  { %9135 = vmatpush1.bf16.msra.mxu0 %v17687_v20  ;;  %9176 = vmatpush1.bf16.msra.mxu1 %v17689_v9 }
 0xbc7   :  { %9136 = vmatprep.subr.bf16.mxu0 %v17695_v41  ;;  %9177 = vmatprep.subr.bf16.mxu1 %v17697_v62 }
 0xbca   :  { %9137 = vmatpush1.bf16.msra.mxu0 %v17699_v6  ;;  %9178 = vmatpush1.bf16.msra.mxu1 %v17701_v52 }
 0xbcb   :  { %9138 = vmatprep.subr.bf16.mxu0 %v17707_v46  ;;  %9179 = vmatprep.subr.bf16.mxu1 %v17709_v59 }
 0xbce   :  { %9139 = vmatpush1.bf16.msra.mxu0 %v17711_v54  ;;  %9180 = vmatpush1.bf16.msra.mxu1 %v17713_v16 }
 0xbcf   :  { %9140 = vmatprep.subr.bf16.mxu0 %v17719_v40  ;;  %9181 = vmatprep.subr.bf16.mxu1 %v17721_v47 }
 0xbd2   :  { %9141 = vmatpush1.bf16.msra.mxu0 %v17723_v32  ;;  %9182 = vmatpush1.bf16.msra.mxu1 %v17725_v51 }
 0xbd3   :  { %9142 = vmatprep.subr.bf16.mxu0 %v17731_v21  ;;  %9183 = vmatprep.subr.bf16.mxu1 %v17733_v12 }
 0xbd6   :  { %9143 = vmatpush1.bf16.msra.mxu0 %v17735_v17  ;;  %9184 = vmatpush1.bf16.msra.mxu1 %v17737_v3 }
 0xbd7   :  { %9435 = vmatprep.subr.bf16.mxu0 %v17743_v30  ;;  %9476 = vmatprep.subr.bf16.mxu1 %v17745_v44  ;;  %v18898_v44 = vld [vmem:[#allocation48_spill] sm:$0xff] }
 0xc6c   :  { %v8544_v10 = vpop.f32.mrb[144].mxu0  ;;  %v8585_v25 = vpop.f32.mrb[144].mxu1 }
 0xc6d   :  { %v8592_v57 = vadd.f32 %v8544_v10, %v18894_v19  ;;  %v8594_v0 = vadd.f32 %v8585_v25, %v18895_v27  ;;  %v8546_v24 = vpop.f32.mrb[145].mxu0  ;;  %v8587_v28 = vpop.f32.mrb[145].mxu1  ;;  %v18900_v25 = vld [vmem:[#allocation71_spill] sm:$0xff] }
 0xc6e   :  { %v8593_v23 = vadd.f32 %v8546_v24, %v18896_v15  ;;  %v8595_v61 = vadd.f32 %v8587_v28, %v18897_v36  ;;  %v8548_v26 = vpop.f32.mrb[146].mxu0  ;;  %v8589_v11 = vpop.f32.mrb[146].mxu1 }
 0xc6f   :  { %v13429_v20 = vmul.f32 -1.442695, %v8592_v57  ;;  %v8549_v9 = vpop.f32.mrb[147].mxu0  ;;  %v8590_v41 = vpop.f32.mrb[147].mxu1  ;;  %v13431_v6 = vmul.f32 -1.442695, %v8594_v0 }
 0xc70   :  { %v13430_v62 = vmul.f32 -1.442695, %v8593_v23  ;;  %v18901_v57 = vld [vmem:[#allocation73_spill] sm:$0xff] }
 0xc71   :  { %15049 = vpow2.f32 %v13429_v20 }
 0xc72   :  { %15051 = vpow2.f32 %v13430_v62 }
 0xc73   :  { %15053 = vtanh.f32 %v8595_v61 }
 0xc74   :  { %15055 = vpow2.f32 %v13431_v6 }
 0xc7b   :  { %v15050_v52 = vpop.eup %15049 }
 0xc7c   :  { %v8605_v46 = vadd.f32 1.0, %v15050_v52  ;;  %v15052_v59 = vpop.eup %15051 }
 0xc7d   :  { %v8606_v54 = vadd.f32 1.0, %v15052_v59  ;;  %v15054_v16 = vpop.eup %15053  ;;  %v17961_v59 = vld [vmem:[#allocation15 + $0x28] ss:$16 sps:$4 sm:$0xff]  }
 0xc7e   :  { %15057 = vrcp.f32 %v8605_v46  ;;  %v15056_v40 = vpop.eup %15055  ;;  %v17959_v46 = vld [vmem:[#allocation15 + $0x20] ss:$16 sps:$4 sm:$0xff]  }
 0xc7f   :  { %15059 = vrcp.f32 %v8606_v54  ;;  %v8607_v21 = vadd.f32 1.0, %v15056_v40  ;;  %v17967_v54 = vld [vmem:[#allocation15 + $0x44] ss:$16 sps:$4 sm:$0xff]   ;;  %v17971_v40 = vld [vmem:[#allocation15 + $0x40] ss:$16 sps:$4 sm:$0xff]  }
 0xc81   :  { %15061 = vrcp.f32 %v8607_v21  ;;  %v17983_v21 = vld [vmem:[#allocation15 + $0x60] ss:$16 sps:$4 sm:$0xff]  }
 0xc88   :  { %v15058_v47 = vpop.eup %15057 }
 0xc89   :  { %v8616_v32 = vmul.f32 %v15058_v47, %v15054_v16  ;;  %v15060_v51 = vpop.eup %15059  ;;  %v17969_v16 = vld [vmem:[#allocation15 + $0x4c] ss:$16 sps:$4 sm:$0xff]   ;;  %v17973_v47 = vld [vmem:[#allocation15 + $0x48] ss:$16 sps:$4 sm:$0xff]  }
 0xc8a   :  { %v8615_v12 = vmul.f32 %v15060_v51, %v17754_v53  ;;  %v17981_v51 = vld [vmem:[#allocation15 + $0x6c] ss:$16 sps:$4 sm:$0xff]  }
 0xc8b   :  { %v15062_v36 = vpop.eup %15061 }
 0xc8c   :  { %v8851_v17 = vpop.f32.mrb[148].mxu0  ;;  %v8892_v3 = vpop.f32.mrb[148].mxu1  ;;  %v17898_v30 = vadd.f32 %v8616_v32, %v8615_v12  ;;  %v17979_v32 = vld [vmem:[#allocation15 + $0x64] ss:$16 sps:$4 sm:$0xff]   ;;  %v17985_v12 = vld [vmem:[#allocation15 + $0x68] ss:$16 sps:$4 sm:$0xff]  }
 0xc8d   :  { %v8899_v55 = vadd.f32 %v8851_v17, %v18898_v44  ;;  %v8901_v63 = vadd.f32 %v8892_v3, %v18899_v39  ;;  %v8853_v14 = vpop.f32.mrb[149].mxu0  ;;  %v8894_v10 = vpop.f32.mrb[149].mxu1  ;;  %v17991_v17 = vld [vmem:[#allocation15 + $0x84] ss:$16 sps:$4 sm:$0xff]   ;;  %v17993_v3 = vld [vmem:[#allocation15 + $0x8c] ss:$16 sps:$4 sm:$0xff]  }
 0xc8e   :  { %v8900_v19 = vadd.f32 %v8853_v14, %v18900_v25  ;;  %v8902_v27 = vadd.f32 %v8894_v10, %v18901_v57  ;;  %v8855_v0 = vpop.f32.mrb[150].mxu0  ;;  %v8896_v24 = vpop.f32.mrb[150].mxu1  ;;  %15063 = vtanh.f32 %v17898_v30  ;;  %v17995_v44 = vld [vmem:[#allocation15 + $0x80] ss:$16 sps:$4 sm:$0xff]   ;;  %v18003_v39 = vld [vmem:[#allocation15 + $0xa4] ss:$16 sps:$4 sm:$0xff]  }
 0xc8f   :  { %v13464_v53 = vmul.f32 -1.442695, %v8899_v55  ;;  %v8856_v28 = vpop.f32.mrb[151].mxu0  ;;  %v8897_v15 = vpop.f32.mrb[151].mxu1  ;;  %v13466_v26 = vmul.f32 -1.442695, %v8901_v63 }
 0xc90   :  { %v13465_v23 = vmul.f32 -1.442695, %v8900_v19  ;;  %v17997_v55 = vld [vmem:[#allocation15 + $0x88] ss:$16 sps:$4 sm:$0xff]   ;;  %v18005_v63 = vld [vmem:[#allocation15 + $0xac] ss:$16 sps:$4 sm:$0xff]  }
 0xc91   :  { %15065 = vpow2.f32 %v13464_v53  ;;  %v18007_v14 = vld [vmem:[#allocation15 + $0xa0] ss:$16 sps:$4 sm:$0xff]   ;;  %v18009_v10 = vld [vmem:[#allocation15 + $0xa8] ss:$16 sps:$4 sm:$0xff]   ;;  %v18015_v25 = vld [vmem:[#allocation15 + $0xc4] ss:$16 sps:$4 sm:$0xff]  }
 0xc92   :  { %15067 = vpow2.f32 %v13465_v23  ;;  %v18017_v19 = vld [vmem:[#allocation15 + $0xcc] ss:$16 sps:$4 sm:$0xff]   ;;  %v18019_v57 = vld [vmem:[#allocation15 + $0xc0] ss:$16 sps:$4 sm:$0xff]   ;;  %v18027_v0 = vld [vmem:[#allocation15 + $0xe4] ss:$16 sps:$4 sm:$0xff]  }
 0xc93   :  { %15069 = vtanh.f32 %v8902_v27  ;;  %v18021_v27 = vld [vmem:[#allocation15 + $0xc8] ss:$16 sps:$4 sm:$0xff]   ;;  %v18029_v24 = vld [vmem:[#allocation15 + $0xec] ss:$16 sps:$4 sm:$0xff]   ;;  %v18031_v53 = vld [vmem:[#allocation15 + $0xe0] ss:$16 sps:$4 sm:$0xff]  }
 0xc94   :  { %15071 = vpow2.f32 %v13466_v26  ;;  %v18033_v28 = vld [vmem:[#allocation15 + $0xe8] ss:$16 sps:$4 sm:$0xff]   ;;  %v18039_v15 = vld [vmem:[#allocation16 + $0x4] ss:$16 sps:$4 sm:$0xff]   ;;  %v18041_v23 = vld [vmem:[#allocation16 + $0xc] ss:$16 sps:$4 sm:$0xff]  }
 0xc95   :  { %v18909_v26 = vld [vmem:[#allocation58_spill] sm:$0xff] }
 0xc98   :  { %v15064_v61 = vpop.eup %15063 }
 0xc99   :  { %v8619_v11 = vmul.f32 %v15064_v61, %v15062_v36 }
 0xc9b   :  { %v15066_v20 = vpop.eup %15065  ;;  %8928 = vst [vmem:[#allocation4 + $0x20] sm:$0xff] %v8619_v11  ;;  %v8935_v41 = vpack.c.bf16 %v8619_v11, %v8619_v11 }
 0xc9c   :  { %v8912_v9 = vadd.f32 1.0, %v15066_v20  ;;  %v15068_v62 = vpop.eup %15067  ;;  %v18910_v20 = vld [vmem:[#allocation61_spill] sm:$0xff] }
 0xc9d   :  { %v8913_v6 = vadd.f32 1.0, %v15068_v62  ;;  %9161 = vmatmul.mubr.bf16.vlgmr.msra.gmra.mrb[152].mxu0 %v8935_v41  ;;  %9202 = vmatmul.mubr.bf16.vlgmr.msra.gmra.mrb[152].mxu1 %v8935_v41 }
 0xc9e   :  { %15073 = vrcp.f32 %v8912_v9  ;;  %9436 = vmatpush1.bf16.msra.mxu0 %v17761_v37  ;;  %9477 = vmatpush1.bf16.msra.mxu1 %v17763_v56  ;;  %v15070_v37 = vpop.eup %15069 }
 0xc9f   :  { %15075 = vrcp.f32 %v8913_v6  ;;  %9437 = vmatprep.subr.bf16.mxu0 %v17765_v48  ;;  %9478 = vmatprep.subr.bf16.mxu1 %v17767_v34  ;;  %v15072_v52 = vpop.eup %15071  ;;  %v18911_v6 = vld [vmem:[#allocation60_spill] sm:$0xff] }
 0xca0   :  { %9467 = vmatprep.mubr.bf16.mxu0 %v18704_v60  ;;  %9508 = vmatprep.mubr.bf16.mxu1 %v18704_v60 }
 0xca2   :  { %9438 = vmatpush1.bf16.msra.mxu0 %v17771_v42  ;;  %9479 = vmatpush1.bf16.msra.mxu1 %v17773_v38  ;;  %v8914_v42 = vadd.f32 1.0, %v15072_v52  ;;  %v18912_v52 = vld [vmem:[#allocation62_spill] sm:$0xff] }
 0xca3   :  { %9439 = vmatprep.subr.bf16.mxu0 %v17777_v2  ;;  %9480 = vmatprep.subr.bf16.mxu1 %v17779_v43  ;;  %v18902_v43 = vld [vmem:[#allocation27_spill] sm:$0xff] }
 0xca4   :  { %15077 = vrcp.f32 %v8914_v42 }
 0xca6   :  { %9440 = vmatpush1.bf16.msra.mxu0 %v17785_v35  ;;  %9481 = vmatpush1.bf16.msra.mxu1 %v17787_v13  ;;  %v18903_v35 = vld [vmem:[#allocation79_spill] sm:$0xff]  ;;  %v18904_v13 = vld [vmem:[#allocation81_spill] sm:$0xff] }
 0xca7   :  { %9441 = vmatprep.subr.bf16.mxu0 %v17791_v58  ;;  %9482 = vmatprep.subr.bf16.mxu1 %v17793_v4  ;;  %v18905_v58 = vld [vmem:[#allocation83_spill] sm:$0xff]  ;;  %v18906_v4 = vld [vmem:[#allocation72_spill] sm:$0xff] }
 0xca8   :  { %v15074_v56 = vpop.eup %15073 }
 0xca9   :  { %v8923_v48 = vmul.f32 %v15074_v56, %v15070_v37  ;;  %v15076_v34 = vpop.eup %15075 }
 0xcaa   :  { %v8922_v38 = vmul.f32 %v15076_v34, %v17820_v1  ;;  %9442 = vmatpush1.bf16.msra.mxu0 %v17797_v18  ;;  %9483 = vmatpush1.bf16.msra.mxu1 %v17799_v29  ;;  %v18907_v18 = vld [vmem:[#allocation64_spill] sm:$0xff]  ;;  %v18908_v29 = vld [vmem:[#allocation67_spill] sm:$0xff] }
 0xcab   :  { %9443 = vmatprep.subr.bf16.mxu0 %v17803_v7  ;;  %9484 = vmatprep.subr.bf16.mxu1 %v17805_v8 }
 0xcac   :  { %v17924_v2 = vadd.f32 %v8923_v48, %v8922_v38 }
 0xcae   :  { %15079 = vtanh.f32 %v17924_v2  ;;  %9444 = vmatpush1.bf16.msra.mxu0 %v17810_v50  ;;  %9485 = vmatpush1.bf16.msra.mxu1 %v18902_v43  ;;  %v15078_v7 = vpop.eup %15077 }
 0xcaf   :  { %9445 = vmatprep.subr.bf16.mxu0 %v18903_v35  ;;  %9486 = vmatprep.subr.bf16.mxu1 %v18904_v13 }
 0xcb2   :  { %9446 = vmatpush1.bf16.msra.mxu0 %v18905_v58  ;;  %9487 = vmatpush1.bf16.msra.mxu1 %v18906_v4 }
 0xcb3   :  { %9447 = vmatprep.subr.bf16.mxu0 %v18907_v18  ;;  %9488 = vmatprep.subr.bf16.mxu1 %v18908_v29 }
 0xcb6   :  { %9448 = vmatpush1.bf16.msra.mxu0 %v17837_v31  ;;  %9489 = vmatpush1.bf16.msra.mxu1 %v17839_v33  ;;  %v17943_v31 = vld [vmem:[#allocation15 + $0x4] ss:$16 sps:$4 sm:$0xff]   ;;  %v17945_v33 = vld [vmem:[#allocation15 + $0xc] ss:$16 sps:$4 sm:$0xff]  }
 0xcb7   :  { %9449 = vmatprep.subr.bf16.mxu0 %v17843_v49  ;;  %9490 = vmatprep.subr.bf16.mxu1 %v17845_v22  ;;  %v17947_v49 = vld [vmem:[#allocation15] ss:$16 sps:$4 sm:$0xff]   ;;  %v17949_v22 = vld [vmem:[#allocation15 + $0x8] ss:$16 sps:$4 sm:$0xff]  }
 0xcb8   :  { %v15080_v8 = vpop.eup %15079 }
 0xcb9   :  { %v8926_v50 = vmul.f32 %v15080_v8, %v15078_v7 }
 0xcba   :  { %9450 = vmatpush1.bf16.msra.mxu0 %v17849_v5  ;;  %9491 = vmatpush1.bf16.msra.mxu1 %v17851_v45  ;;  %v17955_v5 = vld [vmem:[#allocation15 + $0x24] ss:$16 sps:$4 sm:$0xff]   ;;  %v17957_v45 = vld [vmem:[#allocation15 + $0x2c] ss:$16 sps:$4 sm:$0xff]  }
 0xcbb   :  { %8930 = vst [vmem:[#allocation4 + $0x58] sm:$0xff] %v8926_v50  ;;  %v9242_v1 = vpack.c.bf16 %v8926_v50, %v8926_v50  ;;  %9746 = vmatprep.subr.bf16.mxu0 %v17943_v31  ;;  %9787 = vmatprep.subr.bf16.mxu1 %v17945_v33 }
 0xcbd   :  { %9468 = vmatmul.mubr.bf16.vlgmr.msra.gmra.mrb[156].mxu0 %v9242_v1  ;;  %9509 = vmatmul.mubr.bf16.vlgmr.msra.gmra.mrb[156].mxu1 %v9242_v1 }
 0xcbe   :  { %9778 = vmatprep.mubr.bf16.mxu0 %v18704_v60  ;;  %9819 = vmatprep.mubr.bf16.mxu1 %v18704_v60 }
 0xcbf   :  { %9747 = vmatpush1.bf16.msra.mxu0 %v17947_v49  ;;  %9788 = vmatpush1.bf16.msra.mxu1 %v17949_v22 }
 0xcc0   :  { %9748 = vmatprep.subr.bf16.mxu0 %v17955_v5  ;;  %9789 = vmatprep.subr.bf16.mxu1 %v17957_v45 }
 0xcc3   :  { %9749 = vmatpush1.bf16.msra.mxu0 %v17959_v46  ;;  %9790 = vmatpush1.bf16.msra.mxu1 %v17961_v59 }
 0xcc4   :  { %9750 = vmatprep.subr.bf16.mxu0 %v17967_v54  ;;  %9791 = vmatprep.subr.bf16.mxu1 %v17969_v16 }
 0xcc7   :  { %9751 = vmatpush1.bf16.msra.mxu0 %v17971_v40  ;;  %9792 = vmatpush1.bf16.msra.mxu1 %v17973_v47 }
 0xcc8   :  { %9752 = vmatprep.subr.bf16.mxu0 %v17979_v32  ;;  %9793 = vmatprep.subr.bf16.mxu1 %v17981_v51 }
 0xccb   :  { %9753 = vmatpush1.bf16.msra.mxu0 %v17983_v21  ;;  %9794 = vmatpush1.bf16.msra.mxu1 %v17985_v12 }
 0xccc   :  { %9754 = vmatprep.subr.bf16.mxu0 %v17991_v17  ;;  %9795 = vmatprep.subr.bf16.mxu1 %v17993_v3 }
 0xccf   :  { %9755 = vmatpush1.bf16.msra.mxu0 %v17995_v44  ;;  %9796 = vmatpush1.bf16.msra.mxu1 %v17997_v55 }
 0xcd0   :  { %9756 = vmatprep.subr.bf16.mxu0 %v18003_v39  ;;  %9797 = vmatprep.subr.bf16.mxu1 %v18005_v63 }
 0xcd3   :  { %9757 = vmatpush1.bf16.msra.mxu0 %v18007_v14  ;;  %9798 = vmatpush1.bf16.msra.mxu1 %v18009_v10 }
 0xcd4   :  { %9758 = vmatprep.subr.bf16.mxu0 %v18015_v25  ;;  %9799 = vmatprep.subr.bf16.mxu1 %v18017_v19 }
 0xcd7   :  { %9759 = vmatpush1.bf16.msra.mxu0 %v18019_v57  ;;  %9800 = vmatpush1.bf16.msra.mxu1 %v18021_v27 }
 0xcd8   :  { %9760 = vmatprep.subr.bf16.mxu0 %v18027_v0  ;;  %9801 = vmatprep.subr.bf16.mxu1 %v18029_v24 }
 0xcdb   :  { %9761 = vmatpush1.bf16.msra.mxu0 %v18031_v53  ;;  %9802 = vmatpush1.bf16.msra.mxu1 %v18033_v28 }
 0xcdc   :  { %10053 = vmatprep.subr.bf16.mxu0 %v18039_v15  ;;  %10094 = vmatprep.subr.bf16.mxu1 %v18041_v23 }
 0xd70   :  { %v9162_v36 = vpop.f32.mrb[152].mxu0  ;;  %v9203_v61 = vpop.f32.mrb[152].mxu1 }
 0xd71   :  { %v9210_v11 = vadd.f32 %v9162_v36, %v18909_v26  ;;  %v9212_v9 = vadd.f32 %v9203_v61, %v18910_v20  ;;  %v9164_v41 = vpop.f32.mrb[153].mxu0  ;;  %v9205_v62 = vpop.f32.mrb[153].mxu1 }
 0xd72   :  { %v9211_v37 = vadd.f32 %v9164_v41, %v18911_v6  ;;  %v9213_v56 = vadd.f32 %v9205_v62, %v18912_v52  ;;  %v9166_v48 = vpop.f32.mrb[154].mxu0  ;;  %v9207_v34 = vpop.f32.mrb[154].mxu1  ;;  %v18914_v6 = vld [vmem:[#allocation46_spill] sm:$0xff] }
 0xd73   :  { %v13499_v42 = vmul.f32 -1.442695, %v9210_v11  ;;  %v9167_v38 = vpop.f32.mrb[155].mxu0  ;;  %v9208_v43 = vpop.f32.mrb[155].mxu1  ;;  %v13501_v13 = vmul.f32 -1.442695, %v9212_v9 }
 0xd74   :  { %v13500_v35 = vmul.f32 -1.442695, %v9211_v37  ;;  %v18913_v9 = vld [vmem:[#allocation44_spill] sm:$0xff]  ;;  %v18915_v48 = vld [vmem:[#allocation47_spill] sm:$0xff] }
 0xd75   :  { %15081 = vpow2.f32 %v13499_v42  ;;  %v18916_v42 = vld [vmem:[#allocation49_spill] sm:$0xff] }
 0xd76   :  { %15083 = vpow2.f32 %v13500_v35 }
 0xd77   :  { %15085 = vtanh.f32 %v9213_v56 }
 0xd78   :  { %15087 = vpow2.f32 %v13501_v13 }
 0xd7f   :  { %v15082_v58 = vpop.eup %15081 }
 0xd80   :  { %v9223_v4 = vadd.f32 1.0, %v15082_v58  ;;  %v15084_v18 = vpop.eup %15083 }
 0xd81   :  { %v9224_v29 = vadd.f32 1.0, %v15084_v18  ;;  %v15086_v7 = vpop.eup %15085 }
 0xd82   :  { %15089 = vrcp.f32 %v9223_v4  ;;  %v15088_v8 = vpop.eup %15087 }
 0xd83   :  { %15091 = vrcp.f32 %v9224_v29  ;;  %v9225_v61 = vadd.f32 1.0, %v15088_v8 }
 0xd85   :  { %15093 = vrcp.f32 %v9225_v61 }
 0xd8c   :  { %v15090_v50 = vpop.eup %15089 }
 0xd8d   :  { %v9234_v1 = vmul.f32 %v15090_v50, %v15086_v7  ;;  %v15092_v36 = vpop.eup %15091 }
 0xd8e   :  { %v9233_v26 = vmul.f32 %v15092_v36, %v17898_v30  ;;  %v18059_v36 = vld [vmem:[#allocation16 + $0x8] ss:$16 sps:$4 sm:$0xff]  }
 0xd8f   :  { %v15094_v18 = vpop.eup %15093 }
 0xd90   :  { %v9469_v11 = vpop.f32.mrb[156].mxu0  ;;  %v9510_v20 = vpop.f32.mrb[156].mxu1  ;;  %v18050_v41 = vadd.f32 %v9234_v1, %v9233_v26  ;;  %v18057_v1 = vld [vmem:[#allocation16] ss:$16 sps:$4 sm:$0xff]  }
 0xd91   :  { %v9517_v62 = vadd.f32 %v9469_v11, %v18913_v9  ;;  %v9519_v37 = vadd.f32 %v9510_v20, %v18914_v6  ;;  %v9471_v52 = vpop.f32.mrb[157].mxu0  ;;  %v9512_v56 = vpop.f32.mrb[157].mxu1  ;;  %v18061_v11 = vld [vmem:[#allocation16 + $0x24] ss:$16 sps:$4 sm:$0xff]   ;;  %v18063_v20 = vld [vmem:[#allocation16 + $0x2c] ss:$16 sps:$4 sm:$0xff]  }
 0xd92   :  { %v9518_v34 = vadd.f32 %v9471_v52, %v18915_v48  ;;  %v9520_v38 = vadd.f32 %v9512_v56, %v18916_v42  ;;  %v9473_v43 = vpop.f32.mrb[158].mxu0  ;;  %v9514_v35 = vpop.f32.mrb[158].mxu1  ;;  %15095 = vtanh.f32 %v18050_v41  ;;  %v18067_v6 = vld [vmem:[#allocation16 + $0x20] ss:$16 sps:$4 sm:$0xff]   ;;  %v18073_v52 = vld [vmem:[#allocation16 + $0x44] ss:$16 sps:$4 sm:$0xff]  }
 0xd93   :  { %v13534_v30 = vmul.f32 -1.442695, %v9517_v62  ;;  %v9474_v13 = vpop.f32.mrb[159].mxu0  ;;  %v9515_v58 = vpop.f32.mrb[159].mxu1  ;;  %v13536_v7 = vmul.f32 -1.442695, %v9519_v37 }
 0xd94   :  { %v13535_v4 = vmul.f32 -1.442695, %v9518_v34  ;;  %v18069_v37 = vld [vmem:[#allocation16 + $0x28] ss:$16 sps:$4 sm:$0xff]   ;;  %v18075_v56 = vld [vmem:[#allocation16 + $0x4c] ss:$16 sps:$4 sm:$0xff]  }
 0xd95   :  { %15097 = vpow2.f32 %v13534_v30  ;;  %v18081_v48 = vld [vmem:[#allocation16 + $0x40] ss:$16 sps:$4 sm:$0xff]   ;;  %v18083_v34 = vld [vmem:[#allocation16 + $0x48] ss:$16 sps:$4 sm:$0xff]   ;;  %v18087_v42 = vld [vmem:[#allocation16 + $0x64] ss:$16 sps:$4 sm:$0xff]  }
 0xd96   :  { %15099 = vpow2.f32 %v13535_v4  ;;  %v18093_v30 = vld [vmem:[#allocation16 + $0x60] ss:$16 sps:$4 sm:$0xff]   ;;  %v18095_v13 = vld [vmem:[#allocation16 + $0x68] ss:$16 sps:$4 sm:$0xff]   ;;  %v18099_v4 = vld [vmem:[#allocation16 + $0x84] ss:$16 sps:$4 sm:$0xff]  }
 0xd97   :  { %15101 = vtanh.f32 %v9520_v38  ;;  %v18089_v38 = vld [vmem:[#allocation16 + $0x6c] ss:$16 sps:$4 sm:$0xff]  }
 0xd98   :  { %15103 = vpow2.f32 %v13536_v7 }
 0xd9c   :  { %v15096_v29 = vpop.eup %15095 }
 0xd9d   :  { %v9237_v8 = vmul.f32 %v15096_v29, %v15094_v18  ;;  %v18101_v18 = vld [vmem:[#allocation16 + $0x8c] ss:$16 sps:$4 sm:$0xff]  }
 0xd9f   :  { %v15098_v50 = vpop.eup %15097  ;;  %9546 = vst [vmem:[#allocation4 + $0x30] sm:$0xff] %v9237_v8  ;;  %v9553_v26 = vpack.c.bf16 %v9237_v8, %v9237_v8 }
 0xda0   :  { %v9530_v61 = vadd.f32 1.0, %v15098_v50  ;;  %v15100_v9 = vpop.eup %15099 }
 0xda1   :  { %v9531_v62 = vadd.f32 1.0, %v15100_v9  ;;  %9779 = vmatmul.mubr.bf16.vlgmr.msra.gmra.mrb[160].mxu0 %v9553_v26  ;;  %9820 = vmatmul.mubr.bf16.vlgmr.msra.gmra.mrb[160].mxu1 %v9553_v26  ;;  %v15102_v43 = vpop.eup %15101  ;;  %v18108_v26 = vld [vmem:[#allocation16 + $0x88] ss:$16 sps:$4 sm:$0xff]   ;;  %v18112_v9 = vld [vmem:[#allocation16 + $0xa4] ss:$16 sps:$4 sm:$0xff]  }
 0xda2   :  { %15105 = vrcp.f32 %v9530_v61  ;;  %10054 = vmatpush1.bf16.msra.mxu0 %v18057_v1  ;;  %10095 = vmatpush1.bf16.msra.mxu1 %v18059_v36  ;;  %v15104_v35 = vpop.eup %15103  ;;  %v18106_v61 = vld [vmem:[#allocation16 + $0x80] ss:$16 sps:$4 sm:$0xff]   ;;  %18917 = vst [vmem:[#allocation80_spill] sm:$0xff] %v18108_v26  ;;  %18918 = vst [vmem:[#allocation25_spill] sm:$0xff] %v18112_v9 }
 0xda3   :  { %15107 = vrcp.f32 %v9531_v62  ;;  %10055 = vmatprep.subr.bf16.mxu0 %v18061_v11  ;;  %10096 = vmatprep.subr.bf16.mxu1 %v18063_v20  ;;  %v9532_v8 = vadd.f32 1.0, %v15104_v35  ;;  %v18114_v62 = vld [vmem:[#allocation16 + $0xac] ss:$16 sps:$4 sm:$0xff]   ;;  %v18123_v35 = vld [vmem:[#allocation16 + $0xa8] ss:$16 sps:$4 sm:$0xff]  }
 0xda4   :  { %10085 = vmatprep.mubr.bf16.mxu0 %v18704_v60  ;;  %10126 = vmatprep.mubr.bf16.mxu1 %v18704_v60  ;;  %18919 = vst [vmem:[#allocation66_spill] sm:$0xff] %v18114_v62  ;;  %18921 = vst [vmem:[#allocation31_spill] sm:$0xff] %v18123_v35 }
 0xda5   :  { %15109 = vrcp.f32 %v9532_v8  ;;  %v18135_v8 = vld [vmem:[#allocation16 + $0xc8] ss:$16 sps:$4 sm:$0xff]  }
 0xda6   :  { %10056 = vmatpush1.bf16.msra.mxu0 %v18067_v6  ;;  %10097 = vmatpush1.bf16.msra.mxu1 %v18069_v37 }
 0xda7   :  { %10057 = vmatprep.subr.bf16.mxu0 %v18073_v52  ;;  %10098 = vmatprep.subr.bf16.mxu1 %v18075_v56 }
 0xdaa   :  { %10058 = vmatpush1.bf16.msra.mxu0 %v18081_v48  ;;  %10099 = vmatpush1.bf16.msra.mxu1 %v18083_v34 }
 0xdab   :  { %10059 = vmatprep.subr.bf16.mxu0 %v18087_v42  ;;  %10100 = vmatprep.subr.bf16.mxu1 %v18089_v38 }
 0xdac   :  { %v15106_v58 = vpop.eup %15105 }
 0xdad   :  { %v9541_v29 = vmul.f32 %v15106_v58, %v15102_v43  ;;  %v15108_v7 = vpop.eup %15107  ;;  %v18127_v58 = vld [vmem:[#allocation16 + $0xc4] ss:$16 sps:$4 sm:$0xff]  }
 0xdae   :  { %v9540_v50 = vmul.f32 %v15108_v7, %v17924_v2  ;;  %10060 = vmatpush1.bf16.msra.mxu0 %v18093_v30  ;;  %10101 = vmatpush1.bf16.msra.mxu1 %v18095_v13  ;;  %v18121_v2 = vld [vmem:[#allocation16 + $0xa0] ss:$16 sps:$4 sm:$0xff]   ;;  %18922 = vst [vmem:[#allocation33_spill] sm:$0xff] %v18127_v58  ;;  %v18129_v7 = vld [vmem:[#allocation16 + $0xcc] ss:$16 sps:$4 sm:$0xff]  }
 0xdaf   :  { %10061 = vmatprep.subr.bf16.mxu0 %v18099_v4  ;;  %10102 = vmatprep.subr.bf16.mxu1 %v18101_v18  ;;  %18920 = vst [vmem:[#allocation78_spill] sm:$0xff] %v18121_v2  ;;  %18923 = vst [vmem:[#allocation32_spill] sm:$0xff] %v18129_v7 }
 0xdb0   :  { %v18116_v43 = vadd.f32 %v9541_v29, %v9540_v50  ;;  %v18133_v29 = vld [vmem:[#allocation16 + $0xc0] ss:$16 sps:$4 sm:$0xff]   ;;  %v18139_v50 = vld [vmem:[#allocation16 + $0xe4] ss:$16 sps:$4 sm:$0xff]  }
 0xdb2   :  { %15111 = vtanh.f32 %v18116_v43  ;;  %10062 = vmatpush1.bf16.msra.mxu0 %v18106_v61  ;;  %10103 = vmatpush1.bf16.msra.mxu1 %v18108_v26 }
 0xdb3   :  { %10063 = vmatprep.subr.bf16.mxu0 %v18112_v9  ;;  %10104 = vmatprep.subr.bf16.mxu1 %v18114_v62  ;;  %v18141_v9 = vld [vmem:[#allocation16 + $0xec] ss:$16 sps:$4 sm:$0xff]   ;;  %v18145_v62 = vld [vmem:[#allocation16 + $0xe0] ss:$16 sps:$4 sm:$0xff]  }
 0xdb6   :  { %10064 = vmatpush1.bf16.msra.mxu0 %v18121_v2  ;;  %10105 = vmatpush1.bf16.msra.mxu1 %v18123_v35  ;;  %v18147_v2 = vld [vmem:[#allocation16 + $0xe8] ss:$16 sps:$4 sm:$0xff]   ;;  %v15110_v35 = vpop.eup %15109 }
 0xdb7   :  { %10065 = vmatprep.subr.bf16.mxu0 %v18127_v58  ;;  %10106 = vmatprep.subr.bf16.mxu1 %v18129_v7 }
 0xdba   :  { %10066 = vmatpush1.bf16.msra.mxu0 %v18133_v29  ;;  %10107 = vmatpush1.bf16.msra.mxu1 %v18135_v8 }
 0xdbb   :  { %10067 = vmatprep.subr.bf16.mxu0 %v18139_v50  ;;  %10108 = vmatprep.subr.bf16.mxu1 %v18141_v9 }
 0xdbc   :  { %v15112_v58 = vpop.eup %15111 }
 0xdbd   :  { %v9544_v26 = vmul.f32 %v15112_v58, %v15110_v35  ;;  %v18929_v35 = vld [vmem:[#allocation65_spill] sm:$0xff] }
 0xdbe   :  { %10068 = vmatpush1.bf16.msra.mxu0 %v18145_v62  ;;  %10109 = vmatpush1.bf16.msra.mxu1 %v18147_v2 }
 0xdbf   :  { %9548 = vst [vmem:[#allocation4 + $0x48] sm:$0xff] %v9544_v26  ;;  %v9860_v7 = vpack.c.bf16 %v9544_v26, %v9544_v26  ;;  %10362 = vmatprep.subr.bf16.mxu0 %v17943_v31  ;;  %10403 = vmatprep.subr.bf16.mxu1 %v17945_v33 }
 0xdc1   :  { %10086 = vmatmul.mubr.bf16.vlgmr.msra.gmra.mrb[164].mxu0 %v9860_v7  ;;  %10127 = vmatmul.mubr.bf16.vlgmr.msra.gmra.mrb[164].mxu1 %v9860_v7 }
 0xdc2   :  { %10363 = vmatpush1.bf16.msra.mxu0 %v17947_v49  ;;  %10404 = vmatpush1.bf16.msra.mxu1 %v17949_v22  ;;  %v18924_v49 = vld [vmem:[#allocation69_spill] sm:$0xff] }
 0xdc3   :  { %10364 = vmatprep.subr.bf16.mxu0 %v17955_v5  ;;  %10405 = vmatprep.subr.bf16.mxu1 %v17957_v45  ;;  %v18925_v5 = vld [vmem:[#allocation68_spill] sm:$0xff] }
 0xdc4   :  { %10394 = vmatprep.mubr.bf16.mxu0 %v18704_v60  ;;  %10435 = vmatprep.mubr.bf16.mxu1 %v18704_v60 }
 0xdc6   :  { %10365 = vmatpush1.bf16.msra.mxu0 %v17959_v46  ;;  %10406 = vmatpush1.bf16.msra.mxu1 %v17961_v59 }
 0xdc7   :  { %10366 = vmatprep.subr.bf16.mxu0 %v17967_v54  ;;  %10407 = vmatprep.subr.bf16.mxu1 %v17969_v16  ;;  %v18926_v54 = vld [vmem:[#allocation70_spill] sm:$0xff] }
 0xdca   :  { %10367 = vmatpush1.bf16.msra.mxu0 %v17971_v40  ;;  %10408 = vmatpush1.bf16.msra.mxu1 %v17973_v47  ;;  %v18927_v40 = vld [vmem:[#allocation74_spill] sm:$0xff] }
 0xdcb   :  { %10368 = vmatprep.subr.bf16.mxu0 %v17979_v32  ;;  %10409 = vmatprep.subr.bf16.mxu1 %v17981_v51 }
 0xdce   :  { %10369 = vmatpush1.bf16.msra.mxu0 %v17983_v21  ;;  %10410 = vmatpush1.bf16.msra.mxu1 %v17985_v12 }
 0xdcf   :  { %10370 = vmatprep.subr.bf16.mxu0 %v17991_v17  ;;  %10411 = vmatprep.subr.bf16.mxu1 %v17993_v3 }
 0xdd2   :  { %10371 = vmatpush1.bf16.msra.mxu0 %v17995_v44  ;;  %10412 = vmatpush1.bf16.msra.mxu1 %v17997_v55 }
 0xdd3   :  { %10372 = vmatprep.subr.bf16.mxu0 %v18003_v39  ;;  %10413 = vmatprep.subr.bf16.mxu1 %v18005_v63 }
 0xdd6   :  { %10373 = vmatpush1.bf16.msra.mxu0 %v18007_v14  ;;  %10414 = vmatpush1.bf16.msra.mxu1 %v18009_v10 }
 0xdd7   :  { %10374 = vmatprep.subr.bf16.mxu0 %v18015_v25  ;;  %10415 = vmatprep.subr.bf16.mxu1 %v18017_v19 }
 0xdda   :  { %10375 = vmatpush1.bf16.msra.mxu0 %v18019_v57  ;;  %10416 = vmatpush1.bf16.msra.mxu1 %v18021_v27 }
 0xddb   :  { %10376 = vmatprep.subr.bf16.mxu0 %v18027_v0  ;;  %10417 = vmatprep.subr.bf16.mxu1 %v18029_v24 }
 0xdde   :  { %10377 = vmatpush1.bf16.msra.mxu0 %v18031_v53  ;;  %10418 = vmatpush1.bf16.msra.mxu1 %v18033_v28 }
 0xddf   :  { %10669 = vmatprep.subr.bf16.mxu0 %v18039_v15  ;;  %10710 = vmatprep.subr.bf16.mxu1 %v18041_v23  ;;  %v18928_v23 = vld [vmem:[#allocation63_spill] sm:$0xff] }
 0xe74   :  { %v9780_v31 = vpop.f32.mrb[160].mxu0  ;;  %v9821_v33 = vpop.f32.mrb[160].mxu1 }
 0xe75   :  { %v9828_v22 = vadd.f32 %v9780_v31, %v18924_v49  ;;  %v9830_v45 = vadd.f32 %v9821_v33, %v18925_v5  ;;  %v9782_v46 = vpop.f32.mrb[161].mxu0  ;;  %v9823_v59 = vpop.f32.mrb[161].mxu1  ;;  %v18930_v33 = vld [vmem:[#allocation42_spill] sm:$0xff] }
 0xe76   :  { %v9829_v16 = vadd.f32 %v9782_v46, %v18926_v54  ;;  %v9831_v47 = vadd.f32 %v9823_v59, %v18927_v40  ;;  %v9784_v32 = vpop.f32.mrb[162].mxu0  ;;  %v9825_v51 = vpop.f32.mrb[162].mxu1 }
 0xe77   :  { %v13569_v21 = vmul.f32 -1.442695, %v9828_v22  ;;  %v9785_v12 = vpop.f32.mrb[163].mxu0  ;;  %v9826_v17 = vpop.f32.mrb[163].mxu1  ;;  %v13571_v44 = vmul.f32 -1.442695, %v9830_v45 }
 0xe78   :  { %v13570_v3 = vmul.f32 -1.442695, %v9829_v16  ;;  %v18931_v22 = vld [vmem:[#allocation45_spill] sm:$0xff] }
 0xe79   :  { %15113 = vpow2.f32 %v13569_v21 }
 0xe7a   :  { %15115 = vpow2.f32 %v13570_v3 }
 0xe7b   :  { %15117 = vtanh.f32 %v9831_v47 }
 0xe7c   :  { %15119 = vpow2.f32 %v13571_v44 }
 0xe83   :  { %v15114_v55 = vpop.eup %15113 }
 0xe84   :  { %v9841_v39 = vadd.f32 1.0, %v15114_v55  ;;  %v15116_v63 = vpop.eup %15115 }
 0xe85   :  { %v9842_v14 = vadd.f32 1.0, %v15116_v63  ;;  %v15118_v10 = vpop.eup %15117  ;;  %v18257_v63 = vld [vmem:[#allocation15 + $0x28] ss:$16 sps:$4 sm:$0xff]  }
 0xe86   :  { %15121 = vrcp.f32 %v9841_v39  ;;  %v15120_v25 = vpop.eup %15119  ;;  %v18255_v39 = vld [vmem:[#allocation15 + $0x20] ss:$16 sps:$4 sm:$0xff]  }
 0xe87   :  { %15123 = vrcp.f32 %v9842_v14  ;;  %v9843_v0 = vadd.f32 1.0, %v15120_v25  ;;  %v18263_v14 = vld [vmem:[#allocation15 + $0x44] ss:$16 sps:$4 sm:$0xff]   ;;  %v18267_v25 = vld [vmem:[#allocation15 + $0x40] ss:$16 sps:$4 sm:$0xff]  }
 0xe89   :  { %15125 = vrcp.f32 %v9843_v0  ;;  %v18279_v0 = vld [vmem:[#allocation15 + $0x60] ss:$16 sps:$4 sm:$0xff]  }
 0xe90   :  { %v15122_v19 = vpop.eup %15121 }
 0xe91   :  { %v9852_v57 = vmul.f32 %v15122_v19, %v15118_v10  ;;  %v15124_v27 = vpop.eup %15123  ;;  %v18265_v10 = vld [vmem:[#allocation15 + $0x4c] ss:$16 sps:$4 sm:$0xff]   ;;  %v18269_v19 = vld [vmem:[#allocation15 + $0x48] ss:$16 sps:$4 sm:$0xff]  }
 0xe92   :  { %v9851_v24 = vmul.f32 %v15124_v27, %v18050_v41  ;;  %v18277_v27 = vld [vmem:[#allocation15 + $0x6c] ss:$16 sps:$4 sm:$0xff]  }
 0xe93   :  { %v15126_v40 = vpop.eup %15125 }
 0xe94   :  { %v10087_v53 = vpop.f32.mrb[164].mxu0  ;;  %v10128_v28 = vpop.f32.mrb[164].mxu1  ;;  %v18194_v15 = vadd.f32 %v9852_v57, %v9851_v24  ;;  %v18275_v57 = vld [vmem:[#allocation15 + $0x64] ss:$16 sps:$4 sm:$0xff]   ;;  %v18281_v24 = vld [vmem:[#allocation15 + $0x68] ss:$16 sps:$4 sm:$0xff]  }
 0xe95   :  { %v10135_v26 = vadd.f32 %v10087_v53, %v18928_v23  ;;  %v10137_v58 = vadd.f32 %v10128_v28, %v18929_v35  ;;  %v10089_v7 = vpop.f32.mrb[165].mxu0  ;;  %v10130_v31 = vpop.f32.mrb[165].mxu1  ;;  %v18287_v53 = vld [vmem:[#allocation15 + $0x84] ss:$16 sps:$4 sm:$0xff]   ;;  %v18289_v28 = vld [vmem:[#allocation15 + $0x8c] ss:$16 sps:$4 sm:$0xff]  }
 0xe96   :  { %v10136_v49 = vadd.f32 %v10089_v7, %v18930_v33  ;;  %v10138_v5 = vadd.f32 %v10130_v31, %v18931_v22  ;;  %v10091_v45 = vpop.f32.mrb[166].mxu0  ;;  %v10132_v46 = vpop.f32.mrb[166].mxu1  ;;  %15127 = vtanh.f32 %v18194_v15  ;;  %v18291_v23 = vld [vmem:[#allocation15 + $0x80] ss:$16 sps:$4 sm:$0xff]   ;;  %v18299_v35 = vld [vmem:[#allocation15 + $0xa4] ss:$16 sps:$4 sm:$0xff]  }
 0xe97   :  { %v13604_v41 = vmul.f32 -1.442695, %v10135_v26  ;;  %v10092_v59 = vpop.f32.mrb[167].mxu0  ;;  %v10133_v54 = vpop.f32.mrb[167].mxu1  ;;  %v13606_v32 = vmul.f32 -1.442695, %v10137_v58 }
 0xe98   :  { %v13605_v16 = vmul.f32 -1.442695, %v10136_v49  ;;  %v18293_v26 = vld [vmem:[#allocation15 + $0x88] ss:$16 sps:$4 sm:$0xff]   ;;  %v18301_v58 = vld [vmem:[#allocation15 + $0xac] ss:$16 sps:$4 sm:$0xff]  }
 0xe99   :  { %15129 = vpow2.f32 %v13604_v41  ;;  %v18303_v7 = vld [vmem:[#allocation15 + $0xa0] ss:$16 sps:$4 sm:$0xff]   ;;  %v18305_v31 = vld [vmem:[#allocation15 + $0xa8] ss:$16 sps:$4 sm:$0xff]   ;;  %v18311_v33 = vld [vmem:[#allocation15 + $0xc4] ss:$16 sps:$4 sm:$0xff]  }
 0xe9a   :  { %15131 = vpow2.f32 %v13605_v16  ;;  %v18313_v49 = vld [vmem:[#allocation15 + $0xcc] ss:$16 sps:$4 sm:$0xff]   ;;  %v18315_v22 = vld [vmem:[#allocation15 + $0xc0] ss:$16 sps:$4 sm:$0xff]   ;;  %v18323_v45 = vld [vmem:[#allocation15 + $0xe4] ss:$16 sps:$4 sm:$0xff]  }
 0xe9b   :  { %15133 = vtanh.f32 %v10138_v5  ;;  %v18317_v5 = vld [vmem:[#allocation15 + $0xc8] ss:$16 sps:$4 sm:$0xff]   ;;  %v18325_v46 = vld [vmem:[#allocation15 + $0xec] ss:$16 sps:$4 sm:$0xff]   ;;  %v18327_v41 = vld [vmem:[#allocation15 + $0xe0] ss:$16 sps:$4 sm:$0xff]  }
 0xe9c   :  { %15135 = vpow2.f32 %v13606_v32  ;;  %v18329_v59 = vld [vmem:[#allocation15 + $0xe8] ss:$16 sps:$4 sm:$0xff]   ;;  %v18335_v54 = vld [vmem:[#allocation16 + $0x4] ss:$16 sps:$4 sm:$0xff]   ;;  %v18337_v16 = vld [vmem:[#allocation16 + $0xc] ss:$16 sps:$4 sm:$0xff]  }
 0xe9d   :  { %v18939_v32 = vld [vmem:[#allocation75_spill] sm:$0xff] }
 0xea0   :  { %v15128_v47 = vpop.eup %15127 }
 0xea1   :  { %v9855_v51 = vmul.f32 %v15128_v47, %v15126_v40 }
 0xea3   :  { %v15130_v21 = vpop.eup %15129  ;;  %10163 = vst [vmem:[#allocation4 + $0x40] sm:$0xff] %v9855_v51  ;;  %v10169_v17 = vpack.c.bf16 %v9855_v51, %v9855_v51 }
 0xea4   :  { %v10148_v12 = vadd.f32 1.0, %v15130_v21  ;;  %v15132_v3 = vpop.eup %15131  ;;  %v18940_v21 = vld [vmem:[#allocation76_spill] sm:$0xff] }
 0xea5   :  { %v10149_v44 = vadd.f32 1.0, %v15132_v3  ;;  %10395 = vmatmul.mubr.bf16.vlgmr.msra.gmra.mrb[168].mxu0 %v10169_v17  ;;  %10436 = vmatmul.mubr.bf16.vlgmr.msra.gmra.mrb[168].mxu1 %v10169_v17 }
 0xea6   :  { %15137 = vrcp.f32 %v10148_v12  ;;  %10670 = vmatpush1.bf16.msra.mxu0 %v18057_v1  ;;  %10711 = vmatpush1.bf16.msra.mxu1 %v18059_v36  ;;  %v15134_v1 = vpop.eup %15133 }
 0xea7   :  { %15139 = vrcp.f32 %v10149_v44  ;;  %10671 = vmatprep.subr.bf16.mxu0 %v18061_v11  ;;  %10712 = vmatprep.subr.bf16.mxu1 %v18063_v20  ;;  %v15136_v55 = vpop.eup %15135  ;;  %v18941_v44 = vld [vmem:[#allocation77_spill] sm:$0xff] }
 0xea8   :  { %10701 = vmatprep.mubr.bf16.mxu0 %v18704_v60  ;;  %10742 = vmatprep.mubr.bf16.mxu1 %v18704_v60 }
 0xeaa   :  { %10672 = vmatpush1.bf16.msra.mxu0 %v18067_v6  ;;  %10713 = vmatpush1.bf16.msra.mxu1 %v18069_v37  ;;  %v10150_v6 = vadd.f32 1.0, %v15136_v55  ;;  %v18942_v55 = vld [vmem:[#allocation34_spill] sm:$0xff] }
 0xeab   :  { %10673 = vmatprep.subr.bf16.mxu0 %v18073_v52  ;;  %10714 = vmatprep.subr.bf16.mxu1 %v18075_v56  ;;  %v18932_v56 = vld [vmem:[#allocation80_spill] sm:$0xff] }
 0xeac   :  { %15141 = vrcp.f32 %v10150_v6 }
 0xeae   :  { %10674 = vmatpush1.bf16.msra.mxu0 %v18081_v48  ;;  %10715 = vmatpush1.bf16.msra.mxu1 %v18083_v34  ;;  %v18933_v48 = vld [vmem:[#allocation25_spill] sm:$0xff]  ;;  %v18934_v34 = vld [vmem:[#allocation66_spill] sm:$0xff] }
 0xeaf   :  { %10675 = vmatprep.subr.bf16.mxu0 %v18087_v42  ;;  %10716 = vmatprep.subr.bf16.mxu1 %v18089_v38  ;;  %v18935_v42 = vld [vmem:[#allocation78_spill] sm:$0xff]  ;;  %v18936_v38 = vld [vmem:[#allocation31_spill] sm:$0xff] }
 0xeb0   :  { %v15138_v36 = vpop.eup %15137 }
 0xeb1   :  { %v10159_v11 = vmul.f32 %v15138_v36, %v15134_v1  ;;  %v15140_v20 = vpop.eup %15139 }
 0xeb2   :  { %v10158_v37 = vmul.f32 %v15140_v20, %v18116_v43  ;;  %10676 = vmatpush1.bf16.msra.mxu0 %v18093_v30  ;;  %10717 = vmatpush1.bf16.msra.mxu1 %v18095_v13  ;;  %v18937_v30 = vld [vmem:[#allocation33_spill] sm:$0xff]  ;;  %v18938_v13 = vld [vmem:[#allocation32_spill] sm:$0xff] }
 0xeb3   :  { %10677 = vmatprep.subr.bf16.mxu0 %v18099_v4  ;;  %10718 = vmatprep.subr.bf16.mxu1 %v18101_v18 }
 0xeb4   :  { %v18220_v52 = vadd.f32 %v10159_v11, %v10158_v37 }
 0xeb6   :  { %15143 = vtanh.f32 %v18220_v52  ;;  %10678 = vmatpush1.bf16.msra.mxu0 %v18106_v61  ;;  %10719 = vmatpush1.bf16.msra.mxu1 %v18932_v56  ;;  %v15142_v4 = vpop.eup %15141 }
 0xeb7   :  { %10679 = vmatprep.subr.bf16.mxu0 %v18933_v48  ;;  %10720 = vmatprep.subr.bf16.mxu1 %v18934_v34 }
 0xeba   :  { %10680 = vmatpush1.bf16.msra.mxu0 %v18935_v42  ;;  %10721 = vmatpush1.bf16.msra.mxu1 %v18936_v38 }
 0xebb   :  { %10681 = vmatprep.subr.bf16.mxu0 %v18937_v30  ;;  %10722 = vmatprep.subr.bf16.mxu1 %v18938_v13 }
 0xebe   :  { %10682 = vmatpush1.bf16.msra.mxu0 %v18133_v29  ;;  %10723 = vmatpush1.bf16.msra.mxu1 %v18135_v8  ;;  %v18239_v29 = vld [vmem:[#allocation15 + $0x4] ss:$16 sps:$4 sm:$0xff]   ;;  %v18241_v8 = vld [vmem:[#allocation15 + $0xc] ss:$16 sps:$4 sm:$0xff]  }
 0xebf   :  { %10683 = vmatprep.subr.bf16.mxu0 %v18139_v50  ;;  %10724 = vmatprep.subr.bf16.mxu1 %v18141_v9  ;;  %v18243_v50 = vld [vmem:[#allocation15] ss:$16 sps:$4 sm:$0xff]   ;;  %v18245_v9 = vld [vmem:[#allocation15 + $0x8] ss:$16 sps:$4 sm:$0xff]  }
 0xec0   :  { %v15144_v18 = vpop.eup %15143 }
 0xec1   :  { %v10162_v61 = vmul.f32 %v15144_v18, %v15142_v4 }
 0xec2   :  { %10684 = vmatpush1.bf16.msra.mxu0 %v18145_v62  ;;  %10725 = vmatpush1.bf16.msra.mxu1 %v18147_v2  ;;  %v18251_v62 = vld [vmem:[#allocation15 + $0x24] ss:$16 sps:$4 sm:$0xff]   ;;  %v18253_v2 = vld [vmem:[#allocation15 + $0x2c] ss:$16 sps:$4 sm:$0xff]  }
 0xec3   :  { %10164 = vst [vmem:[#allocation4 + $0x38] sm:$0xff] %v10162_v61  ;;  %v10476_v43 = vpack.c.bf16 %v10162_v61, %v10162_v61  ;;  %10978 = vmatprep.subr.bf16.mxu0 %v18239_v29  ;;  %11019 = vmatprep.subr.bf16.mxu1 %v18241_v8 }
 0xec5   :  { %10702 = vmatmul.mubr.bf16.vlgmr.msra.gmra.mrb[172].mxu0 %v10476_v43  ;;  %10743 = vmatmul.mubr.bf16.vlgmr.msra.gmra.mrb[172].mxu1 %v10476_v43 }
 0xec6   :  { %11010 = vmatprep.mubr.bf16.mxu0 %v18704_v60  ;;  %11051 = vmatprep.mubr.bf16.mxu1 %v18704_v60 }
 0xec7   :  { %10979 = vmatpush1.bf16.msra.mxu0 %v18243_v50  ;;  %11020 = vmatpush1.bf16.msra.mxu1 %v18245_v9 }
 0xec8   :  { %10980 = vmatprep.subr.bf16.mxu0 %v18251_v62  ;;  %11021 = vmatprep.subr.bf16.mxu1 %v18253_v2 }
 0xecb   :  { %10981 = vmatpush1.bf16.msra.mxu0 %v18255_v39  ;;  %11022 = vmatpush1.bf16.msra.mxu1 %v18257_v63 }
 0xecc   :  { %10982 = vmatprep.subr.bf16.mxu0 %v18263_v14  ;;  %11023 = vmatprep.subr.bf16.mxu1 %v18265_v10 }
 0xecf   :  { %10983 = vmatpush1.bf16.msra.mxu0 %v18267_v25  ;;  %11024 = vmatpush1.bf16.msra.mxu1 %v18269_v19 }
 0xed0   :  { %10984 = vmatprep.subr.bf16.mxu0 %v18275_v57  ;;  %11025 = vmatprep.subr.bf16.mxu1 %v18277_v27 }
 0xed3   :  { %10985 = vmatpush1.bf16.msra.mxu0 %v18279_v0  ;;  %11026 = vmatpush1.bf16.msra.mxu1 %v18281_v24 }
 0xed4   :  { %10986 = vmatprep.subr.bf16.mxu0 %v18287_v53  ;;  %11027 = vmatprep.subr.bf16.mxu1 %v18289_v28 }
 0xed7   :  { %10987 = vmatpush1.bf16.msra.mxu0 %v18291_v23  ;;  %11028 = vmatpush1.bf16.msra.mxu1 %v18293_v26 }
 0xed8   :  { %10988 = vmatprep.subr.bf16.mxu0 %v18299_v35  ;;  %11029 = vmatprep.subr.bf16.mxu1 %v18301_v58 }
 0xedb   :  { %10989 = vmatpush1.bf16.msra.mxu0 %v18303_v7  ;;  %11030 = vmatpush1.bf16.msra.mxu1 %v18305_v31 }
 0xedc   :  { %10990 = vmatprep.subr.bf16.mxu0 %v18311_v33  ;;  %11031 = vmatprep.subr.bf16.mxu1 %v18313_v49 }
 0xedf   :  { %10991 = vmatpush1.bf16.msra.mxu0 %v18315_v22  ;;  %11032 = vmatpush1.bf16.msra.mxu1 %v18317_v5 }
 0xee0   :  { %10992 = vmatprep.subr.bf16.mxu0 %v18323_v45  ;;  %11033 = vmatprep.subr.bf16.mxu1 %v18325_v46 }
 0xee3   :  { %10993 = vmatpush1.bf16.msra.mxu0 %v18327_v41  ;;  %11034 = vmatpush1.bf16.msra.mxu1 %v18329_v59 }
 0xee4   :  { %11285 = vmatprep.subr.bf16.mxu0 %v18335_v54  ;;  %11326 = vmatprep.subr.bf16.mxu1 %v18337_v16 }
 0xf78   :  { %v10396_v40 = vpop.f32.mrb[168].mxu0  ;;  %v10437_v47 = vpop.f32.mrb[168].mxu1 }
 0xf79   :  { %v10444_v51 = vadd.f32 %v10396_v40, %v18939_v32  ;;  %v10446_v12 = vadd.f32 %v10437_v47, %v18940_v21  ;;  %v10398_v17 = vpop.f32.mrb[169].mxu0  ;;  %v10439_v3 = vpop.f32.mrb[169].mxu1 }
 0xf7a   :  { %v10445_v1 = vadd.f32 %v10398_v17, %v18941_v44  ;;  %v10447_v36 = vadd.f32 %v10439_v3, %v18942_v55  ;;  %v10400_v11 = vpop.f32.mrb[170].mxu0  ;;  %v10441_v20 = vpop.f32.mrb[170].mxu1  ;;  %v18944_v44 = vld [vmem:[#allocation29_spill] sm:$0xff] }
 0xf7b   :  { %v13639_v6 = vmul.f32 -1.442695, %v10444_v51  ;;  %v10401_v37 = vpop.f32.mrb[171].mxu0  ;;  %v10442_v56 = vpop.f32.mrb[171].mxu1  ;;  %v13641_v34 = vmul.f32 -1.442695, %v10446_v12 }
 0xf7c   :  { %v13640_v48 = vmul.f32 -1.442695, %v10445_v1  ;;  %v18943_v12 = vld [vmem:[#allocation26_spill] sm:$0xff]  ;;  %v18945_v11 = vld [vmem:[#allocation28_spill] sm:$0xff] }
 0xf7d   :  { %15145 = vpow2.f32 %v13639_v6  ;;  %v18946_v6 = vld [vmem:[#allocation30_spill] sm:$0xff] }
 0xf7e   :  { %15147 = vpow2.f32 %v13640_v48 }
 0xf7f   :  { %15149 = vtanh.f32 %v10447_v36 }
 0xf80   :  { %15151 = vpow2.f32 %v13641_v34 }
 0xf87   :  { %v15146_v42 = vpop.eup %15145 }
 0xf88   :  { %v10457_v38 = vadd.f32 1.0, %v15146_v42  ;;  %v15148_v30 = vpop.eup %15147 }
 0xf89   :  { %v10458_v13 = vadd.f32 1.0, %v15148_v30  ;;  %v15150_v4 = vpop.eup %15149 }
 0xf8a   :  { %15153 = vrcp.f32 %v10457_v38  ;;  %v15152_v18 = vpop.eup %15151 }
 0xf8b   :  { %15155 = vrcp.f32 %v10458_v13  ;;  %v10459_v47 = vadd.f32 1.0, %v15152_v18 }
 0xf8d   :  { %15157 = vrcp.f32 %v10459_v47 }
 0xf94   :  { %v15154_v61 = vpop.eup %15153 }
 0xf95   :  { %v10468_v43 = vmul.f32 %v15154_v61, %v15150_v4  ;;  %v15156_v40 = vpop.eup %15155 }
 0xf96   :  { %v10467_v32 = vmul.f32 %v15156_v40, %v18194_v15  ;;  %v18355_v40 = vld [vmem:[#allocation16 + $0x8] ss:$16 sps:$4 sm:$0xff]  }
 0xf97   :  { %v15158_v30 = vpop.eup %15157 }
 0xf98   :  { %v10703_v51 = vpop.f32.mrb[172].mxu0  ;;  %v10744_v21 = vpop.f32.mrb[172].mxu1  ;;  %v18346_v17 = vadd.f32 %v10468_v43, %v10467_v32  ;;  %v18353_v43 = vld [vmem:[#allocation16] ss:$16 sps:$4 sm:$0xff]  }
 0xf99   :  { %v10751_v3 = vadd.f32 %v10703_v51, %v18943_v12  ;;  %v10753_v1 = vadd.f32 %v10744_v21, %v18944_v44  ;;  %v10705_v55 = vpop.f32.mrb[173].mxu0  ;;  %v10746_v36 = vpop.f32.mrb[173].mxu1  ;;  %v18357_v51 = vld [vmem:[#allocation16 + $0x24] ss:$16 sps:$4 sm:$0xff]   ;;  %v18359_v21 = vld [vmem:[#allocation16 + $0x2c] ss:$16 sps:$4 sm:$0xff]  }
 0xf9a   :  { %v10752_v20 = vadd.f32 %v10705_v55, %v18945_v11  ;;  %v10754_v37 = vadd.f32 %v10746_v36, %v18946_v6  ;;  %v10707_v56 = vpop.f32.mrb[174].mxu0  ;;  %v10748_v48 = vpop.f32.mrb[174].mxu1  ;;  %15159 = vtanh.f32 %v18346_v17  ;;  %v18363_v44 = vld [vmem:[#allocation16 + $0x20] ss:$16 sps:$4 sm:$0xff]   ;;  %v18369_v55 = vld [vmem:[#allocation16 + $0x44] ss:$16 sps:$4 sm:$0xff]  }
 0xf9b   :  { %v13674_v15 = vmul.f32 -1.442695, %v10751_v3  ;;  %v10708_v34 = vpop.f32.mrb[175].mxu0  ;;  %v10749_v42 = vpop.f32.mrb[175].mxu1  ;;  %v13676_v4 = vmul.f32 -1.442695, %v10753_v1 }
 0xf9c   :  { %v13675_v38 = vmul.f32 -1.442695, %v10752_v20  ;;  %v18365_v1 = vld [vmem:[#allocation16 + $0x28] ss:$16 sps:$4 sm:$0xff]   ;;  %v18371_v36 = vld [vmem:[#allocation16 + $0x4c] ss:$16 sps:$4 sm:$0xff]  }
 0xf9d   :  { %15161 = vpow2.f32 %v13674_v15  ;;  %v18377_v11 = vld [vmem:[#allocation16 + $0x40] ss:$16 sps:$4 sm:$0xff]   ;;  %v18379_v20 = vld [vmem:[#allocation16 + $0x48] ss:$16 sps:$4 sm:$0xff]   ;;  %v18383_v6 = vld [vmem:[#allocation16 + $0x64] ss:$16 sps:$4 sm:$0xff]  }
 0xf9e   :  { %15163 = vpow2.f32 %v13675_v38  ;;  %v18389_v15 = vld [vmem:[#allocation16 + $0x60] ss:$16 sps:$4 sm:$0xff]   ;;  %v18391_v34 = vld [vmem:[#allocation16 + $0x68] ss:$16 sps:$4 sm:$0xff]   ;;  %v18395_v38 = vld [vmem:[#allocation16 + $0x84] ss:$16 sps:$4 sm:$0xff]  }
 0xf9f   :  { %15165 = vtanh.f32 %v10754_v37  ;;  %v18385_v37 = vld [vmem:[#allocation16 + $0x6c] ss:$16 sps:$4 sm:$0xff]  }
 0xfa0   :  { %15167 = vpow2.f32 %v13676_v4 }
 0xfa4   :  { %v15160_v13 = vpop.eup %15159 }
 0xfa5   :  { %v10471_v18 = vmul.f32 %v15160_v13, %v15158_v30  ;;  %v18397_v30 = vld [vmem:[#allocation16 + $0x8c] ss:$16 sps:$4 sm:$0xff]  }
 0xfa7   :  { %v15162_v61 = vpop.eup %15161  ;;  %10779 = vst [vmem:[#allocation4 + $0x50] sm:$0xff] %v10471_v18  ;;  %v10785_v32 = vpack.c.bf16 %v10471_v18, %v10471_v18 }
 0xfa8   :  { %v10764_v47 = vadd.f32 1.0, %v15162_v61  ;;  %v15164_v12 = vpop.eup %15163 }
 0xfa9   :  { %v10765_v3 = vadd.f32 1.0, %v15164_v12  ;;  %11011 = vmatmul.mubr.bf16.vlgmr.msra.gmra.mrb[176].mxu0 %v10785_v32  ;;  %11052 = vmatmul.mubr.bf16.vlgmr.msra.gmra.mrb[176].mxu1 %v10785_v32  ;;  %v15166_v56 = vpop.eup %15165  ;;  %v18404_v32 = vld [vmem:[#allocation16 + $0x88] ss:$16 sps:$4 sm:$0xff]   ;;  %v18408_v12 = vld [vmem:[#allocation16 + $0xa4] ss:$16 sps:$4 sm:$0xff]  }
 0xfaa   :  { %15169 = vrcp.f32 %v10764_v47  ;;  %11286 = vmatpush1.bf16.msra.mxu0 %v18353_v43  ;;  %11327 = vmatpush1.bf16.msra.mxu1 %v18355_v40  ;;  %v15168_v48 = vpop.eup %15167  ;;  %v18402_v47 = vld [vmem:[#allocation16 + $0x80] ss:$16 sps:$4 sm:$0xff]   ;;  %18947 = vst [vmem:[#allocation35_spill] sm:$0xff] %v18404_v32  ;;  %18948 = vst [vmem:[#allocation48_spill] sm:$0xff] %v18408_v12 }
 0xfab   :  { %15171 = vrcp.f32 %v10765_v3  ;;  %11287 = vmatprep.subr.bf16.mxu0 %v18357_v51  ;;  %11328 = vmatprep.subr.bf16.mxu1 %v18359_v21  ;;  %v10766_v18 = vadd.f32 1.0, %v15168_v48  ;;  %v18410_v3 = vld [vmem:[#allocation16 + $0xac] ss:$16 sps:$4 sm:$0xff]   ;;  %v18419_v48 = vld [vmem:[#allocation16 + $0xa8] ss:$16 sps:$4 sm:$0xff]  }
 0xfac   :  { %11317 = vmatprep.mubr.bf16.mxu0 %v18704_v60  ;;  %11358 = vmatprep.mubr.bf16.mxu1 %v18704_v60  ;;  %18949 = vst [vmem:[#allocation51_spill] sm:$0xff] %v18410_v3  ;;  %18951 = vst [vmem:[#allocation73_spill] sm:$0xff] %v18419_v48 }
 0xfad   :  { %15173 = vrcp.f32 %v10766_v18  ;;  %v18431_v18 = vld [vmem:[#allocation16 + $0xc8] ss:$16 sps:$4 sm:$0xff]  }
 0xfae   :  { %11288 = vmatpush1.bf16.msra.mxu0 %v18363_v44  ;;  %11329 = vmatpush1.bf16.msra.mxu1 %v18365_v1 }
 0xfaf   :  { %11289 = vmatprep.subr.bf16.mxu0 %v18369_v55  ;;  %11330 = vmatprep.subr.bf16.mxu1 %v18371_v36 }
 0xfb2   :  { %11290 = vmatpush1.bf16.msra.mxu0 %v18377_v11  ;;  %11331 = vmatpush1.bf16.msra.mxu1 %v18379_v20 }
 0xfb3   :  { %11291 = vmatprep.subr.bf16.mxu0 %v18383_v6  ;;  %11332 = vmatprep.subr.bf16.mxu1 %v18385_v37 }
 0xfb4   :  { %v15170_v42 = vpop.eup %15169 }
 0xfb5   :  { %v10775_v13 = vmul.f32 %v15170_v42, %v15166_v56  ;;  %v15172_v4 = vpop.eup %15171  ;;  %v18423_v42 = vld [vmem:[#allocation16 + $0xc4] ss:$16 sps:$4 sm:$0xff]  }
 0xfb6   :  { %v10774_v61 = vmul.f32 %v15172_v4, %v18220_v52  ;;  %11292 = vmatpush1.bf16.msra.mxu0 %v18389_v15  ;;  %11333 = vmatpush1.bf16.msra.mxu1 %v18391_v34  ;;  %v18417_v52 = vld [vmem:[#allocation16 + $0xa0] ss:$16 sps:$4 sm:$0xff]   ;;  %18952 = vst [vmem:[#allocation27_spill] sm:$0xff] %v18423_v42  ;;  %v18425_v4 = vld [vmem:[#allocation16 + $0xcc] ss:$16 sps:$4 sm:$0xff]  }
 0xfb7   :  { %11293 = vmatprep.subr.bf16.mxu0 %v18395_v38  ;;  %11334 = vmatprep.subr.bf16.mxu1 %v18397_v30  ;;  %18950 = vst [vmem:[#allocation71_spill] sm:$0xff] %v18417_v52  ;;  %18953 = vst [vmem:[#allocation79_spill] sm:$0xff] %v18425_v4 }
 0xfb8   :  { %v18412_v56 = vadd.f32 %v10775_v13, %v10774_v61  ;;  %v18429_v13 = vld [vmem:[#allocation16 + $0xc0] ss:$16 sps:$4 sm:$0xff]   ;;  %v18435_v61 = vld [vmem:[#allocation16 + $0xe4] ss:$16 sps:$4 sm:$0xff]  }
 0xfba   :  { %15175 = vtanh.f32 %v18412_v56  ;;  %11294 = vmatpush1.bf16.msra.mxu0 %v18402_v47  ;;  %11335 = vmatpush1.bf16.msra.mxu1 %v18404_v32 }
 0xfbb   :  { %11295 = vmatprep.subr.bf16.mxu0 %v18408_v12  ;;  %11336 = vmatprep.subr.bf16.mxu1 %v18410_v3  ;;  %v18437_v12 = vld [vmem:[#allocation16 + $0xec] ss:$16 sps:$4 sm:$0xff]   ;;  %v18441_v3 = vld [vmem:[#allocation16 + $0xe0] ss:$16 sps:$4 sm:$0xff]  }
 0xfbe   :  { %11296 = vmatpush1.bf16.msra.mxu0 %v18417_v52  ;;  %11337 = vmatpush1.bf16.msra.mxu1 %v18419_v48  ;;  %v18443_v52 = vld [vmem:[#allocation16 + $0xe8] ss:$16 sps:$4 sm:$0xff]   ;;  %v15174_v48 = vpop.eup %15173 }
 0xfbf   :  { %11297 = vmatprep.subr.bf16.mxu0 %v18423_v42  ;;  %11338 = vmatprep.subr.bf16.mxu1 %v18425_v4 }
 0xfc2   :  { %11298 = vmatpush1.bf16.msra.mxu0 %v18429_v13  ;;  %11339 = vmatpush1.bf16.msra.mxu1 %v18431_v18 }
 0xfc3   :  { %11299 = vmatprep.subr.bf16.mxu0 %v18435_v61  ;;  %11340 = vmatprep.subr.bf16.mxu1 %v18437_v12 }
 0xfc4   :  { %v15176_v42 = vpop.eup %15175 }
 0xfc5   :  { %v10778_v32 = vmul.f32 %v15176_v42, %v15174_v48  ;;  %v18959_v48 = vld [vmem:[#allocation52_spill] sm:$0xff] }
 0xfc6   :  { %11300 = vmatpush1.bf16.msra.mxu0 %v18441_v3  ;;  %11341 = vmatpush1.bf16.msra.mxu1 %v18443_v52 }
 0xfc7   :  { %10780 = vst [vmem:[#allocation4 + $0x28] sm:$0xff] %v10778_v32  ;;  %v11092_v4 = vpack.c.bf16 %v10778_v32, %v10778_v32  ;;  %11594 = vmatprep.subr.bf16.mxu0 %v18239_v29  ;;  %11635 = vmatprep.subr.bf16.mxu1 %v18241_v8 }
 0xfc9   :  { %11318 = vmatmul.mubr.bf16.vlgmr.msra.gmra.mrb[180].mxu0 %v11092_v4  ;;  %11359 = vmatmul.mubr.bf16.vlgmr.msra.gmra.mrb[180].mxu1 %v11092_v4 }
 0xfca   :  { %11595 = vmatpush1.bf16.msra.mxu0 %v18243_v50  ;;  %11636 = vmatpush1.bf16.msra.mxu1 %v18245_v9  ;;  %v18954_v50 = vld [vmem:[#allocation37_spill] sm:$0xff] }
 0xfcb   :  { %11596 = vmatprep.subr.bf16.mxu0 %v18251_v62  ;;  %11637 = vmatprep.subr.bf16.mxu1 %v18253_v2  ;;  %v18955_v62 = vld [vmem:[#allocation36_spill] sm:$0xff] }
 0xfcc   :  { %11626 = vmatprep.mubr.bf16.mxu0 %v18704_v60  ;;  %11667 = vmatprep.mubr.bf16.mxu1 %v18704_v60 }
 0xfce   :  { %11597 = vmatpush1.bf16.msra.mxu0 %v18255_v39  ;;  %11638 = vmatpush1.bf16.msra.mxu1 %v18257_v63 }
 0xfcf   :  { %11598 = vmatprep.subr.bf16.mxu0 %v18263_v14  ;;  %11639 = vmatprep.subr.bf16.mxu1 %v18265_v10  ;;  %v18956_v14 = vld [vmem:[#allocation38_spill] sm:$0xff] }
 0xfd2   :  { %11599 = vmatpush1.bf16.msra.mxu0 %v18267_v25  ;;  %11640 = vmatpush1.bf16.msra.mxu1 %v18269_v19  ;;  %v18957_v25 = vld [vmem:[#allocation55_spill] sm:$0xff] }
 0xfd3   :  { %11600 = vmatprep.subr.bf16.mxu0 %v18275_v57  ;;  %11641 = vmatprep.subr.bf16.mxu1 %v18277_v27 }
 0xfd6   :  { %11601 = vmatpush1.bf16.msra.mxu0 %v18279_v0  ;;  %11642 = vmatpush1.bf16.msra.mxu1 %v18281_v24 }
 0xfd7   :  { %11602 = vmatprep.subr.bf16.mxu0 %v18287_v53  ;;  %11643 = vmatprep.subr.bf16.mxu1 %v18289_v28 }
 0xfda   :  { %11603 = vmatpush1.bf16.msra.mxu0 %v18291_v23  ;;  %11644 = vmatpush1.bf16.msra.mxu1 %v18293_v26 }
 0xfdb   :  { %11604 = vmatprep.subr.bf16.mxu0 %v18299_v35  ;;  %11645 = vmatprep.subr.bf16.mxu1 %v18301_v58 }
 0xfde   :  { %11605 = vmatpush1.bf16.msra.mxu0 %v18303_v7  ;;  %11646 = vmatpush1.bf16.msra.mxu1 %v18305_v31 }
 0xfdf   :  { %11606 = vmatprep.subr.bf16.mxu0 %v18311_v33  ;;  %11647 = vmatprep.subr.bf16.mxu1 %v18313_v49 }
 0xfe2   :  { %11607 = vmatpush1.bf16.msra.mxu0 %v18315_v22  ;;  %11648 = vmatpush1.bf16.msra.mxu1 %v18317_v5 }
 0xfe3   :  { %11608 = vmatprep.subr.bf16.mxu0 %v18323_v45  ;;  %11649 = vmatprep.subr.bf16.mxu1 %v18325_v46 }
 0xfe6   :  { %11609 = vmatpush1.bf16.msra.mxu0 %v18327_v41  ;;  %11650 = vmatpush1.bf16.msra.mxu1 %v18329_v59 }
 0xfe7   :  { %11901 = vmatprep.subr.bf16.mxu0 %v18335_v54  ;;  %11942 = vmatprep.subr.bf16.mxu1 %v18337_v16  ;;  %v18958_v16 = vld [vmem:[#allocation53_spill] sm:$0xff] }
0x107c   :  { %v11012_v29 = vpop.f32.mrb[176].mxu0  ;;  %v11053_v8 = vpop.f32.mrb[176].mxu1 }
0x107d   :  { %v11060_v9 = vadd.f32 %v11012_v29, %v18954_v50  ;;  %v11062_v2 = vadd.f32 %v11053_v8, %v18955_v62  ;;  %v11014_v39 = vpop.f32.mrb[177].mxu0  ;;  %v11055_v63 = vpop.f32.mrb[177].mxu1  ;;  %v18960_v8 = vld [vmem:[#allocation54_spill] sm:$0xff] }
0x107e   :  { %v11061_v10 = vadd.f32 %v11014_v39, %v18956_v14  ;;  %v11063_v19 = vadd.f32 %v11055_v63, %v18957_v25  ;;  %v11016_v57 = vpop.f32.mrb[178].mxu0  ;;  %v11057_v27 = vpop.f32.mrb[178].mxu1 }
0x107f   :  { %v13709_v0 = vmul.f32 -1.442695, %v11060_v9  ;;  %v11017_v24 = vpop.f32.mrb[179].mxu0  ;;  %v11058_v53 = vpop.f32.mrb[179].mxu1  ;;  %v13711_v23 = vmul.f32 -1.442695, %v11062_v2 }
0x1080   :  { %v13710_v28 = vmul.f32 -1.442695, %v11061_v10  ;;  %v18961_v9 = vld [vmem:[#allocation82_spill] sm:$0xff] }
0x1081   :  { %15177 = vpow2.f32 %v13709_v0 }
0x1082   :  { %15179 = vpow2.f32 %v13710_v28 }
0x1083   :  { %15181 = vtanh.f32 %v11063_v19 }
0x1084   :  { %15183 = vpow2.f32 %v13711_v23 }
0x108b   :  { %v15178_v26 = vpop.eup %15177 }
0x108c   :  { %v11073_v35 = vadd.f32 1.0, %v15178_v26  ;;  %v15180_v58 = vpop.eup %15179 }
0x108d   :  { %v11074_v7 = vadd.f32 1.0, %v15180_v58  ;;  %v15182_v31 = vpop.eup %15181  ;;  %v14713_v58 = vld [vmem:[#allocation18 + $0x60] sm:$0xff]  }
0x108e   :  { %15185 = vrcp.f32 %v11073_v35  ;;  %v15184_v33 = vpop.eup %15183  ;;  %v14706_v35 = vld [vmem:[#allocation18] sm:$0xff]  }
0x108f   :  { %15187 = vrcp.f32 %v11074_v7  ;;  %v11075_v45 = vadd.f32 1.0, %v15184_v33  ;;  %v14714_v7 = vld [vmem:[#allocation18 + $0x20] sm:$0xff]   ;;  %v14716_v33 = vld [vmem:[#allocation18 + $0x28] sm:$0xff]  }
0x1091   :  { %15189 = vrcp.f32 %v11075_v45  ;;  %v14720_v45 = vld [vmem:[#allocation18 + $0x38] sm:$0xff]  }
0x1098   :  { %v15186_v49 = vpop.eup %15185 }
0x1099   :  { %v11084_v22 = vmul.f32 %v15186_v49, %v15182_v31  ;;  %v15188_v5 = vpop.eup %15187  ;;  %v14715_v31 = vld [vmem:[#allocation18 + $0x68] sm:$0xff]   ;;  %v14717_v49 = vld [vmem:[#allocation18 + $0x70] sm:$0xff]  }
0x109a   :  { %v11083_v46 = vmul.f32 %v15188_v5, %v18346_v17  ;;  %v14719_v5 = vld [vmem:[#allocation18 + $0x78] sm:$0xff]  }
0x109b   :  { %v15190_v25 = vpop.eup %15189 }
0x109c   :  { %v11319_v41 = vpop.f32.mrb[180].mxu0  ;;  %v11360_v59 = vpop.f32.mrb[180].mxu1  ;;  %v18490_v54 = vadd.f32 %v11084_v22, %v11083_v46  ;;  %v14718_v22 = vld [vmem:[#allocation18 + $0x30] sm:$0xff]  }
0x109d   :  { %v11367_v32 = vadd.f32 %v11319_v41, %v18958_v16  ;;  %v11369_v42 = vadd.f32 %v11360_v59, %v18959_v48  ;;  %v11321_v4 = vpop.f32.mrb[181].mxu0  ;;  %v11362_v29 = vpop.f32.mrb[181].mxu1  ;;  %v18969_v59 = vld [vmem:[#allocation57_spill] sm:$0xff] }
0x109e   :  { %v11368_v50 = vadd.f32 %v11321_v4, %v18960_v8  ;;  %v11370_v62 = vadd.f32 %v11362_v29, %v18961_v9  ;;  %v11323_v2 = vpop.f32.mrb[182].mxu0  ;;  %v11364_v39 = vpop.f32.mrb[182].mxu1  ;;  %15191 = vtanh.f32 %v18490_v54  ;;  %v18971_v29 = vld [vmem:[#allocation59_spill] sm:$0xff] }
0x109f   :  { %v13744_v17 = vmul.f32 -1.442695, %v11367_v32  ;;  %v11324_v63 = vpop.f32.mrb[183].mxu0  ;;  %v11365_v14 = vpop.f32.mrb[183].mxu1  ;;  %v13746_v57 = vmul.f32 -1.442695, %v11369_v42 }
0x10a0   :  { %v13745_v10 = vmul.f32 -1.442695, %v11368_v50  ;;  %v18970_v32 = vld [vmem:[#allocation56_spill] sm:$0xff]  ;;  %v18972_v50 = vld [vmem:[#allocation39_spill] sm:$0xff] }
0x10a1   :  { %15193 = vpow2.f32 %v13744_v17 }
0x10a2   :  { %15195 = vpow2.f32 %v13745_v10 }
0x10a3   :  { %15197 = vtanh.f32 %v11370_v62 }
0x10a4   :  { %15199 = vpow2.f32 %v13746_v57 }
0x10a8   :  { %v15192_v19 = vpop.eup %15191 }
0x10a9   :  { %v11087_v27 = vmul.f32 %v15192_v19, %v15190_v25 }
0x10ab   :  { %v15194_v0 = vpop.eup %15193  ;;  %11395 = vst [vmem:[#allocation4 + $0x60] sm:$0xff] %v11087_v27  ;;  %v11401_v53 = vpack.c.bf16 %v11087_v27, %v11087_v27 }
0x10ac   :  { %v11380_v24 = vadd.f32 1.0, %v15194_v0  ;;  %v15196_v28 = vpop.eup %15195 }
0x10ad   :  { %v11381_v23 = vadd.f32 1.0, %v15196_v28  ;;  %11627 = vmatmul.mubr.bf16.vlgmr.msra.gmra.mrb[184].mxu0 %v11401_v53  ;;  %11668 = vmatmul.mubr.bf16.vlgmr.msra.gmra.mrb[184].mxu1 %v11401_v53 }
0x10ae   :  { %15201 = vrcp.f32 %v11380_v24  ;;  %11902 = vmatpush1.bf16.msra.mxu0 %v18353_v43  ;;  %11943 = vmatpush1.bf16.msra.mxu1 %v18355_v40  ;;  %v15198_v43 = vpop.eup %15197 }
0x10af   :  { %15203 = vrcp.f32 %v11381_v23  ;;  %11903 = vmatprep.subr.bf16.mxu0 %v18357_v51  ;;  %11944 = vmatprep.subr.bf16.mxu1 %v18359_v21  ;;  %v15200_v26 = vpop.eup %15199 }
0x10b0   :  { %11933 = vmatprep.mubr.bf16.mxu0 %v18704_v60  ;;  %11974 = vmatprep.mubr.bf16.mxu1 %v18704_v60  ;;  %v11382_v21 = vadd.f32 1.0, %v15200_v26 }
0x10b2   :  { %11904 = vmatpush1.bf16.msra.mxu0 %v18363_v44  ;;  %11945 = vmatpush1.bf16.msra.mxu1 %v18365_v1  ;;  %15205 = vrcp.f32 %v11382_v21  ;;  %v18973_v21 = vld [vmem:[#allocation41_spill] sm:$0xff] }
0x10b3   :  { %11905 = vmatprep.subr.bf16.mxu0 %v18369_v55  ;;  %11946 = vmatprep.subr.bf16.mxu1 %v18371_v36  ;;  %v18962_v55 = vld [vmem:[#allocation35_spill] sm:$0xff]  ;;  %v18963_v36 = vld [vmem:[#allocation48_spill] sm:$0xff] }
0x10b6   :  { %11906 = vmatpush1.bf16.msra.mxu0 %v18377_v11  ;;  %11947 = vmatpush1.bf16.msra.mxu1 %v18379_v20  ;;  %v18964_v11 = vld [vmem:[#allocation51_spill] sm:$0xff] }
0x10b7   :  { %11907 = vmatprep.subr.bf16.mxu0 %v18383_v6  ;;  %11948 = vmatprep.subr.bf16.mxu1 %v18385_v37  ;;  %v18965_v20 = vld [vmem:[#allocation71_spill] sm:$0xff]  ;;  %v18966_v6 = vld [vmem:[#allocation73_spill] sm:$0xff] }
0x10b8   :  { %v15202_v40 = vpop.eup %15201  ;;  %v18967_v37 = vld [vmem:[#allocation27_spill] sm:$0xff] }
0x10b9   :  { %v11391_v60 = vmul.f32 %v15202_v40, %v15198_v43  ;;  %v15204_v51 = vpop.eup %15203 }
0x10ba   :  { %v11390_v44 = vmul.f32 %v15204_v51, %v18412_v56  ;;  %11908 = vmatpush1.bf16.msra.mxu0 %v18389_v15  ;;  %11949 = vmatpush1.bf16.msra.mxu1 %v18391_v34  ;;  %v18968_v15 = vld [vmem:[#allocation79_spill] sm:$0xff]  ;;  %v14705_v56 = vld [vmem:[#allocation18 + $0x40] sm:$0xff]  }
0x10bb   :  { %11909 = vmatprep.subr.bf16.mxu0 %v18395_v38  ;;  %11950 = vmatprep.subr.bf16.mxu1 %v18397_v30 }
0x10bc   :  { %v18516_v1 = vadd.f32 %v11391_v60, %v11390_v44  ;;  %v15206_v34 = vpop.eup %15205 }
0x10be   :  { %15207 = vtanh.f32 %v18516_v1  ;;  %11910 = vmatpush1.bf16.msra.mxu0 %v18402_v47  ;;  %11951 = vmatpush1.bf16.msra.mxu1 %v18962_v55  ;;  %v18974_v55 = vld [vmem:[#allocation40_spill] sm:$0xff] }
0x10bf   :  { %11911 = vmatprep.subr.bf16.mxu0 %v18963_v36  ;;  %11952 = vmatprep.subr.bf16.mxu1 %v18964_v11 }
0x10c2   :  { %11912 = vmatpush1.bf16.msra.mxu0 %v18965_v20  ;;  %11953 = vmatpush1.bf16.msra.mxu1 %v18966_v6  ;;  %v18975_v6 = vld [vmem:[#allocation43_spill] sm:$0xff] }
0x10c3   :  { %11913 = vmatprep.subr.bf16.mxu0 %v18967_v37  ;;  %11954 = vmatprep.subr.bf16.mxu1 %v18968_v15  ;;  %v18976_v15 = vld [vmem:[#allocation50_spill] sm:$0xff] }
0x10c6   :  { %11914 = vmatpush1.bf16.msra.mxu0 %v18429_v13  ;;  %11955 = vmatpush1.bf16.msra.mxu1 %v18431_v18  ;;  %v14707_v13 = vld [vmem:[#allocation18 + $0x48] sm:$0xff]  }
0x10c7   :  { %11915 = vmatprep.subr.bf16.mxu0 %v18435_v61  ;;  %11956 = vmatprep.subr.bf16.mxu1 %v18437_v12  ;;  %v14708_v18 = vld [vmem:[#allocation18 + $0x8] sm:$0xff]   ;;  %v14709_v12 = vld [vmem:[#allocation18 + $0x50] sm:$0xff]   ;;  %v14712_v61 = vld [vmem:[#allocation18 + $0x18] sm:$0xff]  }
0x10c8   :  { %v15208_v38 = vpop.eup %15207 }
0x10c9   :  { %v11394_v30 = vmul.f32 %v15208_v38, %v15206_v34 }
0x10ca   :  { %11916 = vmatpush1.bf16.msra.mxu0 %v18441_v3  ;;  %11957 = vmatpush1.bf16.msra.mxu1 %v18443_v52  ;;  %v14710_v3 = vld [vmem:[#allocation18 + $0x10] sm:$0xff]   ;;  %v14711_v52 = vld [vmem:[#allocation18 + $0x58] sm:$0xff]  }
0x10cb   :  { %11396 = vst [vmem:[#allocation4 + $0x18] sm:$0xff] %v11394_v30  ;;  %v11708_v47 = vpack.c.bf16 %v11394_v30, %v11394_v30  ;;  %13895 = vmatprep.subr.bf16.mxu1 %v14705_v56  ;;  %13873 = vmatprep.subr.bf16.mxu0 %v14705_v56 }
0x10cd   :  { %11934 = vmatmul.mubr.bf16.vlgmr.msra.gmra.mrb[188].mxu0 %v11708_v47  ;;  %11975 = vmatmul.mubr.bf16.vlgmr.msra.gmra.mrb[188].mxu1 %v11708_v47 }
0x10ce   :  { %13896 = vmatpush3.bf16.msra.mxu1 %v14706_v35  ;;  %13874 = vmatpush3.bf16.msra.mxu0 %v14706_v35 }
0x10cf   :  { %13897 = vmatprep.subr.bf16.mxu1 %v14707_v13  ;;  %13875 = vmatprep.subr.bf16.mxu0 %v14707_v13 }
0x10d2   :  { %13898 = vmatpush3.bf16.msra.mxu1 %v14708_v18  ;;  %13876 = vmatpush3.bf16.msra.mxu0 %v14708_v18 }
0x10d3   :  { %13899 = vmatprep.subr.bf16.mxu1 %v14709_v12  ;;  %13877 = vmatprep.subr.bf16.mxu0 %v14709_v12 }
0x10d6   :  { %13900 = vmatpush3.bf16.msra.mxu1 %v14710_v3  ;;  %13878 = vmatpush3.bf16.msra.mxu0 %v14710_v3 }
0x10d7   :  { %13901 = vmatprep.subr.bf16.mxu1 %v14711_v52  ;;  %13879 = vmatprep.subr.bf16.mxu0 %v14711_v52 }
0x10da   :  { %13902 = vmatpush3.bf16.msra.mxu1 %v14712_v61  ;;  %13880 = vmatpush3.bf16.msra.mxu0 %v14712_v61 }
0x10db   :  { %13903 = vmatprep.subr.bf16.mxu1 %v14713_v58  ;;  %13881 = vmatprep.subr.bf16.mxu0 %v14713_v58 }
0x10de   :  { %13904 = vmatpush3.bf16.msra.mxu1 %v14714_v7  ;;  %13882 = vmatpush3.bf16.msra.mxu0 %v14714_v7 }
0x10df   :  { %13905 = vmatprep.subr.bf16.mxu1 %v14715_v31  ;;  %13883 = vmatprep.subr.bf16.mxu0 %v14715_v31 }
0x10e2   :  { %13906 = vmatpush3.bf16.msra.mxu1 %v14716_v33  ;;  %13884 = vmatpush3.bf16.msra.mxu0 %v14716_v33 }
0x10e3   :  { %13907 = vmatprep.subr.bf16.mxu1 %v14717_v49  ;;  %13885 = vmatprep.subr.bf16.mxu0 %v14717_v49 }
0x10e6   :  { %13908 = vmatpush3.bf16.msra.mxu1 %v14718_v22  ;;  %13886 = vmatpush3.bf16.msra.mxu0 %v14718_v22 }
0x10e7   :  { %13909 = vmatprep.subr.bf16.mxu1 %v14719_v5  ;;  %13887 = vmatprep.subr.bf16.mxu0 %v14719_v5 }
0x10ea   :  { %13910 = vmatpush3.bf16.msra.mxu1 %v14720_v45  ;;  %13888 = vmatpush3.bf16.msra.mxu0 %v14720_v45 }
0x1180   :  { %v11628_v46 = vpop.f32.mrb[184].mxu0  ;;  %v11669_v41 = vpop.f32.mrb[184].mxu1 }
0x1181   :  { %v11676_v16 = vadd.f32 %v11628_v46, %v18969_v59  ;;  %v11678_v48 = vadd.f32 %v11669_v41, %v18970_v32  ;;  %v11630_v42 = vpop.f32.mrb[185].mxu0  ;;  %v11671_v4 = vpop.f32.mrb[185].mxu1  ;;  %v15462_v32 = vmov 1966171168  }
0x1182   :  { %v11677_v8 = vadd.f32 %v11630_v42, %v18971_v29  ;;  %v11679_v9 = vadd.f32 %v11671_v4, %v18972_v50  ;;  %v11632_v62 = vpop.f32.mrb[186].mxu0  ;;  %v11673_v2 = vpop.f32.mrb[186].mxu1  ;;  %v12427_v4 = vld [vmem:[#allocation4] sm:$0xff]  ;;  %v18977_v50 = vld [vmem:[#allocation24_spill] sm:$0xff] }
0x1183   :  { %v13779_v39 = vmul.f32 -1.442695, %v11676_v16  ;;  %v11633_v17 = vpop.f32.mrb[187].mxu0  ;;  %v11674_v63 = vpop.f32.mrb[187].mxu1  ;;  %v13781_v10 = vmul.f32 -1.442695, %v11678_v48  ;;  %v12024_v48 = vunpack.c.l.s4 %v15462_v32  ;;  %v12429_v29 = vpack.c.bf16 %v12427_v4, %v12427_v4 }
0x1184   :  { %v13780_v14 = vmul.f32 -1.442695, %v11677_v8  ;;  %v18978_v63 = vlaneseq }
0x1185   :  { %15209 = vpow2.f32 %v13779_v39  ;;  %v12025_v8 = vunpack.c.0.s8 %v12024_v48 }
0x1186   :  { %15211 = vpow2.f32 %v13780_v14  ;;  %vm18545_vm0 = vcmp.lt.s32.totalorder %v18978_v63, 256 }
0x1187   :  { %15213 = vtanh.f32 %v11679_v9  ;;  %v12028_v9 = vsub.s32 %v12025_v8, %v18977_v50 }
0x1188   :  { %15215 = vpow2.f32 %v13781_v10 }
0x118f   :  { %v15210_v25 = vpop.eup %15209 }
0x1190   :  { %v11689_v19 = vadd.f32 1.0, %v15210_v25  ;;  %v15212_v57 = vpop.eup %15211 }
0x1191   :  { %v11690_v27 = vadd.f32 1.0, %v15212_v57  ;;  %v15214_v0 = vpop.eup %15213 }
0x1192   :  { %15217 = vrcp.f32 %v11689_v19  ;;  %v15216_v24 = vpop.eup %15215 }
0x1193   :  { %15219 = vrcp.f32 %v11690_v27  ;;  %v11691_v43 = vadd.f32 1.0, %v15216_v24 }
0x1195   :  { %15221 = vrcp.f32 %v11691_v43 }
0x119c   :  { %v15218_v53 = vpop.eup %15217 }
0x119d   :  { %v11700_v28 = vmul.f32 %v15218_v53, %v15214_v0  ;;  %v15220_v23 = vpop.eup %15219 }
0x119e   :  { %v11699_v26 = vmul.f32 %v15220_v23, %v18490_v54 }
0x119f   :  { %v15222_v13 = vpop.eup %15221 }
0x11a0   :  { %v11935_v40 = vpop.f32.mrb[188].mxu0  ;;  %v11976_v60 = vpop.f32.mrb[188].mxu1  ;;  %v11701_v51 = vadd.f32 %v11700_v28, %v11699_v26 }
0x11a1   :  { %v11983_v44 = vadd.f32 %v11935_v40, %v18973_v21  ;;  %v11985_v36 = vadd.f32 %v11976_v60, %v18974_v55  ;;  %v11937_v11 = vpop.f32.mrb[189].mxu0  ;;  %v11978_v20 = vpop.f32.mrb[189].mxu1 }
0x11a2   :  { %v11984_v37 = vadd.f32 %v11937_v11, %v18975_v6  ;;  %v11986_v34 = vadd.f32 %v11978_v20, %v18976_v15  ;;  %v11939_v38 = vpop.f32.mrb[190].mxu0  ;;  %v11980_v30 = vpop.f32.mrb[190].mxu1  ;;  %15223 = vtanh.f32 %v11701_v51 }
0x11a3   :  { %v13814_v47 = vmul.f32 -1.442695, %v11983_v44  ;;  %v11940_v56 = vpop.f32.mrb[191].mxu0  ;;  %v11981_v54 = vpop.f32.mrb[191].mxu1  ;;  %v13816_v12 = vmul.f32 -1.442695, %v11985_v36 }
0x11a4   :  { %v13815_v35 = vmul.f32 -1.442695, %v11984_v37 }
0x11a5   :  { %15225 = vpow2.f32 %v13814_v47 }
0x11a6   :  { %15227 = vpow2.f32 %v13815_v35 }
0x11a7   :  { %15229 = vtanh.f32 %v11986_v34 }
0x11a8   :  { %15231 = vpow2.f32 %v13816_v12 }
0x11ac   :  { %v15224_v18 = vpop.eup %15223 }
0x11ad   :  { %v11703_v3 = vmul.f32 %v15224_v18, %v15222_v13 }
0x11af   :  { %v15226_v52 = vpop.eup %15225  ;;  %12011 = vst [vmem:[#allocation4 + $0x70] sm:$0xff] %v11703_v3 }
0x11b0   :  { %v11996_v61 = vadd.f32 1.0, %v15226_v52  ;;  %v15228_v58 = vpop.eup %15227 }
0x11b1   :  { %v11997_v7 = vadd.f32 1.0, %v15228_v58  ;;  %v15230_v31 = vpop.eup %15229  ;;  %v12472_v58 = vand.u32 127, %v18978_v63 }
0x11b2   :  { %15233 = vrcp.f32 %v11996_v61  ;;  %v15232_v33 = vpop.eup %15231 }
0x11b3   :  { %15235 = vrcp.f32 %v11997_v7  ;;  %v11998_v45 = vadd.f32 1.0, %v15232_v33  ;;  %vm12473_vm1 = vcmp.lt.s32.totalorder %v12472_v58, 5 }
0x11b5   :  { %15237 = vrcp.f32 %v11998_v45 }
0x11bc   :  { %v15234_v49 = vpop.eup %15233 }
0x11bd   :  { %v12007_v22 = vmul.f32 %v15234_v49, %v15230_v31  ;;  %v15236_v5 = vpop.eup %15235  ;;  %v13848_v31 = vld [vmem:[%s18583_s11] ss:$0 sm:$0xff] }
0x11be   :  { %v12006_v46 = vmul.f32 %v15236_v5, %v18516_v1 }
0x11bf   :  { %v15238_v59 = vpop.eup %15237 }
0x11c0   :  { %v12008_v41 = vadd.f32 %v12007_v22, %v12006_v46 }
0x11c2   :  { %15239 = vtanh.f32 %v12008_v41 }
0x11cc   :  { %v15240_v16 = vpop.eup %15239 }
0x11cd   :  { %v12010_v42 = vmul.f32 %v15240_v16, %v15238_v59 }
0x11cf   :  { %12012 = vst [vmem:[#allocation4 + $0x8] sm:$0xff] %v12010_v42  ;;  %v12430_v1 = vpack.c.bf16 %v12010_v42, %v12010_v42 }
0x11d1   :  { %12463 = vmatprep.mubr.bf16.mxu1 %v12430_v1 }
0x11d2   :  { %12464 = vmatmul.mubr.bf16.vlgmr.msra.gmra.mrb[192].mxu1 %v12429_v29 }
0x11d6   :  { %v14721_v62 = vld [vmem:[%s12017_s26] ss:$8 sps:$4 sm:$0xff]   ;;  %v14725_v27 = vld [vmem:[%s12136_s6 + $0x4] ss:$8 sps:$4 sm:$0xff]  }
0x11d7   :  { %v14722_v2 = vld [vmem:[%s12048_s19] ss:$8 sps:$4 sm:$0xff]   ;;  %v12029_v39 = vrot.slane %v14721_v62, %v12028_v9  ;;  %v14726_v53 = vld [vmem:[%s12164_s7 + $0x4] ss:$8 sps:$4 sm:$0xff]   ;;  %v12148_v23 = vrot.slane %v14725_v27, %v12028_v9 }
0x11d8   :  { %v14723_v17 = vld [vmem:[%s12077_s28] ss:$8 sps:$4 sm:$0xff]   ;;  %v12060_v10 = vrot.slane %v14722_v2, %v12028_v9  ;;  %v14727_v43 = vld [vmem:[%s12193_s0 + $0x4] ss:$8 sps:$4 sm:$0xff]   ;;  %v12176_v60 = vrot.slane %v14726_v53, %v12028_v9 }
0x11d9   :  { %v14724_v25 = vld [vmem:[%s12106_s3] ss:$8 sps:$4 sm:$0xff]   ;;  %v12036_v19 = vrot.slane %v12029_v39, %v12028_v9  ;;  %v12089_v57 = vrot.slane %v14723_v17, %v12028_v9  ;;  %v14728_v51 = vld [vmem:[%s12222_s5 + $0x4] ss:$8 sps:$4 sm:$0xff]   ;;  %v12155_v44 = vrot.slane %v12148_v23, %v12028_v9  ;;  %v12205_v55 = vrot.slane %v14727_v43, %v12028_v9 }
0x11da   :  { %v12061_v0 = vcombine.high %v12060_v10, %v12060_v10  ;;  %v12118_v24 = vrot.slane %v14724_v25, %v12028_v9  ;;  %v12177_v11 = vcombine.high %v12176_v60, %v12176_v60  ;;  %v12234_v20 = vrot.slane %v14728_v51, %v12028_v9 }
0x11db   :  { %12042 = vst.msk [vmem:[#allocation5] ss:$8 sm:$0x3] %vm18545_vm0, %v12036_v19  ;;  %v12096_v28 = vrot.slane %v12089_v57, %v12028_v9  ;;  %12158 = vst.msk [vmem:[#allocation5 + $0x4] ss:$8 sm:$0x3] %vm18545_vm0, %v12155_v44  ;;  %v12212_v6 = vrot.slane %v12205_v55, %v12028_v9 }
0x11dc   :  { %v12068_v26 = vrot.slane %v12061_v0, %v12028_v9  ;;  %v12119_v40 = vcombine.high %v12118_v24, %v12118_v24  ;;  %v12184_v15 = vrot.slane %v12177_v11, %v12028_v9  ;;  %v12235_v34 = vcombine.high %v12234_v20, %v12234_v20 }
0x11dd   :  { %v12097_v21 = vcombine.high %v12096_v28, %v12096_v28  ;;  %v12213_v38 = vcombine.high %v12212_v6, %v12212_v6 }
0x11de   :  { %12071 = vst.msk [vmem:[#allocation5 + $0x1] ss:$8 sm:$0x3] %vm18545_vm0, %v12068_v26  ;;  %v12126_v36 = vrot.slane %v12119_v40, %v12028_v9  ;;  %12187 = vst.msk [vmem:[#allocation5 + $0x5] ss:$8 sm:$0x3] %vm18545_vm0, %v12184_v15  ;;  %v12242_v30 = vrot.slane %v12235_v34, %v12028_v9 }
0x11df   :  { %12100 = vst.msk [vmem:[#allocation5 + $0x2] ss:$8 sm:$0x3] %vm18545_vm0, %v12097_v21  ;;  %12216 = vst.msk [vmem:[#allocation5 + $0x6] ss:$8 sm:$0x3] %vm18545_vm0, %v12213_v38 }
0x11e0   :  { %v12127_v37 = vcombine.high %v12126_v36, %v12126_v36  ;;  %v12243_v47 = vcombine.high %v12242_v30, %v12242_v30 }
0x11e2   :  { %12130 = vst.msk [vmem:[#allocation5 + $0x3] ss:$8 sm:$0x3] %vm18545_vm0, %v12127_v37  ;;  %12246 = vst.msk [vmem:[#allocation5 + $0x7] ss:$8 sm:$0x3] %vm18545_vm0, %v12243_v47 }
0x11e9   :  { %v12249_v56 = vld [vmem:[#allocation5 + $0x8] sm:$0xff]  ;;  %v12248_v54 = vld [vmem:[#allocation5] sm:$0xff] }
0x11ea   :  { %v12251_v35 = vpack.c.bf16 %v12249_v56, %v12249_v56  ;;  %v12250_v13 = vpack.c.bf16 %v12248_v54, %v12248_v54 }
0x11ec   :  { %12419 = vmatprep.mubr.bf16.mxu0 %v12251_v35 }
0x11ed   :  { %12420 = vmatmul.mubr.bf16.vlgmr.msra.gmra.mrb[192].mxu0 %v12250_v13 }
0x12a5   :  { %v13911_v18 = vpop.f32.mrb[192].mxu1 }
0x12a6   :  { %v13912_v12 = vpop.f32.mrb[193].mxu1 }
0x12a7   :  { %v13913_v3 = vadd.f32 %v13912_v12, %v13911_v18  ;;  %v13914_v52 = vpop.f32.mrb[194].mxu1 }
0x12a8   :  { %v13915_v61 = vpop.f32.mrb[195].mxu1 }
0x12a9   :  { %v12466_v45 = vadd.f32 %v13913_v3, %v13848_v31 }
0x12c0   :  { %v13889_v7 = vpop.f32.mrb[192].mxu0 }
0x12c1   :  { %v13890_v33 = vpop.f32.mrb[193].mxu0 }
0x12c2   :  { %v13891_v49 = vadd.f32 %v13890_v33, %v13889_v7  ;;  %v13892_v22 = vpop.f32.mrb[194].mxu0 }
0x12c3   :  { %v13893_v5 = vpop.f32.mrb[195].mxu0 }
0x12c4   :  { %v12422_v46 = vadd.f32 %v13891_v49, %v13848_v31 }
0x12c6   :  { %v12474_v41 = vsel %vm12473_vm1, %v12422_v46, %v12466_v45 }
0x12c7   :  { %12475 = vst [vmem:[%s18584_s12] sm:$0xff] %v12474_v41 }
0x12c8   :  { %12480 = vsyncpa [#allocation7], 1 }
0x12c9   :  { %12481 = vsyncpa [#allocation11], 1 }
0x12ca   :  { %12482 = vsyncpa [#allocation14], 1 }
0x12cb   :  { %12483 = vsyncpa [#allocation17], 1 }
0x12cc   :  { %12484 = vsyncpa [#allocation8], 1 }

</bundles_post_ra>
